<compile_context>
chip_gen: v7x
topology: tpu7x:2x2x1
jax: 0.10.0
libtpu: 0.0.40
codegen_flags: <defaults>
</compile_context>

<pallas_src>
import functools
import math

import jax
import jax.numpy as jnp
from jax.experimental import pallas as pl
from jax.experimental.pallas import tpu as pltpu

WINDOW_SIZES = (4, 8, 16, 32, 32)      # FeatureExtractor default window_sizes
CONV_CHANNELS = (4, 8, 16, 32, 64)     # CNNlayer conv output channels
PAD = 4                                # CNNlayer conv padding (default)
BN_EPS = 1e-5


def _round_up(x, m):
    return ((x + m - 1) // m) * m


# ---------------------------------------------------------------------------
# Kernel 1: Conv1d(as matmul, transposed) + folded-BN + ReLU + MaxPool1d(2,2)
# ---------------------------------------------------------------------------
def _conv_bn_relu_pool_kernel(a_ref, w_ref, shift_ref, o_ref, *, lp_pad):
    # a_ref: (1, K, 2*lp_pad) bf16, columns = [even conv positions | odd conv positions]
    # w_ref: (cout, K) bf16 with BN scale folded; shift_ref: (cout, 1) f32
    acc = jnp.dot(w_ref[...], a_ref[0], preferred_element_type=jnp.float32)
    y = jnp.maximum(acc + shift_ref[...], 0.0)            # f32 epilogue (v5e friendly)
    pooled = jnp.maximum(y[:, :lp_pad], y[:, lp_pad:])    # fused MaxPool1d(2,2)
    o_ref[0] = pooled.astype(o_ref.dtype)                 # lane-dense (cout, lp_pad) store


# ---------------------------------------------------------------------------
# Kernel 2: Conv1d(as matmul) + folded-BN + ReLU + AdaptiveMaxPool1d(out_size)
# ---------------------------------------------------------------------------
def _conv_bn_relu_adaptpool_kernel(a_ref, w_ref, shift_ref, o_ref, *, lout, out_size):
    acc = jnp.dot(w_ref[...], a_ref[0], preferred_element_type=jnp.float32)
    y = jnp.maximum(acc + shift_ref[...], 0.0)            # (cout, lout_pad), >= 0
    col = jax.lax.broadcasted_iota(jnp.int32, y.shape, 1)
    segs = []
    for i in range(out_size):                             # PyTorch adaptive segment bounds
        s = (i * lout) // out_size
        e = ((i + 1) * lout + out_size - 1) // out_size
        m = (col >= s) & (col < e)
        segs.append(jnp.max(jnp.where(m, y, 0.0), axis=-1, keepdims=True))
    o_ref[0] = jnp.concatenate(segs, axis=-1).astype(o_ref.dtype)


# ---------------------------------------------------------------------------
# Kernel 3: ClassifierMLP (1280 -> 320 -> 80 -> num_classes), Dropout = identity
# ---------------------------------------------------------------------------
def _mlp_kernel(f_ref, w1_ref, b1_ref, w2_ref, b2_ref, w3_ref, b3_ref, o_ref):
    y = jnp.dot(f_ref[...], w1_ref[...], preferred_element_type=jnp.float32) + b1_ref[...]
    y = jnp.maximum(y, 0.0).astype(w2_ref.dtype)
    y = jnp.dot(y, w2_ref[...], preferred_element_type=jnp.float32) + b2_ref[...]
    y = jnp.maximum(y, 0.0).astype(w3_ref.dtype)
    y = jnp.dot(y, w3_ref[...], preferred_element_type=jnp.float32) + b3_ref[...]
    o_ref[...] = y.astype(o_ref.dtype)


# ---------------------------------------------------------------------------
# Host-side (XLA glue) wrappers
# ---------------------------------------------------------------------------
def _fold_bn(w, b, gamma, beta, mean, var):
    """Fold eval-mode BatchNorm1d into the conv weights / a per-channel shift."""
    cout = w.shape[0]
    s = gamma / jnp.sqrt(var + BN_EPS)
    wmat = (w.reshape(cout, -1) * s[:, None]).astype(jnp.bfloat16)     # (cout, cin*k)
    shift = ((b - mean) * s + beta).reshape(cout, 1).astype(jnp.float32)
    return wmat, shift


def conv_bn_relu_maxpool2(h, l_valid, wmat, shift, k):
    """Layers 1-4 of a CNNlayer: Conv1d(k,pad=4)+BN+ReLU+MaxPool1d(2,2) fused kernel."""
    n, cin, _ = h.shape
    xp = jnp.pad(h[:, :, :l_valid], ((0, 0), (0, 0), (PAD, PAD)))
    lout = l_valid + 2 * PAD - k + 1
    lp = lout // 2                                  # MaxPool1d(2,2) output length
    lp_pad = _round_up(lp, 128)
    # im2col with output positions split into [even | odd] lane-aligned halves.
    ev = jnp.stack([xp[:, :, j:j + 2 * lp:2] for j in range(k)], axis=2)          # (n,cin,k,lp)
    od = jnp.stack([xp[:, :, j + 1:j + 1 + 2 * lp:2] for j in range(k)], axis=2)  # (n,cin,k,lp)
    padw = ((0, 0), (0, 0), (0, 0), (0, lp_pad - lp))
    a = jnp.concatenate([jnp.pad(ev, padw), jnp.pad(od, padw)], axis=3)
    a = a.reshape(n, cin * k, 2 * lp_pad).astype(jnp.bfloat16)
    cout = wmat.shape[0]
    out = pl.pallas_call(
        functools.partial(_conv_bn_relu_pool_kernel, lp_pad=lp_pad),
        out_shape=jax.ShapeDtypeStruct((n, cout, lp_pad), jnp.bfloat16),
        grid=(n,),
        in_specs=[
            pl.BlockSpec((1, cin * k, 2 * lp_pad), lambda b: (b, 0, 0)),
            pl.BlockSpec((cout, cin * k), lambda b: (0, 0)),
            pl.BlockSpec((cout, 1), lambda b: (0, 0)),
        ],
        out_specs=pl.BlockSpec((1, cout, lp_pad), lambda b: (b, 0, 0)),
        compiler_params=pltpu.CompilerParams(dimension_semantics=("parallel",)),
    )(a, wmat, shift)
    return out, lp


def conv_bn_relu_adaptmaxpool(h, l_valid, wmat, shift, k, out_size=4):
    """Layer 5: Conv1d(k,pad=4)+BN+ReLU+AdaptiveMaxPool1d(out_size) fused kernel."""
    n, cin, _ = h.shape
    xp = jnp.pad(h[:, :, :l_valid], ((0, 0), (0, 0), (PAD, PAD)))
    lout = l_valid + 2 * PAD - k + 1
    lout_pad = _round_up(lout, 128)
    a = jnp.stack([xp[:, :, j:j + lout] for j in range(k)], axis=2)    # (n,cin,k,lout)
    a = jnp.pad(a, ((0, 0), (0, 0), (0, 0), (0, lout_pad - lout)))
    a = a.reshape(n, cin * k, lout_pad).astype(jnp.bfloat16)
    cout = wmat.shape[0]
    out = pl.pallas_call(
        functools.partial(_conv_bn_relu_adaptpool_kernel, lout=lout, out_size=out_size),
        out_shape=jax.ShapeDtypeStruct((n, cout, out_size), jnp.float32),
        grid=(n,),
        in_specs=[
            pl.BlockSpec((1, cin * k, lout_pad), lambda b: (b, 0, 0)),
            pl.BlockSpec((cout, cin * k), lambda b: (0, 0)),
            pl.BlockSpec((cout, 1), lambda b: (0, 0)),
        ],
        out_specs=pl.BlockSpec((1, cout, out_size), lambda b: (b, 0, 0)),
        compiler_params=pltpu.CompilerParams(dimension_semantics=("parallel",)),
    )(a, wmat, shift)
    return out


def _merge_branch_params(layers_a, layers_b):
    """Merge two structurally identical CNN branches (both ws=32) into one branch
    with block-diagonal conv weights; layer 1 shares the raw input (plain cout concat)."""
    merged = []
    for li, (la, lb) in enumerate(zip(layers_a, layers_b)):
        wa, wb = la["w"], lb["w"]
        if li == 0:
            w = jnp.concatenate([wa, wb], axis=0)
        else:
            ca, cia, k = wa.shape
            cb, cib, _ = wb.shape
            top = jnp.concatenate([wa, jnp.zeros((ca, cib, k), wa.dtype)], axis=1)
            bot = jnp.concatenate([jnp.zeros((cb, cia, k), wb.dtype), wb], axis=1)
            w = jnp.concatenate([top, bot], axis=0)
        merged.append({
            "w": w,
            **{name: jnp.concatenate([la[name], lb[name]], axis=0)
               for name in ("b", "gamma", "beta", "mean", "var")},
        })
    return merged


def mlp_forward(f, mp):
    n = f.shape[0]
    n_pad = _round_up(max(n, 8), 8)
    f_p = jnp.pad(f, ((0, n_pad - n), (0, 0))).astype(jnp.bfloat16)
    w1 = mp["w1"].T.astype(jnp.bfloat16)
    w2 = mp["w2"].T.astype(jnp.bfloat16)
    w3 = mp["w3"].T.astype(jnp.bfloat16)
    b1 = mp["b1"].reshape(1, -1)
    b2 = mp["b2"].reshape(1, -1)
    b3 = mp["b3"].reshape(1, -1)
    out = pl.pallas_call(
        _mlp_kernel,
        out_shape=jax.ShapeDtypeStruct((n_pad, w3.shape[1]), jnp.float32),
    )(f_p, w1, b1, w2, b2, w3, b3)
    return out[:n]


# ---------------------------------------------------------------------------
# Parameters (deterministic synthetic init, PyTorch-equivalent shapes)
# ---------------------------------------------------------------------------
def init_params(key, in_channel, num_classes):
    params = {"cnn": [], "mlp": {}}
    for ws in WINDOW_SIZES:
        layers = []
        cin = in_channel
        for cout in CONV_CHANNELS:
            key, kw, kb, kg, kbe, km, kv = jax.random.split(key, 7)
            fan_in = cin * ws
            layers.append({
                "w": jax.random.normal(kw, (cout, cin, ws), jnp.float32) / math.sqrt(fan_in),
                "b": 0.05 * jax.random.normal(kb, (cout,), jnp.float32),
                "gamma": 1.0 + 0.1 * jax.random.normal(kg, (cout,), jnp.float32),
                "beta": 0.1 * jax.random.normal(kbe, (cout,), jnp.float32),
                "mean": 0.1 * jax.random.normal(km, (cout,), jnp.float32),
                "var": 1.0 + 0.1 * jax.random.uniform(kv, (cout,), jnp.float32),
            })
            cin = cout
        params["cnn"].append(layers)
    dims = [(1280, 320), (320, 80), (80, num_classes)]   # ClassifierMLP(1280, nc)
    for idx, (din, dout) in enumerate(dims, start=1):
        key, kw, kb = jax.random.split(key, 3)
        params["mlp"][f"w{idx}"] = jax.random.normal(kw, (dout, din), jnp.float32) / math.sqrt(din)
        params["mlp"][f"b{idx}"] = 0.05 * jax.random.normal(kb, (dout,), jnp.float32)
    return params


# ---------------------------------------------------------------------------
# BaseModel forward (eval mode)
# ---------------------------------------------------------------------------
def base_model_forward(params, x):
    n = x.shape[0]
    # The two ws=32 branches are merged; their flattened features stay adjacent in
    # channel order, so the final concatenation matches PyTorch's order exactly.
    branches = [
        (WINDOW_SIZES[0], params["cnn"][0]),
        (WINDOW_SIZES[1], params["cnn"][1]),
        (WINDOW_SIZES[2], params["cnn"][2]),
        (WINDOW_SIZES[3], _merge_branch_params(params["cnn"][3], params["cnn"][4])),
    ]
    feats = []
    for ws, layers in branches:
        h, l_valid = x, x.shape[2]
        for li in range(4):                                 # layers 1-4: conv+bn+relu+maxpool
            lyr = layers[li]
            wmat, shift = _fold_bn(lyr["w"], lyr["b"], lyr["gamma"], lyr["beta"],
                                   lyr["mean"], lyr["var"])
            h, l_valid = conv_bn_relu_maxpool2(h, l_valid, wmat, shift, ws)
        lyr = layers[4]                                     # layer 5: conv+bn+relu+adaptmaxpool(4)
        wmat, shift = _fold_bn(lyr["w"], lyr["b"], lyr["gamma"], lyr["beta"],
                               lyr["mean"], lyr["var"])
        pooled = conv_bn_relu_adaptmaxpool(h, l_valid, wmat, shift, ws, out_size=4)
        feats.append(pooled.reshape(n, -1))                 # nn.Flatten(): channel-major
    f = jnp.concatenate(feats, axis=1)                      # (n, 1280)
    return mlp_forward(f, params["mlp"])                    # ClassifierMLP, last=None


if __name__ == "__main__":
    key = jax.random.PRNGKey(0)
    pkey, xkey = jax.random.split(key)
    in_channel, num_classes = 4, 3
    batch, length = 2, 1024   # length must be large enough for the 5x-downsampled k=32 branch

    params = init_params(pkey, in_channel, num_classes)
    x = jax.random.normal(xkey, (batch, in_channel, length), jnp.float32)

    fwd = jax.jit(base_model_forward)
    preds = fwd(params, x)
    jax.block_until_ready(preds)
    assert preds.shape == (batch, num_classes)
    assert bool(jnp.all(jnp.isfinite(preds)))
    print("KERNEL_OK")
</pallas_src>

<mosaic_0001>
module attributes {stable_mosaic.version = 11 : i64} {
  func.func @_conv_bn_relu_pool_kernel(%arg0: i32, %arg1: memref<1x16x1280xbf16, #tpu.memory_space<vmem>>, %arg2: memref<4x16xbf16, #tpu.memory_space<vmem>>, %arg3: memref<4x1xf32, #tpu.memory_space<vmem>>, %arg4: memref<1x4x640xbf16, #tpu.memory_space<vmem>>) attributes {dimension_semantics = [#tpu.dimension_semantics<parallel>], iteration_bounds = array<i64: 2>, scalar_prefetch = 0 : i64, scratch_operands = 0 : i64, tpu.core_type = #tpu.core_type<tc>, window_params = [{transform_indices = @transform_0, window_bounds = array<i64: 1, 16, 1280>}, {pipeline_mode = #tpu.pipeline_mode<synchronous>, transform_indices = @transform_1, window_bounds = array<i64: 4, 16>}, {pipeline_mode = #tpu.pipeline_mode<synchronous>, transform_indices = @transform_2, window_bounds = array<i64: 4, 1>}, {transform_indices = @transform_3, window_bounds = array<i64: 1, 4, 640>}]} {
    %c0 = arith.constant 0 : index
    %c0_0 = arith.constant 0 : index
    %0 = vector.load %arg2[%c0, %c0_0] : memref<4x16xbf16, #tpu.memory_space<vmem>>, vector<4x16xbf16>
    %c0_1 = arith.constant 0 : index
    %c0_2 = arith.constant 0 : index
    %c0_3 = arith.constant 0 : index
    %1 = vector.load %arg1[%c0_1, %c0_2, %c0_3] : memref<1x16x1280xbf16, #tpu.memory_space<vmem>>, vector<1x16x1280xbf16>
    %2 = vector.shape_cast %1 : vector<1x16x1280xbf16> to vector<16x1280xbf16>
    %cst = arith.constant dense<0.000000e+00> : vector<4x1280xf32>
    %3 = tpu.matmul %0, %2, %cst {dimension_numbers = #tpu.dot_dimension_numbers<[1], [0], [0], [1], [0, 0, 1, 1], [], []>} : vector<4x16xbf16>, vector<16x1280xbf16>, vector<4x1280xf32> -> vector<4x1280xf32>
    %c0_4 = arith.constant 0 : index
    %c0_5 = arith.constant 0 : index
    %4 = vector.load %arg3[%c0_4, %c0_5] : memref<4x1xf32, #tpu.memory_space<vmem>>, vector<4x1xf32>
    %5 = vector.broadcast %4 : vector<4x1xf32> to vector<4x1280xf32>
    %6 = arith.addf %3, %5 : vector<4x1280xf32>
    %cst_6 = arith.constant 0.000000e+00 : f32
    %7 = vector.broadcast %cst_6 : f32 to vector<4x1280xf32>
    %8 = arith.maximumf %6, %7 : vector<4x1280xf32>
    %9 = vector.extract_strided_slice %8 {offsets = [0, 0], sizes = [4, 640], strides = [1, 1]} : vector<4x1280xf32> to vector<4x640xf32>
    %10 = vector.extract_strided_slice %8 {offsets = [0, 640], sizes = [4, 640], strides = [1, 1]} : vector<4x1280xf32> to vector<4x640xf32>
    %11 = arith.maximumf %9, %10 : vector<4x640xf32>
    %12 = arith.truncf %11 : vector<4x640xf32> to vector<4x640xbf16>
    %c0_7 = arith.constant 0 : index
    %c0_8 = arith.constant 0 : index
    %c0_9 = arith.constant 0 : index
    %13 = vector.load %arg4[%c0_7, %c0_8, %c0_9] : memref<1x4x640xbf16, #tpu.memory_space<vmem>>, vector<1x4x640xbf16>
    %14 = vector.shape_cast %13 : vector<1x4x640xbf16> to vector<4x640xbf16>
    %15 = vector.shape_cast %12 : vector<4x640xbf16> to vector<1x4x640xbf16>
    tpu.vector_store %arg4[%c0_7, %c0_8, %c0_9], %15 {strides = array<i32>} : memref<1x4x640xbf16, #tpu.memory_space<vmem>>, vector<1x4x640xbf16>,
    return
  }
  func.func @transform_0(%arg0: i32) -> (i32, i32, i32) {
    %c0_i32 = arith.constant 0 : i32
    %c0_i32_0 = arith.constant 0 : i32
    %c0_i32_1 = arith.constant 0 : i32
    return %arg0, %c0_i32, %c0_i32_0 : i32, i32, i32
  }
  func.func @transform_1(%arg0: i32) -> (i32, i32) {
    %c0_i32 = arith.constant 0 : i32
    %c0_i32_0 = arith.constant 0 : i32
    %c0_i32_1 = arith.constant 0 : i32
    return %c0_i32, %c0_i32_0 : i32, i32
  }
  func.func @transform_2(%arg0: i32) -> (i32, i32) {
    %c0_i32 = arith.constant 0 : i32
    %c0_i32_0 = arith.constant 0 : i32
    %c0_i32_1 = arith.constant 0 : i32
    return %c0_i32, %c0_i32_0 : i32, i32
  }
  func.func @transform_3(%arg0: i32) -> (i32, i32, i32) {
    %c0_i32 = arith.constant 0 : i32
    %c0_i32_0 = arith.constant 0 : i32
    %c0_i32_1 = arith.constant 0 : i32
    return %arg0, %c0_i32, %c0_i32_0 : i32, i32, i32
  }
}

module attributes {stable_mosaic.version = 11 : i64} {
  func.func @_conv_bn_relu_pool_kernel(%arg0: i32, %arg1: memref<1x16x768xbf16, #tpu.memory_space<vmem>>, %arg2: memref<8x16xbf16, #tpu.memory_space<vmem>>, %arg3: memref<8x1xf32, #tpu.memory_space<vmem>>, %arg4: memref<1x8x384xbf16, #tpu.memory_space<vmem>>) attributes {dimension_semantics = [#tpu.dimension_semantics<parallel>], iteration_bounds = array<i64: 2>, scalar_prefetch = 0 : i64, scratch_operands = 0 : i64, tpu.core_type = #tpu.core_type<tc>, window_params = [{transform_indices = @transform_0, window_bounds = array<i64: 1, 16, 768>}, {pipeline_mode = #tpu.pipeline_mode<synchronous>, transform_indices = @transform_1, window_bounds = array<i64: 8, 16>}, {pipeline_mode = #tpu.pipeline_mode<synchronous>, transform_indices = @transform_2, window_bounds = array<i64: 8, 1>}, {transform_indices = @transform_3, window_bounds = array<i64: 1, 8, 384>}]} {
    %c0 = arith.constant 0 : index
    %c0_0 = arith.constant 0 : index
    %0 = vector.load %arg2[%c0, %c0_0] : memref<8x16xbf16, #tpu.memory_space<vmem>>, vector<8x16xbf16>
    %c0_1 = arith.constant 0 : index
    %c0_2 = arith.constant 0 : index
    %c0_3 = arith.constant 0 : index
    %1 = vector.load %arg1[%c0_1, %c0_2, %c0_3] : memref<1x16x768xbf16, #tpu.memory_space<vmem>>, vector<1x16x768xbf16>
    %2 = vector.shape_cast %1 : vector<1x16x768xbf16> to vector<16x768xbf16>
    %cst = arith.constant dense<0.000000e+00> : vector<8x768xf32>
    %3 = tpu.matmul %0, %2, %cst {dimension_numbers = #tpu.dot_dimension_numbers<[1], [0], [0], [1], [0, 0, 1, 1], [], []>} : vector<8x16xbf16>, vector<16x768xbf16>, vector<8x768xf32> -> vector<8x768xf32>
    %c0_4 = arith.constant 0 : index
    %c0_5 = arith.constant 0 : index
    %4 = vector.load %arg3[%c0_4, %c0_5] : memref<8x1xf32, #tpu.memory_space<vmem>>, vector<8x1xf32>
    %5 = vector.broadcast %4 : vector<8x1xf32> to vector<8x768xf32>
    %6 = arith.addf %3, %5 : vector<8x768xf32>
    %cst_6 = arith.constant 0.000000e+00 : f32
    %7 = vector.broadcast %cst_6 : f32 to vector<8x768xf32>
    %8 = arith.maximumf %6, %7 : vector<8x768xf32>
    %9 = vector.extract_strided_slice %8 {offsets = [0, 0], sizes = [8, 384], strides = [1, 1]} : vector<8x768xf32> to vector<8x384xf32>
    %10 = vector.extract_strided_slice %8 {offsets = [0, 384], sizes = [8, 384], strides = [1, 1]} : vector<8x768xf32> to vector<8x384xf32>
    %11 = arith.maximumf %9, %10 : vector<8x384xf32>
    %12 = arith.truncf %11 : vector<8x384xf32> to vector<8x384xbf16>
    %c0_7 = arith.constant 0 : index
    %c0_8 = arith.constant 0 : index
    %c0_9 = arith.constant 0 : index
    %13 = vector.load %arg4[%c0_7, %c0_8, %c0_9] : memref<1x8x384xbf16, #tpu.memory_space<vmem>>, vector<1x8x384xbf16>
    %14 = vector.shape_cast %13 : vector<1x8x384xbf16> to vector<8x384xbf16>
    %15 = vector.shape_cast %12 : vector<8x384xbf16> to vector<1x8x384xbf16>
    tpu.vector_store %arg4[%c0_7, %c0_8, %c0_9], %15 {strides = array<i32>} : memref<1x8x384xbf16, #tpu.memory_space<vmem>>, vector<1x8x384xbf16>,
    return
  }
  func.func @transform_0(%arg0: i32) -> (i32, i32, i32) {
    %c0_i32 = arith.constant 0 : i32
    %c0_i32_0 = arith.constant 0 : i32
    %c0_i32_1 = arith.constant 0 : i32
    return %arg0, %c0_i32, %c0_i32_0 : i32, i32, i32
  }
  func.func @transform_1(%arg0: i32) -> (i32, i32) {
    %c0_i32 = arith.constant 0 : i32
    %c0_i32_0 = arith.constant 0 : i32
    %c0_i32_1 = arith.constant 0 : i32
    return %c0_i32, %c0_i32_0 : i32, i32
  }
  func.func @transform_2(%arg0: i32) -> (i32, i32) {
    %c0_i32 = arith.constant 0 : i32
    %c0_i32_0 = arith.constant 0 : i32
    %c0_i32_1 = arith.constant 0 : i32
    return %c0_i32, %c0_i32_0 : i32, i32
  }
  func.func @transform_3(%arg0: i32) -> (i32, i32, i32) {
    %c0_i32 = arith.constant 0 : i32
    %c0_i32_0 = arith.constant 0 : i32
    %c0_i32_1 = arith.constant 0 : i32
    return %arg0, %c0_i32, %c0_i32_0 : i32, i32, i32
  }
}

module attributes {stable_mosaic.version = 11 : i64} {
  func.func @_conv_bn_relu_pool_kernel(%arg0: i32, %arg1: memref<1x32x512xbf16, #tpu.memory_space<vmem>>, %arg2: memref<16x32xbf16, #tpu.memory_space<vmem>>, %arg3: memref<16x1xf32, #tpu.memory_space<vmem>>, %arg4: memref<1x16x256xbf16, #tpu.memory_space<vmem>>) attributes {dimension_semantics = [#tpu.dimension_semantics<parallel>], iteration_bounds = array<i64: 2>, scalar_prefetch = 0 : i64, scratch_operands = 0 : i64, tpu.core_type = #tpu.core_type<tc>, window_params = [{transform_indices = @transform_0, window_bounds = array<i64: 1, 32, 512>}, {pipeline_mode = #tpu.pipeline_mode<synchronous>, transform_indices = @transform_1, window_bounds = array<i64: 16, 32>}, {pipeline_mode = #tpu.pipeline_mode<synchronous>, transform_indices = @transform_2, window_bounds = array<i64: 16, 1>}, {transform_indices = @transform_3, window_bounds = array<i64: 1, 16, 256>}]} {
    %c0 = arith.constant 0 : index
    %c0_0 = arith.constant 0 : index
    %0 = vector.load %arg2[%c0, %c0_0] : memref<16x32xbf16, #tpu.memory_space<vmem>>, vector<16x32xbf16>
    %c0_1 = arith.constant 0 : index
    %c0_2 = arith.constant 0 : index
    %c0_3 = arith.constant 0 : index
    %1 = vector.load %arg1[%c0_1, %c0_2, %c0_3] : memref<1x32x512xbf16, #tpu.memory_space<vmem>>, vector<1x32x512xbf16>
    %2 = vector.shape_cast %1 : vector<1x32x512xbf16> to vector<32x512xbf16>
    %cst = arith.constant dense<0.000000e+00> : vector<16x512xf32>
    %3 = tpu.matmul %0, %2, %cst {dimension_numbers = #tpu.dot_dimension_numbers<[1], [0], [0], [1], [0, 0, 1, 1], [], []>} : vector<16x32xbf16>, vector<32x512xbf16>, vector<16x512xf32> -> vector<16x512xf32>
    %c0_4 = arith.constant 0 : index
    %c0_5 = arith.constant 0 : index
    %4 = vector.load %arg3[%c0_4, %c0_5] : memref<16x1xf32, #tpu.memory_space<vmem>>, vector<16x1xf32>
    %5 = vector.broadcast %4 : vector<16x1xf32> to vector<16x512xf32>
    %6 = arith.addf %3, %5 : vector<16x512xf32>
    %cst_6 = arith.constant 0.000000e+00 : f32
    %7 = vector.broadcast %cst_6 : f32 to vector<16x512xf32>
    %8 = arith.maximumf %6, %7 : vector<16x512xf32>
    %9 = vector.extract_strided_slice %8 {offsets = [0, 0], sizes = [16, 256], strides = [1, 1]} : vector<16x512xf32> to vector<16x256xf32>
    %10 = vector.extract_strided_slice %8 {offsets = [0, 256], sizes = [16, 256], strides = [1, 1]} : vector<16x512xf32> to vector<16x256xf32>
    %11 = arith.maximumf %9, %10 : vector<16x256xf32>
    %12 = arith.truncf %11 : vector<16x256xf32> to vector<16x256xbf16>
    %c0_7 = arith.constant 0 : index
    %c0_8 = arith.constant 0 : index
    %c0_9 = arith.constant 0 : index
    %13 = vector.load %arg4[%c0_7, %c0_8, %c0_9] : memref<1x16x256xbf16, #tpu.memory_space<vmem>>, vector<1x16x256xbf16>
    %14 = vector.shape_cast %13 : vector<1x16x256xbf16> to vector<16x256xbf16>
    %15 = vector.shape_cast %12 : vector<16x256xbf16> to vector<1x16x256xbf16>
    tpu.vector_store %arg4[%c0_7, %c0_8, %c0_9], %15 {strides = array<i32>} : memref<1x16x256xbf16, #tpu.memory_space<vmem>>, vector<1x16x256xbf16>,
    return
  }
  func.func @transform_0(%arg0: i32) -> (i32, i32, i32) {
    %c0_i32 = arith.constant 0 : i32
    %c0_i32_0 = arith.constant 0 : i32
    %c0_i32_1 = arith.constant 0 : i32
    return %arg0, %c0_i32, %c0_i32_0 : i32, i32, i32
  }
  func.func @transform_1(%arg0: i32) -> (i32, i32) {
    %c0_i32 = arith.constant 0 : i32
    %c0_i32_0 = arith.constant 0 : i32
    %c0_i32_1 = arith.constant 0 : i32
    return %c0_i32, %c0_i32_0 : i32, i32
  }
  func.func @transform_2(%arg0: i32) -> (i32, i32) {
    %c0_i32 = arith.constant 0 : i32
    %c0_i32_0 = arith.constant 0 : i32
    %c0_i32_1 = arith.constant 0 : i32
    return %c0_i32, %c0_i32_0 : i32, i32
  }
  func.func @transform_3(%arg0: i32) -> (i32, i32, i32) {
    %c0_i32 = arith.constant 0 : i32
    %c0_i32_0 = arith.constant 0 : i32
    %c0_i32_1 = arith.constant 0 : i32
    return %arg0, %c0_i32, %c0_i32_0 : i32, i32, i32
  }
}

module attributes {stable_mosaic.version = 11 : i64} {
  func.func @_conv_bn_relu_pool_kernel(%arg0: i32, %arg1: memref<1x64x256xbf16, #tpu.memory_space<vmem>>, %arg2: memref<32x64xbf16, #tpu.memory_space<vmem>>, %arg3: memref<32x1xf32, #tpu.memory_space<vmem>>, %arg4: memref<1x32x128xbf16, #tpu.memory_space<vmem>>) attributes {dimension_semantics = [#tpu.dimension_semantics<parallel>], iteration_bounds = array<i64: 2>, scalar_prefetch = 0 : i64, scratch_operands = 0 : i64, tpu.core_type = #tpu.core_type<tc>, window_params = [{transform_indices = @transform_0, window_bounds = array<i64: 1, 64, 256>}, {pipeline_mode = #tpu.pipeline_mode<synchronous>, transform_indices = @transform_1, window_bounds = array<i64: 32, 64>}, {pipeline_mode = #tpu.pipeline_mode<synchronous>, transform_indices = @transform_2, window_bounds = array<i64: 32, 1>}, {transform_indices = @transform_3, window_bounds = array<i64: 1, 32, 128>}]} {
    %c0 = arith.constant 0 : index
    %c0_0 = arith.constant 0 : index
    %0 = vector.load %arg2[%c0, %c0_0] : memref<32x64xbf16, #tpu.memory_space<vmem>>, vector<32x64xbf16>
    %c0_1 = arith.constant 0 : index
    %c0_2 = arith.constant 0 : index
    %c0_3 = arith.constant 0 : index
    %1 = vector.load %arg1[%c0_1, %c0_2, %c0_3] : memref<1x64x256xbf16, #tpu.memory_space<vmem>>, vector<1x64x256xbf16>
    %2 = vector.shape_cast %1 : vector<1x64x256xbf16> to vector<64x256xbf16>
    %cst = arith.constant dense<0.000000e+00> : vector<32x256xf32>
    %3 = tpu.matmul %0, %2, %cst {dimension_numbers = #tpu.dot_dimension_numbers<[1], [0], [0], [1], [0, 0, 1, 1], [], []>} : vector<32x64xbf16>, vector<64x256xbf16>, vector<32x256xf32> -> vector<32x256xf32>
    %c0_4 = arith.constant 0 : index
    %c0_5 = arith.constant 0 : index
    %4 = vector.load %arg3[%c0_4, %c0_5] : memref<32x1xf32, #tpu.memory_space<vmem>>, vector<32x1xf32>
    %5 = vector.broadcast %4 : vector<32x1xf32> to vector<32x256xf32>
    %6 = arith.addf %3, %5 : vector<32x256xf32>
    %cst_6 = arith.constant 0.000000e+00 : f32
    %7 = vector.broadcast %cst_6 : f32 to vector<32x256xf32>
    %8 = arith.maximumf %6, %7 : vector<32x256xf32>
    %9 = vector.extract_strided_slice %8 {offsets = [0, 0], sizes = [32, 128], strides = [1, 1]} : vector<32x256xf32> to vector<32x128xf32>
    %10 = vector.extract_strided_slice %8 {offsets = [0, 128], sizes = [32, 128], strides = [1, 1]} : vector<32x256xf32> to vector<32x128xf32>
    %11 = arith.maximumf %9, %10 : vector<32x128xf32>
    %12 = arith.truncf %11 : vector<32x128xf32> to vector<32x128xbf16>
    %c0_7 = arith.constant 0 : index
    %c0_8 = arith.constant 0 : index
    %c0_9 = arith.constant 0 : index
    %13 = vector.load %arg4[%c0_7, %c0_8, %c0_9] : memref<1x32x128xbf16, #tpu.memory_space<vmem>>, vector<1x32x128xbf16>
    %14 = vector.shape_cast %13 : vector<1x32x128xbf16> to vector<32x128xbf16>
    %15 = vector.shape_cast %12 : vector<32x128xbf16> to vector<1x32x128xbf16>
    tpu.vector_store %arg4[%c0_7, %c0_8, %c0_9], %15 {strides = array<i32>} : memref<1x32x128xbf16, #tpu.memory_space<vmem>>, vector<1x32x128xbf16>,
    return
  }
  func.func @transform_0(%arg0: i32) -> (i32, i32, i32) {
    %c0_i32 = arith.constant 0 : i32
    %c0_i32_0 = arith.constant 0 : i32
    %c0_i32_1 = arith.constant 0 : i32
    return %arg0, %c0_i32, %c0_i32_0 : i32, i32, i32
  }
  func.func @transform_1(%arg0: i32) -> (i32, i32) {
    %c0_i32 = arith.constant 0 : i32
    %c0_i32_0 = arith.constant 0 : i32
    %c0_i32_1 = arith.constant 0 : i32
    return %c0_i32, %c0_i32_0 : i32, i32
  }
  func.func @transform_2(%arg0: i32) -> (i32, i32) {
    %c0_i32 = arith.constant 0 : i32
    %c0_i32_0 = arith.constant 0 : i32
    %c0_i32_1 = arith.constant 0 : i32
    return %c0_i32, %c0_i32_0 : i32, i32
  }
  func.func @transform_3(%arg0: i32) -> (i32, i32, i32) {
    %c0_i32 = arith.constant 0 : i32
    %c0_i32_0 = arith.constant 0 : i32
    %c0_i32_1 = arith.constant 0 : i32
    return %arg0, %c0_i32, %c0_i32_0 : i32, i32, i32
  }
}

module attributes {stable_mosaic.version = 11 : i64} {
  func.func @_conv_bn_relu_adaptpool_kernel(%arg0: i32, %arg1: memref<1x128x128xbf16, #tpu.memory_space<vmem>>, %arg2: memref<64x128xbf16, #tpu.memory_space<vmem>>, %arg3: memref<64x1xf32, #tpu.memory_space<vmem>>, %arg4: memref<1x64x4xf32, #tpu.memory_space<vmem>>) attributes {dimension_semantics = [#tpu.dimension_semantics<parallel>], iteration_bounds = array<i64: 2>, scalar_prefetch = 0 : i64, scratch_operands = 0 : i64, tpu.core_type = #tpu.core_type<tc>, window_params = [{transform_indices = @transform_0, window_bounds = array<i64: 1, 128, 128>}, {pipeline_mode = #tpu.pipeline_mode<synchronous>, transform_indices = @transform_1, window_bounds = array<i64: 64, 128>}, {pipeline_mode = #tpu.pipeline_mode<synchronous>, transform_indices = @transform_2, window_bounds = array<i64: 64, 1>}, {transform_indices = @transform_3, window_bounds = array<i64: 1, 64, 4>}]} {
    %c0 = arith.constant 0 : index
    %c0_0 = arith.constant 0 : index
    %0 = vector.load %arg2[%c0, %c0_0] : memref<64x128xbf16, #tpu.memory_space<vmem>>, vector<64x128xbf16>
    %c0_1 = arith.constant 0 : index
    %c0_2 = arith.constant 0 : index
    %c0_3 = arith.constant 0 : index
    %1 = vector.load %arg1[%c0_1, %c0_2, %c0_3] : memref<1x128x128xbf16, #tpu.memory_space<vmem>>, vector<1x128x128xbf16>
    %2 = vector.shape_cast %1 : vector<1x128x128xbf16> to vector<128x128xbf16>
    %cst = arith.constant dense<0.000000e+00> : vector<64x128xf32>
    %3 = tpu.matmul %0, %2, %cst {dimension_numbers = #tpu.dot_dimension_numbers<[1], [0], [0], [1], [0, 0, 1, 1], [], []>} : vector<64x128xbf16>, vector<128x128xbf16>, vector<64x128xf32> -> vector<64x128xf32>
    %c0_4 = arith.constant 0 : index
    %c0_5 = arith.constant 0 : index
    %4 = vector.load %arg3[%c0_4, %c0_5] : memref<64x1xf32, #tpu.memory_space<vmem>>, vector<64x1xf32>
    %5 = vector.broadcast %4 : vector<64x1xf32> to vector<64x128xf32>
    %6 = arith.addf %3, %5 : vector<64x128xf32>
    %cst_6 = arith.constant 0.000000e+00 : f32
    %7 = vector.broadcast %cst_6 : f32 to vector<64x128xf32>
    %8 = arith.maximumf %6, %7 : vector<64x128xf32>
    %9 = tpu.iota {dimensions = array<i32: 1>} : vector<64x128xi32>
    %c0_i32 = arith.constant 0 : i32
    %10 = vector.broadcast %c0_i32 : i32 to vector<64x128xi32>
    %11 = arith.cmpi sge, %9, %10 : vector<64x128xi32>
    %c19_i32 = arith.constant 19 : i32
    %12 = vector.broadcast %c19_i32 : i32 to vector<64x128xi32>
    %13 = arith.cmpi slt, %9, %12 : vector<64x128xi32>
    %14 = arith.andi %11, %13 : vector<64x128xi1>
    %cst_7 = arith.constant 0.000000e+00 : f32
    %15 = vector.broadcast %cst_7 : f32 to vector<64x128xf32>
    %16 = arith.select %14, %8, %15 : vector<64x128xi1>, vector<64x128xf32>
    %cst_8 = arith.constant dense<0xFF800000> : vector<64xf32>
    %17 = vector.multi_reduction <maximumf>, %16, %cst_8 [1] : vector<64x128xf32> to vector<64xf32>
    %18 = vector.shape_cast %17 : vector<64xf32> to vector<64x1xf32>
    %c18_i32 = arith.constant 18 : i32
    %19 = vector.broadcast %c18_i32 : i32 to vector<64x128xi32>
    %20 = arith.cmpi sge, %9, %19 : vector<64x128xi32>
    %c37_i32 = arith.constant 37 : i32
    %21 = vector.broadcast %c37_i32 : i32 to vector<64x128xi32>
    %22 = arith.cmpi slt, %9, %21 : vector<64x128xi32>
    %23 = arith.andi %20, %22 : vector<64x128xi1>
    %cst_9 = arith.constant 0.000000e+00 : f32
    %24 = vector.broadcast %cst_9 : f32 to vector<64x128xf32>
    %25 = arith.select %23, %8, %24 : vector<64x128xi1>, vector<64x128xf32>
    %cst_10 = arith.constant dense<0xFF800000> : vector<64xf32>
    %26 = vector.multi_reduction <maximumf>, %25, %cst_10 [1] : vector<64x128xf32> to vector<64xf32>
    %27 = vector.shape_cast %26 : vector<64xf32> to vector<64x1xf32>
    %c36_i32 = arith.constant 36 : i32
    %28 = vector.broadcast %c36_i32 : i32 to vector<64x128xi32>
    %29 = arith.cmpi sge, %9, %28 : vector<64x128xi32>
    %c55_i32 = arith.constant 55 : i32
    %30 = vector.broadcast %c55_i32 : i32 to vector<64x128xi32>
    %31 = arith.cmpi slt, %9, %30 : vector<64x128xi32>
    %32 = arith.andi %29, %31 : vector<64x128xi1>
    %cst_11 = arith.constant 0.000000e+00 : f32
    %33 = vector.broadcast %cst_11 : f32 to vector<64x128xf32>
    %34 = arith.select %32, %8, %33 : vector<64x128xi1>, vector<64x128xf32>
    %cst_12 = arith.constant dense<0xFF800000> : vector<64xf32>
    %35 = vector.multi_reduction <maximumf>, %34, %cst_12 [1] : vector<64x128xf32> to vector<64xf32>
    %36 = vector.shape_cast %35 : vector<64xf32> to vector<64x1xf32>
    %c54_i32 = arith.constant 54 : i32
    %37 = vector.broadcast %c54_i32 : i32 to vector<64x128xi32>
    %38 = arith.cmpi sge, %9, %37 : vector<64x128xi32>
    %c73_i32 = arith.constant 73 : i32
    %39 = vector.broadcast %c73_i32 : i32 to vector<64x128xi32>
    %40 = arith.cmpi slt, %9, %39 : vector<64x128xi32>
    %41 = arith.andi %38, %40 : vector<64x128xi1>
    %cst_13 = arith.constant 0.000000e+00 : f32
    %42 = vector.broadcast %cst_13 : f32 to vector<64x128xf32>
    %43 = arith.select %41, %8, %42 : vector<64x128xi1>, vector<64x128xf32>
    %cst_14 = arith.constant dense<0xFF800000> : vector<64xf32>
    %44 = vector.multi_reduction <maximumf>, %43, %cst_14 [1] : vector<64x128xf32> to vector<64xf32>
    %45 = vector.shape_cast %44 : vector<64xf32> to vector<64x1xf32>
    %46 = tpu.concatenate %18, %27, %36, %45 in 1 : vector<64x1xf32>, vector<64x1xf32>, vector<64x1xf32>, vector<64x1xf32> -> vector<64x4xf32>
    %c0_15 = arith.constant 0 : index
    %c0_16 = arith.constant 0 : index
    %c0_17 = arith.constant 0 : index
    %47 = vector.load %arg4[%c0_15, %c0_16, %c0_17] : memref<1x64x4xf32, #tpu.memory_space<vmem>>, vector<1x64x4xf32>
    %48 = vector.shape_cast %47 : vector<1x64x4xf32> to vector<64x4xf32>
    %49 = vector.shape_cast %46 : vector<64x4xf32> to vector<1x64x4xf32>
    tpu.vector_store %arg4[%c0_15, %c0_16, %c0_17], %49 {strides = array<i32>} : memref<1x64x4xf32, #tpu.memory_space<vmem>>, vector<1x64x4xf32>,
    return
  }
  func.func @transform_0(%arg0: i32) -> (i32, i32, i32) {
    %c0_i32 = arith.constant 0 : i32
    %c0_i32_0 = arith.constant 0 : i32
    %c0_i32_1 = arith.constant 0 : i32
    return %arg0, %c0_i32, %c0_i32_0 : i32, i32, i32
  }
  func.func @transform_1(%arg0: i32) -> (i32, i32) {
    %c0_i32 = arith.constant 0 : i32
    %c0_i32_0 = arith.constant 0 : i32
    %c0_i32_1 = arith.constant 0 : i32
    return %c0_i32, %c0_i32_0 : i32, i32
  }
  func.func @transform_2(%arg0: i32) -> (i32, i32) {
    %c0_i32 = arith.constant 0 : i32
    %c0_i32_0 = arith.constant 0 : i32
    %c0_i32_1 = arith.constant 0 : i32
    return %c0_i32, %c0_i32_0 : i32, i32
  }
  func.func @transform_3(%arg0: i32) -> (i32, i32, i32) {
    %c0_i32 = arith.constant 0 : i32
    %c0_i32_0 = arith.constant 0 : i32
    %c0_i32_1 = arith.constant 0 : i32
    return %arg0, %c0_i32, %c0_i32_0 : i32, i32, i32
  }
}

module attributes {stable_mosaic.version = 11 : i64} {
  func.func @_conv_bn_relu_pool_kernel(%arg0: i32, %arg1: memref<1x32x1024xbf16, #tpu.memory_space<vmem>>, %arg2: memref<4x32xbf16, #tpu.memory_space<vmem>>, %arg3: memref<4x1xf32, #tpu.memory_space<vmem>>, %arg4: memref<1x4x512xbf16, #tpu.memory_space<vmem>>) attributes {dimension_semantics = [#tpu.dimension_semantics<parallel>], iteration_bounds = array<i64: 2>, scalar_prefetch = 0 : i64, scratch_operands = 0 : i64, tpu.core_type = #tpu.core_type<tc>, window_params = [{transform_indices = @transform_0, window_bounds = array<i64: 1, 32, 1024>}, {pipeline_mode = #tpu.pipeline_mode<synchronous>, transform_indices = @transform_1, window_bounds = array<i64: 4, 32>}, {pipeline_mode = #tpu.pipeline_mode<synchronous>, transform_indices = @transform_2, window_bounds = array<i64: 4, 1>}, {transform_indices = @transform_3, window_bounds = array<i64: 1, 4, 512>}]} {
    %c0 = arith.constant 0 : index
    %c0_0 = arith.constant 0 : index
    %0 = vector.load %arg2[%c0, %c0_0] : memref<4x32xbf16, #tpu.memory_space<vmem>>, vector<4x32xbf16>
    %c0_1 = arith.constant 0 : index
    %c0_2 = arith.constant 0 : index
    %c0_3 = arith.constant 0 : index
    %1 = vector.load %arg1[%c0_1, %c0_2, %c0_3] : memref<1x32x1024xbf16, #tpu.memory_space<vmem>>, vector<1x32x1024xbf16>
    %2 = vector.shape_cast %1 : vector<1x32x1024xbf16> to vector<32x1024xbf16>
    %cst = arith.constant dense<0.000000e+00> : vector<4x1024xf32>
    %3 = tpu.matmul %0, %2, %cst {dimension_numbers = #tpu.dot_dimension_numbers<[1], [0], [0], [1], [0, 0, 1, 1], [], []>} : vector<4x32xbf16>, vector<32x1024xbf16>, vector<4x1024xf32> -> vector<4x1024xf32>
    %c0_4 = arith.constant 0 : index
    %c0_5 = arith.constant 0 : index
    %4 = vector.load %arg3[%c0_4, %c0_5] : memref<4x1xf32, #tpu.memory_space<vmem>>, vector<4x1xf32>
    %5 = vector.broadcast %4 : vector<4x1xf32> to vector<4x1024xf32>
    %6 = arith.addf %3, %5 : vector<4x1024xf32>
    %cst_6 = arith.constant 0.000000e+00 : f32
    %7 = vector.broadcast %cst_6 : f32 to vector<4x1024xf32>
    %8 = arith.maximumf %6, %7 : vector<4x1024xf32>
    %9 = vector.extract_strided_slice %8 {offsets = [0, 0], sizes = [4, 512], strides = [1, 1]} : vector<4x1024xf32> to vector<4x512xf32>
    %10 = vector.extract_strided_slice %8 {offsets = [0, 512], sizes = [4, 512], strides = [1, 1]} : vector<4x1024xf32> to vector<4x512xf32>
    %11 = arith.maximumf %9, %10 : vector<4x512xf32>
    %12 = arith.truncf %11 : vector<4x512xf32> to vector<4x512xbf16>
    %c0_7 = arith.constant 0 : index
    %c0_8 = arith.constant 0 : index
    %c0_9 = arith.constant 0 : index
    %13 = vector.load %arg4[%c0_7, %c0_8, %c0_9] : memref<1x4x512xbf16, #tpu.memory_space<vmem>>, vector<1x4x512xbf16>
    %14 = vector.shape_cast %13 : vector<1x4x512xbf16> to vector<4x512xbf16>
    %15 = vector.shape_cast %12 : vector<4x512xbf16> to vector<1x4x512xbf16>
    tpu.vector_store %arg4[%c0_7, %c0_8, %c0_9], %15 {strides = array<i32>} : memref<1x4x512xbf16, #tpu.memory_space<vmem>>, vector<1x4x512xbf16>,
    return
  }
  func.func @transform_0(%arg0: i32) -> (i32, i32, i32) {
    %c0_i32 = arith.constant 0 : i32
    %c0_i32_0 = arith.constant 0 : i32
    %c0_i32_1 = arith.constant 0 : i32
    return %arg0, %c0_i32, %c0_i32_0 : i32, i32, i32
  }
  func.func @transform_1(%arg0: i32) -> (i32, i32) {
    %c0_i32 = arith.constant 0 : i32
    %c0_i32_0 = arith.constant 0 : i32
    %c0_i32_1 = arith.constant 0 : i32
    return %c0_i32, %c0_i32_0 : i32, i32
  }
  func.func @transform_2(%arg0: i32) -> (i32, i32) {
    %c0_i32 = arith.constant 0 : i32
    %c0_i32_0 = arith.constant 0 : i32
    %c0_i32_1 = arith.constant 0 : i32
    return %c0_i32, %c0_i32_0 : i32, i32
  }
  func.func @transform_3(%arg0: i32) -> (i32, i32, i32) {
    %c0_i32 = arith.constant 0 : i32
    %c0_i32_0 = arith.constant 0 : i32
    %c0_i32_1 = arith.constant 0 : i32
    return %arg0, %c0_i32, %c0_i32_0 : i32, i32, i32
  }
}

module attributes {stable_mosaic.version = 11 : i64} {
  func.func @_conv_bn_relu_pool_kernel(%arg0: i32, %arg1: memref<1x32x512xbf16, #tpu.memory_space<vmem>>, %arg2: memref<8x32xbf16, #tpu.memory_space<vmem>>, %arg3: memref<8x1xf32, #tpu.memory_space<vmem>>, %arg4: memref<1x8x256xbf16, #tpu.memory_space<vmem>>) attributes {dimension_semantics = [#tpu.dimension_semantics<parallel>], iteration_bounds = array<i64: 2>, scalar_prefetch = 0 : i64, scratch_operands = 0 : i64, tpu.core_type = #tpu.core_type<tc>, window_params = [{transform_indices = @transform_0, window_bounds = array<i64: 1, 32, 512>}, {pipeline_mode = #tpu.pipeline_mode<synchronous>, transform_indices = @transform_1, window_bounds = array<i64: 8, 32>}, {pipeline_mode = #tpu.pipeline_mode<synchronous>, transform_indices = @transform_2, window_bounds = array<i64: 8, 1>}, {transform_indices = @transform_3, window_bounds = array<i64: 1, 8, 256>}]} {
    %c0 = arith.constant 0 : index
    %c0_0 = arith.constant 0 : index
    %0 = vector.load %arg2[%c0, %c0_0] : memref<8x32xbf16, #tpu.memory_space<vmem>>, vector<8x32xbf16>
    %c0_1 = arith.constant 0 : index
    %c0_2 = arith.constant 0 : index
    %c0_3 = arith.constant 0 : index
    %1 = vector.load %arg1[%c0_1, %c0_2, %c0_3] : memref<1x32x512xbf16, #tpu.memory_space<vmem>>, vector<1x32x512xbf16>
    %2 = vector.shape_cast %1 : vector<1x32x512xbf16> to vector<32x512xbf16>
    %cst = arith.constant dense<0.000000e+00> : vector<8x512xf32>
    %3 = tpu.matmul %0, %2, %cst {dimension_numbers = #tpu.dot_dimension_numbers<[1], [0], [0], [1], [0, 0, 1, 1], [], []>} : vector<8x32xbf16>, vector<32x512xbf16>, vector<8x512xf32> -> vector<8x512xf32>
    %c0_4 = arith.constant 0 : index
    %c0_5 = arith.constant 0 : index
    %4 = vector.load %arg3[%c0_4, %c0_5] : memref<8x1xf32, #tpu.memory_space<vmem>>, vector<8x1xf32>
    %5 = vector.broadcast %4 : vector<8x1xf32> to vector<8x512xf32>
    %6 = arith.addf %3, %5 : vector<8x512xf32>
    %cst_6 = arith.constant 0.000000e+00 : f32
    %7 = vector.broadcast %cst_6 : f32 to vector<8x512xf32>
    %8 = arith.maximumf %6, %7 : vector<8x512xf32>
    %9 = vector.extract_strided_slice %8 {offsets = [0, 0], sizes = [8, 256], strides = [1, 1]} : vector<8x512xf32> to vector<8x256xf32>
    %10 = vector.extract_strided_slice %8 {offsets = [0, 256], sizes = [8, 256], strides = [1, 1]} : vector<8x512xf32> to vector<8x256xf32>
    %11 = arith.maximumf %9, %10 : vector<8x256xf32>
    %12 = arith.truncf %11 : vector<8x256xf32> to vector<8x256xbf16>
    %c0_7 = arith.constant 0 : index
    %c0_8 = arith.constant 0 : index
    %c0_9 = arith.constant 0 : index
    %13 = vector.load %arg4[%c0_7, %c0_8, %c0_9] : memref<1x8x256xbf16, #tpu.memory_space<vmem>>, vector<1x8x256xbf16>
    %14 = vector.shape_cast %13 : vector<1x8x256xbf16> to vector<8x256xbf16>
    %15 = vector.shape_cast %12 : vector<8x256xbf16> to vector<1x8x256xbf16>
    tpu.vector_store %arg4[%c0_7, %c0_8, %c0_9], %15 {strides = array<i32>} : memref<1x8x256xbf16, #tpu.memory_space<vmem>>, vector<1x8x256xbf16>,
    return
  }
  func.func @transform_0(%arg0: i32) -> (i32, i32, i32) {
    %c0_i32 = arith.constant 0 : i32
    %c0_i32_0 = arith.constant 0 : i32
    %c0_i32_1 = arith.constant 0 : i32
    return %arg0, %c0_i32, %c0_i32_0 : i32, i32, i32
  }
  func.func @transform_1(%arg0: i32) -> (i32, i32) {
    %c0_i32 = arith.constant 0 : i32
    %c0_i32_0 = arith.constant 0 : i32
    %c0_i32_1 = arith.constant 0 : i32
    return %c0_i32, %c0_i32_0 : i32, i32
  }
  func.func @transform_2(%arg0: i32) -> (i32, i32) {
    %c0_i32 = arith.constant 0 : i32
    %c0_i32_0 = arith.constant 0 : i32
    %c0_i32_1 = arith.constant 0 : i32
    return %c0_i32, %c0_i32_0 : i32, i32
  }
  func.func @transform_3(%arg0: i32) -> (i32, i32, i32) {
    %c0_i32 = arith.constant 0 : i32
    %c0_i32_0 = arith.constant 0 : i32
    %c0_i32_1 = arith.constant 0 : i32
    return %arg0, %c0_i32, %c0_i32_0 : i32, i32, i32
  }
}

module attributes {stable_mosaic.version = 11 : i64} {
  func.func @_conv_bn_relu_pool_kernel(%arg0: i32, %arg1: memref<1x64x256xbf16, #tpu.memory_space<vmem>>, %arg2: memref<16x64xbf16, #tpu.memory_space<vmem>>, %arg3: memref<16x1xf32, #tpu.memory_space<vmem>>, %arg4: memref<1x16x128xbf16, #tpu.memory_space<vmem>>) attributes {dimension_semantics = [#tpu.dimension_semantics<parallel>], iteration_bounds = array<i64: 2>, scalar_prefetch = 0 : i64, scratch_operands = 0 : i64, tpu.core_type = #tpu.core_type<tc>, window_params = [{transform_indices = @transform_0, window_bounds = array<i64: 1, 64, 256>}, {pipeline_mode = #tpu.pipeline_mode<synchronous>, transform_indices = @transform_1, window_bounds = array<i64: 16, 64>}, {pipeline_mode = #tpu.pipeline_mode<synchronous>, transform_indices = @transform_2, window_bounds = array<i64: 16, 1>}, {transform_indices = @transform_3, window_bounds = array<i64: 1, 16, 128>}]} {
    %c0 = arith.constant 0 : index
    %c0_0 = arith.constant 0 : index
    %0 = vector.load %arg2[%c0, %c0_0] : memref<16x64xbf16, #tpu.memory_space<vmem>>, vector<16x64xbf16>
    %c0_1 = arith.constant 0 : index
    %c0_2 = arith.constant 0 : index
    %c0_3 = arith.constant 0 : index
    %1 = vector.load %arg1[%c0_1, %c0_2, %c0_3] : memref<1x64x256xbf16, #tpu.memory_space<vmem>>, vector<1x64x256xbf16>
    %2 = vector.shape_cast %1 : vector<1x64x256xbf16> to vector<64x256xbf16>
    %cst = arith.constant dense<0.000000e+00> : vector<16x256xf32>
    %3 = tpu.matmul %0, %2, %cst {dimension_numbers = #tpu.dot_dimension_numbers<[1], [0], [0], [1], [0, 0, 1, 1], [], []>} : vector<16x64xbf16>, vector<64x256xbf16>, vector<16x256xf32> -> vector<16x256xf32>
    %c0_4 = arith.constant 0 : index
    %c0_5 = arith.constant 0 : index
    %4 = vector.load %arg3[%c0_4, %c0_5] : memref<16x1xf32, #tpu.memory_space<vmem>>, vector<16x1xf32>
    %5 = vector.broadcast %4 : vector<16x1xf32> to vector<16x256xf32>
    %6 = arith.addf %3, %5 : vector<16x256xf32>
    %cst_6 = arith.constant 0.000000e+00 : f32
    %7 = vector.broadcast %cst_6 : f32 to vector<16x256xf32>
    %8 = arith.maximumf %6, %7 : vector<16x256xf32>
    %9 = vector.extract_strided_slice %8 {offsets = [0, 0], sizes = [16, 128], strides = [1, 1]} : vector<16x256xf32> to vector<16x128xf32>
    %10 = vector.extract_strided_slice %8 {offsets = [0, 128], sizes = [16, 128], strides = [1, 1]} : vector<16x256xf32> to vector<16x128xf32>
    %11 = arith.maximumf %9, %10 : vector<16x128xf32>
    %12 = arith.truncf %11 : vector<16x128xf32> to vector<16x128xbf16>
    %c0_7 = arith.constant 0 : index
    %c0_8 = arith.constant 0 : index
    %c0_9 = arith.constant 0 : index
    %13 = vector.load %arg4[%c0_7, %c0_8, %c0_9] : memref<1x16x128xbf16, #tpu.memory_space<vmem>>, vector<1x16x128xbf16>
    %14 = vector.shape_cast %13 : vector<1x16x128xbf16> to vector<16x128xbf16>
    %15 = vector.shape_cast %12 : vector<16x128xbf16> to vector<1x16x128xbf16>
    tpu.vector_store %arg4[%c0_7, %c0_8, %c0_9], %15 {strides = array<i32>} : memref<1x16x128xbf16, #tpu.memory_space<vmem>>, vector<1x16x128xbf16>,
    return
  }
  func.func @transform_0(%arg0: i32) -> (i32, i32, i32) {
    %c0_i32 = arith.constant 0 : i32
    %c0_i32_0 = arith.constant 0 : i32
    %c0_i32_1 = arith.constant 0 : i32
    return %arg0, %c0_i32, %c0_i32_0 : i32, i32, i32
  }
  func.func @transform_1(%arg0: i32) -> (i32, i32) {
    %c0_i32 = arith.constant 0 : i32
    %c0_i32_0 = arith.constant 0 : i32
    %c0_i32_1 = arith.constant 0 : i32
    return %c0_i32, %c0_i32_0 : i32, i32
  }
  func.func @transform_2(%arg0: i32) -> (i32, i32) {
    %c0_i32 = arith.constant 0 : i32
    %c0_i32_0 = arith.constant 0 : i32
    %c0_i32_1 = arith.constant 0 : i32
    return %c0_i32, %c0_i32_0 : i32, i32
  }
  func.func @transform_3(%arg0: i32) -> (i32, i32, i32) {
    %c0_i32 = arith.constant 0 : i32
    %c0_i32_0 = arith.constant 0 : i32
    %c0_i32_1 = arith.constant 0 : i32
    return %arg0, %c0_i32, %c0_i32_0 : i32, i32, i32
  }
}

module attributes {stable_mosaic.version = 11 : i64} {
  func.func @_conv_bn_relu_pool_kernel(%arg0: i32, %arg1: memref<1x128x256xbf16, #tpu.memory_space<vmem>>, %arg2: memref<32x128xbf16, #tpu.memory_space<vmem>>, %arg3: memref<32x1xf32, #tpu.memory_space<vmem>>, %arg4: memref<1x32x128xbf16, #tpu.memory_space<vmem>>) attributes {dimension_semantics = [#tpu.dimension_semantics<parallel>], iteration_bounds = array<i64: 2>, scalar_prefetch = 0 : i64, scratch_operands = 0 : i64, tpu.core_type = #tpu.core_type<tc>, window_params = [{transform_indices = @transform_0, window_bounds = array<i64: 1, 128, 256>}, {pipeline_mode = #tpu.pipeline_mode<synchronous>, transform_indices = @transform_1, window_bounds = array<i64: 32, 128>}, {pipeline_mode = #tpu.pipeline_mode<synchronous>, transform_indices = @transform_2, window_bounds = array<i64: 32, 1>}, {transform_indices = @transform_3, window_bounds = array<i64: 1, 32, 128>}]} {
    %c0 = arith.constant 0 : index
    %c0_0 = arith.constant 0 : index
    %0 = vector.load %arg2[%c0, %c0_0] : memref<32x128xbf16, #tpu.memory_space<vmem>>, vector<32x128xbf16>
    %c0_1 = arith.constant 0 : index
    %c0_2 = arith.constant 0 : index
    %c0_3 = arith.constant 0 : index
    %1 = vector.load %arg1[%c0_1, %c0_2, %c0_3] : memref<1x128x256xbf16, #tpu.memory_space<vmem>>, vector<1x128x256xbf16>
    %2 = vector.shape_cast %1 : vector<1x128x256xbf16> to vector<128x256xbf16>
    %cst = arith.constant dense<0.000000e+00> : vector<32x256xf32>
    %3 = tpu.matmul %0, %2, %cst {dimension_numbers = #tpu.dot_dimension_numbers<[1], [0], [0], [1], [0, 0, 1, 1], [], []>} : vector<32x128xbf16>, vector<128x256xbf16>, vector<32x256xf32> -> vector<32x256xf32>
    %c0_4 = arith.constant 0 : index
    %c0_5 = arith.constant 0 : index
    %4 = vector.load %arg3[%c0_4, %c0_5] : memref<32x1xf32, #tpu.memory_space<vmem>>, vector<32x1xf32>
    %5 = vector.broadcast %4 : vector<32x1xf32> to vector<32x256xf32>
    %6 = arith.addf %3, %5 : vector<32x256xf32>
    %cst_6 = arith.constant 0.000000e+00 : f32
    %7 = vector.broadcast %cst_6 : f32 to vector<32x256xf32>
    %8 = arith.maximumf %6, %7 : vector<32x256xf32>
    %9 = vector.extract_strided_slice %8 {offsets = [0, 0], sizes = [32, 128], strides = [1, 1]} : vector<32x256xf32> to vector<32x128xf32>
    %10 = vector.extract_strided_slice %8 {offsets = [0, 128], sizes = [32, 128], strides = [1, 1]} : vector<32x256xf32> to vector<32x128xf32>
    %11 = arith.maximumf %9, %10 : vector<32x128xf32>
    %12 = arith.truncf %11 : vector<32x128xf32> to vector<32x128xbf16>
    %c0_7 = arith.constant 0 : index
    %c0_8 = arith.constant 0 : index
    %c0_9 = arith.constant 0 : index
    %13 = vector.load %arg4[%c0_7, %c0_8, %c0_9] : memref<1x32x128xbf16, #tpu.memory_space<vmem>>, vector<1x32x128xbf16>
    %14 = vector.shape_cast %13 : vector<1x32x128xbf16> to vector<32x128xbf16>
    %15 = vector.shape_cast %12 : vector<32x128xbf16> to vector<1x32x128xbf16>
    tpu.vector_store %arg4[%c0_7, %c0_8, %c0_9], %15 {strides = array<i32>} : memref<1x32x128xbf16, #tpu.memory_space<vmem>>, vector<1x32x128xbf16>,
    return
  }
  func.func @transform_0(%arg0: i32) -> (i32, i32, i32) {
    %c0_i32 = arith.constant 0 : i32
    %c0_i32_0 = arith.constant 0 : i32
    %c0_i32_1 = arith.constant 0 : i32
    return %arg0, %c0_i32, %c0_i32_0 : i32, i32, i32
  }
  func.func @transform_1(%arg0: i32) -> (i32, i32) {
    %c0_i32 = arith.constant 0 : i32
    %c0_i32_0 = arith.constant 0 : i32
    %c0_i32_1 = arith.constant 0 : i32
    return %c0_i32, %c0_i32_0 : i32, i32
  }
  func.func @transform_2(%arg0: i32) -> (i32, i32) {
    %c0_i32 = arith.constant 0 : i32
    %c0_i32_0 = arith.constant 0 : i32
    %c0_i32_1 = arith.constant 0 : i32
    return %c0_i32, %c0_i32_0 : i32, i32
  }
  func.func @transform_3(%arg0: i32) -> (i32, i32, i32) {
    %c0_i32 = arith.constant 0 : i32
    %c0_i32_0 = arith.constant 0 : i32
    %c0_i32_1 = arith.constant 0 : i32
    return %arg0, %c0_i32, %c0_i32_0 : i32, i32, i32
  }
}

module attributes {stable_mosaic.version = 11 : i64} {
  func.func @_conv_bn_relu_adaptpool_kernel(%arg0: i32, %arg1: memref<1x256x128xbf16, #tpu.memory_space<vmem>>, %arg2: memref<64x256xbf16, #tpu.memory_space<vmem>>, %arg3: memref<64x1xf32, #tpu.memory_space<vmem>>, %arg4: memref<1x64x4xf32, #tpu.memory_space<vmem>>) attributes {dimension_semantics = [#tpu.dimension_semantics<parallel>], iteration_bounds = array<i64: 2>, scalar_prefetch = 0 : i64, scratch_operands = 0 : i64, tpu.core_type = #tpu.core_type<tc>, window_params = [{transform_indices = @transform_0, window_bounds = array<i64: 1, 256, 128>}, {pipeline_mode = #tpu.pipeline_mode<synchronous>, transform_indices = @transform_1, window_bounds = array<i64: 64, 256>}, {pipeline_mode = #tpu.pipeline_mode<synchronous>, transform_indices = @transform_2, window_bounds = array<i64: 64, 1>}, {transform_indices = @transform_3, window_bounds = array<i64: 1, 64, 4>}]} {
    %c0 = arith.constant 0 : index
    %c0_0 = arith.constant 0 : index
    %0 = vector.load %arg2[%c0, %c0_0] : memref<64x256xbf16, #tpu.memory_space<vmem>>, vector<64x256xbf16>
    %c0_1 = arith.constant 0 : index
    %c0_2 = arith.constant 0 : index
    %c0_3 = arith.constant 0 : index
    %1 = vector.load %arg1[%c0_1, %c0_2, %c0_3] : memref<1x256x128xbf16, #tpu.memory_space<vmem>>, vector<1x256x128xbf16>
    %2 = vector.shape_cast %1 : vector<1x256x128xbf16> to vector<256x128xbf16>
    %cst = arith.constant dense<0.000000e+00> : vector<64x128xf32>
    %3 = tpu.matmul %0, %2, %cst {dimension_numbers = #tpu.dot_dimension_numbers<[1], [0], [0], [1], [0, 0, 1, 1], [], []>} : vector<64x256xbf16>, vector<256x128xbf16>, vector<64x128xf32> -> vector<64x128xf32>
    %c0_4 = arith.constant 0 : index
    %c0_5 = arith.constant 0 : index
    %4 = vector.load %arg3[%c0_4, %c0_5] : memref<64x1xf32, #tpu.memory_space<vmem>>, vector<64x1xf32>
    %5 = vector.broadcast %4 : vector<64x1xf32> to vector<64x128xf32>
    %6 = arith.addf %3, %5 : vector<64x128xf32>
    %cst_6 = arith.constant 0.000000e+00 : f32
    %7 = vector.broadcast %cst_6 : f32 to vector<64x128xf32>
    %8 = arith.maximumf %6, %7 : vector<64x128xf32>
    %9 = tpu.iota {dimensions = array<i32: 1>} : vector<64x128xi32>
    %c0_i32 = arith.constant 0 : i32
    %10 = vector.broadcast %c0_i32 : i32 to vector<64x128xi32>
    %11 = arith.cmpi sge, %9, %10 : vector<64x128xi32>
    %c17_i32 = arith.constant 17 : i32
    %12 = vector.broadcast %c17_i32 : i32 to vector<64x128xi32>
    %13 = arith.cmpi slt, %9, %12 : vector<64x128xi32>
    %14 = arith.andi %11, %13 : vector<64x128xi1>
    %cst_7 = arith.constant 0.000000e+00 : f32
    %15 = vector.broadcast %cst_7 : f32 to vector<64x128xf32>
    %16 = arith.select %14, %8, %15 : vector<64x128xi1>, vector<64x128xf32>
    %cst_8 = arith.constant dense<0xFF800000> : vector<64xf32>
    %17 = vector.multi_reduction <maximumf>, %16, %cst_8 [1] : vector<64x128xf32> to vector<64xf32>
    %18 = vector.shape_cast %17 : vector<64xf32> to vector<64x1xf32>
    %c16_i32 = arith.constant 16 : i32
    %19 = vector.broadcast %c16_i32 : i32 to vector<64x128xi32>
    %20 = arith.cmpi sge, %9, %19 : vector<64x128xi32>
    %c33_i32 = arith.constant 33 : i32
    %21 = vector.broadcast %c33_i32 : i32 to vector<64x128xi32>
    %22 = arith.cmpi slt, %9, %21 : vector<64x128xi32>
    %23 = arith.andi %20, %22 : vector<64x128xi1>
    %cst_9 = arith.constant 0.000000e+00 : f32
    %24 = vector.broadcast %cst_9 : f32 to vector<64x128xf32>
    %25 = arith.select %23, %8, %24 : vector<64x128xi1>, vector<64x128xf32>
    %cst_10 = arith.constant dense<0xFF800000> : vector<64xf32>
    %26 = vector.multi_reduction <maximumf>, %25, %cst_10 [1] : vector<64x128xf32> to vector<64xf32>
    %27 = vector.shape_cast %26 : vector<64xf32> to vector<64x1xf32>
    %c32_i32 = arith.constant 32 : i32
    %28 = vector.broadcast %c32_i32 : i32 to vector<64x128xi32>
    %29 = arith.cmpi sge, %9, %28 : vector<64x128xi32>
    %c49_i32 = arith.constant 49 : i32
    %30 = vector.broadcast %c49_i32 : i32 to vector<64x128xi32>
    %31 = arith.cmpi slt, %9, %30 : vector<64x128xi32>
    %32 = arith.andi %29, %31 : vector<64x128xi1>
    %cst_11 = arith.constant 0.000000e+00 : f32
    %33 = vector.broadcast %cst_11 : f32 to vector<64x128xf32>
    %34 = arith.select %32, %8, %33 : vector<64x128xi1>, vector<64x128xf32>
    %cst_12 = arith.constant dense<0xFF800000> : vector<64xf32>
    %35 = vector.multi_reduction <maximumf>, %34, %cst_12 [1] : vector<64x128xf32> to vector<64xf32>
    %36 = vector.shape_cast %35 : vector<64xf32> to vector<64x1xf32>
    %c48_i32 = arith.constant 48 : i32
    %37 = vector.broadcast %c48_i32 : i32 to vector<64x128xi32>
    %38 = arith.cmpi sge, %9, %37 : vector<64x128xi32>
    %c65_i32 = arith.constant 65 : i32
    %39 = vector.broadcast %c65_i32 : i32 to vector<64x128xi32>
    %40 = arith.cmpi slt, %9, %39 : vector<64x128xi32>
    %41 = arith.andi %38, %40 : vector<64x128xi1>
    %cst_13 = arith.constant 0.000000e+00 : f32
    %42 = vector.broadcast %cst_13 : f32 to vector<64x128xf32>
    %43 = arith.select %41, %8, %42 : vector<64x128xi1>, vector<64x128xf32>
    %cst_14 = arith.constant dense<0xFF800000> : vector<64xf32>
    %44 = vector.multi_reduction <maximumf>, %43, %cst_14 [1] : vector<64x128xf32> to vector<64xf32>
    %45 = vector.shape_cast %44 : vector<64xf32> to vector<64x1xf32>
    %46 = tpu.concatenate %18, %27, %36, %45 in 1 : vector<64x1xf32>, vector<64x1xf32>, vector<64x1xf32>, vector<64x1xf32> -> vector<64x4xf32>
    %c0_15 = arith.constant 0 : index
    %c0_16 = arith.constant 0 : index
    %c0_17 = arith.constant 0 : index
    %47 = vector.load %arg4[%c0_15, %c0_16, %c0_17] : memref<1x64x4xf32, #tpu.memory_space<vmem>>, vector<1x64x4xf32>
    %48 = vector.shape_cast %47 : vector<1x64x4xf32> to vector<64x4xf32>
    %49 = vector.shape_cast %46 : vector<64x4xf32> to vector<1x64x4xf32>
    tpu.vector_store %arg4[%c0_15, %c0_16, %c0_17], %49 {strides = array<i32>} : memref<1x64x4xf32, #tpu.memory_space<vmem>>, vector<1x64x4xf32>,
    return
  }
  func.func @transform_0(%arg0: i32) -> (i32, i32, i32) {
    %c0_i32 = arith.constant 0 : i32
    %c0_i32_0 = arith.constant 0 : i32
    %c0_i32_1 = arith.constant 0 : i32
    return %arg0, %c0_i32, %c0_i32_0 : i32, i32, i32
  }
  func.func @transform_1(%arg0: i32) -> (i32, i32) {
    %c0_i32 = arith.constant 0 : i32
    %c0_i32_0 = arith.constant 0 : i32
    %c0_i32_1 = arith.constant 0 : i32
    return %c0_i32, %c0_i32_0 : i32, i32
  }
  func.func @transform_2(%arg0: i32) -> (i32, i32) {
    %c0_i32 = arith.constant 0 : i32
    %c0_i32_0 = arith.constant 0 : i32
    %c0_i32_1 = arith.constant 0 : i32
    return %c0_i32, %c0_i32_0 : i32, i32
  }
  func.func @transform_3(%arg0: i32) -> (i32, i32, i32) {
    %c0_i32 = arith.constant 0 : i32
    %c0_i32_0 = arith.constant 0 : i32
    %c0_i32_1 = arith.constant 0 : i32
    return %arg0, %c0_i32, %c0_i32_0 : i32, i32, i32
  }
}

module attributes {stable_mosaic.version = 11 : i64} {
  func.func @_conv_bn_relu_pool_kernel(%arg0: i32, %arg1: memref<1x64x1024xbf16, #tpu.memory_space<vmem>>, %arg2: memref<4x64xbf16, #tpu.memory_space<vmem>>, %arg3: memref<4x1xf32, #tpu.memory_space<vmem>>, %arg4: memref<1x4x512xbf16, #tpu.memory_space<vmem>>) attributes {dimension_semantics = [#tpu.dimension_semantics<parallel>], iteration_bounds = array<i64: 2>, scalar_prefetch = 0 : i64, scratch_operands = 0 : i64, tpu.core_type = #tpu.core_type<tc>, window_params = [{transform_indices = @transform_0, window_bounds = array<i64: 1, 64, 1024>}, {pipeline_mode = #tpu.pipeline_mode<synchronous>, transform_indices = @transform_1, window_bounds = array<i64: 4, 64>}, {pipeline_mode = #tpu.pipeline_mode<synchronous>, transform_indices = @transform_2, window_bounds = array<i64: 4, 1>}, {transform_indices = @transform_3, window_bounds = array<i64: 1, 4, 512>}]} {
    %c0 = arith.constant 0 : index
    %c0_0 = arith.constant 0 : index
    %0 = vector.load %arg2[%c0, %c0_0] : memref<4x64xbf16, #tpu.memory_space<vmem>>, vector<4x64xbf16>
    %c0_1 = arith.constant 0 : index
    %c0_2 = arith.constant 0 : index
    %c0_3 = arith.constant 0 : index
    %1 = vector.load %arg1[%c0_1, %c0_2, %c0_3] : memref<1x64x1024xbf16, #tpu.memory_space<vmem>>, vector<1x64x1024xbf16>
    %2 = vector.shape_cast %1 : vector<1x64x1024xbf16> to vector<64x1024xbf16>
    %cst = arith.constant dense<0.000000e+00> : vector<4x1024xf32>
    %3 = tpu.matmul %0, %2, %cst {dimension_numbers = #tpu.dot_dimension_numbers<[1], [0], [0], [1], [0, 0, 1, 1], [], []>} : vector<4x64xbf16>, vector<64x1024xbf16>, vector<4x1024xf32> -> vector<4x1024xf32>
    %c0_4 = arith.constant 0 : index
    %c0_5 = arith.constant 0 : index
    %4 = vector.load %arg3[%c0_4, %c0_5] : memref<4x1xf32, #tpu.memory_space<vmem>>, vector<4x1xf32>
    %5 = vector.broadcast %4 : vector<4x1xf32> to vector<4x1024xf32>
    %6 = arith.addf %3, %5 : vector<4x1024xf32>
    %cst_6 = arith.constant 0.000000e+00 : f32
    %7 = vector.broadcast %cst_6 : f32 to vector<4x1024xf32>
    %8 = arith.maximumf %6, %7 : vector<4x1024xf32>
    %9 = vector.extract_strided_slice %8 {offsets = [0, 0], sizes = [4, 512], strides = [1, 1]} : vector<4x1024xf32> to vector<4x512xf32>
    %10 = vector.extract_strided_slice %8 {offsets = [0, 512], sizes = [4, 512], strides = [1, 1]} : vector<4x1024xf32> to vector<4x512xf32>
    %11 = arith.maximumf %9, %10 : vector<4x512xf32>
    %12 = arith.truncf %11 : vector<4x512xf32> to vector<4x512xbf16>
    %c0_7 = arith.constant 0 : index
    %c0_8 = arith.constant 0 : index
    %c0_9 = arith.constant 0 : index
    %13 = vector.load %arg4[%c0_7, %c0_8, %c0_9] : memref<1x4x512xbf16, #tpu.memory_space<vmem>>, vector<1x4x512xbf16>
    %14 = vector.shape_cast %13 : vector<1x4x512xbf16> to vector<4x512xbf16>
    %15 = vector.shape_cast %12 : vector<4x512xbf16> to vector<1x4x512xbf16>
    tpu.vector_store %arg4[%c0_7, %c0_8, %c0_9], %15 {strides = array<i32>} : memref<1x4x512xbf16, #tpu.memory_space<vmem>>, vector<1x4x512xbf16>,
    return
  }
  func.func @transform_0(%arg0: i32) -> (i32, i32, i32) {
    %c0_i32 = arith.constant 0 : i32
    %c0_i32_0 = arith.constant 0 : i32
    %c0_i32_1 = arith.constant 0 : i32
    return %arg0, %c0_i32, %c0_i32_0 : i32, i32, i32
  }
  func.func @transform_1(%arg0: i32) -> (i32, i32) {
    %c0_i32 = arith.constant 0 : i32
    %c0_i32_0 = arith.constant 0 : i32
    %c0_i32_1 = arith.constant 0 : i32
    return %c0_i32, %c0_i32_0 : i32, i32
  }
  func.func @transform_2(%arg0: i32) -> (i32, i32) {
    %c0_i32 = arith.constant 0 : i32
    %c0_i32_0 = arith.constant 0 : i32
    %c0_i32_1 = arith.constant 0 : i32
    return %c0_i32, %c0_i32_0 : i32, i32
  }
  func.func @transform_3(%arg0: i32) -> (i32, i32, i32) {
    %c0_i32 = arith.constant 0 : i32
    %c0_i32_0 = arith.constant 0 : i32
    %c0_i32_1 = arith.constant 0 : i32
    return %arg0, %c0_i32, %c0_i32_0 : i32, i32, i32
  }
}

module attributes {stable_mosaic.version = 11 : i64} {
  func.func @_conv_bn_relu_pool_kernel(%arg0: i32, %arg1: memref<1x64x512xbf16, #tpu.memory_space<vmem>>, %arg2: memref<8x64xbf16, #tpu.memory_space<vmem>>, %arg3: memref<8x1xf32, #tpu.memory_space<vmem>>, %arg4: memref<1x8x256xbf16, #tpu.memory_space<vmem>>) attributes {dimension_semantics = [#tpu.dimension_semantics<parallel>], iteration_bounds = array<i64: 2>, scalar_prefetch = 0 : i64, scratch_operands = 0 : i64, tpu.core_type = #tpu.core_type<tc>, window_params = [{transform_indices = @transform_0, window_bounds = array<i64: 1, 64, 512>}, {pipeline_mode = #tpu.pipeline_mode<synchronous>, transform_indices = @transform_1, window_bounds = array<i64: 8, 64>}, {pipeline_mode = #tpu.pipeline_mode<synchronous>, transform_indices = @transform_2, window_bounds = array<i64: 8, 1>}, {transform_indices = @transform_3, window_bounds = array<i64: 1, 8, 256>}]} {
    %c0 = arith.constant 0 : index
    %c0_0 = arith.constant 0 : index
    %0 = vector.load %arg2[%c0, %c0_0] : memref<8x64xbf16, #tpu.memory_space<vmem>>, vector<8x64xbf16>
    %c0_1 = arith.constant 0 : index
    %c0_2 = arith.constant 0 : index
    %c0_3 = arith.constant 0 : index
    %1 = vector.load %arg1[%c0_1, %c0_2, %c0_3] : memref<1x64x512xbf16, #tpu.memory_space<vmem>>, vector<1x64x512xbf16>
    %2 = vector.shape_cast %1 : vector<1x64x512xbf16> to vector<64x512xbf16>
    %cst = arith.constant dense<0.000000e+00> : vector<8x512xf32>
    %3 = tpu.matmul %0, %2, %cst {dimension_numbers = #tpu.dot_dimension_numbers<[1], [0], [0], [1], [0, 0, 1, 1], [], []>} : vector<8x64xbf16>, vector<64x512xbf16>, vector<8x512xf32> -> vector<8x512xf32>
    %c0_4 = arith.constant 0 : index
    %c0_5 = arith.constant 0 : index
    %4 = vector.load %arg3[%c0_4, %c0_5] : memref<8x1xf32, #tpu.memory_space<vmem>>, vector<8x1xf32>
    %5 = vector.broadcast %4 : vector<8x1xf32> to vector<8x512xf32>
    %6 = arith.addf %3, %5 : vector<8x512xf32>
    %cst_6 = arith.constant 0.000000e+00 : f32
    %7 = vector.broadcast %cst_6 : f32 to vector<8x512xf32>
    %8 = arith.maximumf %6, %7 : vector<8x512xf32>
    %9 = vector.extract_strided_slice %8 {offsets = [0, 0], sizes = [8, 256], strides = [1, 1]} : vector<8x512xf32> to vector<8x256xf32>
    %10 = vector.extract_strided_slice %8 {offsets = [0, 256], sizes = [8, 256], strides = [1, 1]} : vector<8x512xf32> to vector<8x256xf32>
    %11 = arith.maximumf %9, %10 : vector<8x256xf32>
    %12 = arith.truncf %11 : vector<8x256xf32> to vector<8x256xbf16>
    %c0_7 = arith.constant 0 : index
    %c0_8 = arith.constant 0 : index
    %c0_9 = arith.constant 0 : index
    %13 = vector.load %arg4[%c0_7, %c0_8, %c0_9] : memref<1x8x256xbf16, #tpu.memory_space<vmem>>, vector<1x8x256xbf16>
    %14 = vector.shape_cast %13 : vector<1x8x256xbf16> to vector<8x256xbf16>
    %15 = vector.shape_cast %12 : vector<8x256xbf16> to vector<1x8x256xbf16>
    tpu.vector_store %arg4[%c0_7, %c0_8, %c0_9], %15 {strides = array<i32>} : memref<1x8x256xbf16, #tpu.memory_space<vmem>>, vector<1x8x256xbf16>,
    return
  }
  func.func @transform_0(%arg0: i32) -> (i32, i32, i32) {
    %c0_i32 = arith.constant 0 : i32
    %c0_i32_0 = arith.constant 0 : i32
    %c0_i32_1 = arith.constant 0 : i32
    return %arg0, %c0_i32, %c0_i32_0 : i32, i32, i32
  }
  func.func @transform_1(%arg0: i32) -> (i32, i32) {
    %c0_i32 = arith.constant 0 : i32
    %c0_i32_0 = arith.constant 0 : i32
    %c0_i32_1 = arith.constant 0 : i32
    return %c0_i32, %c0_i32_0 : i32, i32
  }
  func.func @transform_2(%arg0: i32) -> (i32, i32) {
    %c0_i32 = arith.constant 0 : i32
    %c0_i32_0 = arith.constant 0 : i32
    %c0_i32_1 = arith.constant 0 : i32
    return %c0_i32, %c0_i32_0 : i32, i32
  }
  func.func @transform_3(%arg0: i32) -> (i32, i32, i32) {
    %c0_i32 = arith.constant 0 : i32
    %c0_i32_0 = arith.constant 0 : i32
    %c0_i32_1 = arith.constant 0 : i32
    return %arg0, %c0_i32, %c0_i32_0 : i32, i32, i32
  }
}

module attributes {stable_mosaic.version = 11 : i64} {
  func.func @_conv_bn_relu_pool_kernel(%arg0: i32, %arg1: memref<1x128x256xbf16, #tpu.memory_space<vmem>>, %arg2: memref<16x128xbf16, #tpu.memory_space<vmem>>, %arg3: memref<16x1xf32, #tpu.memory_space<vmem>>, %arg4: memref<1x16x128xbf16, #tpu.memory_space<vmem>>) attributes {dimension_semantics = [#tpu.dimension_semantics<parallel>], iteration_bounds = array<i64: 2>, scalar_prefetch = 0 : i64, scratch_operands = 0 : i64, tpu.core_type = #tpu.core_type<tc>, window_params = [{transform_indices = @transform_0, window_bounds = array<i64: 1, 128, 256>}, {pipeline_mode = #tpu.pipeline_mode<synchronous>, transform_indices = @transform_1, window_bounds = array<i64: 16, 128>}, {pipeline_mode = #tpu.pipeline_mode<synchronous>, transform_indices = @transform_2, window_bounds = array<i64: 16, 1>}, {transform_indices = @transform_3, window_bounds = array<i64: 1, 16, 128>}]} {
    %c0 = arith.constant 0 : index
    %c0_0 = arith.constant 0 : index
    %0 = vector.load %arg2[%c0, %c0_0] : memref<16x128xbf16, #tpu.memory_space<vmem>>, vector<16x128xbf16>
    %c0_1 = arith.constant 0 : index
    %c0_2 = arith.constant 0 : index
    %c0_3 = arith.constant 0 : index
    %1 = vector.load %arg1[%c0_1, %c0_2, %c0_3] : memref<1x128x256xbf16, #tpu.memory_space<vmem>>, vector<1x128x256xbf16>
    %2 = vector.shape_cast %1 : vector<1x128x256xbf16> to vector<128x256xbf16>
    %cst = arith.constant dense<0.000000e+00> : vector<16x256xf32>
    %3 = tpu.matmul %0, %2, %cst {dimension_numbers = #tpu.dot_dimension_numbers<[1], [0], [0], [1], [0, 0, 1, 1], [], []>} : vector<16x128xbf16>, vector<128x256xbf16>, vector<16x256xf32> -> vector<16x256xf32>
    %c0_4 = arith.constant 0 : index
    %c0_5 = arith.constant 0 : index
    %4 = vector.load %arg3[%c0_4, %c0_5] : memref<16x1xf32, #tpu.memory_space<vmem>>, vector<16x1xf32>
    %5 = vector.broadcast %4 : vector<16x1xf32> to vector<16x256xf32>
    %6 = arith.addf %3, %5 : vector<16x256xf32>
    %cst_6 = arith.constant 0.000000e+00 : f32
    %7 = vector.broadcast %cst_6 : f32 to vector<16x256xf32>
    %8 = arith.maximumf %6, %7 : vector<16x256xf32>
    %9 = vector.extract_strided_slice %8 {offsets = [0, 0], sizes = [16, 128], strides = [1, 1]} : vector<16x256xf32> to vector<16x128xf32>
    %10 = vector.extract_strided_slice %8 {offsets = [0, 128], sizes = [16, 128], strides = [1, 1]} : vector<16x256xf32> to vector<16x128xf32>
    %11 = arith.maximumf %9, %10 : vector<16x128xf32>
    %12 = arith.truncf %11 : vector<16x128xf32> to vector<16x128xbf16>
    %c0_7 = arith.constant 0 : index
    %c0_8 = arith.constant 0 : index
    %c0_9 = arith.constant 0 : index
    %13 = vector.load %arg4[%c0_7, %c0_8, %c0_9] : memref<1x16x128xbf16, #tpu.memory_space<vmem>>, vector<1x16x128xbf16>
    %14 = vector.shape_cast %13 : vector<1x16x128xbf16> to vector<16x128xbf16>
    %15 = vector.shape_cast %12 : vector<16x128xbf16> to vector<1x16x128xbf16>
    tpu.vector_store %arg4[%c0_7, %c0_8, %c0_9], %15 {strides = array<i32>} : memref<1x16x128xbf16, #tpu.memory_space<vmem>>, vector<1x16x128xbf16>,
    return
  }
  func.func @transform_0(%arg0: i32) -> (i32, i32, i32) {
    %c0_i32 = arith.constant 0 : i32
    %c0_i32_0 = arith.constant 0 : i32
    %c0_i32_1 = arith.constant 0 : i32
    return %arg0, %c0_i32, %c0_i32_0 : i32, i32, i32
  }
  func.func @transform_1(%arg0: i32) -> (i32, i32) {
    %c0_i32 = arith.constant 0 : i32
    %c0_i32_0 = arith.constant 0 : i32
    %c0_i32_1 = arith.constant 0 : i32
    return %c0_i32, %c0_i32_0 : i32, i32
  }
  func.func @transform_2(%arg0: i32) -> (i32, i32) {
    %c0_i32 = arith.constant 0 : i32
    %c0_i32_0 = arith.constant 0 : i32
    %c0_i32_1 = arith.constant 0 : i32
    return %c0_i32, %c0_i32_0 : i32, i32
  }
  func.func @transform_3(%arg0: i32) -> (i32, i32, i32) {
    %c0_i32 = arith.constant 0 : i32
    %c0_i32_0 = arith.constant 0 : i32
    %c0_i32_1 = arith.constant 0 : i32
    return %arg0, %c0_i32, %c0_i32_0 : i32, i32, i32
  }
}

module attributes {stable_mosaic.version = 11 : i64} {
  func.func @_conv_bn_relu_pool_kernel(%arg0: i32, %arg1: memref<1x256x256xbf16, #tpu.memory_space<vmem>>, %arg2: memref<32x256xbf16, #tpu.memory_space<vmem>>, %arg3: memref<32x1xf32, #tpu.memory_space<vmem>>, %arg4: memref<1x32x128xbf16, #tpu.memory_space<vmem>>) attributes {dimension_semantics = [#tpu.dimension_semantics<parallel>], iteration_bounds = array<i64: 2>, scalar_prefetch = 0 : i64, scratch_operands = 0 : i64, tpu.core_type = #tpu.core_type<tc>, window_params = [{transform_indices = @transform_0, window_bounds = array<i64: 1, 256, 256>}, {pipeline_mode = #tpu.pipeline_mode<synchronous>, transform_indices = @transform_1, window_bounds = array<i64: 32, 256>}, {pipeline_mode = #tpu.pipeline_mode<synchronous>, transform_indices = @transform_2, window_bounds = array<i64: 32, 1>}, {transform_indices = @transform_3, window_bounds = array<i64: 1, 32, 128>}]} {
    %c0 = arith.constant 0 : index
    %c0_0 = arith.constant 0 : index
    %0 = vector.load %arg2[%c0, %c0_0] : memref<32x256xbf16, #tpu.memory_space<vmem>>, vector<32x256xbf16>
    %c0_1 = arith.constant 0 : index
    %c0_2 = arith.constant 0 : index
    %c0_3 = arith.constant 0 : index
    %1 = vector.load %arg1[%c0_1, %c0_2, %c0_3] : memref<1x256x256xbf16, #tpu.memory_space<vmem>>, vector<1x256x256xbf16>
    %2 = vector.shape_cast %1 : vector<1x256x256xbf16> to vector<256x256xbf16>
    %cst = arith.constant dense<0.000000e+00> : vector<32x256xf32>
    %3 = tpu.matmul %0, %2, %cst {dimension_numbers = #tpu.dot_dimension_numbers<[1], [0], [0], [1], [0, 0, 1, 1], [], []>} : vector<32x256xbf16>, vector<256x256xbf16>, vector<32x256xf32> -> vector<32x256xf32>
    %c0_4 = arith.constant 0 : index
    %c0_5 = arith.constant 0 : index
    %4 = vector.load %arg3[%c0_4, %c0_5] : memref<32x1xf32, #tpu.memory_space<vmem>>, vector<32x1xf32>
    %5 = vector.broadcast %4 : vector<32x1xf32> to vector<32x256xf32>
    %6 = arith.addf %3, %5 : vector<32x256xf32>
    %cst_6 = arith.constant 0.000000e+00 : f32
    %7 = vector.broadcast %cst_6 : f32 to vector<32x256xf32>
    %8 = arith.maximumf %6, %7 : vector<32x256xf32>
    %9 = vector.extract_strided_slice %8 {offsets = [0, 0], sizes = [32, 128], strides = [1, 1]} : vector<32x256xf32> to vector<32x128xf32>
    %10 = vector.extract_strided_slice %8 {offsets = [0, 128], sizes = [32, 128], strides = [1, 1]} : vector<32x256xf32> to vector<32x128xf32>
    %11 = arith.maximumf %9, %10 : vector<32x128xf32>
    %12 = arith.truncf %11 : vector<32x128xf32> to vector<32x128xbf16>
    %c0_7 = arith.constant 0 : index
    %c0_8 = arith.constant 0 : index
    %c0_9 = arith.constant 0 : index
    %13 = vector.load %arg4[%c0_7, %c0_8, %c0_9] : memref<1x32x128xbf16, #tpu.memory_space<vmem>>, vector<1x32x128xbf16>
    %14 = vector.shape_cast %13 : vector<1x32x128xbf16> to vector<32x128xbf16>
    %15 = vector.shape_cast %12 : vector<32x128xbf16> to vector<1x32x128xbf16>
    tpu.vector_store %arg4[%c0_7, %c0_8, %c0_9], %15 {strides = array<i32>} : memref<1x32x128xbf16, #tpu.memory_space<vmem>>, vector<1x32x128xbf16>,
    return
  }
  func.func @transform_0(%arg0: i32) -> (i32, i32, i32) {
    %c0_i32 = arith.constant 0 : i32
    %c0_i32_0 = arith.constant 0 : i32
    %c0_i32_1 = arith.constant 0 : i32
    return %arg0, %c0_i32, %c0_i32_0 : i32, i32, i32
  }
  func.func @transform_1(%arg0: i32) -> (i32, i32) {
    %c0_i32 = arith.constant 0 : i32
    %c0_i32_0 = arith.constant 0 : i32
    %c0_i32_1 = arith.constant 0 : i32
    return %c0_i32, %c0_i32_0 : i32, i32
  }
  func.func @transform_2(%arg0: i32) -> (i32, i32) {
    %c0_i32 = arith.constant 0 : i32
    %c0_i32_0 = arith.constant 0 : i32
    %c0_i32_1 = arith.constant 0 : i32
    return %c0_i32, %c0_i32_0 : i32, i32
  }
  func.func @transform_3(%arg0: i32) -> (i32, i32, i32) {
    %c0_i32 = arith.constant 0 : i32
    %c0_i32_0 = arith.constant 0 : i32
    %c0_i32_1 = arith.constant 0 : i32
    return %arg0, %c0_i32, %c0_i32_0 : i32, i32, i32
  }
}

module attributes {stable_mosaic.version = 11 : i64} {
  func.func @_conv_bn_relu_adaptpool_kernel(%arg0: i32, %arg1: memref<1x512x128xbf16, #tpu.memory_space<vmem>>, %arg2: memref<64x512xbf16, #tpu.memory_space<vmem>>, %arg3: memref<64x1xf32, #tpu.memory_space<vmem>>, %arg4: memref<1x64x4xf32, #tpu.memory_space<vmem>>) attributes {dimension_semantics = [#tpu.dimension_semantics<parallel>], iteration_bounds = array<i64: 2>, scalar_prefetch = 0 : i64, scratch_operands = 0 : i64, tpu.core_type = #tpu.core_type<tc>, window_params = [{transform_indices = @transform_0, window_bounds = array<i64: 1, 512, 128>}, {pipeline_mode = #tpu.pipeline_mode<synchronous>, transform_indices = @transform_1, window_bounds = array<i64: 64, 512>}, {pipeline_mode = #tpu.pipeline_mode<synchronous>, transform_indices = @transform_2, window_bounds = array<i64: 64, 1>}, {transform_indices = @transform_3, window_bounds = array<i64: 1, 64, 4>}]} {
    %c0 = arith.constant 0 : index
    %c0_0 = arith.constant 0 : index
    %0 = vector.load %arg2[%c0, %c0_0] : memref<64x512xbf16, #tpu.memory_space<vmem>>, vector<64x512xbf16>
    %c0_1 = arith.constant 0 : index
    %c0_2 = arith.constant 0 : index
    %c0_3 = arith.constant 0 : index
    %1 = vector.load %arg1[%c0_1, %c0_2, %c0_3] : memref<1x512x128xbf16, #tpu.memory_space<vmem>>, vector<1x512x128xbf16>
    %2 = vector.shape_cast %1 : vector<1x512x128xbf16> to vector<512x128xbf16>
    %cst = arith.constant dense<0.000000e+00> : vector<64x128xf32>
    %3 = tpu.matmul %0, %2, %cst {dimension_numbers = #tpu.dot_dimension_numbers<[1], [0], [0], [1], [0, 0, 1, 1], [], []>} : vector<64x512xbf16>, vector<512x128xbf16>, vector<64x128xf32> -> vector<64x128xf32>
    %c0_4 = arith.constant 0 : index
    %c0_5 = arith.constant 0 : index
    %4 = vector.load %arg3[%c0_4, %c0_5] : memref<64x1xf32, #tpu.memory_space<vmem>>, vector<64x1xf32>
    %5 = vector.broadcast %4 : vector<64x1xf32> to vector<64x128xf32>
    %6 = arith.addf %3, %5 : vector<64x128xf32>
    %cst_6 = arith.constant 0.000000e+00 : f32
    %7 = vector.broadcast %cst_6 : f32 to vector<64x128xf32>
    %8 = arith.maximumf %6, %7 : vector<64x128xf32>
    %9 = tpu.iota {dimensions = array<i32: 1>} : vector<64x128xi32>
    %c0_i32 = arith.constant 0 : i32
    %10 = vector.broadcast %c0_i32 : i32 to vector<64x128xi32>
    %11 = arith.cmpi sge, %9, %10 : vector<64x128xi32>
    %c13_i32 = arith.constant 13 : i32
    %12 = vector.broadcast %c13_i32 : i32 to vector<64x128xi32>
    %13 = arith.cmpi slt, %9, %12 : vector<64x128xi32>
    %14 = arith.andi %11, %13 : vector<64x128xi1>
    %cst_7 = arith.constant 0.000000e+00 : f32
    %15 = vector.broadcast %cst_7 : f32 to vector<64x128xf32>
    %16 = arith.select %14, %8, %15 : vector<64x128xi1>, vector<64x128xf32>
    %cst_8 = arith.constant dense<0xFF800000> : vector<64xf32>
    %17 = vector.multi_reduction <maximumf>, %16, %cst_8 [1] : vector<64x128xf32> to vector<64xf32>
    %18 = vector.shape_cast %17 : vector<64xf32> to vector<64x1xf32>
    %c12_i32 = arith.constant 12 : i32
    %19 = vector.broadcast %c12_i32 : i32 to vector<64x128xi32>
    %20 = arith.cmpi sge, %9, %19 : vector<64x128xi32>
    %c25_i32 = arith.constant 25 : i32
    %21 = vector.broadcast %c25_i32 : i32 to vector<64x128xi32>
    %22 = arith.cmpi slt, %9, %21 : vector<64x128xi32>
    %23 = arith.andi %20, %22 : vector<64x128xi1>
    %cst_9 = arith.constant 0.000000e+00 : f32
    %24 = vector.broadcast %cst_9 : f32 to vector<64x128xf32>
    %25 = arith.select %23, %8, %24 : vector<64x128xi1>, vector<64x128xf32>
    %cst_10 = arith.constant dense<0xFF800000> : vector<64xf32>
    %26 = vector.multi_reduction <maximumf>, %25, %cst_10 [1] : vector<64x128xf32> to vector<64xf32>
    %27 = vector.shape_cast %26 : vector<64xf32> to vector<64x1xf32>
    %c25_i32_11 = arith.constant 25 : i32
    %28 = vector.broadcast %c25_i32_11 : i32 to vector<64x128xi32>
    %29 = arith.cmpi sge, %9, %28 : vector<64x128xi32>
    %c38_i32 = arith.constant 38 : i32
    %30 = vector.broadcast %c38_i32 : i32 to vector<64x128xi32>
    %31 = arith.cmpi slt, %9, %30 : vector<64x128xi32>
    %32 = arith.andi %29, %31 : vector<64x128xi1>
    %cst_12 = arith.constant 0.000000e+00 : f32
    %33 = vector.broadcast %cst_12 : f32 to vector<64x128xf32>
    %34 = arith.select %32, %8, %33 : vector<64x128xi1>, vector<64x128xf32>
    %cst_13 = arith.constant dense<0xFF800000> : vector<64xf32>
    %35 = vector.multi_reduction <maximumf>, %34, %cst_13 [1] : vector<64x128xf32> to vector<64xf32>
    %36 = vector.shape_cast %35 : vector<64xf32> to vector<64x1xf32>
    %c37_i32 = arith.constant 37 : i32
    %37 = vector.broadcast %c37_i32 : i32 to vector<64x128xi32>
    %38 = arith.cmpi sge, %9, %37 : vector<64x128xi32>
    %c50_i32 = arith.constant 50 : i32
    %39 = vector.broadcast %c50_i32 : i32 to vector<64x128xi32>
    %40 = arith.cmpi slt, %9, %39 : vector<64x128xi32>
    %41 = arith.andi %38, %40 : vector<64x128xi1>
    %cst_14 = arith.constant 0.000000e+00 : f32
    %42 = vector.broadcast %cst_14 : f32 to vector<64x128xf32>
    %43 = arith.select %41, %8, %42 : vector<64x128xi1>, vector<64x128xf32>
    %cst_15 = arith.constant dense<0xFF800000> : vector<64xf32>
    %44 = vector.multi_reduction <maximumf>, %43, %cst_15 [1] : vector<64x128xf32> to vector<64xf32>
    %45 = vector.shape_cast %44 : vector<64xf32> to vector<64x1xf32>
    %46 = tpu.concatenate %18, %27, %36, %45 in 1 : vector<64x1xf32>, vector<64x1xf32>, vector<64x1xf32>, vector<64x1xf32> -> vector<64x4xf32>
    %c0_16 = arith.constant 0 : index
    %c0_17 = arith.constant 0 : index
    %c0_18 = arith.constant 0 : index
    %47 = vector.load %arg4[%c0_16, %c0_17, %c0_18] : memref<1x64x4xf32, #tpu.memory_space<vmem>>, vector<1x64x4xf32>
    %48 = vector.shape_cast %47 : vector<1x64x4xf32> to vector<64x4xf32>
    %49 = vector.shape_cast %46 : vector<64x4xf32> to vector<1x64x4xf32>
    tpu.vector_store %arg4[%c0_16, %c0_17, %c0_18], %49 {strides = array<i32>} : memref<1x64x4xf32, #tpu.memory_space<vmem>>, vector<1x64x4xf32>,
    return
  }
  func.func @transform_0(%arg0: i32) -> (i32, i32, i32) {
    %c0_i32 = arith.constant 0 : i32
    %c0_i32_0 = arith.constant 0 : i32
    %c0_i32_1 = arith.constant 0 : i32
    return %arg0, %c0_i32, %c0_i32_0 : i32, i32, i32
  }
  func.func @transform_1(%arg0: i32) -> (i32, i32) {
    %c0_i32 = arith.constant 0 : i32
    %c0_i32_0 = arith.constant 0 : i32
    %c0_i32_1 = arith.constant 0 : i32
    return %c0_i32, %c0_i32_0 : i32, i32
  }
  func.func @transform_2(%arg0: i32) -> (i32, i32) {
    %c0_i32 = arith.constant 0 : i32
    %c0_i32_0 = arith.constant 0 : i32
    %c0_i32_1 = arith.constant 0 : i32
    return %c0_i32, %c0_i32_0 : i32, i32
  }
  func.func @transform_3(%arg0: i32) -> (i32, i32, i32) {
    %c0_i32 = arith.constant 0 : i32
    %c0_i32_0 = arith.constant 0 : i32
    %c0_i32_1 = arith.constant 0 : i32
    return %arg0, %c0_i32, %c0_i32_0 : i32, i32, i32
  }
}

module attributes {stable_mosaic.version = 11 : i64} {
  func.func @_conv_bn_relu_pool_kernel(%arg0: i32, %arg1: memref<1x128x1024xbf16, #tpu.memory_space<vmem>>, %arg2: memref<8x128xbf16, #tpu.memory_space<vmem>>, %arg3: memref<8x1xf32, #tpu.memory_space<vmem>>, %arg4: memref<1x8x512xbf16, #tpu.memory_space<vmem>>) attributes {dimension_semantics = [#tpu.dimension_semantics<parallel>], iteration_bounds = array<i64: 2>, scalar_prefetch = 0 : i64, scratch_operands = 0 : i64, tpu.core_type = #tpu.core_type<tc>, window_params = [{transform_indices = @transform_0, window_bounds = array<i64: 1, 128, 1024>}, {pipeline_mode = #tpu.pipeline_mode<synchronous>, transform_indices = @transform_1, window_bounds = array<i64: 8, 128>}, {pipeline_mode = #tpu.pipeline_mode<synchronous>, transform_indices = @transform_2, window_bounds = array<i64: 8, 1>}, {transform_indices = @transform_3, window_bounds = array<i64: 1, 8, 512>}]} {
    %c0 = arith.constant 0 : index
    %c0_0 = arith.constant 0 : index
    %0 = vector.load %arg2[%c0, %c0_0] : memref<8x128xbf16, #tpu.memory_space<vmem>>, vector<8x128xbf16>
    %c0_1 = arith.constant 0 : index
    %c0_2 = arith.constant 0 : index
    %c0_3 = arith.constant 0 : index
    %1 = vector.load %arg1[%c0_1, %c0_2, %c0_3] : memref<1x128x1024xbf16, #tpu.memory_space<vmem>>, vector<1x128x1024xbf16>
    %2 = vector.shape_cast %1 : vector<1x128x1024xbf16> to vector<128x1024xbf16>
    %cst = arith.constant dense<0.000000e+00> : vector<8x1024xf32>
    %3 = tpu.matmul %0, %2, %cst {dimension_numbers = #tpu.dot_dimension_numbers<[1], [0], [0], [1], [0, 0, 1, 1], [], []>} : vector<8x128xbf16>, vector<128x1024xbf16>, vector<8x1024xf32> -> vector<8x1024xf32>
    %c0_4 = arith.constant 0 : index
    %c0_5 = arith.constant 0 : index
    %4 = vector.load %arg3[%c0_4, %c0_5] : memref<8x1xf32, #tpu.memory_space<vmem>>, vector<8x1xf32>
    %5 = vector.broadcast %4 : vector<8x1xf32> to vector<8x1024xf32>
    %6 = arith.addf %3, %5 : vector<8x1024xf32>
    %cst_6 = arith.constant 0.000000e+00 : f32
    %7 = vector.broadcast %cst_6 : f32 to vector<8x1024xf32>
    %8 = arith.maximumf %6, %7 : vector<8x1024xf32>
    %9 = vector.extract_strided_slice %8 {offsets = [0, 0], sizes = [8, 512], strides = [1, 1]} : vector<8x1024xf32> to vector<8x512xf32>
    %10 = vector.extract_strided_slice %8 {offsets = [0, 512], sizes = [8, 512], strides = [1, 1]} : vector<8x1024xf32> to vector<8x512xf32>
    %11 = arith.maximumf %9, %10 : vector<8x512xf32>
    %12 = arith.truncf %11 : vector<8x512xf32> to vector<8x512xbf16>
    %c0_7 = arith.constant 0 : index
    %c0_8 = arith.constant 0 : index
    %c0_9 = arith.constant 0 : index
    %13 = vector.load %arg4[%c0_7, %c0_8, %c0_9] : memref<1x8x512xbf16, #tpu.memory_space<vmem>>, vector<1x8x512xbf16>
    %14 = vector.shape_cast %13 : vector<1x8x512xbf16> to vector<8x512xbf16>
    %15 = vector.shape_cast %12 : vector<8x512xbf16> to vector<1x8x512xbf16>
    tpu.vector_store %arg4[%c0_7, %c0_8, %c0_9], %15 {strides = array<i32>} : memref<1x8x512xbf16, #tpu.memory_space<vmem>>, vector<1x8x512xbf16>,
    return
  }
  func.func @transform_0(%arg0: i32) -> (i32, i32, i32) {
    %c0_i32 = arith.constant 0 : i32
    %c0_i32_0 = arith.constant 0 : i32
    %c0_i32_1 = arith.constant 0 : i32
    return %arg0, %c0_i32, %c0_i32_0 : i32, i32, i32
  }
  func.func @transform_1(%arg0: i32) -> (i32, i32) {
    %c0_i32 = arith.constant 0 : i32
    %c0_i32_0 = arith.constant 0 : i32
    %c0_i32_1 = arith.constant 0 : i32
    return %c0_i32, %c0_i32_0 : i32, i32
  }
  func.func @transform_2(%arg0: i32) -> (i32, i32) {
    %c0_i32 = arith.constant 0 : i32
    %c0_i32_0 = arith.constant 0 : i32
    %c0_i32_1 = arith.constant 0 : i32
    return %c0_i32, %c0_i32_0 : i32, i32
  }
  func.func @transform_3(%arg0: i32) -> (i32, i32, i32) {
    %c0_i32 = arith.constant 0 : i32
    %c0_i32_0 = arith.constant 0 : i32
    %c0_i32_1 = arith.constant 0 : i32
    return %arg0, %c0_i32, %c0_i32_0 : i32, i32, i32
  }
}

module attributes {stable_mosaic.version = 11 : i64} {
  func.func @_conv_bn_relu_pool_kernel(%arg0: i32, %arg1: memref<1x256x512xbf16, #tpu.memory_space<vmem>>, %arg2: memref<16x256xbf16, #tpu.memory_space<vmem>>, %arg3: memref<16x1xf32, #tpu.memory_space<vmem>>, %arg4: memref<1x16x256xbf16, #tpu.memory_space<vmem>>) attributes {dimension_semantics = [#tpu.dimension_semantics<parallel>], iteration_bounds = array<i64: 2>, scalar_prefetch = 0 : i64, scratch_operands = 0 : i64, tpu.core_type = #tpu.core_type<tc>, window_params = [{transform_indices = @transform_0, window_bounds = array<i64: 1, 256, 512>}, {pipeline_mode = #tpu.pipeline_mode<synchronous>, transform_indices = @transform_1, window_bounds = array<i64: 16, 256>}, {pipeline_mode = #tpu.pipeline_mode<synchronous>, transform_indices = @transform_2, window_bounds = array<i64: 16, 1>}, {transform_indices = @transform_3, window_bounds = array<i64: 1, 16, 256>}]} {
    %c0 = arith.constant 0 : index
    %c0_0 = arith.constant 0 : index
    %0 = vector.load %arg2[%c0, %c0_0] : memref<16x256xbf16, #tpu.memory_space<vmem>>, vector<16x256xbf16>
    %c0_1 = arith.constant 0 : index
    %c0_2 = arith.constant 0 : index
    %c0_3 = arith.constant 0 : index
    %1 = vector.load %arg1[%c0_1, %c0_2, %c0_3] : memref<1x256x512xbf16, #tpu.memory_space<vmem>>, vector<1x256x512xbf16>
    %2 = vector.shape_cast %1 : vector<1x256x512xbf16> to vector<256x512xbf16>
    %cst = arith.constant dense<0.000000e+00> : vector<16x512xf32>
    %3 = tpu.matmul %0, %2, %cst {dimension_numbers = #tpu.dot_dimension_numbers<[1], [0], [0], [1], [0, 0, 1, 1], [], []>} : vector<16x256xbf16>, vector<256x512xbf16>, vector<16x512xf32> -> vector<16x512xf32>
    %c0_4 = arith.constant 0 : index
    %c0_5 = arith.constant 0 : index
    %4 = vector.load %arg3[%c0_4, %c0_5] : memref<16x1xf32, #tpu.memory_space<vmem>>, vector<16x1xf32>
    %5 = vector.broadcast %4 : vector<16x1xf32> to vector<16x512xf32>
    %6 = arith.addf %3, %5 : vector<16x512xf32>
    %cst_6 = arith.constant 0.000000e+00 : f32
    %7 = vector.broadcast %cst_6 : f32 to vector<16x512xf32>
    %8 = arith.maximumf %6, %7 : vector<16x512xf32>
    %9 = vector.extract_strided_slice %8 {offsets = [0, 0], sizes = [16, 256], strides = [1, 1]} : vector<16x512xf32> to vector<16x256xf32>
    %10 = vector.extract_strided_slice %8 {offsets = [0, 256], sizes = [16, 256], strides = [1, 1]} : vector<16x512xf32> to vector<16x256xf32>
    %11 = arith.maximumf %9, %10 : vector<16x256xf32>
    %12 = arith.truncf %11 : vector<16x256xf32> to vector<16x256xbf16>
    %c0_7 = arith.constant 0 : index
    %c0_8 = arith.constant 0 : index
    %c0_9 = arith.constant 0 : index
    %13 = vector.load %arg4[%c0_7, %c0_8, %c0_9] : memref<1x16x256xbf16, #tpu.memory_space<vmem>>, vector<1x16x256xbf16>
    %14 = vector.shape_cast %13 : vector<1x16x256xbf16> to vector<16x256xbf16>
    %15 = vector.shape_cast %12 : vector<16x256xbf16> to vector<1x16x256xbf16>
    tpu.vector_store %arg4[%c0_7, %c0_8, %c0_9], %15 {strides = array<i32>} : memref<1x16x256xbf16, #tpu.memory_space<vmem>>, vector<1x16x256xbf16>,
    return
  }
  func.func @transform_0(%arg0: i32) -> (i32, i32, i32) {
    %c0_i32 = arith.constant 0 : i32
    %c0_i32_0 = arith.constant 0 : i32
    %c0_i32_1 = arith.constant 0 : i32
    return %arg0, %c0_i32, %c0_i32_0 : i32, i32, i32
  }
  func.func @transform_1(%arg0: i32) -> (i32, i32) {
    %c0_i32 = arith.constant 0 : i32
    %c0_i32_0 = arith.constant 0 : i32
    %c0_i32_1 = arith.constant 0 : i32
    return %c0_i32, %c0_i32_0 : i32, i32
  }
  func.func @transform_2(%arg0: i32) -> (i32, i32) {
    %c0_i32 = arith.constant 0 : i32
    %c0_i32_0 = arith.constant 0 : i32
    %c0_i32_1 = arith.constant 0 : i32
    return %c0_i32, %c0_i32_0 : i32, i32
  }
  func.func @transform_3(%arg0: i32) -> (i32, i32, i32) {
    %c0_i32 = arith.constant 0 : i32
    %c0_i32_0 = arith.constant 0 : i32
    %c0_i32_1 = arith.constant 0 : i32
    return %arg0, %c0_i32, %c0_i32_0 : i32, i32, i32
  }
}

module attributes {stable_mosaic.version = 11 : i64} {
  func.func @_conv_bn_relu_pool_kernel(%arg0: i32, %arg1: memref<1x512x256xbf16, #tpu.memory_space<vmem>>, %arg2: memref<32x512xbf16, #tpu.memory_space<vmem>>, %arg3: memref<32x1xf32, #tpu.memory_space<vmem>>, %arg4: memref<1x32x128xbf16, #tpu.memory_space<vmem>>) attributes {dimension_semantics = [#tpu.dimension_semantics<parallel>], iteration_bounds = array<i64: 2>, scalar_prefetch = 0 : i64, scratch_operands = 0 : i64, tpu.core_type = #tpu.core_type<tc>, window_params = [{transform_indices = @transform_0, window_bounds = array<i64: 1, 512, 256>}, {pipeline_mode = #tpu.pipeline_mode<synchronous>, transform_indices = @transform_1, window_bounds = array<i64: 32, 512>}, {pipeline_mode = #tpu.pipeline_mode<synchronous>, transform_indices = @transform_2, window_bounds = array<i64: 32, 1>}, {transform_indices = @transform_3, window_bounds = array<i64: 1, 32, 128>}]} {
    %c0 = arith.constant 0 : index
    %c0_0 = arith.constant 0 : index
    %0 = vector.load %arg2[%c0, %c0_0] : memref<32x512xbf16, #tpu.memory_space<vmem>>, vector<32x512xbf16>
    %c0_1 = arith.constant 0 : index
    %c0_2 = arith.constant 0 : index
    %c0_3 = arith.constant 0 : index
    %1 = vector.load %arg1[%c0_1, %c0_2, %c0_3] : memref<1x512x256xbf16, #tpu.memory_space<vmem>>, vector<1x512x256xbf16>
    %2 = vector.shape_cast %1 : vector<1x512x256xbf16> to vector<512x256xbf16>
    %cst = arith.constant dense<0.000000e+00> : vector<32x256xf32>
    %3 = tpu.matmul %0, %2, %cst {dimension_numbers = #tpu.dot_dimension_numbers<[1], [0], [0], [1], [0, 0, 1, 1], [], []>} : vector<32x512xbf16>, vector<512x256xbf16>, vector<32x256xf32> -> vector<32x256xf32>
    %c0_4 = arith.constant 0 : index
    %c0_5 = arith.constant 0 : index
    %4 = vector.load %arg3[%c0_4, %c0_5] : memref<32x1xf32, #tpu.memory_space<vmem>>, vector<32x1xf32>
    %5 = vector.broadcast %4 : vector<32x1xf32> to vector<32x256xf32>
    %6 = arith.addf %3, %5 : vector<32x256xf32>
    %cst_6 = arith.constant 0.000000e+00 : f32
    %7 = vector.broadcast %cst_6 : f32 to vector<32x256xf32>
    %8 = arith.maximumf %6, %7 : vector<32x256xf32>
    %9 = vector.extract_strided_slice %8 {offsets = [0, 0], sizes = [32, 128], strides = [1, 1]} : vector<32x256xf32> to vector<32x128xf32>
    %10 = vector.extract_strided_slice %8 {offsets = [0, 128], sizes = [32, 128], strides = [1, 1]} : vector<32x256xf32> to vector<32x128xf32>
    %11 = arith.maximumf %9, %10 : vector<32x128xf32>
    %12 = arith.truncf %11 : vector<32x128xf32> to vector<32x128xbf16>
    %c0_7 = arith.constant 0 : index
    %c0_8 = arith.constant 0 : index
    %c0_9 = arith.constant 0 : index
    %13 = vector.load %arg4[%c0_7, %c0_8, %c0_9] : memref<1x32x128xbf16, #tpu.memory_space<vmem>>, vector<1x32x128xbf16>
    %14 = vector.shape_cast %13 : vector<1x32x128xbf16> to vector<32x128xbf16>
    %15 = vector.shape_cast %12 : vector<32x128xbf16> to vector<1x32x128xbf16>
    tpu.vector_store %arg4[%c0_7, %c0_8, %c0_9], %15 {strides = array<i32>} : memref<1x32x128xbf16, #tpu.memory_space<vmem>>, vector<1x32x128xbf16>,
    return
  }
  func.func @transform_0(%arg0: i32) -> (i32, i32, i32) {
    %c0_i32 = arith.constant 0 : i32
    %c0_i32_0 = arith.constant 0 : i32
    %c0_i32_1 = arith.constant 0 : i32
    return %arg0, %c0_i32, %c0_i32_0 : i32, i32, i32
  }
  func.func @transform_1(%arg0: i32) -> (i32, i32) {
    %c0_i32 = arith.constant 0 : i32
    %c0_i32_0 = arith.constant 0 : i32
    %c0_i32_1 = arith.constant 0 : i32
    return %c0_i32, %c0_i32_0 : i32, i32
  }
  func.func @transform_2(%arg0: i32) -> (i32, i32) {
    %c0_i32 = arith.constant 0 : i32
    %c0_i32_0 = arith.constant 0 : i32
    %c0_i32_1 = arith.constant 0 : i32
    return %c0_i32, %c0_i32_0 : i32, i32
  }
  func.func @transform_3(%arg0: i32) -> (i32, i32, i32) {
    %c0_i32 = arith.constant 0 : i32
    %c0_i32_0 = arith.constant 0 : i32
    %c0_i32_1 = arith.constant 0 : i32
    return %arg0, %c0_i32, %c0_i32_0 : i32, i32, i32
  }
}

module attributes {stable_mosaic.version = 11 : i64} {
  func.func @_conv_bn_relu_pool_kernel(%arg0: i32, %arg1: memref<1x1024x256xbf16, #tpu.memory_space<vmem>>, %arg2: memref<64x1024xbf16, #tpu.memory_space<vmem>>, %arg3: memref<64x1xf32, #tpu.memory_space<vmem>>, %arg4: memref<1x64x128xbf16, #tpu.memory_space<vmem>>) attributes {dimension_semantics = [#tpu.dimension_semantics<parallel>], iteration_bounds = array<i64: 2>, scalar_prefetch = 0 : i64, scratch_operands = 0 : i64, tpu.core_type = #tpu.core_type<tc>, window_params = [{transform_indices = @transform_0, window_bounds = array<i64: 1, 1024, 256>}, {pipeline_mode = #tpu.pipeline_mode<synchronous>, transform_indices = @transform_1, window_bounds = array<i64: 64, 1024>}, {pipeline_mode = #tpu.pipeline_mode<synchronous>, transform_indices = @transform_2, window_bounds = array<i64: 64, 1>}, {transform_indices = @transform_3, window_bounds = array<i64: 1, 64, 128>}]} {
    %c0 = arith.constant 0 : index
    %c0_0 = arith.constant 0 : index
    %0 = vector.load %arg2[%c0, %c0_0] : memref<64x1024xbf16, #tpu.memory_space<vmem>>, vector<64x1024xbf16>
    %c0_1 = arith.constant 0 : index
    %c0_2 = arith.constant 0 : index
    %c0_3 = arith.constant 0 : index
    %1 = vector.load %arg1[%c0_1, %c0_2, %c0_3] : memref<1x1024x256xbf16, #tpu.memory_space<vmem>>, vector<1x1024x256xbf16>
    %2 = vector.shape_cast %1 : vector<1x1024x256xbf16> to vector<1024x256xbf16>
    %cst = arith.constant dense<0.000000e+00> : vector<64x256xf32>
    %3 = tpu.matmul %0, %2, %cst {dimension_numbers = #tpu.dot_dimension_numbers<[1], [0], [0], [1], [0, 0, 1, 1], [], []>} : vector<64x1024xbf16>, vector<1024x256xbf16>, vector<64x256xf32> -> vector<64x256xf32>
    %c0_4 = arith.constant 0 : index
    %c0_5 = arith.constant 0 : index
    %4 = vector.load %arg3[%c0_4, %c0_5] : memref<64x1xf32, #tpu.memory_space<vmem>>, vector<64x1xf32>
    %5 = vector.broadcast %4 : vector<64x1xf32> to vector<64x256xf32>
    %6 = arith.addf %3, %5 : vector<64x256xf32>
    %cst_6 = arith.constant 0.000000e+00 : f32
    %7 = vector.broadcast %cst_6 : f32 to vector<64x256xf32>
    %8 = arith.maximumf %6, %7 : vector<64x256xf32>
    %9 = vector.extract_strided_slice %8 {offsets = [0, 0], sizes = [64, 128], strides = [1, 1]} : vector<64x256xf32> to vector<64x128xf32>
    %10 = vector.extract_strided_slice %8 {offsets = [0, 128], sizes = [64, 128], strides = [1, 1]} : vector<64x256xf32> to vector<64x128xf32>
    %11 = arith.maximumf %9, %10 : vector<64x128xf32>
    %12 = arith.truncf %11 : vector<64x128xf32> to vector<64x128xbf16>
    %c0_7 = arith.constant 0 : index
    %c0_8 = arith.constant 0 : index
    %c0_9 = arith.constant 0 : index
    %13 = vector.load %arg4[%c0_7, %c0_8, %c0_9] : memref<1x64x128xbf16, #tpu.memory_space<vmem>>, vector<1x64x128xbf16>
    %14 = vector.shape_cast %13 : vector<1x64x128xbf16> to vector<64x128xbf16>
    %15 = vector.shape_cast %12 : vector<64x128xbf16> to vector<1x64x128xbf16>
    tpu.vector_store %arg4[%c0_7, %c0_8, %c0_9], %15 {strides = array<i32>} : memref<1x64x128xbf16, #tpu.memory_space<vmem>>, vector<1x64x128xbf16>,
    return
  }
  func.func @transform_0(%arg0: i32) -> (i32, i32, i32) {
    %c0_i32 = arith.constant 0 : i32
    %c0_i32_0 = arith.constant 0 : i32
    %c0_i32_1 = arith.constant 0 : i32
    return %arg0, %c0_i32, %c0_i32_0 : i32, i32, i32
  }
  func.func @transform_1(%arg0: i32) -> (i32, i32) {
    %c0_i32 = arith.constant 0 : i32
    %c0_i32_0 = arith.constant 0 : i32
    %c0_i32_1 = arith.constant 0 : i32
    return %c0_i32, %c0_i32_0 : i32, i32
  }
  func.func @transform_2(%arg0: i32) -> (i32, i32) {
    %c0_i32 = arith.constant 0 : i32
    %c0_i32_0 = arith.constant 0 : i32
    %c0_i32_1 = arith.constant 0 : i32
    return %c0_i32, %c0_i32_0 : i32, i32
  }
  func.func @transform_3(%arg0: i32) -> (i32, i32, i32) {
    %c0_i32 = arith.constant 0 : i32
    %c0_i32_0 = arith.constant 0 : i32
    %c0_i32_1 = arith.constant 0 : i32
    return %arg0, %c0_i32, %c0_i32_0 : i32, i32, i32
  }
}

module attributes {stable_mosaic.version = 11 : i64} {
  func.func @_conv_bn_relu_adaptpool_kernel(%arg0: i32, %arg1: memref<1x2048x128xbf16, #tpu.memory_space<vmem>>, %arg2: memref<128x2048xbf16, #tpu.memory_space<vmem>>, %arg3: memref<128x1xf32, #tpu.memory_space<vmem>>, %arg4: memref<1x128x4xf32, #tpu.memory_space<vmem>>) attributes {dimension_semantics = [#tpu.dimension_semantics<parallel>], iteration_bounds = array<i64: 2>, scalar_prefetch = 0 : i64, scratch_operands = 0 : i64, tpu.core_type = #tpu.core_type<tc>, window_params = [{transform_indices = @transform_0, window_bounds = array<i64: 1, 2048, 128>}, {pipeline_mode = #tpu.pipeline_mode<synchronous>, transform_indices = @transform_1, window_bounds = array<i64: 128, 2048>}, {pipeline_mode = #tpu.pipeline_mode<synchronous>, transform_indices = @transform_2, window_bounds = array<i64: 128, 1>}, {transform_indices = @transform_3, window_bounds = array<i64: 1, 128, 4>}]} {
    %c0 = arith.constant 0 : index
    %c0_0 = arith.constant 0 : index
    %0 = vector.load %arg2[%c0, %c0_0] : memref<128x2048xbf16, #tpu.memory_space<vmem>>, vector<128x2048xbf16>
    %c0_1 = arith.constant 0 : index
    %c0_2 = arith.constant 0 : index
    %c0_3 = arith.constant 0 : index
    %1 = vector.load %arg1[%c0_1, %c0_2, %c0_3] : memref<1x2048x128xbf16, #tpu.memory_space<vmem>>, vector<1x2048x128xbf16>
    %2 = vector.shape_cast %1 : vector<1x2048x128xbf16> to vector<2048x128xbf16>
    %cst = arith.constant dense<0.000000e+00> : vector<128x128xf32>
    %3 = tpu.matmul %0, %2, %cst {dimension_numbers = #tpu.dot_dimension_numbers<[1], [0], [0], [1], [0, 0, 1, 1], [], []>} : vector<128x2048xbf16>, vector<2048x128xbf16>, vector<128x128xf32> -> vector<128x128xf32>
    %c0_4 = arith.constant 0 : index
    %c0_5 = arith.constant 0 : index
    %4 = vector.load %arg3[%c0_4, %c0_5] : memref<128x1xf32, #tpu.memory_space<vmem>>, vector<128x1xf32>
    %5 = vector.broadcast %4 : vector<128x1xf32> to vector<128x128xf32>
    %6 = arith.addf %3, %5 : vector<128x128xf32>
    %cst_6 = arith.constant 0.000000e+00 : f32
    %7 = vector.broadcast %cst_6 : f32 to vector<128x128xf32>
    %8 = arith.maximumf %6, %7 : vector<128x128xf32>
    %9 = tpu.iota {dimensions = array<i32: 1>} : vector<128x128xi32>
    %c0_i32 = arith.constant 0 : i32
    %10 = vector.broadcast %c0_i32 : i32 to vector<128x128xi32>
    %11 = arith.cmpi sge, %9, %10 : vector<128x128xi32>
    %c5_i32 = arith.constant 5 : i32
    %12 = vector.broadcast %c5_i32 : i32 to vector<128x128xi32>
    %13 = arith.cmpi slt, %9, %12 : vector<128x128xi32>
    %14 = arith.andi %11, %13 : vector<128x128xi1>
    %cst_7 = arith.constant 0.000000e+00 : f32
    %15 = vector.broadcast %cst_7 : f32 to vector<128x128xf32>
    %16 = arith.select %14, %8, %15 : vector<128x128xi1>, vector<128x128xf32>
    %cst_8 = arith.constant dense<0xFF800000> : vector<128xf32>
    %17 = vector.multi_reduction <maximumf>, %16, %cst_8 [1] : vector<128x128xf32> to vector<128xf32>
    %18 = vector.shape_cast %17 : vector<128xf32> to vector<128x1xf32>
    %c4_i32 = arith.constant 4 : i32
    %19 = vector.broadcast %c4_i32 : i32 to vector<128x128xi32>
    %20 = arith.cmpi sge, %9, %19 : vector<128x128xi32>
    %c10_i32 = arith.constant 10 : i32
    %21 = vector.broadcast %c10_i32 : i32 to vector<128x128xi32>
    %22 = arith.cmpi slt, %9, %21 : vector<128x128xi32>
    %23 = arith.andi %20, %22 : vector<128x128xi1>
    %cst_9 = arith.constant 0.000000e+00 : f32
    %24 = vector.broadcast %cst_9 : f32 to vector<128x128xf32>
    %25 = arith.select %23, %8, %24 : vector<128x128xi1>, vector<128x128xf32>
    %cst_10 = arith.constant dense<0xFF800000> : vector<128xf32>
    %26 = vector.multi_reduction <maximumf>, %25, %cst_10 [1] : vector<128x128xf32> to vector<128xf32>
    %27 = vector.shape_cast %26 : vector<128xf32> to vector<128x1xf32>
    %c9_i32 = arith.constant 9 : i32
    %28 = vector.broadcast %c9_i32 : i32 to vector<128x128xi32>
    %29 = arith.cmpi sge, %9, %28 : vector<128x128xi32>
    %c15_i32 = arith.constant 15 : i32
    %30 = vector.broadcast %c15_i32 : i32 to vector<128x128xi32>
    %31 = arith.cmpi slt, %9, %30 : vector<128x128xi32>
    %32 = arith.andi %29, %31 : vector<128x128xi1>
    %cst_11 = arith.constant 0.000000e+00 : f32
    %33 = vector.broadcast %cst_11 : f32 to vector<128x128xf32>
    %34 = arith.select %32, %8, %33 : vector<128x128xi1>, vector<128x128xf32>
    %cst_12 = arith.constant dense<0xFF800000> : vector<128xf32>
    %35 = vector.multi_reduction <maximumf>, %34, %cst_12 [1] : vector<128x128xf32> to vector<128xf32>
    %36 = vector.shape_cast %35 : vector<128xf32> to vector<128x1xf32>
    %c14_i32 = arith.constant 14 : i32
    %37 = vector.broadcast %c14_i32 : i32 to vector<128x128xi32>
    %38 = arith.cmpi sge, %9, %37 : vector<128x128xi32>
    %c19_i32 = arith.constant 19 : i32
    %39 = vector.broadcast %c19_i32 : i32 to vector<128x128xi32>
    %40 = arith.cmpi slt, %9, %39 : vector<128x128xi32>
    %41 = arith.andi %38, %40 : vector<128x128xi1>
    %cst_13 = arith.constant 0.000000e+00 : f32
    %42 = vector.broadcast %cst_13 : f32 to vector<128x128xf32>
    %43 = arith.select %41, %8, %42 : vector<128x128xi1>, vector<128x128xf32>
    %cst_14 = arith.constant dense<0xFF800000> : vector<128xf32>
    %44 = vector.multi_reduction <maximumf>, %43, %cst_14 [1] : vector<128x128xf32> to vector<128xf32>
    %45 = vector.shape_cast %44 : vector<128xf32> to vector<128x1xf32>
    %46 = tpu.concatenate %18, %27, %36, %45 in 1 : vector<128x1xf32>, vector<128x1xf32>, vector<128x1xf32>, vector<128x1xf32> -> vector<128x4xf32>
    %c0_15 = arith.constant 0 : index
    %c0_16 = arith.constant 0 : index
    %c0_17 = arith.constant 0 : index
    %47 = vector.load %arg4[%c0_15, %c0_16, %c0_17] : memref<1x128x4xf32, #tpu.memory_space<vmem>>, vector<1x128x4xf32>
    %48 = vector.shape_cast %47 : vector<1x128x4xf32> to vector<128x4xf32>
    %49 = vector.shape_cast %46 : vector<128x4xf32> to vector<1x128x4xf32>
    tpu.vector_store %arg4[%c0_15, %c0_16, %c0_17], %49 {strides = array<i32>} : memref<1x128x4xf32, #tpu.memory_space<vmem>>, vector<1x128x4xf32>,
    return
  }
  func.func @transform_0(%arg0: i32) -> (i32, i32, i32) {
    %c0_i32 = arith.constant 0 : i32
    %c0_i32_0 = arith.constant 0 : i32
    %c0_i32_1 = arith.constant 0 : i32
    return %arg0, %c0_i32, %c0_i32_0 : i32, i32, i32
  }
  func.func @transform_1(%arg0: i32) -> (i32, i32) {
    %c0_i32 = arith.constant 0 : i32
    %c0_i32_0 = arith.constant 0 : i32
    %c0_i32_1 = arith.constant 0 : i32
    return %c0_i32, %c0_i32_0 : i32, i32
  }
  func.func @transform_2(%arg0: i32) -> (i32, i32) {
    %c0_i32 = arith.constant 0 : i32
    %c0_i32_0 = arith.constant 0 : i32
    %c0_i32_1 = arith.constant 0 : i32
    return %c0_i32, %c0_i32_0 : i32, i32
  }
  func.func @transform_3(%arg0: i32) -> (i32, i32, i32) {
    %c0_i32 = arith.constant 0 : i32
    %c0_i32_0 = arith.constant 0 : i32
    %c0_i32_1 = arith.constant 0 : i32
    return %arg0, %c0_i32, %c0_i32_0 : i32, i32, i32
  }
}

module attributes {stable_mosaic.version = 11 : i64} {
  func.func @_mlp_kernel(%arg0: memref<8x1280xbf16, #tpu.memory_space<vmem>>, %arg1: memref<1280x320xbf16, #tpu.memory_space<vmem>>, %arg2: memref<1x320xf32, #tpu.memory_space<vmem>>, %arg3: memref<320x80xbf16, #tpu.memory_space<vmem>>, %arg4: memref<1x80xf32, #tpu.memory_space<vmem>>, %arg5: memref<80x3xbf16, #tpu.memory_space<vmem>>, %arg6: memref<1x3xf32, #tpu.memory_space<vmem>>, %arg7: memref<8x3xf32, #tpu.memory_space<vmem>>) attributes {dimension_semantics = [], scalar_prefetch = 0 : i64, scratch_operands = 0 : i64, tpu.core_type = #tpu.core_type<tc>} {
    %c0 = arith.constant 0 : index
    %c0_0 = arith.constant 0 : index
    %0 = vector.load %arg0[%c0, %c0_0] : memref<8x1280xbf16, #tpu.memory_space<vmem>>, vector<8x1280xbf16>
    %c0_1 = arith.constant 0 : index
    %c0_2 = arith.constant 0 : index
    %1 = vector.load %arg1[%c0_1, %c0_2] : memref<1280x320xbf16, #tpu.memory_space<vmem>>, vector<1280x320xbf16>
    %cst = arith.constant dense<0.000000e+00> : vector<8x320xf32>
    %2 = tpu.matmul %0, %1, %cst {dimension_numbers = #tpu.dot_dimension_numbers<[1], [0], [0], [1], [0, 0, 1, 1], [], []>} : vector<8x1280xbf16>, vector<1280x320xbf16>, vector<8x320xf32> -> vector<8x320xf32>
    %c0_3 = arith.constant 0 : index
    %c0_4 = arith.constant 0 : index
    %3 = vector.load %arg2[%c0_3, %c0_4] : memref<1x320xf32, #tpu.memory_space<vmem>>, vector<1x320xf32>
    %4 = vector.broadcast %3 : vector<1x320xf32> to vector<8x320xf32>
    %5 = arith.addf %2, %4 : vector<8x320xf32>
    %cst_5 = arith.constant 0.000000e+00 : f32
    %6 = vector.broadcast %cst_5 : f32 to vector<8x320xf32>
    %7 = arith.maximumf %5, %6 : vector<8x320xf32>
    %8 = arith.truncf %7 : vector<8x320xf32> to vector<8x320xbf16>
    %c0_6 = arith.constant 0 : index
    %c0_7 = arith.constant 0 : index
    %9 = vector.load %arg3[%c0_6, %c0_7] : memref<320x80xbf16, #tpu.memory_space<vmem>>, vector<320x80xbf16>
    %cst_8 = arith.constant dense<0.000000e+00> : vector<8x80xf32>
    %10 = tpu.matmul %8, %9, %cst_8 {dimension_numbers = #tpu.dot_dimension_numbers<[1], [0], [0], [1], [0, 0, 1, 1], [], []>} : vector<8x320xbf16>, vector<320x80xbf16>, vector<8x80xf32> -> vector<8x80xf32>
    %c0_9 = arith.constant 0 : index
    %c0_10 = arith.constant 0 : index
    %11 = vector.load %arg4[%c0_9, %c0_10] : memref<1x80xf32, #tpu.memory_space<vmem>>, vector<1x80xf32>
    %12 = vector.broadcast %11 : vector<1x80xf32> to vector<8x80xf32>
    %13 = arith.addf %10, %12 : vector<8x80xf32>
    %cst_11 = arith.constant 0.000000e+00 : f32
    %14 = vector.broadcast %cst_11 : f32 to vector<8x80xf32>
    %15 = arith.maximumf %13, %14 : vector<8x80xf32>
    %16 = arith.truncf %15 : vector<8x80xf32> to vector<8x80xbf16>
    %c0_12 = arith.constant 0 : index
    %c0_13 = arith.constant 0 : index
    %17 = vector.load %arg5[%c0_12, %c0_13] : memref<80x3xbf16, #tpu.memory_space<vmem>>, vector<80x3xbf16>
    %cst_14 = arith.constant dense<0.000000e+00> : vector<8x3xf32>
    %18 = tpu.matmul %16, %17, %cst_14 {dimension_numbers = #tpu.dot_dimension_numbers<[1], [0], [0], [1], [0, 0, 1, 1], [], []>} : vector<8x80xbf16>, vector<80x3xbf16>, vector<8x3xf32> -> vector<8x3xf32>
    %c0_15 = arith.constant 0 : index
    %c0_16 = arith.constant 0 : index
    %19 = vector.load %arg6[%c0_15, %c0_16] : memref<1x3xf32, #tpu.memory_space<vmem>>, vector<1x3xf32>
    %20 = vector.broadcast %19 : vector<1x3xf32> to vector<8x3xf32>
    %21 = arith.addf %18, %20 : vector<8x3xf32>
    %c0_17 = arith.constant 0 : index
    %c0_18 = arith.constant 0 : index
    %22 = vector.load %arg7[%c0_17, %c0_18] : memref<8x3xf32, #tpu.memory_space<vmem>>, vector<8x3xf32>
    tpu.vector_store %arg7[%c0_17, %c0_18], %21 {strides = array<i32>} : memref<8x3xf32, #tpu.memory_space<vmem>>, vector<8x3xf32>,
    return
  }
}

</mosaic_0001>

<bundles_post_ra>
// kernel: base_model_forward.21
= control target key start
LH: loop header
LB: loop body
LE: loop exit
PB: predicated region body
PF: predicated region fallthrough
CT: control target
= control target key end

     0   :  { %s641_s12 = smov 0   ;;  %s673_s0 = inlined_call_operand.vmem [shape: bf16[2,16,1280], index: 0, kind: input, shape index: {}]   ;;  %s674_s1 = inlined_call_operand.vmem [shape: bf16[4,16], index: 1, kind: input, shape index: {}]   ;;  %s675_s2 = inlined_call_operand.vmem [shape: f32[4,1], index: 2, kind: input, shape index: {}]   ;;  %s676_s3 = inlined_call_operand.vmem [shape: bf16[2,4,640], index: 3, kind: output, shape index: {}]  }
   0x1 LB: > { %s556_s13 = sadd.s32 4294967295, %s617_s12   ;;  %p560_p0 = scmp.ge.s32.totalorder %s617_s12, 1  ;;  %s617_s12 = sphi %s641_s12, %s13_s12  }
   0x2   : > { %p137_p1 = scmp.lt.s32.totalorder %s617_s12, 3 }
   0x4   : > { %p138_p2 = pnand %p560_p0, %p137_p1 }
   0x5   : > { %p161_p3 = scmp.lt.s32.totalorder (!%p138_p2), %s556_s13, 1  ;;  %v619_v0 = vmov (!%p138_p2), 0   ;;  %v183_v1 = vld [vmem:[%s675_s2] sm:$0xf] (!%p138_p2)  ;;  %vm239_vm0 = vcmask (!%p138_p2), 130048   ;;  %v478_v45 = vlaneseq (!%p138_p2) }
   0x6   : > { %141 = sbr.rel (%p138_p2) target bundleno = 263 (0x107), region = 32  ;;  %275 = vmatprep.mubr.bf16.mxu0 (!%p138_p2), %v619_v0  ;;  %316 = vmatprep.mubr.bf16.mxu1 (!%p138_p2), %v619_v0  ;;  %v172_v6 = vld [vmem:[%s674_s1] sm:$0x3] (!%p138_p2)  ;;  %v620_v43 = vmov (!%p138_p2), 1983009808  }
   0x7   : > { %595 = vset.pattern.permute.xlu0 (!%p138_p2), %v619_v0  ;;  %v476_v44 = vunpack.c.l.s4 (!%p138_p2), %v620_v43  ;;  %v479_v53 = vshrl.u32 (!%p138_p2), %v478_v45, 7 }
   0x8   : > { %186 = vperm.xlu0 (!%p138_p2), %595, %v183_v1  }
   0x9   : > { %v477_v52 = vunpack.c.0.s8 (!%p138_p2), %v476_v44 }
   0xb   : > { %v480_v63 = vsub.s32 (!%p138_p2), %v477_v52, %v479_v53 }
   0xd   : > { %s678_s13 = smov (!%p161_p3, %s556_s13), 1 }
   0xe   : > { %s583_s16 = smul.u32 80, %s678_s13 }
   0xf   : > { %s584_s22 = smul.u32 10, %s678_s13 }
  0x10   : > { %s165_s19 = scalar_lea.vmem %s673_s0, %s583_s16 }
  0x11   : > { %v596_v2 = vld [vmem:[%s165_s19 + $0x4] ss:$40 sps:$4 sm:$0xff]   ;;  %v600_v4 = vld [vmem:[%s165_s19] ss:$40 sps:$4 sm:$0xff]   ;;  %v602_v7 = vld [vmem:[%s165_s19 + $0x10] ss:$40 sps:$4 sm:$0xff]   ;;  %s170_s25 = scalar_lea.vmem %s676_s3, %s584_s22 }
  0x12   : > { %v598_v3 = vld [vmem:[%s165_s19 + $0xc] ss:$40 sps:$4 sm:$0xff]   ;;  %243 = vmatprep.subr.bf16.mxu0 %v596_v2  ;;  %v601_v5 = vld [vmem:[%s165_s19 + $0x8] ss:$40 sps:$4 sm:$0xff]   ;;  %v605_v9 = vld [vmem:[%s165_s19 + $0x18] ss:$40 sps:$4 sm:$0xff]  }
  0x13   : > { %284 = vmatprep.subr.bf16.mxu1 %v598_v3  ;;  %v604_v8 = vld [vmem:[%s165_s19 + $0x14] ss:$40 sps:$4 sm:$0xff]   ;;  %244 = vmatpush1.bf16.msra.mxu0 %v600_v4  ;;  %v610_v11 = vld [vmem:[%s165_s19 + $0x24] ss:$40 sps:$4 sm:$0xff]   ;;  %v608_v12 = vld [vmem:[%s165_s19 + $0x20] ss:$40 sps:$4 sm:$0xff]  }
  0x14   : > { %285 = vmatpush1.bf16.msra.mxu1 %v601_v5  ;;  %325 = vmatprep.subr.bf16.mxu0 %v604_v8  ;;  %v607_v10 = vld [vmem:[%s165_s19 + $0x1c] ss:$40 sps:$4 sm:$0xff]  }
  0x15   : > { %366 = vmatprep.subr.bf16.mxu1 %v607_v10 }
  0x16   : > { %573 = vmatmul.mubr.msk.bf16.vlgmr.msra.gmra.mrb[0].mxu0 %vm239_vm0, %v172_v6 }
  0x17   : > { %574 = vmatmul.mubr.msk.bf16.vlgmr.msra.gmra.mrb[0].mxu1 %vm239_vm0, %v172_v6  ;;  %326 = vmatpush1.bf16.msra.mxu0 %v602_v7 }
  0x18   : > { %367 = vmatpush1.bf16.msra.mxu1 %v605_v9  ;;  %357 = vmatprep.mubr.bf16.mxu0 %v619_v0 }
  0x19   : > { %398 = vmatprep.mubr.bf16.mxu1 %v619_v0  ;;  %407 = vmatprep.subr.bf16.mxu0 %v610_v11 }
  0x1e   : > { %575 = vmatmul.mubr.msk.bf16.vlgmr.msra.gmra.mrb[4].mxu0 %vm239_vm0, %v172_v6 }
  0x1f   : > { %576 = vmatmul.mubr.msk.bf16.vlgmr.msra.gmra.mrb[4].mxu1 %vm239_vm0, %v172_v6  ;;  %408 = vmatpush1.bf16.msra.mxu0 %v608_v12 }
  0x20   : > { %439 = vmatprep.mubr.bf16.mxu0 %v619_v0 }
  0x26   : > { %577 = vmatmul.mubr.msk.bf16.vlgmr.msra.gmra.mrb[8].mxu0 %vm239_vm0, %v172_v6 }
  0x87   : > { %v187_v21 = vpop.permute.xlu0 %186 }
  0xe9   : > { %v277_v13 = vpop.f32.mrb[0].mxu0 }
  0xea   : > { %v318_v14 = vpop.f32.mrb[0].mxu1  ;;  %v279_v15 = vpop.f32.mrb[1].mxu0  ;;  %v278_v26 = vadd.f32 %v277_v13, %v187_v21 }
  0xeb   : > { %v320_v16 = vpop.f32.mrb[1].mxu1  ;;  %v281_v17 = vpop.f32.mrb[2].mxu0  ;;  %v280_v22 = vadd.f32 %v279_v15, %v187_v21  ;;  %v319_v23 = vadd.f32 %v318_v14, %v187_v21 }
  0xec   : > { %v322_v18 = vpop.f32.mrb[2].mxu1  ;;  %v282_v19 = vpop.f32.mrb[3].mxu0  ;;  %v448_v39 = vmax.f32 %v278_v26, 0.0  ;;  %v321_v48 = vadd.f32 %v320_v16, %v187_v21 }
  0xed   : > { %v323_v20 = vpop.f32.mrb[3].mxu1  ;;  %v449_v34 = vmax.f32 %v280_v22, 0.0  ;;  %v450_v38 = vmax.f32 %v319_v23, 0.0 }
  0xee   : > { %v451_v58 = vmax.f32 %v321_v48, 0.0 }
  0xf1   : > { %v359_v24 = vpop.f32.mrb[4].mxu0 }
  0xf2   : > { %v400_v25 = vpop.f32.mrb[4].mxu1  ;;  %v361_v28 = vpop.f32.mrb[5].mxu0  ;;  %v360_v49 = vadd.f32 %v359_v24, %v187_v21 }
  0xf3   : > { %v401_v27 = vadd.f32 %v400_v25, %v187_v21  ;;  %v402_v29 = vpop.f32.mrb[5].mxu1  ;;  %v362_v30 = vadd.f32 %v361_v28, %v187_v21  ;;  %v363_v32 = vpop.f32.mrb[6].mxu0 }
  0xf4   : > { %v403_v31 = vadd.f32 %v402_v29, %v187_v21  ;;  %v404_v33 = vpop.f32.mrb[6].mxu1  ;;  %v364_v36 = vpop.f32.mrb[7].mxu0  ;;  %v452_v61 = vmax.f32 %v360_v49, 0.0 }
  0xf5   : > { %v454_v35 = vmax.f32 %v401_v27, 0.0  ;;  %v405_v37 = vpop.f32.mrb[7].mxu1  ;;  %v453_v40 = vmax.f32 %v362_v30, 0.0 }
  0xf6   : > { %v455_v41 = vmax.f32 %v403_v31, 0.0 }
  0xf7   : > { %v459_v42 = vmax.f32 %v449_v34, %v454_v35  ;;  %v458_v46 = vmax.f32 %v448_v39, %v453_v40 }
  0xf8   : > { %v460_v47 = vmax.f32 %v450_v38, %v455_v41 }
  0xf9   : > { %v578_v50 = vpack.c.bf16 %v459_v42, %v458_v46  ;;  %v441_v51 = vpop.f32.mrb[8].mxu0 }
  0xfa   : > { %v442_v54 = vadd.f32 %v441_v51, %v187_v21  ;;  %v443_v55 = vpop.f32.mrb[9].mxu0 }
  0xfb   : > { %v444_v56 = vadd.f32 %v443_v55, %v187_v21  ;;  %v445_v57 = vpop.f32.mrb[10].mxu0  ;;  %v481_v4 = vrot.slane %v578_v50, %v480_v63 }
  0xfc   : > { %v456_v59 = vmax.f32 %v442_v54, 0.0  ;;  %v446_v60 = vpop.f32.mrb[11].mxu0 }
  0xfd   : > { %v457_v62 = vmax.f32 %v444_v56, 0.0 }
  0xfe   : > { %v461_v0 = vmax.f32 %v451_v58, %v456_v59 }
  0xff   : > { %v462_v1 = vmax.f32 %v452_v61, %v457_v62 }
 0x100   : > { %v579_v2 = vpack.c.bf16 %v461_v0, %v460_v47 }
 0x101   : > { %v467_v3 = vpack.c.bf16 %v462_v1, %v462_v1 }
 0x102   : > { %v488_v5 = vrot.slane %v579_v2, %v480_v63 }
 0x103   : > { %580 = vst.sshfl [vmem:[%s170_s25 + $0x8] sm:$0x3 pattern:$0x76325410] %v467_v3 }
 0x104   : > { %v489_v6 = vcombine.low %v481_v4, %v488_v5 }
 0x106   : > { %499 = vst [vmem:[%s170_s25] sm:$0xff] %v489_v6 }
 0x107 PF: > { %s13_s12 = sadd.s32 1, %s617_s12  }
 0x108   : > { %p10_p4 = scmp.ge.s32.totalorder %s13_s12, 4  }
 0x10a   :  { %12 = sbr.rel (!%p10_p4) target bundleno = 1 (0x1), region = 62 }

// kernel: base_model_forward.22
= control target key start
LH: loop header
LB: loop body
LE: loop exit
PB: predicated region body
PF: predicated region fallthrough
CT: control target
= control target key end

     0   :  { %s493_s12 = smov 0   ;;  %s520_s0 = inlined_call_operand.vmem [shape: bf16[2,16,768], index: 0, kind: input, shape index: {}]   ;;  %s521_s1 = inlined_call_operand.vmem [shape: bf16[8,16], index: 1, kind: input, shape index: {}]   ;;  %s522_s2 = inlined_call_operand.vmem [shape: f32[8,1], index: 2, kind: input, shape index: {}]   ;;  %s523_s3 = inlined_call_operand.vmem [shape: bf16[2,8,384], index: 3, kind: output, shape index: {}]  }
   0x1 LB: > { %s421_s13 = sadd.s32 4294967295, %s470_s12   ;;  %p425_p0 = scmp.ge.s32.totalorder %s470_s12, 1  ;;  %s470_s12 = sphi %s493_s12, %s13_s12  }
   0x2   : > { %p137_p1 = scmp.lt.s32.totalorder %s470_s12, 3 }
   0x4   : > { %p138_p2 = pnand %p425_p0, %p137_p1 }
   0x5   : > { %p161_p3 = scmp.lt.s32.totalorder (!%p138_p2), %s421_s13, 1  ;;  %v179_v0 = vld [vmem:[%s522_s2] sm:$0xff] (!%p138_p2)  ;;  %v472_v1 = vmov (!%p138_p2), 0   ;;  %vm215_vm0 = vcmask (!%p138_p2), 130048  }
   0x6   : > { %141 = sbr.rel (%p138_p2) target bundleno = 252 (0xfc), region = 32  ;;  %251 = vmatprep.mubr.bf16.mxu0 (!%p138_p2), %v472_v1  ;;  %292 = vmatprep.mubr.bf16.mxu1 (!%p138_p2), %v472_v1  ;;  %v172_v7 = vld [vmem:[%s521_s1] sm:$0xf] (!%p138_p2) }
   0x7   : > { %454 = vset.pattern.permute.xlu0 (!%p138_p2), %v472_v1 }
   0x8   : > { %182 = vperm.xlu0 (!%p138_p2), %454, %v179_v0  }
   0xd   : > { %s525_s13 = smov (!%p161_p3, %s421_s13), 1 }
   0xe   : > { %s443_s16 = smul.u32 48, %s525_s13 }
   0xf   : > { %s444_s22 = smul.u32 12, %s525_s13 }
  0x10   : > { %s165_s19 = scalar_lea.vmem %s520_s0, %s443_s16 }
  0x11   : > { %v455_v2 = vld [vmem:[%s165_s19 + $0x4] ss:$24 sps:$4 sm:$0xff]   ;;  %v459_v4 = vld [vmem:[%s165_s19] ss:$24 sps:$4 sm:$0xff]   ;;  %v463_v6 = vld [vmem:[%s165_s19 + $0x14] ss:$24 sps:$4 sm:$0xff]   ;;  %s170_s25 = scalar_lea.vmem %s523_s3, %s444_s22 }
  0x12   : > { %v457_v3 = vld [vmem:[%s165_s19 + $0xc] ss:$24 sps:$4 sm:$0xff]   ;;  %219 = vmatprep.subr.bf16.mxu0 %v455_v2  ;;  %v460_v5 = vld [vmem:[%s165_s19 + $0x8] ss:$24 sps:$4 sm:$0xff]  }
  0x13   : > { %260 = vmatprep.subr.bf16.mxu1 %v457_v3  ;;  %220 = vmatpush1.bf16.msra.mxu0 %v459_v4  ;;  %v461_v8 = vld [vmem:[%s165_s19 + $0x10] ss:$24 sps:$4 sm:$0xff]  }
  0x14   : > { %261 = vmatpush1.bf16.msra.mxu1 %v460_v5  ;;  %301 = vmatprep.subr.bf16.mxu0 %v463_v6 }
  0x16   : > { %434 = vmatmul.mubr.msk.bf16.vlgmr.msra.gmra.mrb[0].mxu0 %vm215_vm0, %v172_v7 }
  0x17   : > { %435 = vmatmul.mubr.msk.bf16.vlgmr.msra.gmra.mrb[0].mxu1 %vm215_vm0, %v172_v7  ;;  %302 = vmatpush1.bf16.msra.mxu0 %v461_v8 }
  0x18   : > { %333 = vmatprep.mubr.bf16.mxu0 %v472_v1 }
  0x1e   : > { %436 = vmatmul.mubr.msk.bf16.vlgmr.msra.gmra.mrb[4].mxu0 %vm215_vm0, %v172_v7 }
  0x87   : > { %v183_v9 = vpop.permute.xlu0 %182 }
  0xe9   : > { %v253_v10 = vpop.f32.mrb[0].mxu0 }
  0xea   : > { %v294_v11 = vpop.f32.mrb[0].mxu1  ;;  %v255_v12 = vpop.f32.mrb[1].mxu0  ;;  %v254_v13 = vadd.f32 %v253_v10, %v183_v9 }
  0xeb   : > { %v296_v14 = vpop.f32.mrb[1].mxu1  ;;  %v257_v16 = vpop.f32.mrb[2].mxu0  ;;  %v295_v23 = vadd.f32 %v294_v11, %v183_v9  ;;  %v256_v24 = vadd.f32 %v255_v12, %v183_v9 }
  0xec   : > { %v297_v15 = vadd.f32 %v296_v14, %v183_v9  ;;  %v298_v17 = vpop.f32.mrb[2].mxu1  ;;  %v342_v18 = vmax.f32 %v254_v13, 0.0  ;;  %v258_v19 = vpop.f32.mrb[3].mxu0 }
  0xed   : > { %v299_v20 = vpop.f32.mrb[3].mxu1  ;;  %v344_v29 = vmax.f32 %v295_v23, 0.0  ;;  %v343_v31 = vmax.f32 %v256_v24, 0.0 }
  0xee   : > { %v345_v21 = vmax.f32 %v297_v15, 0.0 }
  0xf0   : > { %v348_v22 = vmax.f32 %v342_v18, %v345_v21 }
  0xf1   : > { %v335_v25 = vpop.f32.mrb[4].mxu0 }
  0xf2   : > { %v336_v26 = vadd.f32 %v335_v25, %v183_v9  ;;  %v337_v27 = vpop.f32.mrb[5].mxu0 }
  0xf3   : > { %v338_v28 = vadd.f32 %v337_v27, %v183_v9  ;;  %v339_v30 = vpop.f32.mrb[6].mxu0 }
  0xf4   : > { %v346_v32 = vmax.f32 %v336_v26, 0.0  ;;  %v340_v33 = vpop.f32.mrb[7].mxu0 }
  0xf5   : > { %v347_v34 = vmax.f32 %v338_v28, 0.0 }
  0xf6   : > { %v349_v35 = vmax.f32 %v343_v31, %v346_v32 }
  0xf7   : > { %v350_v36 = vmax.f32 %v344_v29, %v347_v34 }
  0xf8   : > { %v441_v37 = vpack.c.bf16 %v349_v35, %v348_v22 }
  0xf9   : > { %v442_v38 = vpack.c.bf16 %v350_v36, %v350_v36 }
  0xfa   : > { %364 = vst [vmem:[%s170_s25] sm:$0xff] %v441_v37 }
  0xfb   : > { %365 = vst [vmem:[%s170_s25 + $0x8] sm:$0xf] %v442_v38 }
  0xfc PF: > { %s13_s12 = sadd.s32 1, %s470_s12  }
  0xfd   : > { %p10_p4 = scmp.ge.s32.totalorder %s13_s12, 4  }
  0xff   :  { %12 = sbr.rel (!%p10_p4) target bundleno = 1 (0x1), region = 62 }

// kernel: base_model_forward.23
= control target key start
LH: loop header
LB: loop body
LE: loop exit
PB: predicated region body
PF: predicated region fallthrough
CT: control target
= control target key end

     0   :  { %s490_s12 = smov 0   ;;  %s520_s0 = inlined_call_operand.vmem [shape: bf16[2,32,512], index: 0, kind: input, shape index: {}]   ;;  %s521_s1 = inlined_call_operand.vmem [shape: bf16[16,32], index: 1, kind: input, shape index: {}]   ;;  %s522_s2 = inlined_call_operand.vmem [shape: f32[16,1], index: 2, kind: input, shape index: {}]   ;;  %s523_s3 = inlined_call_operand.vmem [shape: bf16[2,16,256], index: 3, kind: output, shape index: {}]  }
   0x1 LB: > { %s410_s13 = sadd.s32 4294967295, %s467_s12   ;;  %p414_p0 = scmp.ge.s32.totalorder %s467_s12, 1  ;;  %s467_s12 = sphi %s490_s12, %s13_s12  }
   0x2   : > { %p137_p1 = scmp.lt.s32.totalorder %s467_s12, 3 }
   0x4   : > { %p138_p2 = pnand %p414_p0, %p137_p1 }
   0x5   : > { %p161_p3 = scmp.lt.s32.totalorder (!%p138_p2), %s410_s13, 1  ;;  %v469_v0 = vmov (!%p138_p2), 0   ;;  %v182_v1 = vld [vmem:[%s522_s2] sm:$0xff] (!%p138_p2)  ;;  %v183_v2 = vld [vmem:[%s522_s2 + $0x8] sm:$0xff] (!%p138_p2)  ;;  %vm239_vm0 = vcmask (!%p138_p2), 261120  }
   0x6   : > { %141 = sbr.rel (%p138_p2) target bundleno = 249 (0xf9), region = 32  ;;  %275 = vmatprep.mubr.bf16.mxu0 (!%p138_p2), %v469_v0  ;;  %318 = vmatprep.mubr.bf16.mxu1 (!%p138_p2), %v469_v0  ;;  %v460_v11 = vld [vmem:[%s521_s1] sm:$0xff] (!%p138_p2)  }
   0x7   : > { %447 = vset.pattern.permute.xlu0 (!%p138_p2), %v469_v0 }
   0x8   : > { %186 = vperm.xlu0 (!%p138_p2), %447, %v182_v1  }
   0xc   : > { %191 = vperm.xlu0 (!%p138_p2), %447, %v183_v2  }
   0xd   : > { %s525_s13 = smov (!%p161_p3, %s410_s13), 1 }
   0xe   : > { %s434_s16 = sshll.u32 %s525_s13, 6  ;;  %s435_s24 = sshll.u32 %s525_s13, 4 }
   0xf   : > { %s165_s21 = scalar_lea.vmem %s520_s0, %s434_s16  ;;  %s170_s27 = scalar_lea.vmem %s523_s3, %s435_s24 }
  0x10   : > { %v448_v3 = vld [vmem:[%s165_s21 + $0x4] ss:$16 sps:$4 sm:$0xff]   ;;  %v450_v4 = vld [vmem:[%s165_s21 + $0xc] ss:$16 sps:$4 sm:$0xff]   ;;  %v452_v5 = vld [vmem:[%s165_s21] ss:$16 sps:$4 sm:$0xff]  }
  0x11   : > { %243 = vmatprep.subr.bf16.mxu0 %v448_v3  ;;  %v453_v6 = vld [vmem:[%s165_s21 + $0x8] ss:$16 sps:$4 sm:$0xff]   ;;  %286 = vmatprep.subr.bf16.mxu1 %v450_v4  ;;  %v454_v7 = vld [vmem:[%s165_s21 + $0x24] ss:$16 sps:$4 sm:$0xff]   ;;  %v456_v8 = vld [vmem:[%s165_s21 + $0x2c] ss:$16 sps:$4 sm:$0xff]  }
  0x12   : > { %244 = vmatpush1.bf16.msra.mxu0 %v452_v5  ;;  %287 = vmatpush1.bf16.msra.mxu1 %v453_v6  ;;  %v458_v9 = vld [vmem:[%s165_s21 + $0x20] ss:$16 sps:$4 sm:$0xff]   ;;  %v459_v10 = vld [vmem:[%s165_s21 + $0x28] ss:$16 sps:$4 sm:$0xff]  }
  0x13   : > { %245 = vmatprep.subr.bf16.mxu0 %v454_v7  ;;  %288 = vmatprep.subr.bf16.mxu1 %v456_v8 }
  0x16   : > { %246 = vmatpush1.bf16.msra.mxu0 %v458_v9  ;;  %289 = vmatpush1.bf16.msra.mxu1 %v459_v10 }
  0x19   : > { %428 = vmatmul.mubr.msk.bf16.vlgmr.msra.gmra.mrb[0].mxu0 %vm239_vm0, %v460_v11  ;;  %429 = vmatmul.mubr.msk.bf16.vlgmr.msra.gmra.mrb[0].mxu1 %vm239_vm0, %v460_v11 }
  0x87   : > { %v187_v12 = vpop.permute.xlu0 %186 }
  0x8b   : > { %v192_v13 = vpop.permute.xlu0 %191 }
  0xec   : > { %v277_v14 = vpop.f32.mrb[0].mxu0  ;;  %v320_v15 = vpop.f32.mrb[0].mxu1 }
  0xed   : > { %v278_v16 = vadd.f32 %v277_v14, %v187_v12  ;;  %v321_v17 = vadd.f32 %v320_v15, %v187_v12  ;;  %v279_v18 = vpop.f32.mrb[1].mxu0  ;;  %v322_v19 = vpop.f32.mrb[1].mxu1 }
  0xee   : > { %v280_v20 = vadd.f32 %v279_v18, %v187_v12  ;;  %v323_v21 = vadd.f32 %v322_v19, %v187_v12  ;;  %v281_v22 = vpop.f32.mrb[2].mxu0  ;;  %v324_v23 = vpop.f32.mrb[2].mxu1 }
  0xef   : > { %v329_v24 = vmax.f32 %v278_v16, 0.0  ;;  %v331_v25 = vmax.f32 %v321_v17, 0.0  ;;  %v282_v26 = vadd.f32 %v281_v22, %v192_v13  ;;  %v325_v27 = vadd.f32 %v324_v23, %v192_v13  ;;  %v283_v28 = vpop.f32.mrb[3].mxu0  ;;  %v326_v29 = vpop.f32.mrb[3].mxu1 }
  0xf0   : > { %v330_v30 = vmax.f32 %v280_v20, 0.0  ;;  %v332_v31 = vmax.f32 %v323_v21, 0.0  ;;  %v284_v32 = vadd.f32 %v283_v28, %v192_v13  ;;  %v327_v33 = vadd.f32 %v326_v29, %v192_v13 }
  0xf1   : > { %v337_v34 = vmax.f32 %v329_v24, %v331_v25  ;;  %v333_v35 = vmax.f32 %v282_v26, 0.0  ;;  %v335_v36 = vmax.f32 %v325_v27, 0.0 }
  0xf2   : > { %v338_v37 = vmax.f32 %v330_v30, %v332_v31  ;;  %v334_v38 = vmax.f32 %v284_v32, 0.0  ;;  %v336_v39 = vmax.f32 %v327_v33, 0.0 }
  0xf3   : > { %v339_v40 = vmax.f32 %v333_v35, %v335_v36 }
  0xf4   : > { %v436_v41 = vpack.c.bf16 %v338_v37, %v337_v34  ;;  %v340_v42 = vmax.f32 %v334_v38, %v336_v39 }
  0xf6   : > { %353 = vst [vmem:[%s170_s27] sm:$0xff] %v436_v41  ;;  %v437_v43 = vpack.c.bf16 %v340_v42, %v339_v40 }
  0xf8   : > { %354 = vst [vmem:[%s170_s27 + $0x8] sm:$0xff] %v437_v43 }
  0xf9 PF: > { %s13_s12 = sadd.s32 1, %s467_s12  }
  0xfa   : > { %p10_p4 = scmp.ge.s32.totalorder %s13_s12, 4  }
  0xfc   :  { %12 = sbr.rel (!%p10_p4) target bundleno = 1 (0x1), region = 62 }

// kernel: base_model_forward.24
= control target key start
LH: loop header
LB: loop body
LE: loop exit
PB: predicated region body
PF: predicated region fallthrough
CT: control target
= control target key end

     0   :  { %s511_s12 = smov 0   ;;  %s550_s0 = inlined_call_operand.vmem [shape: bf16[2,64,256], index: 0, kind: input, shape index: {}]   ;;  %s551_s1 = inlined_call_operand.vmem [shape: bf16[32,64], index: 1, kind: input, shape index: {}]   ;;  %s552_s2 = inlined_call_operand.vmem [shape: f32[32,1], index: 2, kind: input, shape index: {}]   ;;  %s553_s3 = inlined_call_operand.vmem [shape: bf16[2,32,128], index: 3, kind: output, shape index: {}]  }
   0x1 LB: > { %s405_s13 = sadd.s32 4294967295, %s488_s12   ;;  %p409_p0 = scmp.ge.s32.totalorder %s488_s12, 1  ;;  %s488_s12 = sphi %s511_s12, %s13_s12  }
   0x2   : > { %p137_p1 = scmp.lt.s32.totalorder %s488_s12, 3 }
   0x4   : > { %p138_p2 = pnand %p409_p0, %p137_p1 }
   0x5   : > { %p161_p3 = scmp.lt.s32.totalorder (!%p138_p2), %s405_s13, 1  ;;  %v490_v0 = vmov (!%p138_p2), 0   ;;  %v186_v1 = vld [vmem:[%s552_s2 + $0x10] sm:$0xff] (!%p138_p2)  ;;  %v184_v2 = vld [vmem:[%s552_s2] sm:$0xff] (!%p138_p2)  ;;  %v187_v3 = vld [vmem:[%s552_s2 + $0x18] sm:$0xff] (!%p138_p2)  ;;  %vm258_vm0 = vcmask (!%p138_p2), 523264  }
   0x6   : > { %141 = sbr.rel (%p138_p2) target bundleno = 257 (0x101), region = 32  ;;  %297 = vmatprep.mubr.bf16.mxu0 (!%p138_p2), %v490_v0  ;;  %307 = vmatprep.mubr.bf16.mxu1 (!%p138_p2), %v490_v0  ;;  %v185_v4 = vld [vmem:[%s552_s2 + $0x8] sm:$0xff] (!%p138_p2)  ;;  %v480_v13 = vld [vmem:[%s551_s1] sm:$0xff] (!%p138_p2)  }
   0x7   : > { %467 = vset.pattern.permute.xlu1 (!%p138_p2), %v490_v0  ;;  %466 = vset.pattern.permute.xlu0 (!%p138_p2), %v490_v0  ;;  %v481_v14 = vld [vmem:[%s551_s1 + $0x8] sm:$0xff] (!%p138_p2)  }
   0x8   : > { %200 = vperm.xlu1 (!%p138_p2), %467, %v186_v1   ;;  %190 = vperm.xlu0 (!%p138_p2), %466, %v184_v2  }
   0xc   : > { %205 = vperm.xlu1 (!%p138_p2), %467, %v187_v3   ;;  %195 = vperm.xlu0 (!%p138_p2), %466, %v185_v4  }
   0xd   : > { %s555_s13 = smov (!%p161_p3, %s405_s13), 1 }
   0xe   : > { %s432_s18 = sshll.u32 %s555_s13, 6  ;;  %s433_s30 = sshll.u32 %s555_s13, 4 }
   0xf   : > { %s165_s25 = scalar_lea.vmem %s550_s0, %s432_s18  ;;  %s170_s6 = scalar_lea.vmem %s553_s3, %s433_s30 }
  0x10   : > { %v468_v5 = vld [vmem:[%s165_s25 + $0x4] ss:$8 sps:$4 sm:$0xff]   ;;  %v470_v6 = vld [vmem:[%s165_s25] ss:$8 sps:$4 sm:$0xff]   ;;  %v471_v7 = vld [vmem:[%s165_s25 + $0x14] ss:$8 sps:$4 sm:$0xff]  }
  0x11   : > { %265 = vmatprep.subr.bf16.mxu0 %v468_v5  ;;  %449 = vmatprep.subr.bf16.mxu1 %v468_v5  ;;  %v473_v8 = vld [vmem:[%s165_s25 + $0x10] ss:$8 sps:$4 sm:$0xff]   ;;  %v474_v9 = vld [vmem:[%s165_s25 + $0x24] ss:$8 sps:$4 sm:$0xff]   ;;  %v476_v10 = vld [vmem:[%s165_s25 + $0x20] ss:$8 sps:$4 sm:$0xff]  }
  0x12   : > { %266 = vmatpush1.bf16.msra.mxu0 %v470_v6  ;;  %453 = vmatpush1.bf16.msra.mxu1 %v470_v6  ;;  %v477_v11 = vld [vmem:[%s165_s25 + $0x34] ss:$8 sps:$4 sm:$0xff]   ;;  %v479_v12 = vld [vmem:[%s165_s25 + $0x30] ss:$8 sps:$4 sm:$0xff]  }
  0x13   : > { %267 = vmatprep.subr.bf16.mxu0 %v471_v7  ;;  %450 = vmatprep.subr.bf16.mxu1 %v471_v7 }
  0x16   : > { %268 = vmatpush1.bf16.msra.mxu0 %v473_v8  ;;  %454 = vmatpush1.bf16.msra.mxu1 %v473_v8 }
  0x17   : > { %269 = vmatprep.subr.bf16.mxu0 %v474_v9  ;;  %451 = vmatprep.subr.bf16.mxu1 %v474_v9 }
  0x1a   : > { %270 = vmatpush1.bf16.msra.mxu0 %v476_v10  ;;  %455 = vmatpush1.bf16.msra.mxu1 %v476_v10 }
  0x1b   : > { %271 = vmatprep.subr.bf16.mxu0 %v477_v11  ;;  %452 = vmatprep.subr.bf16.mxu1 %v477_v11 }
  0x1e   : > { %272 = vmatpush1.bf16.msra.mxu0 %v479_v12  ;;  %456 = vmatpush1.bf16.msra.mxu1 %v479_v12 }
  0x21   : > { %424 = vmatmul.mubr.msk.bf16.vlgmr.msra.gmra.mrb[0].mxu0 %vm258_vm0, %v480_v13  ;;  %425 = vmatmul.mubr.msk.bf16.vlgmr.msra.gmra.mrb[0].mxu1 %vm258_vm0, %v481_v14 }
  0x87   : > { %v201_v15 = vpop.permute.xlu1 %200  ;;  %v191_v16 = vpop.permute.xlu0 %190 }
  0x8b   : > { %v206_v17 = vpop.permute.xlu1 %205  ;;  %v196_v18 = vpop.permute.xlu0 %195 }
  0xf4   : > { %v299_v19 = vpop.f32.mrb[0].mxu0  ;;  %v309_v20 = vpop.f32.mrb[0].mxu1 }
  0xf5   : > { %v300_v21 = vadd.f32 %v299_v19, %v191_v16  ;;  %v310_v22 = vadd.f32 %v309_v20, %v201_v15  ;;  %v301_v23 = vpop.f32.mrb[1].mxu0  ;;  %v311_v24 = vpop.f32.mrb[1].mxu1 }
  0xf6   : > { %v302_v25 = vadd.f32 %v301_v23, %v191_v16  ;;  %v312_v26 = vadd.f32 %v311_v24, %v201_v15  ;;  %v303_v27 = vpop.f32.mrb[2].mxu0  ;;  %v313_v28 = vpop.f32.mrb[2].mxu1 }
  0xf7   : > { %v318_v29 = vmax.f32 %v300_v21, 0.0  ;;  %v322_v30 = vmax.f32 %v310_v22, 0.0  ;;  %v304_v31 = vadd.f32 %v303_v27, %v196_v18  ;;  %v314_v32 = vadd.f32 %v313_v28, %v206_v17  ;;  %v305_v33 = vpop.f32.mrb[3].mxu0  ;;  %v315_v34 = vpop.f32.mrb[3].mxu1 }
  0xf8   : > { %v319_v35 = vmax.f32 %v302_v25, 0.0  ;;  %v323_v36 = vmax.f32 %v312_v26, 0.0  ;;  %v306_v37 = vadd.f32 %v305_v33, %v196_v18  ;;  %v316_v38 = vadd.f32 %v315_v34, %v206_v17 }
  0xf9   : > { %v320_v39 = vmax.f32 %v304_v31, 0.0  ;;  %v324_v40 = vmax.f32 %v314_v32, 0.0 }
  0xfa   : > { %v326_v41 = vmax.f32 %v318_v29, %v319_v35  ;;  %v328_v42 = vmax.f32 %v322_v30, %v323_v36  ;;  %v321_v43 = vmax.f32 %v306_v37, 0.0  ;;  %v325_v44 = vmax.f32 %v316_v38, 0.0 }
  0xfc   : > { %v327_v45 = vmax.f32 %v320_v39, %v321_v43  ;;  %v329_v46 = vmax.f32 %v324_v40, %v325_v44 }
  0xfe   : > { %v441_v47 = vpack.c.bf16 %v327_v45, %v326_v41  ;;  %v446_v48 = vpack.c.bf16 %v329_v46, %v328_v42 }
 0x100   : > { %442 = vst [vmem:[%s170_s6] sm:$0xff] %v441_v47   ;;  %448 = vst [vmem:[%s170_s6 + $0x8] sm:$0xff] %v446_v48  }
 0x101 PF: > { %s13_s12 = sadd.s32 1, %s488_s12  }
 0x102   : > { %p10_p4 = scmp.ge.s32.totalorder %s13_s12, 4  }
 0x104   :  { %12 = sbr.rel (!%p10_p4) target bundleno = 1 (0x1), region = 62 }

// kernel: base_model_forward.25
= control target key start
LH: loop header
LB: loop body
LE: loop exit
PB: predicated region body
PF: predicated region fallthrough
CT: control target
= control target key end

     0   :  { %s719_s12 = smov 0   ;;  %s937_s0 = inlined_call_operand.vmem [shape: bf16[2,128,128], index: 0, kind: input, shape index: {}]   ;;  %s938_s1 = inlined_call_operand.vmem [shape: bf16[64,128], index: 1, kind: input, shape index: {}]   ;;  %s939_s2 = inlined_call_operand.vmem [shape: f32[64,1], index: 2, kind: input, shape index: {}]   ;;  %s940_s3 = inlined_call_operand.vmem [shape: f32[2,64,4], index: 3, kind: output, shape index: {}]  }
   0x1 LB: > { %s590_s13 = sadd.s32 4294967295, %s696_s12   ;;  %p594_p0 = scmp.ge.s32.totalorder %s696_s12, 1  ;;  %s696_s12 = sphi %s719_s12, %s13_s12  }
   0x2   : > { %p137_p1 = scmp.lt.s32.totalorder %s696_s12, 3 }
   0x4   : > { %p138_p2 = pnand %p594_p0, %p137_p1 }
   0x5   : > { %p161_p3 = scmp.lt.s32.totalorder (!%p138_p2), %s590_s13, 1  ;;  %v686_v0 = vld [vmem:[%s938_s1] sm:$0xff] (!%p138_p2)   ;;  %v687_v1 = vld [vmem:[%s938_s1 + $0x10] sm:$0xff] (!%p138_p2)   ;;  %v698_v2 = vmov (!%p138_p2), 0   ;;  %v197_v6 = vld [vmem:[%s939_s2 + $0x8] sm:$0xff] (!%p138_p2)  ;;  %v389_v26 = vlaneseq (!%p138_p2)  ;;  %vm499_vm10 = vcmask (!%p138_p2), 7168  }
   0x6   : > { %141 = sbr.rel (%p138_p2) target bundleno = 474 (0x1da), region = 32  ;;  %643 = vmatprep.mubr.bf16.mxu0 (!%p138_p2), %v686_v0  ;;  %676 = vset.pattern.permute.xlu0 (!%p138_p2), %v698_v2  ;;  %v196_v3 = vld [vmem:[%s939_s2] sm:$0xff] (!%p138_p2)  ;;  %v198_v4 = vld [vmem:[%s939_s2 + $0x10] sm:$0xff] (!%p138_p2)  ;;  %v199_v8 = vld [vmem:[%s939_s2 + $0x18] sm:$0xff] (!%p138_p2)  ;;  %vm508_vm11 = vcmask (!%p138_p2), 15360   ;;  %vm517_vm12 = vcmask (!%p138_p2), 23552  }
   0x7   : > { %647 = vmatprep.mubr.bf16.mxu1 (!%p138_p2), %v687_v1  ;;  %677 = vset.pattern.permute.xlu1 (!%p138_p2), %v698_v2  ;;  %v200_v10 = vld [vmem:[%s939_s2 + $0x20] sm:$0xff] (!%p138_p2)  ;;  %v201_v11 = vld [vmem:[%s939_s2 + $0x28] sm:$0xff] (!%p138_p2)  ;;  %v202_v13 = vld [vmem:[%s939_s2 + $0x30] sm:$0xff] (!%p138_p2)  ;;  %v783_v27 = vand.u32 (!%p138_p2), 127, %v389_v26  ;;  %vm526_vm13 = vcmask (!%p138_p2), 31744  }
   0x8   : > { %206 = vperm.xlu0 (!%p138_p2), %676, %v196_v3   ;;  %216 = vperm.xlu1 (!%p138_p2), %677, %v198_v4   ;;  %v203_v14 = vld [vmem:[%s939_s2 + $0x38] sm:$0xff] (!%p138_p2)  ;;  %v688_v19 = vld [vmem:[%s938_s1 + $0x8] sm:$0xff] (!%p138_p2)  }
   0x9   : > { %v689_v20 = vld [vmem:[%s938_s1 + $0x18] sm:$0xff] (!%p138_p2)   ;;  %vm392_vm0 = vcmp.lt.s32.totalorder (!%p138_p2), %v783_v27, 19  ;;  %vm418_vm1 = vcmp.ge.s32.totalorder (!%p138_p2), %v783_v27, 18  ;;  %vm419_vm2 = vcmp.lt.s32.totalorder (!%p138_p2), %v783_v27, 37  ;;  %vm445_vm4 = vcmp.ge.s32.totalorder (!%p138_p2), %v783_v27, 36 }
   0xa   : > { %vm797_vm3 = vmand (!%p138_p2), %vm418_vm1, %vm419_vm2  ;;  %vm446_vm5 = vcmp.lt.s32.totalorder (!%p138_p2), %v783_v27, 55  ;;  %vm472_vm7 = vcmp.ge.s32.totalorder (!%p138_p2), %v783_v27, 54  ;;  %vm473_vm8 = vcmp.lt.s32.totalorder (!%p138_p2), %v783_v27, 73 }
   0xb   : > { %vm815_vm6 = vmand (!%p138_p2), %vm445_vm4, %vm446_vm5 }
   0xc   : > { %211 = vperm.xlu0 (!%p138_p2), %676, %v197_v6   ;;  %221 = vperm.xlu1 (!%p138_p2), %677, %v199_v8   ;;  %vm831_vm9 = vmand (!%p138_p2), %vm472_vm7, %vm473_vm8 }
   0xd   : > { %s948_s13 = smov (!%p161_p3, %s590_s13), 1 }
   0xe   : > { %s613_s18 = sshll.u32 %s948_s13, 6 }
   0xf   : > { %s747_s25 = scalar_lea.vmem %s937_s0, %s613_s18  ;;  %s893_s20 = scalar_lea.vmem %s940_s3, %s613_s18 }
  0x10   : > { %v678_v5 = vld [vmem:[%s747_s25] sm:$0xff]   ;;  %v679_v7 = vld [vmem:[%s747_s25 + $0x8] sm:$0xff]   ;;  %v680_v9 = vld [vmem:[%s747_s25 + $0x10] sm:$0xff]   ;;  %226 = vperm.xlu0 %676, %v200_v10   ;;  %231 = vperm.xlu1 %677, %v201_v11  }
  0x11   : > { %627 = vmatprep.subr.bf16.mxu0 %v678_v5  ;;  %651 = vmatprep.subr.bf16.mxu1 %v678_v5  ;;  %v681_v12 = vld [vmem:[%s747_s25 + $0x18] sm:$0xff]   ;;  %v682_v15 = vld [vmem:[%s747_s25 + $0x20] sm:$0xff]   ;;  %v683_v16 = vld [vmem:[%s747_s25 + $0x28] sm:$0xff]  }
  0x12   : > { %628 = vmatpush3.bf16.msra.mxu0 %v678_v5  ;;  %659 = vmatpush3.bf16.msra.mxu1 %v678_v5  ;;  %v684_v17 = vld [vmem:[%s747_s25 + $0x30] sm:$0xff]   ;;  %v685_v18 = vld [vmem:[%s747_s25 + $0x38] sm:$0xff]  }
  0x13   : > { %629 = vmatprep.subr.bf16.mxu0 %v679_v7  ;;  %652 = vmatprep.subr.bf16.mxu1 %v679_v7 }
  0x14   : > { %236 = vperm.xlu0 %676, %v202_v13   ;;  %241 = vperm.xlu1 %677, %v203_v14  }
  0x16   : > { %630 = vmatpush3.bf16.msra.mxu0 %v679_v7  ;;  %660 = vmatpush3.bf16.msra.mxu1 %v679_v7 }
  0x17   : > { %631 = vmatprep.subr.bf16.mxu0 %v680_v9  ;;  %653 = vmatprep.subr.bf16.mxu1 %v680_v9 }
  0x1a   : > { %632 = vmatpush3.bf16.msra.mxu0 %v680_v9  ;;  %661 = vmatpush3.bf16.msra.mxu1 %v680_v9 }
  0x1b   : > { %633 = vmatprep.subr.bf16.mxu0 %v681_v12  ;;  %654 = vmatprep.subr.bf16.mxu1 %v681_v12 }
  0x1e   : > { %634 = vmatpush3.bf16.msra.mxu0 %v681_v12  ;;  %662 = vmatpush3.bf16.msra.mxu1 %v681_v12 }
  0x1f   : > { %635 = vmatprep.subr.bf16.mxu0 %v682_v15  ;;  %655 = vmatprep.subr.bf16.mxu1 %v682_v15 }
  0x22   : > { %636 = vmatpush3.bf16.msra.mxu0 %v682_v15  ;;  %663 = vmatpush3.bf16.msra.mxu1 %v682_v15 }
  0x23   : > { %637 = vmatprep.subr.bf16.mxu0 %v683_v16  ;;  %656 = vmatprep.subr.bf16.mxu1 %v683_v16 }
  0x26   : > { %638 = vmatpush3.bf16.msra.mxu0 %v683_v16  ;;  %664 = vmatpush3.bf16.msra.mxu1 %v683_v16 }
  0x27   : > { %639 = vmatprep.subr.bf16.mxu0 %v684_v17  ;;  %657 = vmatprep.subr.bf16.mxu1 %v684_v17 }
  0x2a   : > { %640 = vmatpush3.bf16.msra.mxu0 %v684_v17  ;;  %665 = vmatpush3.bf16.msra.mxu1 %v684_v17 }
  0x2b   : > { %641 = vmatprep.subr.bf16.mxu0 %v685_v18  ;;  %658 = vmatprep.subr.bf16.mxu1 %v685_v18 }
  0x2e   : > { %642 = vmatpush3.bf16.msra.mxu0 %v685_v18  ;;  %666 = vmatpush3.bf16.msra.mxu1 %v685_v18 }
  0x31   : > { %644 = vmatmul.mubr.bf16.vlgmr.msra.gmra.mrb[0].mxu0 %v688_v19  ;;  %648 = vmatmul.mubr.bf16.vlgmr.msra.gmra.mrb[0].mxu1 %v689_v20 }
  0x87   : > { %v207_v21 = vpop.permute.xlu0 %206  ;;  %v217_v22 = vpop.permute.xlu1 %216 }
  0x8b   : > { %v781_v23 = vpop.permute.xlu0 %211  ;;  %v222_v24 = vpop.permute.xlu1 %221 }
  0x8f   : > { %v227_v25 = vpop.permute.xlu0 %226  ;;  %v232_v28 = vpop.permute.xlu1 %231 }
  0x93   : > { %v237_v29 = vpop.permute.xlu0 %236  ;;  %v242_v48 = vpop.permute.xlu1 %241 }
 0x104   : > { %v645_v30 = vpop.f32.mrb[0].mxu0  ;;  %v649_v31 = vpop.f32.mrb[0].mxu1 }
 0x105   : > { %v359_v32 = vadd.f32 %v645_v30, %v217_v22  ;;  %v375_v33 = vadd.f32 %v649_v31, %v237_v29  ;;  %v350_v34 = vpop.f32.mrb[1].mxu0  ;;  %v366_v35 = vpop.f32.mrb[1].mxu1 }
 0x106   : > { %v351_v36 = vadd.f32 %v350_v34, %v207_v21  ;;  %v646_v37 = vpop.f32.mrb[2].mxu0  ;;  %v650_v38 = vpop.f32.mrb[2].mxu1  ;;  %v367_v59 = vadd.f32 %v366_v35, %v227_v25 }
 0x107   : > { %v383_v39 = vmax.f32 %v359_v32, 0.0  ;;  %v786_v40 = vmax.f32 %v375_v33, 0.0  ;;  %v353_v41 = vpop.f32.mrb[3].mxu0  ;;  %v369_v42 = vpop.f32.mrb[3].mxu1  ;;  %v362_v44 = vadd.f32 %v646_v37, %v222_v24  ;;  %v378_v50 = vadd.f32 %v650_v38, %v242_v48 }
 0x108   : > { %v790_v43 = vmax.f32 %v351_v36, 0.0  ;;  %v385_v63 = vmax.f32 %v367_v59, 0.0  ;;  %v370_v4 = vadd.f32 %v369_v42, %v232_v28  ;;  %v354_v7 = vadd.f32 %v353_v41, %v781_v23 }
 0x109   : > { %v400_v45 = vsel %vm392_vm0, %v786_v40, 0.0  ;;  %v396_v46 = vsel %vm392_vm0, %v383_v39, 0.0  ;;  %v384_v49 = vmax.f32 %v362_v44, 0.0  ;;  %v423_v51 = vsel %vm797_vm3, %v383_v39, 0.0 }
 0x10a   : > { %414 = vmax.xlane.f32.xlu1 %v400_v45  ;;  %406 = vmax.xlane.f32.xlu0 %v396_v46  ;;  %v394_v52 = vsel %vm392_vm0, %v790_v43, 0.0  ;;  %v808_v53 = vmax.f32 %v378_v50, 0.0  ;;  %v427_v54 = vsel %vm797_vm3, %v786_v40, 0.0  ;;  %v450_v57 = vsel %vm815_vm6, %v383_v39, 0.0 }
 0x10b   : > { %v397_v55 = vsel %vm392_vm0, %v384_v49, 0.0  ;;  %v454_v60 = vsel %vm815_vm6, %v786_v40, 0.0  ;;  %v424_v61 = vsel %vm797_vm3, %v384_v49, 0.0  ;;  %v477_v0 = vsel %vm831_vm9, %v383_v39, 0.0 }
 0x10c   : > { %v401_v58 = vsel %vm392_vm0, %v808_v53, 0.0  ;;  %v428_v1 = vsel %vm797_vm3, %v808_v53, 0.0  ;;  %v398_v2 = vsel %vm392_vm0, %v385_v63, 0.0  ;;  %v451_v3 = vsel %vm815_vm6, %v384_v49, 0.0 }
 0x10d   : > { %v421_v5 = vsel %vm797_vm3, %v790_v43, 0.0  ;;  %v455_v6 = vsel %vm815_vm6, %v808_v53, 0.0  ;;  %v386_v8 = vmax.f32 %v370_v4, 0.0  ;;  %v425_v9 = vsel %vm797_vm3, %v385_v63, 0.0 }
 0x10e   : > { %433 = vmax.xlane.f32.xlu1 %v423_v51  ;;  %402 = vmax.xlane.f32.xlu0 %v394_v52  ;;  %v478_v10 = vsel %vm831_vm9, %v384_v49, 0.0  ;;  %v382_v11 = vmax.f32 %v354_v7, 0.0  ;;  %v448_v12 = vsel %vm815_vm6, %v790_v43, 0.0  ;;  %v452_v14 = vsel %vm815_vm6, %v385_v63, 0.0 }
 0x10f   : > { %v399_v13 = vsel %vm392_vm0, %v386_v8, 0.0  ;;  %v475_v16 = vsel %vm831_vm9, %v790_v43, 0.0  ;;  %v426_v17 = vsel %vm797_vm3, %v386_v8, 0.0  ;;  %v479_v18 = vsel %vm831_vm9, %v385_v63, 0.0 }
 0x110   : > { %v422_v15 = vsel %vm797_vm3, %v382_v11, 0.0  ;;  %v449_v19 = vsel %vm815_vm6, %v382_v11, 0.0  ;;  %v395_v20 = vsel %vm392_vm0, %v382_v11, 0.0  ;;  %v453_v21 = vsel %vm815_vm6, %v386_v8, 0.0 }
 0x111   : > { %v481_v22 = vsel %vm831_vm9, %v786_v40, 0.0  ;;  %v476_v23 = vsel %vm831_vm9, %v382_v11, 0.0  ;;  %v480_v24 = vsel %vm831_vm9, %v386_v8, 0.0  ;;  %v482_v25 = vsel %vm831_vm9, %v808_v53, 0.0 }
 0x112   : > { %441 = vmax.xlane.f32.xlu1 %v427_v54  ;;  %408 = vmax.xlane.f32.xlu0 %v397_v55 }
 0x116   : > { %460 = vmax.xlane.f32.xlu1 %v450_v57  ;;  %416 = vmax.xlane.f32.xlu0 %v401_v58 }
 0x11a   : > { %468 = vmax.xlane.f32.xlu1 %v454_v60  ;;  %435 = vmax.xlane.f32.xlu0 %v424_v61 }
 0x11e   : > { %487 = vmax.xlane.f32.xlu1 %v477_v0  ;;  %443 = vmax.xlane.f32.xlu0 %v428_v1 }
 0x122   : > { %410 = vmax.xlane.f32.xlu1 %v398_v2  ;;  %462 = vmax.xlane.f32.xlu0 %v451_v3 }
 0x126   : > { %429 = vmax.xlane.f32.xlu1 %v421_v5  ;;  %470 = vmax.xlane.f32.xlu0 %v455_v6 }
 0x12a   : > { %437 = vmax.xlane.f32.xlu1 %v425_v9  ;;  %489 = vmax.xlane.f32.xlu0 %v478_v10 }
 0x12e   : > { %456 = vmax.xlane.f32.xlu1 %v448_v12  ;;  %412 = vmax.xlane.f32.xlu0 %v399_v13 }
 0x132   : > { %464 = vmax.xlane.f32.xlu1 %v452_v14  ;;  %431 = vmax.xlane.f32.xlu0 %v422_v15 }
 0x136   : > { %483 = vmax.xlane.f32.xlu1 %v475_v16  ;;  %439 = vmax.xlane.f32.xlu0 %v426_v17 }
 0x13a   : > { %491 = vmax.xlane.f32.xlu1 %v479_v18  ;;  %458 = vmax.xlane.f32.xlu0 %v449_v19 }
 0x13e   : > { %404 = vmax.xlane.f32.xlu1 %v395_v20  ;;  %466 = vmax.xlane.f32.xlu0 %v453_v21 }
 0x142   : > { %495 = vmax.xlane.f32.xlu1 %v481_v22  ;;  %485 = vmax.xlane.f32.xlu0 %v476_v23 }
 0x146   : > { %493 = vmax.xlane.f32.xlu0 %v480_v24 }
 0x14a   : > { %497 = vmax.xlane.f32.xlu0 %v482_v25 }
 0x197   : > { %v415_v26 = vpop.xlane.xlu1 %414  ;;  %v407_v27 = vpop.xlane.xlu0 %406 }
 0x19b   : > { %v434_v28 = vpop.xlane.xlu1 %433  ;;  %v403_v29 = vpop.xlane.xlu0 %402 }
 0x19c   : > { %v502_v36 = vsel %vm499_vm10, %v407_v27, %v434_v28 }
 0x19f   : > { %v442_v30 = vpop.xlane.xlu1 %441  ;;  %v409_v31 = vpop.xlane.xlu0 %408 }
 0x1a0   : > { %v506_v3 = vsel %vm499_vm10, %v415_v26, %v442_v30 }
 0x1a3   : > { %v461_v32 = vpop.xlane.xlu1 %460  ;;  %v417_v33 = vpop.xlane.xlu0 %416 }
 0x1a4   : > { %v511_v37 = vsel %vm508_vm11, %v502_v36, %v461_v32 }
 0x1a7   : > { %v469_v34 = vpop.xlane.xlu1 %468  ;;  %v436_v35 = vpop.xlane.xlu0 %435 }
 0x1a8   : > { %v503_v45 = vsel %vm499_vm10, %v409_v31, %v436_v35  ;;  %v515_v4 = vsel %vm508_vm11, %v506_v3, %v469_v34 }
 0x1ab   : > { %v488_v38 = vpop.xlane.xlu1 %487  ;;  %v444_v39 = vpop.xlane.xlu0 %443 }
 0x1ac   : > { %v520_v40 = vsel %vm517_vm12, %v511_v37, %v488_v38  ;;  %v507_v14 = vsel %vm499_vm10, %v417_v33, %v444_v39 }
 0x1ad   : > { %529 = vst.msk [vmem:[%s893_s20 + $0x10] sm:$0xff] %vm526_vm13, %v520_v40 }
 0x1af   : > { %v411_v41 = vpop.xlane.xlu1 %410  ;;  %v463_v42 = vpop.xlane.xlu0 %462 }
 0x1b0   : > { %v512_v46 = vsel %vm508_vm11, %v503_v45, %v463_v42 }
 0x1b3   : > { %v430_v43 = vpop.xlane.xlu1 %429  ;;  %v471_v44 = vpop.xlane.xlu0 %470 }
 0x1b4   : > { %v500_v54 = vsel %vm499_vm10, %v403_v29, %v430_v43  ;;  %v516_v15 = vsel %vm508_vm11, %v507_v14, %v471_v44 }
 0x1b7   : > { %v438_v47 = vpop.xlane.xlu1 %437  ;;  %v490_v48 = vpop.xlane.xlu0 %489 }
 0x1b8   : > { %v521_v49 = vsel %vm517_vm12, %v512_v46, %v490_v48  ;;  %v504_v59 = vsel %vm499_vm10, %v411_v41, %v438_v47 }
 0x1b9   : > { %530 = vst.msk [vmem:[%s893_s20 + $0x18] sm:$0xff] %vm526_vm13, %v521_v49 }
 0x1bb   : > { %v457_v50 = vpop.xlane.xlu1 %456  ;;  %v413_v51 = vpop.xlane.xlu0 %412 }
 0x1bc   : > { %v509_v55 = vsel %vm508_vm11, %v500_v54, %v457_v50 }
 0x1bf   : > { %v465_v52 = vpop.xlane.xlu1 %464  ;;  %v432_v53 = vpop.xlane.xlu0 %431 }
 0x1c0   : > { %v513_v60 = vsel %vm508_vm11, %v504_v59, %v465_v52 }
 0x1c3   : > { %v484_v56 = vpop.xlane.xlu1 %483  ;;  %v440_v57 = vpop.xlane.xlu0 %439 }
 0x1c4   : > { %v518_v58 = vsel %vm517_vm12, %v509_v55, %v484_v56  ;;  %v505_v10 = vsel %vm499_vm10, %v413_v51, %v440_v57 }
 0x1c5   : > { %527 = vst.msk [vmem:[%s893_s20] sm:$0xff] %vm526_vm13, %v518_v58 }
 0x1c7   : > { %v492_v61 = vpop.xlane.xlu1 %491  ;;  %v459_v62 = vpop.xlane.xlu0 %458 }
 0x1c8   : > { %v522_v63 = vsel %vm517_vm12, %v513_v60, %v492_v61 }
 0x1c9   : > { %531 = vst.msk [vmem:[%s893_s20 + $0x20] sm:$0xff] %vm526_vm13, %v522_v63 }
 0x1cb   : > { %v405_v0 = vpop.xlane.xlu1 %404  ;;  %v467_v1 = vpop.xlane.xlu0 %466 }
 0x1cc   : > { %v501_v2 = vsel %vm499_vm10, %v405_v0, %v432_v53  ;;  %v514_v11 = vsel %vm508_vm11, %v505_v10, %v467_v1 }
 0x1cd   : > { %v510_v6 = vsel %vm508_vm11, %v501_v2, %v459_v62 }
 0x1cf   : > { %v496_v5 = vpop.xlane.xlu1 %495  ;;  %v486_v7 = vpop.xlane.xlu0 %485 }
 0x1d0   : > { %v524_v8 = vsel %vm517_vm12, %v515_v4, %v496_v5  ;;  %v519_v9 = vsel %vm517_vm12, %v510_v6, %v486_v7 }
 0x1d1   : > { %533 = vst.msk [vmem:[%s893_s20 + $0x30] sm:$0xff] %vm526_vm13, %v524_v8  ;;  %528 = vst.msk [vmem:[%s893_s20 + $0x8] sm:$0xff] %vm526_vm13, %v519_v9 }
 0x1d3   : > { %v494_v12 = vpop.xlane.xlu0 %493 }
 0x1d4   : > { %v523_v13 = vsel %vm517_vm12, %v514_v11, %v494_v12 }
 0x1d5   : > { %532 = vst.msk [vmem:[%s893_s20 + $0x28] sm:$0xff] %vm526_vm13, %v523_v13 }
 0x1d7   : > { %v498_v16 = vpop.xlane.xlu0 %497 }
 0x1d8   : > { %v525_v17 = vsel %vm517_vm12, %v516_v15, %v498_v16 }
 0x1d9   : > { %534 = vst.msk [vmem:[%s893_s20 + $0x38] sm:$0xff] %vm526_vm13, %v525_v17 }
 0x1da PF: > { %s13_s12 = sadd.s32 1, %s696_s12  }
 0x1db   : > { %p10_p4 = scmp.ge.s32.totalorder %s13_s12, 4  }
 0x1dd   :  { %12 = sbr.rel (!%p10_p4) target bundleno = 1 (0x1), region = 62 }

// kernel: base_model_forward.26
= control target key start
LH: loop header
LB: loop body
LE: loop exit
PB: predicated region body
PF: predicated region fallthrough
CT: control target
= control target key end

     0   :  { %s613_s12 = smov 0   ;;  %s662_s0 = inlined_call_operand.vmem [shape: bf16[2,32,1024], index: 0, kind: input, shape index: {}]   ;;  %s663_s1 = inlined_call_operand.vmem [shape: bf16[4,32], index: 1, kind: input, shape index: {}]   ;;  %s664_s2 = inlined_call_operand.vmem [shape: f32[4,1], index: 2, kind: input, shape index: {}]   ;;  %s665_s3 = inlined_call_operand.vmem [shape: bf16[2,4,512], index: 3, kind: output, shape index: {}]  }
   0x1 LB: > { %s537_s13 = sadd.s32 4294967295, %s589_s12   ;;  %p541_p0 = scmp.ge.s32.totalorder %s589_s12, 1  ;;  %s589_s12 = sphi %s613_s12, %s13_s12  }
   0x2   : > { %p137_p1 = scmp.lt.s32.totalorder %s589_s12, 3 }
   0x4   : > { %p138_p2 = pnand %p541_p0, %p137_p1 }
   0x5   : > { %p161_p3 = scmp.lt.s32.totalorder (!%p138_p2), %s537_s13, 1  ;;  %v591_v0 = vmov (!%p138_p2), 0   ;;  %v189_v1 = vld [vmem:[%s664_s2] sm:$0xf] (!%p138_p2)  ;;  %vm275_vm0 = vcmask (!%p138_p2), 261120   ;;  %v468_v46 = vlaneseq (!%p138_p2) }
   0x6   : > { %141 = sbr.rel (%p138_p2) target bundleno = 262 (0x106), region = 32  ;;  %311 = vmatprep.mubr.bf16.mxu0 (!%p138_p2), %v591_v0  ;;  %352 = vmatprep.mubr.bf16.mxu1 (!%p138_p2), %v591_v0  ;;  %v172_v28 = vld [vmem:[%s663_s1] sm:$0x3] (!%p138_p2)  ;;  %v592_v44 = vmov (!%p138_p2), 1983009808  }
   0x7   : > { %582 = vset.pattern.permute.xlu0 (!%p138_p2), %v591_v0  ;;  %v466_v45 = vunpack.c.l.s4 (!%p138_p2), %v592_v44  ;;  %v469_v58 = vshrl.u32 (!%p138_p2), %v468_v46, 7 }
   0x8   : > { %192 = vperm.xlu0 (!%p138_p2), %582, %v189_v1  }
   0x9   : > { %v467_v57 = vunpack.c.0.s8 (!%p138_p2), %v466_v45 }
   0xd   : > { %s667_s13 = smov (!%p161_p3, %s537_s13), 1 }
   0xe   : > { %s570_s16 = sshll.u32 %s667_s13, 7  ;;  %s571_s22 = sshll.u32 %s667_s13, 3 }
   0xf   : > { %s630_s19 = scalar_lea.vmem %s662_s0, %s570_s16  ;;  %s170_s25 = scalar_lea.vmem %s665_s3, %s571_s22 }
  0x10   : > { %v173_v2 = vld [vmem:[%s630_s19] sm:$0xff]  ;;  %v174_v4 = vld [vmem:[%s630_s19 + $0x8] sm:$0xff]  ;;  %v175_v15 = vld [vmem:[%s630_s19 + $0x10] sm:$0xff] }
  0x11   : > { %v177_v3 = vld [vmem:[%s630_s19 + $0x20] sm:$0xff]  ;;  %v178_v6 = vld [vmem:[%s630_s19 + $0x28] sm:$0xff]  ;;  %v179_v17 = vld [vmem:[%s630_s19 + $0x30] sm:$0xff] }
  0x12   : > { %v547_v5 = vcombine.high %v173_v2, %v177_v3  ;;  %v546_v7 = vcombine.low %v173_v2, %v177_v3  ;;  %v181_v8 = vld [vmem:[%s630_s19 + $0x40] sm:$0xff]  ;;  %v549_v10 = vcombine.high %v174_v4, %v178_v6  ;;  %v548_v11 = vcombine.low %v174_v4, %v178_v6  ;;  %v182_v13 = vld [vmem:[%s630_s19 + $0x48] sm:$0xff]  ;;  %v176_v18 = vld [vmem:[%s630_s19 + $0x18] sm:$0xff] }
  0x13   : > { %v185_v9 = vld [vmem:[%s630_s19 + $0x60] sm:$0xff]  ;;  %v186_v14 = vld [vmem:[%s630_s19 + $0x68] sm:$0xff]  ;;  %v180_v19 = vld [vmem:[%s630_s19 + $0x38] sm:$0xff]  ;;  %v551_v22 = vcombine.high %v175_v15, %v179_v17  ;;  %v550_v29 = vcombine.low %v175_v15, %v179_v17 }
  0x14   : > { %v555_v12 = vcombine.high %v181_v8, %v185_v9  ;;  %279 = vmatprep.subr.bf16.mxu0 %v547_v5  ;;  %v557_v16 = vcombine.high %v182_v13, %v186_v14  ;;  %320 = vmatprep.subr.bf16.mxu1 %v549_v10  ;;  %v554_v20 = vcombine.low %v181_v8, %v185_v9  ;;  %v183_v24 = vld [vmem:[%s630_s19 + $0x50] sm:$0xff]  ;;  %v184_v26 = vld [vmem:[%s630_s19 + $0x58] sm:$0xff] }
  0x15   : > { %280 = vmatpush1.bf16.msra.mxu0 %v546_v7  ;;  %321 = vmatpush1.bf16.msra.mxu1 %v548_v11  ;;  %v556_v21 = vcombine.low %v182_v13, %v186_v14  ;;  %v553_v23 = vcombine.high %v176_v18, %v180_v19  ;;  %v187_v25 = vld [vmem:[%s630_s19 + $0x70] sm:$0xff]  ;;  %v188_v27 = vld [vmem:[%s630_s19 + $0x78] sm:$0xff]  ;;  %v552_v30 = vcombine.low %v176_v18, %v180_v19 }
  0x16   : > { %281 = vmatprep.subr.bf16.mxu0 %v555_v12  ;;  %322 = vmatprep.subr.bf16.mxu1 %v557_v16  ;;  %v559_v31 = vcombine.high %v183_v24, %v187_v25  ;;  %v561_v32 = vcombine.high %v184_v26, %v188_v27  ;;  %v558_v33 = vcombine.low %v183_v24, %v187_v25 }
  0x17   : > { %v560_v34 = vcombine.low %v184_v26, %v188_v27  ;;  %v470_v12 = vsub.s32 %v467_v57, %v469_v58 }
  0x19   : > { %282 = vmatpush1.bf16.msra.mxu0 %v554_v20  ;;  %323 = vmatpush1.bf16.msra.mxu1 %v556_v21 }
  0x1a   : > { %361 = vmatprep.subr.bf16.mxu0 %v551_v22  ;;  %402 = vmatprep.subr.bf16.mxu1 %v553_v23 }
  0x1c   : > { %562 = vmatmul.mubr.msk.bf16.vlgmr.msra.gmra.mrb[0].mxu0 %vm275_vm0, %v172_v28  ;;  %563 = vmatmul.mubr.msk.bf16.vlgmr.msra.gmra.mrb[0].mxu1 %vm275_vm0, %v172_v28 }
  0x1d   : > { %362 = vmatpush1.bf16.msra.mxu0 %v550_v29  ;;  %403 = vmatpush1.bf16.msra.mxu1 %v552_v30 }
  0x1e   : > { %363 = vmatprep.subr.bf16.mxu0 %v559_v31  ;;  %404 = vmatprep.subr.bf16.mxu1 %v561_v32 }
  0x1f   : > { %393 = vmatprep.mubr.bf16.mxu0 %v591_v0  ;;  %434 = vmatprep.mubr.bf16.mxu1 %v591_v0 }
  0x21   : > { %364 = vmatpush1.bf16.msra.mxu0 %v558_v33  ;;  %405 = vmatpush1.bf16.msra.mxu1 %v560_v34 }
  0x24   : > { %564 = vmatmul.mubr.msk.bf16.vlgmr.msra.gmra.mrb[4].mxu0 %vm275_vm0, %v172_v28  ;;  %565 = vmatmul.mubr.msk.bf16.vlgmr.msra.gmra.mrb[4].mxu1 %vm275_vm0, %v172_v28 }
  0x87   : > { %v193_v42 = vpop.permute.xlu0 %192 }
  0xef   : > { %v313_v35 = vpop.f32.mrb[0].mxu0  ;;  %v354_v36 = vpop.f32.mrb[0].mxu1 }
  0xf0   : > { %v315_v37 = vpop.f32.mrb[1].mxu0  ;;  %v356_v38 = vpop.f32.mrb[1].mxu1  ;;  %v314_v47 = vadd.f32 %v313_v35, %v193_v42  ;;  %v355_v50 = vadd.f32 %v354_v36, %v193_v42 }
  0xf1   : > { %v317_v39 = vpop.f32.mrb[2].mxu0  ;;  %v358_v40 = vpop.f32.mrb[2].mxu1  ;;  %v316_v48 = vadd.f32 %v315_v37, %v193_v42  ;;  %v357_v51 = vadd.f32 %v356_v38, %v193_v42 }
  0xf2   : > { %v318_v41 = vpop.f32.mrb[3].mxu0  ;;  %v359_v43 = vpop.f32.mrb[3].mxu1  ;;  %v443_v61 = vmax.f32 %v314_v47, 0.0  ;;  %v445_v3 = vmax.f32 %v355_v50, 0.0 }
  0xf3   : > { %v444_v2 = vmax.f32 %v316_v48, 0.0  ;;  %v446_v7 = vmax.f32 %v357_v51, 0.0 }
  0xf7   : > { %v395_v49 = vpop.f32.mrb[4].mxu0  ;;  %v436_v53 = vpop.f32.mrb[4].mxu1 }
  0xf8   : > { %v396_v52 = vadd.f32 %v395_v49, %v193_v42  ;;  %v397_v54 = vpop.f32.mrb[5].mxu0  ;;  %v437_v55 = vadd.f32 %v436_v53, %v193_v42  ;;  %v438_v59 = vpop.f32.mrb[5].mxu1 }
  0xf9   : > { %v398_v56 = vadd.f32 %v397_v54, %v193_v42  ;;  %v399_v60 = vpop.f32.mrb[6].mxu0  ;;  %v439_v63 = vadd.f32 %v438_v59, %v193_v42  ;;  %v440_v0 = vpop.f32.mrb[6].mxu1 }
  0xfa   : > { %v447_v62 = vmax.f32 %v396_v52, 0.0  ;;  %v400_v1 = vpop.f32.mrb[7].mxu0  ;;  %v449_v4 = vmax.f32 %v437_v55, 0.0  ;;  %v441_v6 = vpop.f32.mrb[7].mxu1 }
  0xfb   : > { %v448_v5 = vmax.f32 %v398_v56, 0.0  ;;  %v450_v9 = vmax.f32 %v439_v63, 0.0 }
  0xfc   : > { %v451_v8 = vmax.f32 %v443_v61, %v447_v62  ;;  %v453_v10 = vmax.f32 %v445_v3, %v449_v4 }
  0xfd   : > { %v452_v11 = vmax.f32 %v444_v2, %v448_v5  ;;  %v454_v13 = vmax.f32 %v446_v7, %v450_v9 }
  0xff   : > { %v566_v14 = vpack.c.bf16 %v452_v11, %v451_v8  ;;  %v567_v15 = vpack.c.bf16 %v454_v13, %v453_v10 }
 0x101   : > { %v471_v16 = vrot.slane %v566_v14, %v470_v12  ;;  %v478_v17 = vrot.slane %v567_v15, %v470_v12 }
 0x103   : > { %v479_v18 = vcombine.low %v471_v16, %v478_v17 }
 0x105   : > { %481 = vst [vmem:[%s170_s25] sm:$0xff] %v479_v18 }
 0x106 PF: > { %s13_s12 = sadd.s32 1, %s589_s12  }
 0x107   : > { %p10_p4 = scmp.ge.s32.totalorder %s13_s12, 4  }
 0x109   :  { %12 = sbr.rel (!%p10_p4) target bundleno = 1 (0x1), region = 62 }

// kernel: base_model_forward.27
= control target key start
LH: loop header
LB: loop body
LE: loop exit
PB: predicated region body
PF: predicated region fallthrough
CT: control target
= control target key end

     0   :  { %s459_s12 = smov 0   ;;  %s486_s0 = inlined_call_operand.vmem [shape: bf16[2,32,512], index: 0, kind: input, shape index: {}]   ;;  %s487_s1 = inlined_call_operand.vmem [shape: bf16[8,32], index: 1, kind: input, shape index: {}]   ;;  %s488_s2 = inlined_call_operand.vmem [shape: f32[8,1], index: 2, kind: input, shape index: {}]   ;;  %s489_s3 = inlined_call_operand.vmem [shape: bf16[2,8,256], index: 3, kind: output, shape index: {}]  }
   0x1 LB: > { %s383_s13 = sadd.s32 4294967295, %s436_s12   ;;  %p387_p0 = scmp.ge.s32.totalorder %s436_s12, 1  ;;  %s436_s12 = sphi %s459_s12, %s13_s12  }
   0x2   : > { %p137_p1 = scmp.lt.s32.totalorder %s436_s12, 3 }
   0x4   : > { %p138_p2 = pnand %p387_p0, %p137_p1 }
   0x5   : > { %p161_p3 = scmp.lt.s32.totalorder (!%p138_p2), %s383_s13, 1  ;;  %v181_v0 = vld [vmem:[%s488_s2] sm:$0xff] (!%p138_p2)  ;;  %v438_v1 = vmov (!%p138_p2), 0   ;;  %vm227_vm0 = vcmask (!%p138_p2), 261120  }
   0x6   : > { %141 = sbr.rel (%p138_p2) target bundleno = 247 (0xf7), region = 32  ;;  %263 = vmatprep.mubr.bf16.mxu0 (!%p138_p2), %v438_v1  ;;  %304 = vmatprep.mubr.bf16.mxu1 (!%p138_p2), %v438_v1  ;;  %v172_v10 = vld [vmem:[%s487_s1] sm:$0xf] (!%p138_p2) }
   0x7   : > { %417 = vset.pattern.permute.xlu0 (!%p138_p2), %v438_v1 }
   0x8   : > { %184 = vperm.xlu0 (!%p138_p2), %417, %v181_v0  }
   0xd   : > { %s491_s13 = smov (!%p161_p3, %s383_s13), 1 }
   0xe   : > { %s405_s16 = sshll.u32 %s491_s13, 6  ;;  %s406_s22 = sshll.u32 %s491_s13, 3 }
   0xf   : > { %s165_s19 = scalar_lea.vmem %s486_s0, %s405_s16  ;;  %s170_s25 = scalar_lea.vmem %s489_s3, %s406_s22 }
  0x10   : > { %v418_v2 = vld [vmem:[%s165_s19 + $0x4] ss:$16 sps:$4 sm:$0xff]   ;;  %v420_v3 = vld [vmem:[%s165_s19 + $0xc] ss:$16 sps:$4 sm:$0xff]   ;;  %v422_v4 = vld [vmem:[%s165_s19] ss:$16 sps:$4 sm:$0xff]  }
  0x11   : > { %231 = vmatprep.subr.bf16.mxu0 %v418_v2  ;;  %v423_v5 = vld [vmem:[%s165_s19 + $0x8] ss:$16 sps:$4 sm:$0xff]   ;;  %272 = vmatprep.subr.bf16.mxu1 %v420_v3  ;;  %v424_v6 = vld [vmem:[%s165_s19 + $0x24] ss:$16 sps:$4 sm:$0xff]   ;;  %v426_v7 = vld [vmem:[%s165_s19 + $0x2c] ss:$16 sps:$4 sm:$0xff]  }
  0x12   : > { %232 = vmatpush1.bf16.msra.mxu0 %v422_v4  ;;  %273 = vmatpush1.bf16.msra.mxu1 %v423_v5  ;;  %v428_v8 = vld [vmem:[%s165_s19 + $0x20] ss:$16 sps:$4 sm:$0xff]   ;;  %v429_v9 = vld [vmem:[%s165_s19 + $0x28] ss:$16 sps:$4 sm:$0xff]  }
  0x13   : > { %233 = vmatprep.subr.bf16.mxu0 %v424_v6  ;;  %274 = vmatprep.subr.bf16.mxu1 %v426_v7 }
  0x16   : > { %234 = vmatpush1.bf16.msra.mxu0 %v428_v8  ;;  %275 = vmatpush1.bf16.msra.mxu1 %v429_v9 }
  0x19   : > { %400 = vmatmul.mubr.msk.bf16.vlgmr.msra.gmra.mrb[0].mxu0 %vm227_vm0, %v172_v10  ;;  %401 = vmatmul.mubr.msk.bf16.vlgmr.msra.gmra.mrb[0].mxu1 %vm227_vm0, %v172_v10 }
  0x87   : > { %v185_v11 = vpop.permute.xlu0 %184 }
  0xec   : > { %v265_v12 = vpop.f32.mrb[0].mxu0  ;;  %v306_v13 = vpop.f32.mrb[0].mxu1 }
  0xed   : > { %v266_v14 = vadd.f32 %v265_v12, %v185_v11  ;;  %v307_v15 = vadd.f32 %v306_v13, %v185_v11  ;;  %v267_v16 = vpop.f32.mrb[1].mxu0  ;;  %v308_v17 = vpop.f32.mrb[1].mxu1 }
  0xee   : > { %v268_v18 = vadd.f32 %v267_v16, %v185_v11  ;;  %v309_v19 = vadd.f32 %v308_v17, %v185_v11  ;;  %v269_v20 = vpop.f32.mrb[2].mxu0  ;;  %v310_v21 = vpop.f32.mrb[2].mxu1 }
  0xef   : > { %v313_v22 = vmax.f32 %v266_v14, 0.0  ;;  %v315_v23 = vmax.f32 %v307_v15, 0.0  ;;  %v270_v24 = vpop.f32.mrb[3].mxu0  ;;  %v311_v25 = vpop.f32.mrb[3].mxu1 }
  0xf0   : > { %v314_v26 = vmax.f32 %v268_v18, 0.0  ;;  %v316_v27 = vmax.f32 %v309_v19, 0.0 }
  0xf1   : > { %v317_v28 = vmax.f32 %v313_v22, %v315_v23 }
  0xf2   : > { %v318_v29 = vmax.f32 %v314_v26, %v316_v27 }
  0xf4   : > { %v407_v30 = vpack.c.bf16 %v318_v29, %v317_v28 }
  0xf6   : > { %327 = vst [vmem:[%s170_s25] sm:$0xff] %v407_v30 }
  0xf7 PF: > { %s13_s12 = sadd.s32 1, %s436_s12  }
  0xf8   : > { %p10_p4 = scmp.ge.s32.totalorder %s13_s12, 4  }
  0xfa   :  { %12 = sbr.rel (!%p10_p4) target bundleno = 1 (0x1), region = 62 }

// kernel: base_model_forward.28
= control target key start
LH: loop header
LB: loop body
LE: loop exit
PB: predicated region body
PF: predicated region fallthrough
CT: control target
= control target key end

     0   :  { %s441_s12 = smov 0   ;;  %s471_s0 = inlined_call_operand.vmem [shape: bf16[2,64,256], index: 0, kind: input, shape index: {}]   ;;  %s472_s1 = inlined_call_operand.vmem [shape: bf16[16,64], index: 1, kind: input, shape index: {}]   ;;  %s473_s2 = inlined_call_operand.vmem [shape: f32[16,1], index: 2, kind: input, shape index: {}]   ;;  %s474_s3 = inlined_call_operand.vmem [shape: bf16[2,16,128], index: 3, kind: output, shape index: {}]  }
   0x1 LB: > { %s357_s13 = sadd.s32 4294967295, %s418_s12   ;;  %p361_p0 = scmp.ge.s32.totalorder %s418_s12, 1  ;;  %s418_s12 = sphi %s441_s12, %s13_s12  }
   0x2   : > { %p137_p1 = scmp.lt.s32.totalorder %s418_s12, 3 }
   0x4   : > { %p138_p2 = pnand %p361_p0, %p137_p1 }
   0x5   : > { %p161_p3 = scmp.lt.s32.totalorder (!%p138_p2), %s357_s13, 1  ;;  %v420_v0 = vmov (!%p138_p2), 0   ;;  %v182_v1 = vld [vmem:[%s473_s2] sm:$0xff] (!%p138_p2)  ;;  %v183_v2 = vld [vmem:[%s473_s2 + $0x8] sm:$0xff] (!%p138_p2)  ;;  %vm239_vm0 = vcmask (!%p138_p2), 523264  }
   0x6   : > { %141 = sbr.rel (%p138_p2) target bundleno = 257 (0x101), region = 32  ;;  %275 = vmatprep.mubr.bf16.mxu0 (!%p138_p2), %v420_v0  ;;  %398 = vset.pattern.permute.xlu0 (!%p138_p2), %v420_v0  ;;  %v411_v11 = vld [vmem:[%s472_s1] sm:$0xff] (!%p138_p2)  }
   0x7   : > { %186 = vperm.xlu0 (!%p138_p2), %398, %v182_v1  }
   0xb   : > { %191 = vperm.xlu0 (!%p138_p2), %398, %v183_v2  }
   0xd   : > { %s476_s13 = smov (!%p161_p3, %s357_s13), 1 }
   0xe   : > { %s380_s18 = sshll.u32 %s476_s13, 6  ;;  %s381_s24 = sshll.u32 %s476_s13, 3 }
   0xf   : > { %s165_s21 = scalar_lea.vmem %s471_s0, %s380_s18  ;;  %s170_s27 = scalar_lea.vmem %s474_s3, %s381_s24 }
  0x10   : > { %v399_v3 = vld [vmem:[%s165_s21 + $0x4] ss:$8 sps:$4 sm:$0xff]   ;;  %v401_v4 = vld [vmem:[%s165_s21] ss:$8 sps:$4 sm:$0xff]   ;;  %v402_v5 = vld [vmem:[%s165_s21 + $0x14] ss:$8 sps:$4 sm:$0xff]  }
  0x11   : > { %243 = vmatprep.subr.bf16.mxu0 %v399_v3  ;;  %v404_v6 = vld [vmem:[%s165_s21 + $0x10] ss:$8 sps:$4 sm:$0xff]   ;;  %v405_v7 = vld [vmem:[%s165_s21 + $0x24] ss:$8 sps:$4 sm:$0xff]   ;;  %v407_v8 = vld [vmem:[%s165_s21 + $0x20] ss:$8 sps:$4 sm:$0xff]  }
  0x12   : > { %244 = vmatpush1.bf16.msra.mxu0 %v401_v4  ;;  %v408_v9 = vld [vmem:[%s165_s21 + $0x34] ss:$8 sps:$4 sm:$0xff]   ;;  %v410_v10 = vld [vmem:[%s165_s21 + $0x30] ss:$8 sps:$4 sm:$0xff]  }
  0x13   : > { %245 = vmatprep.subr.bf16.mxu0 %v402_v5 }
  0x16   : > { %246 = vmatpush1.bf16.msra.mxu0 %v404_v6 }
  0x17   : > { %247 = vmatprep.subr.bf16.mxu0 %v405_v7 }
  0x1a   : > { %248 = vmatpush1.bf16.msra.mxu0 %v407_v8 }
  0x1b   : > { %249 = vmatprep.subr.bf16.mxu0 %v408_v9 }
  0x1e   : > { %250 = vmatpush1.bf16.msra.mxu0 %v410_v10 }
  0x21   : > { %375 = vmatmul.mubr.msk.bf16.vlgmr.msra.gmra.mrb[0].mxu0 %vm239_vm0, %v411_v11 }
  0x86   : > { %v187_v12 = vpop.permute.xlu0 %186 }
  0x8a   : > { %v192_v16 = vpop.permute.xlu0 %191 }
  0xf4   : > { %v277_v13 = vpop.f32.mrb[0].mxu0 }
  0xf5   : > { %v278_v14 = vadd.f32 %v277_v13, %v187_v12  ;;  %v279_v15 = vpop.f32.mrb[1].mxu0 }
  0xf6   : > { %v280_v17 = vadd.f32 %v279_v15, %v187_v12  ;;  %v281_v18 = vpop.f32.mrb[2].mxu0 }
  0xf7   : > { %v286_v19 = vmax.f32 %v278_v14, 0.0  ;;  %v282_v20 = vadd.f32 %v281_v18, %v192_v16  ;;  %v283_v21 = vpop.f32.mrb[3].mxu0 }
  0xf8   : > { %v287_v22 = vmax.f32 %v280_v17, 0.0  ;;  %v284_v23 = vadd.f32 %v283_v21, %v192_v16 }
  0xf9   : > { %v288_v24 = vmax.f32 %v282_v20, 0.0 }
  0xfa   : > { %v290_v25 = vmax.f32 %v286_v19, %v287_v22  ;;  %v289_v26 = vmax.f32 %v284_v23, 0.0 }
  0xfc   : > { %v291_v27 = vmax.f32 %v288_v24, %v289_v26 }
  0xfe   : > { %v387_v28 = vpack.c.bf16 %v291_v27, %v290_v25 }
 0x100   : > { %388 = vst [vmem:[%s170_s27] sm:$0xff] %v387_v28  }
 0x101 PF: > { %s13_s12 = sadd.s32 1, %s418_s12  }
 0x102   : > { %p10_p4 = scmp.ge.s32.totalorder %s13_s12, 4  }
 0x104   :  { %12 = sbr.rel (!%p10_p4) target bundleno = 1 (0x1), region = 62 }

// kernel: base_model_forward.29
= control target key start
LH: loop header
LB: loop body
LE: loop exit
PB: predicated region body
PF: predicated region fallthrough
CT: control target
= control target key end

     0   :  { %s580_s12 = smov 0   ;;  %s637_s0 = inlined_call_operand.vmem [shape: bf16[2,128,256], index: 0, kind: input, shape index: {}]   ;;  %s638_s1 = inlined_call_operand.vmem [shape: bf16[32,128], index: 1, kind: input, shape index: {}]   ;;  %s639_s2 = inlined_call_operand.vmem [shape: f32[32,1], index: 2, kind: input, shape index: {}]   ;;  %s640_s3 = inlined_call_operand.vmem [shape: bf16[2,32,128], index: 3, kind: output, shape index: {}]  }
   0x1 LB: > { %s448_s13 = sadd.s32 4294967295, %s557_s12   ;;  %p452_p0 = scmp.ge.s32.totalorder %s557_s12, 1  ;;  %s557_s12 = sphi %s580_s12, %s13_s12  }
   0x2   : > { %p137_p1 = scmp.lt.s32.totalorder %s557_s12, 3 }
   0x4   : > { %p138_p2 = pnand %p452_p0, %p137_p1 }
   0x5   : > { %p161_p3 = scmp.lt.s32.totalorder (!%p138_p2), %s448_s13, 1  ;;  %v559_v0 = vmov (!%p138_p2), 0   ;;  %v194_v1 = vld [vmem:[%s639_s2 + $0x10] sm:$0xff] (!%p138_p2)  ;;  %v192_v2 = vld [vmem:[%s639_s2] sm:$0xff] (!%p138_p2)  ;;  %v195_v3 = vld [vmem:[%s639_s2 + $0x18] sm:$0xff] (!%p138_p2) }
   0x6   : > { %141 = sbr.rel (%p138_p2) target bundleno = 273 (0x111), region = 32  ;;  %340 = vmatprep.mubr.bf16.mxu0 (!%p138_p2), %v559_v0  ;;  %350 = vmatprep.mubr.bf16.mxu1 (!%p138_p2), %v559_v0  ;;  %v193_v4 = vld [vmem:[%s639_s2 + $0x8] sm:$0xff] (!%p138_p2)  ;;  %v549_v21 = vld [vmem:[%s638_s1] sm:$0xff] (!%p138_p2)  }
   0x7   : > { %524 = vset.pattern.permute.xlu1 (!%p138_p2), %v559_v0  ;;  %523 = vset.pattern.permute.xlu0 (!%p138_p2), %v559_v0  ;;  %v550_v22 = vld [vmem:[%s638_s1 + $0x8] sm:$0xff] (!%p138_p2)  }
   0x8   : > { %208 = vperm.xlu1 (!%p138_p2), %524, %v194_v1   ;;  %198 = vperm.xlu0 (!%p138_p2), %523, %v192_v2  }
   0xc   : > { %213 = vperm.xlu1 (!%p138_p2), %524, %v195_v3   ;;  %203 = vperm.xlu0 (!%p138_p2), %523, %v193_v4  }
   0xd   : > { %s642_s13 = smov (!%p161_p3, %s448_s13), 1 }
   0xe   : > { %s481_s18 = sshll.u32 %s642_s13, 7  ;;  %s482_s30 = sshll.u32 %s642_s13, 4 }
   0xf   : > { %s606_s25 = scalar_lea.vmem %s637_s0, %s481_s18  ;;  %s170_s6 = scalar_lea.vmem %s640_s3, %s482_s30 }
  0x10   : > { %v525_v5 = vld [vmem:[%s606_s25 + $0x4] ss:$8 sps:$4 sm:$0xff]   ;;  %v527_v6 = vld [vmem:[%s606_s25] ss:$8 sps:$4 sm:$0xff]   ;;  %v528_v7 = vld [vmem:[%s606_s25 + $0x14] ss:$8 sps:$4 sm:$0xff]  }
  0x11   : > { %308 = vmatprep.subr.bf16.mxu0 %v525_v5  ;;  %498 = vmatprep.subr.bf16.mxu1 %v525_v5  ;;  %v530_v8 = vld [vmem:[%s606_s25 + $0x10] ss:$8 sps:$4 sm:$0xff]   ;;  %v531_v9 = vld [vmem:[%s606_s25 + $0x24] ss:$8 sps:$4 sm:$0xff]   ;;  %v533_v10 = vld [vmem:[%s606_s25 + $0x20] ss:$8 sps:$4 sm:$0xff]  }
  0x12   : > { %309 = vmatpush1.bf16.msra.mxu0 %v527_v6  ;;  %506 = vmatpush1.bf16.msra.mxu1 %v527_v6  ;;  %v534_v11 = vld [vmem:[%s606_s25 + $0x34] ss:$8 sps:$4 sm:$0xff]   ;;  %v536_v12 = vld [vmem:[%s606_s25 + $0x30] ss:$8 sps:$4 sm:$0xff]   ;;  %v537_v13 = vld [vmem:[%s606_s25 + $0x44] ss:$8 sps:$4 sm:$0xff]  }
  0x13   : > { %310 = vmatprep.subr.bf16.mxu0 %v528_v7  ;;  %499 = vmatprep.subr.bf16.mxu1 %v528_v7  ;;  %v539_v14 = vld [vmem:[%s606_s25 + $0x40] ss:$8 sps:$4 sm:$0xff]   ;;  %v540_v15 = vld [vmem:[%s606_s25 + $0x54] ss:$8 sps:$4 sm:$0xff]   ;;  %v542_v16 = vld [vmem:[%s606_s25 + $0x50] ss:$8 sps:$4 sm:$0xff]  }
  0x14   : > { %v543_v17 = vld [vmem:[%s606_s25 + $0x64] ss:$8 sps:$4 sm:$0xff]   ;;  %v545_v18 = vld [vmem:[%s606_s25 + $0x60] ss:$8 sps:$4 sm:$0xff]   ;;  %v546_v19 = vld [vmem:[%s606_s25 + $0x74] ss:$8 sps:$4 sm:$0xff]  }
  0x15   : > { %v548_v20 = vld [vmem:[%s606_s25 + $0x70] ss:$8 sps:$4 sm:$0xff]  }
  0x16   : > { %311 = vmatpush1.bf16.msra.mxu0 %v530_v8  ;;  %507 = vmatpush1.bf16.msra.mxu1 %v530_v8 }
  0x17   : > { %312 = vmatprep.subr.bf16.mxu0 %v531_v9  ;;  %500 = vmatprep.subr.bf16.mxu1 %v531_v9 }
  0x1a   : > { %313 = vmatpush1.bf16.msra.mxu0 %v533_v10  ;;  %508 = vmatpush1.bf16.msra.mxu1 %v533_v10 }
  0x1b   : > { %314 = vmatprep.subr.bf16.mxu0 %v534_v11  ;;  %501 = vmatprep.subr.bf16.mxu1 %v534_v11 }
  0x1e   : > { %315 = vmatpush1.bf16.msra.mxu0 %v536_v12  ;;  %509 = vmatpush1.bf16.msra.mxu1 %v536_v12 }
  0x1f   : > { %316 = vmatprep.subr.bf16.mxu0 %v537_v13  ;;  %502 = vmatprep.subr.bf16.mxu1 %v537_v13 }
  0x22   : > { %317 = vmatpush1.bf16.msra.mxu0 %v539_v14  ;;  %510 = vmatpush1.bf16.msra.mxu1 %v539_v14 }
  0x23   : > { %318 = vmatprep.subr.bf16.mxu0 %v540_v15  ;;  %503 = vmatprep.subr.bf16.mxu1 %v540_v15 }
  0x26   : > { %319 = vmatpush1.bf16.msra.mxu0 %v542_v16  ;;  %511 = vmatpush1.bf16.msra.mxu1 %v542_v16 }
  0x27   : > { %320 = vmatprep.subr.bf16.mxu0 %v543_v17  ;;  %504 = vmatprep.subr.bf16.mxu1 %v543_v17 }
  0x2a   : > { %321 = vmatpush1.bf16.msra.mxu0 %v545_v18  ;;  %512 = vmatpush1.bf16.msra.mxu1 %v545_v18 }
  0x2b   : > { %322 = vmatprep.subr.bf16.mxu0 %v546_v19  ;;  %505 = vmatprep.subr.bf16.mxu1 %v546_v19 }
  0x2e   : > { %323 = vmatpush1.bf16.msra.mxu0 %v548_v20  ;;  %513 = vmatpush1.bf16.msra.mxu1 %v548_v20 }
  0x31   : > { %341 = vmatmul.mubr.bf16.vlgmr.msra.gmra.mrb[0].mxu0 %v549_v21  ;;  %351 = vmatmul.mubr.bf16.vlgmr.msra.gmra.mrb[0].mxu1 %v550_v22 }
  0x87   : > { %v209_v23 = vpop.permute.xlu1 %208  ;;  %v199_v24 = vpop.permute.xlu0 %198 }
  0x8b   : > { %v214_v25 = vpop.permute.xlu1 %213  ;;  %v204_v26 = vpop.permute.xlu0 %203 }
 0x104   : > { %v342_v27 = vpop.f32.mrb[0].mxu0  ;;  %v352_v28 = vpop.f32.mrb[0].mxu1 }
 0x105   : > { %v343_v29 = vadd.f32 %v342_v27, %v199_v24  ;;  %v353_v30 = vadd.f32 %v352_v28, %v209_v23  ;;  %v344_v31 = vpop.f32.mrb[1].mxu0  ;;  %v354_v32 = vpop.f32.mrb[1].mxu1 }
 0x106   : > { %v345_v33 = vadd.f32 %v344_v31, %v199_v24  ;;  %v355_v34 = vadd.f32 %v354_v32, %v209_v23  ;;  %v346_v35 = vpop.f32.mrb[2].mxu0  ;;  %v356_v36 = vpop.f32.mrb[2].mxu1 }
 0x107   : > { %v361_v37 = vmax.f32 %v343_v29, 0.0  ;;  %v365_v38 = vmax.f32 %v353_v30, 0.0  ;;  %v347_v39 = vadd.f32 %v346_v35, %v204_v26  ;;  %v357_v40 = vadd.f32 %v356_v36, %v214_v25  ;;  %v348_v41 = vpop.f32.mrb[3].mxu0  ;;  %v358_v42 = vpop.f32.mrb[3].mxu1 }
 0x108   : > { %v362_v43 = vmax.f32 %v345_v33, 0.0  ;;  %v366_v44 = vmax.f32 %v355_v34, 0.0  ;;  %v349_v45 = vadd.f32 %v348_v41, %v204_v26  ;;  %v359_v46 = vadd.f32 %v358_v42, %v214_v25 }
 0x109   : > { %v363_v47 = vmax.f32 %v347_v39, 0.0  ;;  %v367_v48 = vmax.f32 %v357_v40, 0.0 }
 0x10a   : > { %v369_v49 = vmax.f32 %v361_v37, %v362_v43  ;;  %v371_v50 = vmax.f32 %v365_v38, %v366_v44  ;;  %v364_v51 = vmax.f32 %v349_v45, 0.0  ;;  %v368_v52 = vmax.f32 %v359_v46, 0.0 }
 0x10c   : > { %v370_v53 = vmax.f32 %v363_v47, %v364_v51  ;;  %v372_v54 = vmax.f32 %v367_v48, %v368_v52 }
 0x10e   : > { %v490_v55 = vpack.c.bf16 %v370_v53, %v369_v49  ;;  %v495_v56 = vpack.c.bf16 %v372_v54, %v371_v50 }
 0x110   : > { %491 = vst [vmem:[%s170_s6] sm:$0xff] %v490_v55   ;;  %497 = vst [vmem:[%s170_s6 + $0x8] sm:$0xff] %v495_v56  }
 0x111 PF: > { %s13_s12 = sadd.s32 1, %s557_s12  }
 0x112   : > { %p10_p4 = scmp.ge.s32.totalorder %s13_s12, 4  }
 0x114   :  { %12 = sbr.rel (!%p10_p4) target bundleno = 1 (0x1), region = 62 }

// kernel: base_model_forward.30
= control target key start
LH: loop header
LB: loop body
LE: loop exit
PB: predicated region body
PF: predicated region fallthrough
CT: control target
= control target key end

     0   :  { %s831_s12 = smov 0   ;;  %s1053_s0 = inlined_call_operand.vmem [shape: bf16[2,256,128], index: 0, kind: input, shape index: {}]   ;;  %s1054_s1 = inlined_call_operand.vmem [shape: bf16[64,256], index: 1, kind: input, shape index: {}]   ;;  %s1055_s2 = inlined_call_operand.vmem [shape: f32[64,1], index: 2, kind: input, shape index: {}]   ;;  %s1056_s3 = inlined_call_operand.vmem [shape: f32[2,64,4], index: 3, kind: output, shape index: {}]  }
   0x1 LB: > { %s670_s13 = sadd.s32 4294967295, %s808_s12   ;;  %p674_p0 = scmp.ge.s32.totalorder %s808_s12, 1  ;;  %s808_s12 = sphi %s831_s12, %s13_s12  }
   0x2   : > { %p137_p1 = scmp.lt.s32.totalorder %s808_s12, 3 }
   0x4   : > { %p138_p2 = pnand %p674_p0, %p137_p1 }
   0x5   : > { %p161_p3 = scmp.lt.s32.totalorder (!%p138_p2), %s670_s13, 1  ;;  %v792_v0 = vld [vmem:[%s1054_s1 + $0x4] ss:$8 sps:$4 sm:$0xff] (!%p138_p2)   ;;  %v810_v1 = vmov (!%p138_p2), 0   ;;  %v214_v3 = vld [vmem:[%s1055_s2 + $0x10] sm:$0xff] (!%p138_p2)  ;;  %v215_v5 = vld [vmem:[%s1055_s2 + $0x18] sm:$0xff] (!%p138_p2)  ;;  %v469_v36 = vlaneseq (!%p138_p2) }
   0x6   : > { %141 = sbr.rel (%p138_p2) target bundleno = 477 (0x1dd), region = 32  ;;  %773 = vset.pattern.permute.xlu1 (!%p138_p2), %v810_v1  ;;  %772 = vset.pattern.permute.xlu0 (!%p138_p2), %v810_v1  ;;  %v795_v2 = vld [vmem:[%s1054_s1 + $0x24] ss:$8 sps:$4 sm:$0xff] (!%p138_p2)   ;;  %v219_v19 = vld [vmem:[%s1055_s2 + $0x38] sm:$0xff] (!%p138_p2)  ;;  %v218_v25 = vld [vmem:[%s1055_s2 + $0x30] sm:$0xff] (!%p138_p2)  ;;  %vm579_vm10 = vcmask (!%p138_p2), 7168  }
   0x7   : > { %428 = vmatprep.mubr.bf16.mxu0 (!%p138_p2), %v792_v0  ;;  %444 = vmatprep.mubr.bf16.mxu1 (!%p138_p2), %v795_v2  ;;  %v212_v16 = vld [vmem:[%s1055_s2] sm:$0xff] (!%p138_p2)  ;;  %v217_v17 = vld [vmem:[%s1055_s2 + $0x28] sm:$0xff] (!%p138_p2)  ;;  %v796_v29 = vld [vmem:[%s1054_s1 + $0x14] ss:$8 sps:$4 sm:$0xff] (!%p138_p2)   ;;  %v915_v43 = vand.u32 (!%p138_p2), 127, %v469_v36  ;;  %vm588_vm11 = vcmask (!%p138_p2), 15360  }
   0x8   : > { %232 = vperm.xlu1 (!%p138_p2), %773, %v214_v3   ;;  %222 = vperm.xlu0 (!%p138_p2), %772, %v212_v16   ;;  %v213_v18 = vld [vmem:[%s1055_s2 + $0x8] sm:$0xff] (!%p138_p2)  ;;  %v216_v22 = vld [vmem:[%s1055_s2 + $0x20] sm:$0xff] (!%p138_p2)  ;;  %v798_v30 = vld [vmem:[%s1054_s1 + $0x34] ss:$8 sps:$4 sm:$0xff] (!%p138_p2)   ;;  %vm597_vm12 = vcmask (!%p138_p2), 23552   ;;  %vm606_vm13 = vcmask (!%p138_p2), 31744  }
   0x9   : > { %v790_v27 = vld [vmem:[%s1054_s1] ss:$8 sps:$4 sm:$0xff] (!%p138_p2)   ;;  %v800_v31 = vld [vmem:[%s1054_s1 + $0x10] ss:$8 sps:$4 sm:$0xff] (!%p138_p2)   ;;  %vm472_vm0 = vcmp.lt.s32.totalorder (!%p138_p2), %v915_v43, 17  ;;  %vm498_vm1 = vcmp.ge.s32.totalorder (!%p138_p2), %v915_v43, 16 }
   0xa   : > { %v793_v28 = vld [vmem:[%s1054_s1 + $0x20] ss:$8 sps:$4 sm:$0xff] (!%p138_p2)   ;;  %v801_v32 = vld [vmem:[%s1054_s1 + $0x30] ss:$8 sps:$4 sm:$0xff] (!%p138_p2)   ;;  %vm499_vm2 = vcmp.lt.s32.totalorder (!%p138_p2), %v915_v43, 33  ;;  %vm525_vm4 = vcmp.ge.s32.totalorder (!%p138_p2), %v915_v43, 32 }
   0xb   : > { %vm926_vm3 = vmand (!%p138_p2), %vm498_vm1, %vm499_vm2  ;;  %vm526_vm5 = vcmp.lt.s32.totalorder (!%p138_p2), %v915_v43, 49  ;;  %vm552_vm7 = vcmp.ge.s32.totalorder (!%p138_p2), %v915_v43, 48  ;;  %vm553_vm8 = vcmp.lt.s32.totalorder (!%p138_p2), %v915_v43, 65 }
   0xc   : > { %237 = vperm.xlu1 (!%p138_p2), %773, %v215_v5   ;;  %227 = vperm.xlu0 (!%p138_p2), %772, %v213_v18   ;;  %vm940_vm6 = vmand (!%p138_p2), %vm525_vm4, %vm526_vm5 }
   0xd   : > { %s1064_s13 = smov (!%p161_p3, %s670_s13), 1  ;;  %vm954_vm9 = vmand %vm552_vm7, %vm553_vm8 }
   0xe   : > { %s705_s18 = sshll.u32 %s1064_s13, 7  ;;  %s706_s25 = sshll.u32 %s1064_s13, 6 }
   0xf   : > { %s851_s21 = scalar_lea.vmem %s1053_s0, %s705_s18  ;;  %s1009_s28 = scalar_lea.vmem %s1056_s3, %s706_s25 }
  0x10   : > { %v774_v4 = vld [vmem:[%s851_s21 + $0x40] sm:$0xff]   ;;  %v776_v7 = vld [vmem:[%s851_s21 + $0x48] sm:$0xff]   ;;  %v778_v9 = vld [vmem:[%s851_s21 + $0x50] sm:$0xff]   ;;  %247 = vperm.xlu1 %773, %v217_v17   ;;  %242 = vperm.xlu0 %772, %v216_v22  }
  0x11   : > { %v775_v6 = vld [vmem:[%s851_s21] sm:$0xff]   ;;  %707 = vmatprep.subr.bf16.mxu0 %v774_v4  ;;  %747 = vmatprep.subr.bf16.mxu1 %v774_v4  ;;  %v777_v8 = vld [vmem:[%s851_s21 + $0x8] sm:$0xff]   ;;  %v779_v10 = vld [vmem:[%s851_s21 + $0x10] sm:$0xff]  }
  0x12   : > { %708 = vmatpush3.bf16.msra.mxu0 %v775_v6  ;;  %755 = vmatpush3.bf16.msra.mxu1 %v775_v6  ;;  %v780_v11 = vld [vmem:[%s851_s21 + $0x58] sm:$0xff]   ;;  %v782_v13 = vld [vmem:[%s851_s21 + $0x60] sm:$0xff]   ;;  %v784_v15 = vld [vmem:[%s851_s21 + $0x68] sm:$0xff]  }
  0x13   : > { %709 = vmatprep.subr.bf16.mxu0 %v776_v7  ;;  %748 = vmatprep.subr.bf16.mxu1 %v776_v7  ;;  %v781_v12 = vld [vmem:[%s851_s21 + $0x18] sm:$0xff]   ;;  %v783_v14 = vld [vmem:[%s851_s21 + $0x20] sm:$0xff]   ;;  %v785_v20 = vld [vmem:[%s851_s21 + $0x28] sm:$0xff]  }
  0x14   : > { %v786_v21 = vld [vmem:[%s851_s21 + $0x70] sm:$0xff]   ;;  %257 = vperm.xlu1 %773, %v219_v19   ;;  %v788_v24 = vld [vmem:[%s851_s21 + $0x78] sm:$0xff]   ;;  %252 = vperm.xlu0 %772, %v218_v25  }
  0x15   : > { %v787_v23 = vld [vmem:[%s851_s21 + $0x30] sm:$0xff]   ;;  %v789_v26 = vld [vmem:[%s851_s21 + $0x38] sm:$0xff]  }
  0x16   : > { %710 = vmatpush3.bf16.msra.mxu0 %v777_v8  ;;  %756 = vmatpush3.bf16.msra.mxu1 %v777_v8 }
  0x17   : > { %711 = vmatprep.subr.bf16.mxu0 %v778_v9  ;;  %749 = vmatprep.subr.bf16.mxu1 %v778_v9 }
  0x1a   : > { %712 = vmatpush3.bf16.msra.mxu0 %v779_v10  ;;  %757 = vmatpush3.bf16.msra.mxu1 %v779_v10 }
  0x1b   : > { %713 = vmatprep.subr.bf16.mxu0 %v780_v11  ;;  %750 = vmatprep.subr.bf16.mxu1 %v780_v11 }
  0x1e   : > { %714 = vmatpush3.bf16.msra.mxu0 %v781_v12  ;;  %758 = vmatpush3.bf16.msra.mxu1 %v781_v12 }
  0x1f   : > { %715 = vmatprep.subr.bf16.mxu0 %v782_v13  ;;  %751 = vmatprep.subr.bf16.mxu1 %v782_v13 }
  0x22   : > { %716 = vmatpush3.bf16.msra.mxu0 %v783_v14  ;;  %759 = vmatpush3.bf16.msra.mxu1 %v783_v14 }
  0x23   : > { %717 = vmatprep.subr.bf16.mxu0 %v784_v15  ;;  %752 = vmatprep.subr.bf16.mxu1 %v784_v15 }
  0x26   : > { %718 = vmatpush3.bf16.msra.mxu0 %v785_v20  ;;  %760 = vmatpush3.bf16.msra.mxu1 %v785_v20 }
  0x27   : > { %719 = vmatprep.subr.bf16.mxu0 %v786_v21  ;;  %753 = vmatprep.subr.bf16.mxu1 %v786_v21 }
  0x2a   : > { %720 = vmatpush3.bf16.msra.mxu0 %v787_v23  ;;  %761 = vmatpush3.bf16.msra.mxu1 %v787_v23 }
  0x2b   : > { %721 = vmatprep.subr.bf16.mxu0 %v788_v24  ;;  %754 = vmatprep.subr.bf16.mxu1 %v788_v24 }
  0x2e   : > { %722 = vmatpush3.bf16.msra.mxu0 %v789_v26  ;;  %762 = vmatpush3.bf16.msra.mxu1 %v789_v26 }
  0x31   : > { %429 = vmatmul.mubr.bf16.vlgmr.msra.gmra.mrb[0].mxu0 %v790_v27  ;;  %445 = vmatmul.mubr.bf16.vlgmr.msra.gmra.mrb[0].mxu1 %v793_v28 }
  0x32   : > { %436 = vmatprep.mubr.bf16.mxu0 %v796_v29  ;;  %452 = vmatprep.mubr.bf16.mxu1 %v798_v30 }
  0x39   : > { %437 = vmatmul.mubr.bf16.gmra.mrb[4].mxu0 %v800_v31  ;;  %453 = vmatmul.mubr.bf16.gmra.mrb[4].mxu1 %v801_v32 }
  0x87   : > { %v223_v33 = vpop.permute.xlu0 %222  ;;  %v911_v34 = vpop.permute.xlu1 %232 }
  0x8b   : > { %v228_v35 = vpop.permute.xlu0 %227  ;;  %v913_v37 = vpop.permute.xlu1 %237 }
  0x8f   : > { %v243_v38 = vpop.permute.xlu0 %242  ;;  %v248_v54 = vpop.permute.xlu1 %247 }
  0x93   : > { %v253_v24 = vpop.permute.xlu0 %252 }
 0x104   : > { %v723_v39 = vpop.f32.mrb[0].mxu0  ;;  %v735_v40 = vpop.f32.mrb[0].mxu1 }
 0x105   : > { %v724_v41 = vpop.f32.mrb[1].mxu0  ;;  %v736_v42 = vpop.f32.mrb[1].mxu1 }
 0x106   : > { %v725_v44 = vadd.f32 %v724_v41, %v723_v39  ;;  %v737_v45 = vadd.f32 %v736_v42, %v735_v40  ;;  %v726_v46 = vpop.f32.mrb[2].mxu0  ;;  %v738_v47 = vpop.f32.mrb[2].mxu1 }
 0x107   : > { %v727_v48 = vpop.f32.mrb[3].mxu0  ;;  %v739_v49 = vpop.f32.mrb[3].mxu1 }
 0x108   : > { %v431_v50 = vadd.f32 %v725_v44, %v223_v33  ;;  %v447_v51 = vadd.f32 %v737_v45, %v243_v38  ;;  %v728_v52 = vadd.f32 %v727_v48, %v726_v46  ;;  %v740_v53 = vadd.f32 %v739_v49, %v738_v47 }
 0x10a   : > { %v461_v55 = vmax.f32 %v431_v50, 0.0  ;;  %v465_v56 = vmax.f32 %v447_v51, 0.0  ;;  %v450_v57 = vadd.f32 %v740_v53, %v248_v54  ;;  %v434_v58 = vadd.f32 %v728_v52, %v228_v35 }
 0x10c   : > { %v466_v59 = vmax.f32 %v450_v57, 0.0  ;;  %v729_v60 = vpop.f32.mrb[4].mxu0  ;;  %v741_v61 = vpop.f32.mrb[4].mxu1  ;;  %v478_v62 = vsel %vm472_vm0, %v465_v56, 0.0  ;;  %v474_v63 = vsel %vm472_vm0, %v461_v55, 0.0  ;;  %v462_v7 = vmax.f32 %v434_v58, 0.0 }
 0x10d   : > { %v742_v0 = vpop.f32.mrb[5].mxu1  ;;  %490 = vmax.xlane.f32.xlu1 %v478_v62  ;;  %v730_v1 = vpop.f32.mrb[5].mxu0  ;;  %482 = vmax.xlane.f32.xlu0 %v474_v63  ;;  %v501_v12 = vsel %vm926_vm3, %v461_v55, 0.0  ;;  %v505_v14 = vsel %vm926_vm3, %v465_v56, 0.0  ;;  %v528_v17 = vsel %vm940_vm6, %v461_v55, 0.0  ;;  %v532_v19 = vsel %vm940_vm6, %v465_v56, 0.0 }
 0x10e   : > { %v743_v3 = vadd.f32 %v742_v0, %v741_v61  ;;  %v731_v4 = vadd.f32 %v730_v1, %v729_v60  ;;  %v732_v5 = vpop.f32.mrb[6].mxu0  ;;  %v744_v6 = vpop.f32.mrb[6].mxu1  ;;  %v479_v13 = vsel %vm472_vm0, %v466_v59, 0.0  ;;  %v502_v15 = vsel %vm926_vm3, %v462_v7, 0.0 }
 0x10f   : > { %v733_v8 = vpop.f32.mrb[7].mxu0  ;;  %v745_v9 = vpop.f32.mrb[7].mxu1  ;;  %v506_v18 = vsel %vm926_vm3, %v466_v59, 0.0  ;;  %v529_v20 = vsel %vm940_vm6, %v462_v7, 0.0  ;;  %v555_v22 = vsel %vm954_vm9, %v461_v55, 0.0  ;;  %v533_v23 = vsel %vm940_vm6, %v466_v59, 0.0 }
 0x110   : > { %v734_v10 = vadd.f32 %v733_v8, %v732_v5  ;;  %v746_v11 = vadd.f32 %v745_v9, %v744_v6  ;;  %v455_v25 = vadd.f32 %v743_v3, %v253_v24  ;;  %v439_v26 = vadd.f32 %v731_v4, %v911_v34  ;;  %v258_v34 = vpop.permute.xlu1 %257 }
 0x111   : > { %509 = vmax.xlane.f32.xlu1 %v501_v12  ;;  %492 = vmax.xlane.f32.xlu0 %v479_v13  ;;  %v559_v27 = vsel %vm954_vm9, %v465_v56, 0.0  ;;  %v556_v28 = vsel %vm954_vm9, %v462_v7, 0.0  ;;  %v475_v29 = vsel %vm472_vm0, %v462_v7, 0.0  ;;  %v560_v33 = vsel %vm954_vm9, %v466_v59, 0.0 }
 0x112   : > { %v467_v30 = vmax.f32 %v455_v25, 0.0  ;;  %v463_v31 = vmax.f32 %v439_v26, 0.0  ;;  %v442_v32 = vadd.f32 %v734_v10, %v913_v37  ;;  %v458_v36 = vadd.f32 %v746_v11, %v258_v34 }
 0x114   : > { %v464_v35 = vmax.f32 %v442_v32, 0.0  ;;  %v480_v38 = vsel %vm472_vm0, %v467_v30, 0.0  ;;  %v476_v39 = vsel %vm472_vm0, %v463_v31, 0.0  ;;  %v468_v40 = vmax.f32 %v458_v36, 0.0 }
 0x115   : > { %517 = vmax.xlane.f32.xlu1 %v505_v14  ;;  %511 = vmax.xlane.f32.xlu0 %v502_v15  ;;  %v503_v37 = vsel %vm926_vm3, %v463_v31, 0.0  ;;  %v507_v42 = vsel %vm926_vm3, %v467_v30, 0.0  ;;  %v530_v45 = vsel %vm940_vm6, %v463_v31, 0.0  ;;  %v534_v47 = vsel %vm940_vm6, %v467_v30, 0.0 }
 0x116   : > { %v477_v41 = vsel %vm472_vm0, %v464_v35, 0.0  ;;  %v481_v44 = vsel %vm472_vm0, %v468_v40, 0.0  ;;  %v504_v46 = vsel %vm926_vm3, %v464_v35, 0.0  ;;  %v508_v48 = vsel %vm926_vm3, %v468_v40, 0.0 }
 0x117   : > { %v557_v43 = vsel %vm954_vm9, %v463_v31, 0.0  ;;  %v531_v49 = vsel %vm940_vm6, %v464_v35, 0.0  ;;  %v561_v50 = vsel %vm954_vm9, %v467_v30, 0.0  ;;  %v535_v51 = vsel %vm940_vm6, %v468_v40, 0.0 }
 0x118   : > { %v558_v52 = vsel %vm954_vm9, %v464_v35, 0.0  ;;  %v562_v53 = vsel %vm954_vm9, %v468_v40, 0.0 }
 0x119   : > { %536 = vmax.xlane.f32.xlu1 %v528_v17  ;;  %519 = vmax.xlane.f32.xlu0 %v506_v18 }
 0x11d   : > { %544 = vmax.xlane.f32.xlu1 %v532_v19  ;;  %538 = vmax.xlane.f32.xlu0 %v529_v20 }
 0x121   : > { %563 = vmax.xlane.f32.xlu1 %v555_v22  ;;  %546 = vmax.xlane.f32.xlu0 %v533_v23 }
 0x125   : > { %571 = vmax.xlane.f32.xlu1 %v559_v27  ;;  %565 = vmax.xlane.f32.xlu0 %v556_v28 }
 0x129   : > { %484 = vmax.xlane.f32.xlu1 %v475_v29  ;;  %573 = vmax.xlane.f32.xlu0 %v560_v33 }
 0x12d   : > { %494 = vmax.xlane.f32.xlu1 %v480_v38  ;;  %486 = vmax.xlane.f32.xlu0 %v476_v39 }
 0x131   : > { %513 = vmax.xlane.f32.xlu1 %v503_v37  ;;  %488 = vmax.xlane.f32.xlu0 %v477_v41 }
 0x135   : > { %521 = vmax.xlane.f32.xlu1 %v507_v42  ;;  %496 = vmax.xlane.f32.xlu0 %v481_v44 }
 0x139   : > { %540 = vmax.xlane.f32.xlu1 %v530_v45  ;;  %515 = vmax.xlane.f32.xlu0 %v504_v46 }
 0x13d   : > { %548 = vmax.xlane.f32.xlu1 %v534_v47  ;;  %523 = vmax.xlane.f32.xlu0 %v508_v48 }
 0x141   : > { %567 = vmax.xlane.f32.xlu1 %v557_v43  ;;  %542 = vmax.xlane.f32.xlu0 %v531_v49 }
 0x145   : > { %575 = vmax.xlane.f32.xlu1 %v561_v50  ;;  %550 = vmax.xlane.f32.xlu0 %v535_v51 }
 0x149   : > { %569 = vmax.xlane.f32.xlu0 %v558_v52 }
 0x14d   : > { %577 = vmax.xlane.f32.xlu0 %v562_v53 }
 0x19a   : > { %v491_v54 = vpop.xlane.xlu1 %490  ;;  %v483_v55 = vpop.xlane.xlu0 %482 }
 0x19e   : > { %v510_v56 = vpop.xlane.xlu1 %509  ;;  %v493_v57 = vpop.xlane.xlu0 %492 }
 0x19f   : > { %v580_v0 = vsel %vm579_vm10, %v483_v55, %v510_v56 }
 0x1a2   : > { %v518_v58 = vpop.xlane.xlu1 %517  ;;  %v512_v59 = vpop.xlane.xlu0 %511 }
 0x1a3   : > { %v584_v5 = vsel %vm579_vm10, %v491_v54, %v518_v58 }
 0x1a6   : > { %v537_v60 = vpop.xlane.xlu1 %536  ;;  %v520_v61 = vpop.xlane.xlu0 %519 }
 0x1a7   : > { %v589_v1 = vsel %vm588_vm11, %v580_v0, %v537_v60  ;;  %v585_v10 = vsel %vm579_vm10, %v493_v57, %v520_v61 }
 0x1aa   : > { %v545_v62 = vpop.xlane.xlu1 %544  ;;  %v539_v63 = vpop.xlane.xlu0 %538 }
 0x1ab   : > { %v593_v6 = vsel %vm588_vm11, %v584_v5, %v545_v62 }
 0x1ae   : > { %v564_v2 = vpop.xlane.xlu1 %563  ;;  %v547_v3 = vpop.xlane.xlu0 %546 }
 0x1af   : > { %v598_v4 = vsel %vm597_vm12, %v589_v1, %v564_v2  ;;  %v594_v11 = vsel %vm588_vm11, %v585_v10, %v547_v3 }
 0x1b0   : > { %607 = vst.msk [vmem:[%s1009_s28] sm:$0xff] %vm606_vm13, %v598_v4 }
 0x1b2   : > { %v572_v7 = vpop.xlane.xlu1 %571  ;;  %v566_v8 = vpop.xlane.xlu0 %565 }
 0x1b3   : > { %v602_v9 = vsel %vm597_vm12, %v593_v6, %v572_v7 }
 0x1b4   : > { %611 = vst.msk [vmem:[%s1009_s28 + $0x20] sm:$0xff] %vm606_vm13, %v602_v9 }
 0x1b6   : > { %v485_v12 = vpop.xlane.xlu1 %484  ;;  %v574_v13 = vpop.xlane.xlu0 %573 }
 0x1b7   : > { %v581_v14 = vsel %vm579_vm10, %v485_v12, %v512_v59  ;;  %v603_v15 = vsel %vm597_vm12, %v594_v11, %v574_v13 }
 0x1b8   : > { %v590_v16 = vsel %vm588_vm11, %v581_v14, %v539_v63  ;;  %612 = vst.msk [vmem:[%s1009_s28 + $0x28] sm:$0xff] %vm606_vm13, %v603_v15 }
 0x1b9   : > { %v599_v17 = vsel %vm597_vm12, %v590_v16, %v566_v8 }
 0x1ba   : > { %608 = vst.msk [vmem:[%s1009_s28 + $0x8] sm:$0xff] %vm606_vm13, %v599_v17  ;;  %v495_v18 = vpop.xlane.xlu1 %494  ;;  %v487_v19 = vpop.xlane.xlu0 %486 }
 0x1be   : > { %v514_v20 = vpop.xlane.xlu1 %513  ;;  %v489_v21 = vpop.xlane.xlu0 %488 }
 0x1bf   : > { %v582_v28 = vsel %vm579_vm10, %v487_v19, %v514_v20 }
 0x1c2   : > { %v522_v22 = vpop.xlane.xlu1 %521  ;;  %v497_v23 = vpop.xlane.xlu0 %496 }
 0x1c3   : > { %v586_v33 = vsel %vm579_vm10, %v495_v18, %v522_v22 }
 0x1c6   : > { %v541_v24 = vpop.xlane.xlu1 %540  ;;  %v516_v25 = vpop.xlane.xlu0 %515 }
 0x1c7   : > { %v591_v29 = vsel %vm588_vm11, %v582_v28, %v541_v24  ;;  %v583_v39 = vsel %vm579_vm10, %v489_v21, %v516_v25 }
 0x1ca   : > { %v549_v26 = vpop.xlane.xlu1 %548  ;;  %v524_v27 = vpop.xlane.xlu0 %523 }
 0x1cb   : > { %v595_v34 = vsel %vm588_vm11, %v586_v33, %v549_v26  ;;  %v587_v42 = vsel %vm579_vm10, %v497_v23, %v524_v27 }
 0x1ce   : > { %v568_v30 = vpop.xlane.xlu1 %567  ;;  %v543_v31 = vpop.xlane.xlu0 %542 }
 0x1cf   : > { %v600_v32 = vsel %vm597_vm12, %v591_v29, %v568_v30  ;;  %v592_v40 = vsel %vm588_vm11, %v583_v39, %v543_v31 }
 0x1d0   : > { %609 = vst.msk [vmem:[%s1009_s28 + $0x10] sm:$0xff] %vm606_vm13, %v600_v32 }
 0x1d2   : > { %v576_v35 = vpop.xlane.xlu1 %575  ;;  %v551_v36 = vpop.xlane.xlu0 %550 }
 0x1d3   : > { %v604_v38 = vsel %vm597_vm12, %v595_v34, %v576_v35  ;;  %v596_v44 = vsel %vm588_vm11, %v587_v42, %v551_v36 }
 0x1d4   : > { %613 = vst.msk [vmem:[%s1009_s28 + $0x30] sm:$0xff] %vm606_vm13, %v604_v38 }
 0x1d6   : > { %v570_v37 = vpop.xlane.xlu0 %569 }
 0x1d7   : > { %v601_v41 = vsel %vm597_vm12, %v592_v40, %v570_v37 }
 0x1d8   : > { %610 = vst.msk [vmem:[%s1009_s28 + $0x18] sm:$0xff] %vm606_vm13, %v601_v41 }
 0x1da   : > { %v578_v45 = vpop.xlane.xlu0 %577 }
 0x1db   : > { %v605_v46 = vsel %vm597_vm12, %v596_v44, %v578_v45 }
 0x1dc   : > { %614 = vst.msk [vmem:[%s1009_s28 + $0x38] sm:$0xff] %vm606_vm13, %v605_v46 }
 0x1dd PF: > { %s13_s12 = sadd.s32 1, %s808_s12  }
 0x1de   : > { %p10_p4 = scmp.ge.s32.totalorder %s13_s12, 4  }
 0x1e0   :  { %12 = sbr.rel (!%p10_p4) target bundleno = 1 (0x1), region = 62 }

// kernel: base_model_forward.31
= control target key start
LH: loop header
LB: loop body
LE: loop exit
PB: predicated region body
PF: predicated region fallthrough
CT: control target
= control target key end

     0   :  { %s725_s12 = smov 0   ;;  %s795_s0 = inlined_call_operand.vmem [shape: bf16[2,64,1024], index: 0, kind: input, shape index: {}]   ;;  %s796_s1 = inlined_call_operand.vmem [shape: bf16[4,64], index: 1, kind: input, shape index: {}]   ;;  %s797_s2 = inlined_call_operand.vmem [shape: f32[4,1], index: 2, kind: input, shape index: {}]   ;;  %s798_s3 = inlined_call_operand.vmem [shape: bf16[2,4,512], index: 3, kind: output, shape index: {}]  }
   0x1 LB: > { %s633_s13 = sadd.s32 4294967295, %s701_s12   ;;  %p637_p0 = scmp.ge.s32.totalorder %s701_s12, 1  ;;  %s701_s12 = sphi %s725_s12, %s13_s12  }
   0x2   : > { %p137_p1 = scmp.lt.s32.totalorder %s701_s12, 3 }
   0x4   : > { %p138_p2 = pnand %p637_p0, %p137_p1 }
   0x5   : > { %p161_p3 = scmp.lt.s32.totalorder (!%p138_p2), %s633_s13, 1  ;;  %v703_v0 = vmov (!%p138_p2), 0   ;;  %v205_v1 = vld [vmem:[%s797_s2] sm:$0xf] (!%p138_p2)  ;;  %vm371_vm0 = vcmask (!%p138_p2), 523264  }
   0x6   : > { %141 = sbr.rel (%p138_p2) target bundleno = 278 (0x116), region = 32  ;;  %407 = vmatprep.mubr.bf16.mxu0 (!%p138_p2), %v703_v0  ;;  %448 = vmatprep.mubr.bf16.mxu1 (!%p138_p2), %v703_v0  ;;  %v172_v44 = vld [vmem:[%s796_s1] sm:$0x3] (!%p138_p2) }
   0x7   : > { %694 = vset.pattern.permute.xlu0 (!%p138_p2), %v703_v0 }
   0x8   : > { %208 = vperm.xlu0 (!%p138_p2), %694, %v205_v1  }
   0xd   : > { %s800_s13 = smov (!%p161_p3, %s633_s13), 1 }
   0xe   : > { %s682_s16 = sshll.u32 %s800_s13, 8  ;;  %s683_s22 = sshll.u32 %s800_s13, 3 }
   0xf   : > { %s745_s19 = scalar_lea.vmem %s795_s0, %s682_s16  ;;  %s170_s25 = scalar_lea.vmem %s798_s3, %s683_s22 }
  0x10   : > { %v173_v2 = vld [vmem:[%s745_s19] sm:$0xff]  ;;  %v174_v4 = vld [vmem:[%s745_s19 + $0x8] sm:$0xff]  ;;  %v175_v32 = vld [vmem:[%s745_s19 + $0x10] sm:$0xff] }
  0x11   : > { %v177_v3 = vld [vmem:[%s745_s19 + $0x20] sm:$0xff]  ;;  %v178_v6 = vld [vmem:[%s745_s19 + $0x28] sm:$0xff]  ;;  %v179_v33 = vld [vmem:[%s745_s19 + $0x30] sm:$0xff] }
  0x12   : > { %v643_v5 = vcombine.high %v173_v2, %v177_v3  ;;  %v642_v7 = vcombine.low %v173_v2, %v177_v3  ;;  %v181_v8 = vld [vmem:[%s745_s19 + $0x40] sm:$0xff]  ;;  %v645_v10 = vcombine.high %v174_v4, %v178_v6  ;;  %v644_v11 = vcombine.low %v174_v4, %v178_v6  ;;  %v182_v13 = vld [vmem:[%s745_s19 + $0x48] sm:$0xff]  ;;  %v176_v34 = vld [vmem:[%s745_s19 + $0x18] sm:$0xff] }
  0x13   : > { %v185_v9 = vld [vmem:[%s745_s19 + $0x60] sm:$0xff]  ;;  %v186_v14 = vld [vmem:[%s745_s19 + $0x68] sm:$0xff]  ;;  %v180_v35 = vld [vmem:[%s745_s19 + $0x38] sm:$0xff]  ;;  %v647_v38 = vcombine.high %v175_v32, %v179_v33  ;;  %v646_v45 = vcombine.low %v175_v32, %v179_v33 }
  0x14   : > { %v651_v12 = vcombine.high %v181_v8, %v185_v9  ;;  %v189_v15 = vld [vmem:[%s745_s19 + $0x80] sm:$0xff]  ;;  %375 = vmatprep.subr.bf16.mxu0 %v643_v5  ;;  %v653_v16 = vcombine.high %v182_v13, %v186_v14  ;;  %v190_v18 = vld [vmem:[%s745_s19 + $0x88] sm:$0xff]  ;;  %416 = vmatprep.subr.bf16.mxu1 %v645_v10  ;;  %v650_v20 = vcombine.low %v181_v8, %v185_v9  ;;  %v183_v40 = vld [vmem:[%s745_s19 + $0x50] sm:$0xff] }
  0x15   : > { %v193_v17 = vld [vmem:[%s745_s19 + $0xa0] sm:$0xff]  ;;  %v194_v19 = vld [vmem:[%s745_s19 + $0xa8] sm:$0xff]  ;;  %376 = vmatpush1.bf16.msra.mxu0 %v642_v7  ;;  %417 = vmatpush1.bf16.msra.mxu1 %v644_v11  ;;  %v652_v21 = vcombine.low %v182_v13, %v186_v14  ;;  %v649_v39 = vcombine.high %v176_v34, %v180_v35  ;;  %v187_v41 = vld [vmem:[%s745_s19 + $0x70] sm:$0xff]  ;;  %v648_v46 = vcombine.low %v176_v34, %v180_v35  ;;  %v564_v14 = vlaneseq }
  0x16   : > { %377 = vmatprep.subr.bf16.mxu0 %v651_v12  ;;  %v659_v22 = vcombine.high %v189_v15, %v193_v17  ;;  %418 = vmatprep.subr.bf16.mxu1 %v653_v16  ;;  %v661_v23 = vcombine.high %v190_v18, %v194_v19  ;;  %v197_v24 = vld [vmem:[%s745_s19 + $0xc0] sm:$0xff]  ;;  %v198_v26 = vld [vmem:[%s745_s19 + $0xc8] sm:$0xff]  ;;  %v658_v28 = vcombine.low %v189_v15, %v193_v17  ;;  %v184_v42 = vld [vmem:[%s745_s19 + $0x58] sm:$0xff]  ;;  %v704_v12 = vmov 1983009808  }
  0x17   : > { %v201_v25 = vld [vmem:[%s745_s19 + $0xe0] sm:$0xff]  ;;  %v202_v27 = vld [vmem:[%s745_s19 + $0xe8] sm:$0xff]  ;;  %v660_v29 = vcombine.low %v190_v18, %v194_v19  ;;  %v188_v43 = vld [vmem:[%s745_s19 + $0x78] sm:$0xff]  ;;  %v655_v47 = vcombine.high %v183_v40, %v187_v41  ;;  %v654_v53 = vcombine.low %v183_v40, %v187_v41  ;;  %v562_v13 = vunpack.c.l.s4 %v704_v12 }
  0x18   : > { %v667_v30 = vcombine.high %v197_v24, %v201_v25  ;;  %v669_v31 = vcombine.high %v198_v26, %v202_v27  ;;  %v666_v36 = vcombine.low %v197_v24, %v201_v25  ;;  %v668_v37 = vcombine.low %v198_v26, %v202_v27  ;;  %v191_v49 = vld [vmem:[%s745_s19 + $0x90] sm:$0xff]  ;;  %v192_v51 = vld [vmem:[%s745_s19 + $0x98] sm:$0xff] }
  0x19   : > { %378 = vmatpush1.bf16.msra.mxu0 %v650_v20  ;;  %419 = vmatpush1.bf16.msra.mxu1 %v652_v21  ;;  %v657_v48 = vcombine.high %v184_v42, %v188_v43  ;;  %v195_v50 = vld [vmem:[%s745_s19 + $0xb0] sm:$0xff]  ;;  %v196_v52 = vld [vmem:[%s745_s19 + $0xb8] sm:$0xff]  ;;  %v656_v54 = vcombine.low %v184_v42, %v188_v43  ;;  %v563_v25 = vunpack.c.0.s8 %v562_v13  ;;  %v565_v26 = vshrl.u32 %v564_v14, 7 }
  0x1a   : > { %379 = vmatprep.subr.bf16.mxu0 %v659_v22  ;;  %420 = vmatprep.subr.bf16.mxu1 %v661_v23  ;;  %v663_v55 = vcombine.high %v191_v49, %v195_v50  ;;  %v665_v56 = vcombine.high %v192_v51, %v196_v52  ;;  %v199_v57 = vld [vmem:[%s745_s19 + $0xd0] sm:$0xff]  ;;  %v200_v59 = vld [vmem:[%s745_s19 + $0xd8] sm:$0xff]  ;;  %v662_v61 = vcombine.low %v191_v49, %v195_v50 }
  0x1b   : > { %v203_v58 = vld [vmem:[%s745_s19 + $0xf0] sm:$0xff]  ;;  %v204_v60 = vld [vmem:[%s745_s19 + $0xf8] sm:$0xff]  ;;  %v664_v62 = vcombine.low %v192_v51, %v196_v52 }
  0x1c   : > { %v671_v63 = vcombine.high %v199_v57, %v203_v58  ;;  %v673_v1 = vcombine.high %v200_v59, %v204_v60  ;;  %v670_v2 = vcombine.low %v199_v57, %v203_v58  ;;  %v672_v3 = vcombine.low %v200_v59, %v204_v60 }
  0x1d   : > { %380 = vmatpush1.bf16.msra.mxu0 %v658_v28  ;;  %421 = vmatpush1.bf16.msra.mxu1 %v660_v29 }
  0x1e   : > { %381 = vmatprep.subr.bf16.mxu0 %v667_v30  ;;  %422 = vmatprep.subr.bf16.mxu1 %v669_v31 }
  0x21   : > { %382 = vmatpush1.bf16.msra.mxu0 %v666_v36  ;;  %423 = vmatpush1.bf16.msra.mxu1 %v668_v37 }
  0x22   : > { %457 = vmatprep.subr.bf16.mxu0 %v647_v38  ;;  %498 = vmatprep.subr.bf16.mxu1 %v649_v39 }
  0x24   : > { %674 = vmatmul.mubr.msk.bf16.vlgmr.msra.gmra.mrb[0].mxu0 %vm371_vm0, %v172_v44  ;;  %675 = vmatmul.mubr.msk.bf16.vlgmr.msra.gmra.mrb[0].mxu1 %vm371_vm0, %v172_v44 }
  0x25   : > { %458 = vmatpush1.bf16.msra.mxu0 %v646_v45  ;;  %499 = vmatpush1.bf16.msra.mxu1 %v648_v46 }
  0x26   : > { %459 = vmatprep.subr.bf16.mxu0 %v655_v47  ;;  %500 = vmatprep.subr.bf16.mxu1 %v657_v48 }
  0x27   : > { %489 = vmatprep.mubr.bf16.mxu0 %v703_v0  ;;  %530 = vmatprep.mubr.bf16.mxu1 %v703_v0 }
  0x29   : > { %460 = vmatpush1.bf16.msra.mxu0 %v654_v53  ;;  %501 = vmatpush1.bf16.msra.mxu1 %v656_v54 }
  0x2a   : > { %461 = vmatprep.subr.bf16.mxu0 %v663_v55  ;;  %502 = vmatprep.subr.bf16.mxu1 %v665_v56 }
  0x2d   : > { %462 = vmatpush1.bf16.msra.mxu0 %v662_v61  ;;  %503 = vmatpush1.bf16.msra.mxu1 %v664_v62 }
  0x2e   : > { %463 = vmatprep.subr.bf16.mxu0 %v671_v63  ;;  %504 = vmatprep.subr.bf16.mxu1 %v673_v1 }
  0x31   : > { %464 = vmatpush1.bf16.msra.mxu0 %v670_v2  ;;  %505 = vmatpush1.bf16.msra.mxu1 %v672_v3 }
  0x34   : > { %676 = vmatmul.mubr.msk.bf16.vlgmr.msra.gmra.mrb[4].mxu0 %vm371_vm0, %v172_v44  ;;  %677 = vmatmul.mubr.msk.bf16.vlgmr.msra.gmra.mrb[4].mxu1 %vm371_vm0, %v172_v44  ;;  %v566_v44 = vsub.s32 %v563_v25, %v565_v26 }
  0x87   : > { %v209_v11 = vpop.permute.xlu0 %208 }
  0xf7   : > { %v409_v0 = vpop.f32.mrb[0].mxu0  ;;  %v450_v4 = vpop.f32.mrb[0].mxu1 }
  0xf8   : > { %v411_v5 = vpop.f32.mrb[1].mxu0  ;;  %v452_v6 = vpop.f32.mrb[1].mxu1  ;;  %v410_v15 = vadd.f32 %v409_v0, %v209_v11  ;;  %v451_v18 = vadd.f32 %v450_v4, %v209_v11 }
  0xf9   : > { %v413_v7 = vpop.f32.mrb[2].mxu0  ;;  %v454_v8 = vpop.f32.mrb[2].mxu1  ;;  %v412_v16 = vadd.f32 %v411_v5, %v209_v11  ;;  %v453_v19 = vadd.f32 %v452_v6, %v209_v11 }
  0xfa   : > { %v414_v9 = vpop.f32.mrb[3].mxu0  ;;  %v455_v10 = vpop.f32.mrb[3].mxu1  ;;  %v539_v29 = vmax.f32 %v410_v15, 0.0  ;;  %v541_v35 = vmax.f32 %v451_v18, 0.0 }
  0xfb   : > { %v540_v34 = vmax.f32 %v412_v16, 0.0  ;;  %v542_v39 = vmax.f32 %v453_v19, 0.0 }
 0x107   : > { %v491_v17 = vpop.f32.mrb[4].mxu0  ;;  %v532_v21 = vpop.f32.mrb[4].mxu1 }
 0x108   : > { %v492_v20 = vadd.f32 %v491_v17, %v209_v11  ;;  %v493_v22 = vpop.f32.mrb[5].mxu0  ;;  %v533_v23 = vadd.f32 %v532_v21, %v209_v11  ;;  %v534_v27 = vpop.f32.mrb[5].mxu1 }
 0x109   : > { %v494_v24 = vadd.f32 %v493_v22, %v209_v11  ;;  %v495_v28 = vpop.f32.mrb[6].mxu0  ;;  %v535_v31 = vadd.f32 %v534_v27, %v209_v11  ;;  %v536_v32 = vpop.f32.mrb[6].mxu1 }
 0x10a   : > { %v543_v30 = vmax.f32 %v492_v20, 0.0  ;;  %v496_v33 = vpop.f32.mrb[7].mxu0  ;;  %v545_v36 = vmax.f32 %v533_v23, 0.0  ;;  %v537_v38 = vpop.f32.mrb[7].mxu1 }
 0x10b   : > { %v544_v37 = vmax.f32 %v494_v24, 0.0  ;;  %v546_v41 = vmax.f32 %v535_v31, 0.0 }
 0x10c   : > { %v547_v40 = vmax.f32 %v539_v29, %v543_v30  ;;  %v549_v42 = vmax.f32 %v541_v35, %v545_v36 }
 0x10d   : > { %v548_v43 = vmax.f32 %v540_v34, %v544_v37  ;;  %v550_v45 = vmax.f32 %v542_v39, %v546_v41 }
 0x10f   : > { %v678_v46 = vpack.c.bf16 %v548_v43, %v547_v40  ;;  %v679_v47 = vpack.c.bf16 %v550_v45, %v549_v42 }
 0x111   : > { %v567_v48 = vrot.slane %v678_v46, %v566_v44  ;;  %v574_v49 = vrot.slane %v679_v47, %v566_v44 }
 0x113   : > { %v575_v50 = vcombine.low %v567_v48, %v574_v49 }
 0x115   : > { %577 = vst [vmem:[%s170_s25] sm:$0xff] %v575_v50 }
 0x116 PF: > { %s13_s12 = sadd.s32 1, %s701_s12  }
 0x117   : > { %p10_p4 = scmp.ge.s32.totalorder %s13_s12, 4  }
 0x119   :  { %12 = sbr.rel (!%p10_p4) target bundleno = 1 (0x1), region = 62 }

// kernel: base_model_forward.32
= control target key start
LH: loop header
LB: loop body
LE: loop exit
PB: predicated region body
PF: predicated region fallthrough
CT: control target
= control target key end

     0   :  { %s527_s12 = smov 0   ;;  %s554_s0 = inlined_call_operand.vmem [shape: bf16[2,64,512], index: 0, kind: input, shape index: {}]   ;;  %s555_s1 = inlined_call_operand.vmem [shape: bf16[8,64], index: 1, kind: input, shape index: {}]   ;;  %s556_s2 = inlined_call_operand.vmem [shape: f32[8,1], index: 2, kind: input, shape index: {}]   ;;  %s557_s3 = inlined_call_operand.vmem [shape: bf16[2,8,256], index: 3, kind: output, shape index: {}]  }
   0x1 LB: > { %s431_s13 = sadd.s32 4294967295, %s504_s12   ;;  %p435_p0 = scmp.ge.s32.totalorder %s504_s12, 1  ;;  %s504_s12 = sphi %s527_s12, %s13_s12  }
   0x2   : > { %p137_p1 = scmp.lt.s32.totalorder %s504_s12, 3 }
   0x4   : > { %p138_p2 = pnand %p435_p0, %p137_p1 }
   0x5   : > { %p161_p3 = scmp.lt.s32.totalorder (!%p138_p2), %s431_s13, 1  ;;  %v189_v0 = vld [vmem:[%s556_s2] sm:$0xff] (!%p138_p2)  ;;  %v506_v1 = vmov (!%p138_p2), 0   ;;  %vm275_vm0 = vcmask (!%p138_p2), 523264  }
   0x6   : > { %141 = sbr.rel (%p138_p2) target bundleno = 255 (0xff), region = 32  ;;  %311 = vmatprep.mubr.bf16.mxu0 (!%p138_p2), %v506_v1  ;;  %352 = vmatprep.mubr.bf16.mxu1 (!%p138_p2), %v506_v1  ;;  %v172_v18 = vld [vmem:[%s555_s1] sm:$0xf] (!%p138_p2) }
   0x7   : > { %473 = vset.pattern.permute.xlu0 (!%p138_p2), %v506_v1 }
   0x8   : > { %192 = vperm.xlu0 (!%p138_p2), %473, %v189_v0  }
   0xd   : > { %s559_s13 = smov (!%p161_p3, %s431_s13), 1 }
   0xe   : > { %s461_s16 = sshll.u32 %s559_s13, 7  ;;  %s462_s22 = sshll.u32 %s559_s13, 3 }
   0xf   : > { %s165_s19 = scalar_lea.vmem %s554_s0, %s461_s16  ;;  %s170_s25 = scalar_lea.vmem %s557_s3, %s462_s22 }
  0x10   : > { %v474_v2 = vld [vmem:[%s165_s19 + $0x4] ss:$16 sps:$4 sm:$0xff]   ;;  %v476_v3 = vld [vmem:[%s165_s19 + $0xc] ss:$16 sps:$4 sm:$0xff]   ;;  %v478_v4 = vld [vmem:[%s165_s19] ss:$16 sps:$4 sm:$0xff]  }
  0x11   : > { %279 = vmatprep.subr.bf16.mxu0 %v474_v2  ;;  %v479_v5 = vld [vmem:[%s165_s19 + $0x8] ss:$16 sps:$4 sm:$0xff]   ;;  %320 = vmatprep.subr.bf16.mxu1 %v476_v3  ;;  %v480_v6 = vld [vmem:[%s165_s19 + $0x24] ss:$16 sps:$4 sm:$0xff]   ;;  %v482_v7 = vld [vmem:[%s165_s19 + $0x2c] ss:$16 sps:$4 sm:$0xff]  }
  0x12   : > { %280 = vmatpush1.bf16.msra.mxu0 %v478_v4  ;;  %321 = vmatpush1.bf16.msra.mxu1 %v479_v5  ;;  %v484_v8 = vld [vmem:[%s165_s19 + $0x20] ss:$16 sps:$4 sm:$0xff]   ;;  %v485_v9 = vld [vmem:[%s165_s19 + $0x28] ss:$16 sps:$4 sm:$0xff]   ;;  %v486_v10 = vld [vmem:[%s165_s19 + $0x44] ss:$16 sps:$4 sm:$0xff]  }
  0x13   : > { %281 = vmatprep.subr.bf16.mxu0 %v480_v6  ;;  %322 = vmatprep.subr.bf16.mxu1 %v482_v7  ;;  %v488_v11 = vld [vmem:[%s165_s19 + $0x4c] ss:$16 sps:$4 sm:$0xff]   ;;  %v490_v12 = vld [vmem:[%s165_s19 + $0x40] ss:$16 sps:$4 sm:$0xff]   ;;  %v491_v13 = vld [vmem:[%s165_s19 + $0x48] ss:$16 sps:$4 sm:$0xff]  }
  0x14   : > { %v492_v14 = vld [vmem:[%s165_s19 + $0x64] ss:$16 sps:$4 sm:$0xff]   ;;  %v494_v15 = vld [vmem:[%s165_s19 + $0x6c] ss:$16 sps:$4 sm:$0xff]   ;;  %v496_v16 = vld [vmem:[%s165_s19 + $0x60] ss:$16 sps:$4 sm:$0xff]  }
  0x15   : > { %v497_v17 = vld [vmem:[%s165_s19 + $0x68] ss:$16 sps:$4 sm:$0xff]  }
  0x16   : > { %282 = vmatpush1.bf16.msra.mxu0 %v484_v8  ;;  %323 = vmatpush1.bf16.msra.mxu1 %v485_v9 }
  0x17   : > { %283 = vmatprep.subr.bf16.mxu0 %v486_v10  ;;  %324 = vmatprep.subr.bf16.mxu1 %v488_v11 }
  0x1a   : > { %284 = vmatpush1.bf16.msra.mxu0 %v490_v12  ;;  %325 = vmatpush1.bf16.msra.mxu1 %v491_v13 }
  0x1b   : > { %285 = vmatprep.subr.bf16.mxu0 %v492_v14  ;;  %326 = vmatprep.subr.bf16.mxu1 %v494_v15 }
  0x1e   : > { %286 = vmatpush1.bf16.msra.mxu0 %v496_v16  ;;  %327 = vmatpush1.bf16.msra.mxu1 %v497_v17 }
  0x21   : > { %456 = vmatmul.mubr.msk.bf16.vlgmr.msra.gmra.mrb[0].mxu0 %vm275_vm0, %v172_v18  ;;  %457 = vmatmul.mubr.msk.bf16.vlgmr.msra.gmra.mrb[0].mxu1 %vm275_vm0, %v172_v18 }
  0x87   : > { %v193_v19 = vpop.permute.xlu0 %192 }
  0xf4   : > { %v313_v20 = vpop.f32.mrb[0].mxu0  ;;  %v354_v21 = vpop.f32.mrb[0].mxu1 }
  0xf5   : > { %v314_v22 = vadd.f32 %v313_v20, %v193_v19  ;;  %v355_v23 = vadd.f32 %v354_v21, %v193_v19  ;;  %v315_v24 = vpop.f32.mrb[1].mxu0  ;;  %v356_v25 = vpop.f32.mrb[1].mxu1 }
  0xf6   : > { %v316_v26 = vadd.f32 %v315_v24, %v193_v19  ;;  %v357_v27 = vadd.f32 %v356_v25, %v193_v19  ;;  %v317_v28 = vpop.f32.mrb[2].mxu0  ;;  %v358_v29 = vpop.f32.mrb[2].mxu1 }
  0xf7   : > { %v361_v30 = vmax.f32 %v314_v22, 0.0  ;;  %v363_v31 = vmax.f32 %v355_v23, 0.0  ;;  %v318_v32 = vpop.f32.mrb[3].mxu0  ;;  %v359_v33 = vpop.f32.mrb[3].mxu1 }
  0xf8   : > { %v362_v34 = vmax.f32 %v316_v26, 0.0  ;;  %v364_v35 = vmax.f32 %v357_v27, 0.0 }
  0xf9   : > { %v365_v36 = vmax.f32 %v361_v30, %v363_v31 }
  0xfa   : > { %v366_v37 = vmax.f32 %v362_v34, %v364_v35 }
  0xfc   : > { %v463_v38 = vpack.c.bf16 %v366_v37, %v365_v36 }
  0xfe   : > { %375 = vst [vmem:[%s170_s25] sm:$0xff] %v463_v38 }
  0xff PF: > { %s13_s12 = sadd.s32 1, %s504_s12  }
 0x100   : > { %p10_p4 = scmp.ge.s32.totalorder %s13_s12, 4  }
 0x102   :  { %12 = sbr.rel (!%p10_p4) target bundleno = 1 (0x1), region = 62 }

// kernel: base_model_forward.33
= control target key start
LH: loop header
LB: loop body
LE: loop exit
PB: predicated region body
PF: predicated region fallthrough
CT: control target
= control target key end

     0   :  { %s505_s12 = smov 0   ;;  %s553_s0 = inlined_call_operand.vmem [shape: bf16[2,128,256], index: 0, kind: input, shape index: {}]   ;;  %s554_s1 = inlined_call_operand.vmem [shape: bf16[16,128], index: 1, kind: input, shape index: {}]   ;;  %s555_s2 = inlined_call_operand.vmem [shape: f32[16,1], index: 2, kind: input, shape index: {}]   ;;  %s556_s3 = inlined_call_operand.vmem [shape: bf16[2,16,128], index: 3, kind: output, shape index: {}]  }
   0x1 LB: > { %s402_s13 = sadd.s32 4294967295, %s482_s12   ;;  %p406_p0 = scmp.ge.s32.totalorder %s482_s12, 1  ;;  %s482_s12 = sphi %s505_s12, %s13_s12  }
   0x2   : > { %p137_p1 = scmp.lt.s32.totalorder %s482_s12, 3 }
   0x4   : > { %p138_p2 = pnand %p406_p0, %p137_p1 }
   0x5   : > { %p161_p3 = scmp.lt.s32.totalorder (!%p138_p2), %s402_s13, 1  ;;  %v484_v0 = vmov (!%p138_p2), 0   ;;  %v190_v1 = vld [vmem:[%s555_s2] sm:$0xff] (!%p138_p2)  ;;  %v191_v2 = vld [vmem:[%s555_s2 + $0x8] sm:$0xff] (!%p138_p2) }
   0x6   : > { %141 = sbr.rel (%p138_p2) target bundleno = 273 (0x111), region = 32  ;;  %320 = vmatprep.mubr.bf16.mxu0 (!%p138_p2), %v484_v0  ;;  %450 = vset.pattern.permute.xlu0 (!%p138_p2), %v484_v0  ;;  %v475_v19 = vld [vmem:[%s554_s1] sm:$0xff] (!%p138_p2)  }
   0x7   : > { %194 = vperm.xlu0 (!%p138_p2), %450, %v190_v1  }
   0xb   : > { %199 = vperm.xlu0 (!%p138_p2), %450, %v191_v2  }
   0xd   : > { %s558_s13 = smov (!%p161_p3, %s402_s13), 1 }
   0xe   : > { %s432_s18 = sshll.u32 %s558_s13, 7  ;;  %s433_s24 = sshll.u32 %s558_s13, 3 }
   0xf   : > { %s525_s21 = scalar_lea.vmem %s553_s0, %s432_s18  ;;  %s170_s27 = scalar_lea.vmem %s556_s3, %s433_s24 }
  0x10   : > { %v451_v3 = vld [vmem:[%s525_s21 + $0x4] ss:$8 sps:$4 sm:$0xff]   ;;  %v453_v4 = vld [vmem:[%s525_s21] ss:$8 sps:$4 sm:$0xff]   ;;  %v454_v5 = vld [vmem:[%s525_s21 + $0x14] ss:$8 sps:$4 sm:$0xff]  }
  0x11   : > { %288 = vmatprep.subr.bf16.mxu0 %v451_v3  ;;  %v456_v6 = vld [vmem:[%s525_s21 + $0x10] ss:$8 sps:$4 sm:$0xff]   ;;  %v457_v7 = vld [vmem:[%s525_s21 + $0x24] ss:$8 sps:$4 sm:$0xff]   ;;  %v459_v8 = vld [vmem:[%s525_s21 + $0x20] ss:$8 sps:$4 sm:$0xff]  }
  0x12   : > { %289 = vmatpush1.bf16.msra.mxu0 %v453_v4  ;;  %v460_v9 = vld [vmem:[%s525_s21 + $0x34] ss:$8 sps:$4 sm:$0xff]   ;;  %v462_v10 = vld [vmem:[%s525_s21 + $0x30] ss:$8 sps:$4 sm:$0xff]   ;;  %v463_v11 = vld [vmem:[%s525_s21 + $0x44] ss:$8 sps:$4 sm:$0xff]  }
  0x13   : > { %290 = vmatprep.subr.bf16.mxu0 %v454_v5  ;;  %v465_v12 = vld [vmem:[%s525_s21 + $0x40] ss:$8 sps:$4 sm:$0xff]   ;;  %v466_v13 = vld [vmem:[%s525_s21 + $0x54] ss:$8 sps:$4 sm:$0xff]   ;;  %v468_v14 = vld [vmem:[%s525_s21 + $0x50] ss:$8 sps:$4 sm:$0xff]  }
  0x14   : > { %v469_v15 = vld [vmem:[%s525_s21 + $0x64] ss:$8 sps:$4 sm:$0xff]   ;;  %v471_v16 = vld [vmem:[%s525_s21 + $0x60] ss:$8 sps:$4 sm:$0xff]   ;;  %v472_v17 = vld [vmem:[%s525_s21 + $0x74] ss:$8 sps:$4 sm:$0xff]  }
  0x15   : > { %v474_v18 = vld [vmem:[%s525_s21 + $0x70] ss:$8 sps:$4 sm:$0xff]  }
  0x16   : > { %291 = vmatpush1.bf16.msra.mxu0 %v456_v6 }
  0x17   : > { %292 = vmatprep.subr.bf16.mxu0 %v457_v7 }
  0x1a   : > { %293 = vmatpush1.bf16.msra.mxu0 %v459_v8 }
  0x1b   : > { %294 = vmatprep.subr.bf16.mxu0 %v460_v9 }
  0x1e   : > { %295 = vmatpush1.bf16.msra.mxu0 %v462_v10 }
  0x1f   : > { %296 = vmatprep.subr.bf16.mxu0 %v463_v11 }
  0x22   : > { %297 = vmatpush1.bf16.msra.mxu0 %v465_v12 }
  0x23   : > { %298 = vmatprep.subr.bf16.mxu0 %v466_v13 }
  0x26   : > { %299 = vmatpush1.bf16.msra.mxu0 %v468_v14 }
  0x27   : > { %300 = vmatprep.subr.bf16.mxu0 %v469_v15 }
  0x2a   : > { %301 = vmatpush1.bf16.msra.mxu0 %v471_v16 }
  0x2b   : > { %302 = vmatprep.subr.bf16.mxu0 %v472_v17 }
  0x2e   : > { %303 = vmatpush1.bf16.msra.mxu0 %v474_v18 }
  0x31   : > { %321 = vmatmul.mubr.bf16.vlgmr.msra.gmra.mrb[0].mxu0 %v475_v19 }
  0x86   : > { %v195_v20 = vpop.permute.xlu0 %194 }
  0x8a   : > { %v200_v24 = vpop.permute.xlu0 %199 }
 0x104   : > { %v322_v21 = vpop.f32.mrb[0].mxu0 }
 0x105   : > { %v323_v22 = vadd.f32 %v322_v21, %v195_v20  ;;  %v324_v23 = vpop.f32.mrb[1].mxu0 }
 0x106   : > { %v325_v25 = vadd.f32 %v324_v23, %v195_v20  ;;  %v326_v26 = vpop.f32.mrb[2].mxu0 }
 0x107   : > { %v331_v27 = vmax.f32 %v323_v22, 0.0  ;;  %v327_v28 = vadd.f32 %v326_v26, %v200_v24  ;;  %v328_v29 = vpop.f32.mrb[3].mxu0 }
 0x108   : > { %v332_v30 = vmax.f32 %v325_v25, 0.0  ;;  %v329_v31 = vadd.f32 %v328_v29, %v200_v24 }
 0x109   : > { %v333_v32 = vmax.f32 %v327_v28, 0.0 }
 0x10a   : > { %v335_v33 = vmax.f32 %v331_v27, %v332_v30  ;;  %v334_v34 = vmax.f32 %v329_v31, 0.0 }
 0x10c   : > { %v336_v35 = vmax.f32 %v333_v32, %v334_v34 }
 0x10e   : > { %v439_v36 = vpack.c.bf16 %v336_v35, %v335_v33 }
 0x110   : > { %440 = vst [vmem:[%s170_s27] sm:$0xff] %v439_v36  }
 0x111 PF: > { %s13_s12 = sadd.s32 1, %s482_s12  }
 0x112   : > { %p10_p4 = scmp.ge.s32.totalorder %s13_s12, 4  }
 0x114   :  { %12 = sbr.rel (!%p10_p4) target bundleno = 1 (0x1), region = 62 }

// kernel: base_model_forward.34
= control target key start
LH: loop header
LB: loop body
LE: loop exit
PB: predicated region body
PF: predicated region fallthrough
CT: control target
= control target key end

     0   :  { %s745_s12 = smov 0   ;;  %s824_s0 = inlined_call_operand.vmem [shape: bf16[2,256,256], index: 0, kind: input, shape index: {}]   ;;  %s825_s1 = inlined_call_operand.vmem [shape: bf16[32,256], index: 1, kind: input, shape index: {}]   ;;  %s826_s2 = inlined_call_operand.vmem [shape: f32[32,1], index: 2, kind: input, shape index: {}]   ;;  %s827_s3 = inlined_call_operand.vmem [shape: bf16[2,32,128], index: 3, kind: output, shape index: {}]  }
   0x1 LB: > { %s551_s13 = sadd.s32 4294967295, %s722_s12   ;;  %p555_p0 = scmp.ge.s32.totalorder %s722_s12, 1  ;;  %s722_s12 = sphi %s745_s12, %s13_s12  }
   0x2   : > { %p137_p1 = scmp.lt.s32.totalorder %s722_s12, 3 }
   0x4   : > { %p138_p2 = pnand %p555_p0, %p137_p1 }
   0x5   : > { %p161_p3 = scmp.lt.s32.totalorder (!%p138_p2), %s551_s13, 1  ;;  %v712_v0 = vld [vmem:[%s825_s1 + $0x4] ss:$8 sps:$4 sm:$0xff] (!%p138_p2)   ;;  %v724_v1 = vmov (!%p138_p2), 0   ;;  %v715_v2 = vld [vmem:[%s825_s1 + $0x14] ss:$8 sps:$4 sm:$0xff] (!%p138_p2)  }
   0x6   : > { %141 = sbr.rel (%p138_p2) target bundleno = 305 (0x131), region = 32  ;;  %661 = vset.pattern.permute.xlu1 (!%p138_p2), %v724_v1  ;;  %660 = vset.pattern.permute.xlu0 (!%p138_p2), %v724_v1  ;;  %v209_v3 = vld [vmem:[%s826_s2 + $0x10] sm:$0xff] (!%p138_p2)  ;;  %v207_v4 = vld [vmem:[%s826_s2] sm:$0xff] (!%p138_p2)  ;;  %v210_v5 = vld [vmem:[%s826_s2 + $0x18] sm:$0xff] (!%p138_p2) }
   0x7   : > { %443 = vmatprep.mubr.bf16.mxu0 (!%p138_p2), %v712_v0  ;;  %223 = vperm.xlu1 (!%p138_p2), %661, %v209_v3   ;;  %v208_v9 = vld [vmem:[%s826_s2 + $0x8] sm:$0xff] (!%p138_p2)  ;;  %v713_v40 = vld [vmem:[%s825_s1 + $0x10] ss:$8 sps:$4 sm:$0xff] (!%p138_p2)  }
   0x8   : > { %453 = vmatprep.mubr.bf16.mxu1 (!%p138_p2), %v715_v2  ;;  %213 = vperm.xlu0 (!%p138_p2), %660, %v207_v4   ;;  %v710_v39 = vld [vmem:[%s825_s1] ss:$8 sps:$4 sm:$0xff] (!%p138_p2)  }
   0xb   : > { %228 = vperm.xlu1 (!%p138_p2), %661, %v210_v5  }
   0xc   : > { %218 = vperm.xlu0 (!%p138_p2), %660, %v208_v9  }
   0xd   : > { %s829_s13 = smov (!%p161_p3, %s551_s13), 1 }
   0xe   : > { %s602_s22 = sshll.u32 %s829_s13, 8  ;;  %s603_s7 = sshll.u32 %s829_s13, 4 }
   0xf   : > { %s774_s27 = scalar_lea.vmem %s824_s0, %s602_s22  ;;  %s170_s10 = scalar_lea.vmem %s827_s3, %s603_s7 }
  0x10   : > { %v662_v6 = vld [vmem:[%s774_s27 + $0x4] ss:$8 sps:$4 sm:$0xff]   ;;  %v664_v7 = vld [vmem:[%s774_s27] ss:$8 sps:$4 sm:$0xff]   ;;  %v665_v8 = vld [vmem:[%s774_s27 + $0x14] ss:$8 sps:$4 sm:$0xff]  }
  0x11   : > { %411 = vmatprep.subr.bf16.mxu0 %v662_v6  ;;  %619 = vmatprep.subr.bf16.mxu1 %v662_v6  ;;  %v667_v10 = vld [vmem:[%s774_s27 + $0x10] ss:$8 sps:$4 sm:$0xff]   ;;  %v668_v11 = vld [vmem:[%s774_s27 + $0x24] ss:$8 sps:$4 sm:$0xff]   ;;  %v670_v12 = vld [vmem:[%s774_s27 + $0x20] ss:$8 sps:$4 sm:$0xff]  }
  0x12   : > { %412 = vmatpush1.bf16.msra.mxu0 %v664_v7  ;;  %635 = vmatpush1.bf16.msra.mxu1 %v664_v7  ;;  %v671_v13 = vld [vmem:[%s774_s27 + $0x34] ss:$8 sps:$4 sm:$0xff]   ;;  %v673_v14 = vld [vmem:[%s774_s27 + $0x30] ss:$8 sps:$4 sm:$0xff]   ;;  %v674_v15 = vld [vmem:[%s774_s27 + $0x44] ss:$8 sps:$4 sm:$0xff]  }
  0x13   : > { %413 = vmatprep.subr.bf16.mxu0 %v665_v8  ;;  %620 = vmatprep.subr.bf16.mxu1 %v665_v8  ;;  %v676_v16 = vld [vmem:[%s774_s27 + $0x40] ss:$8 sps:$4 sm:$0xff]   ;;  %v677_v17 = vld [vmem:[%s774_s27 + $0x54] ss:$8 sps:$4 sm:$0xff]   ;;  %v679_v18 = vld [vmem:[%s774_s27 + $0x50] ss:$8 sps:$4 sm:$0xff]  }
  0x14   : > { %v680_v19 = vld [vmem:[%s774_s27 + $0x64] ss:$8 sps:$4 sm:$0xff]   ;;  %v682_v20 = vld [vmem:[%s774_s27 + $0x60] ss:$8 sps:$4 sm:$0xff]   ;;  %v683_v21 = vld [vmem:[%s774_s27 + $0x74] ss:$8 sps:$4 sm:$0xff]  }
  0x15   : > { %v685_v22 = vld [vmem:[%s774_s27 + $0x70] ss:$8 sps:$4 sm:$0xff]   ;;  %v686_v23 = vld [vmem:[%s774_s27 + $0x84] ss:$8 sps:$4 sm:$0xff]   ;;  %v688_v24 = vld [vmem:[%s774_s27 + $0x80] ss:$8 sps:$4 sm:$0xff]  }
  0x16   : > { %414 = vmatpush1.bf16.msra.mxu0 %v667_v10  ;;  %636 = vmatpush1.bf16.msra.mxu1 %v667_v10  ;;  %v689_v25 = vld [vmem:[%s774_s27 + $0x94] ss:$8 sps:$4 sm:$0xff]   ;;  %v691_v26 = vld [vmem:[%s774_s27 + $0x90] ss:$8 sps:$4 sm:$0xff]   ;;  %v692_v27 = vld [vmem:[%s774_s27 + $0xa4] ss:$8 sps:$4 sm:$0xff]  }
  0x17   : > { %415 = vmatprep.subr.bf16.mxu0 %v668_v11  ;;  %621 = vmatprep.subr.bf16.mxu1 %v668_v11  ;;  %v694_v28 = vld [vmem:[%s774_s27 + $0xa0] ss:$8 sps:$4 sm:$0xff]   ;;  %v695_v29 = vld [vmem:[%s774_s27 + $0xb4] ss:$8 sps:$4 sm:$0xff]   ;;  %v697_v30 = vld [vmem:[%s774_s27 + $0xb0] ss:$8 sps:$4 sm:$0xff]  }
  0x18   : > { %v698_v31 = vld [vmem:[%s774_s27 + $0xc4] ss:$8 sps:$4 sm:$0xff]   ;;  %v700_v32 = vld [vmem:[%s774_s27 + $0xc0] ss:$8 sps:$4 sm:$0xff]   ;;  %v701_v33 = vld [vmem:[%s774_s27 + $0xd4] ss:$8 sps:$4 sm:$0xff]  }
  0x19   : > { %v703_v34 = vld [vmem:[%s774_s27 + $0xd0] ss:$8 sps:$4 sm:$0xff]   ;;  %v704_v35 = vld [vmem:[%s774_s27 + $0xe4] ss:$8 sps:$4 sm:$0xff]   ;;  %v706_v36 = vld [vmem:[%s774_s27 + $0xe0] ss:$8 sps:$4 sm:$0xff]  }
  0x1a   : > { %416 = vmatpush1.bf16.msra.mxu0 %v670_v12  ;;  %637 = vmatpush1.bf16.msra.mxu1 %v670_v12  ;;  %v707_v37 = vld [vmem:[%s774_s27 + $0xf4] ss:$8 sps:$4 sm:$0xff]   ;;  %v709_v38 = vld [vmem:[%s774_s27 + $0xf0] ss:$8 sps:$4 sm:$0xff]  }
  0x1b   : > { %417 = vmatprep.subr.bf16.mxu0 %v671_v13  ;;  %622 = vmatprep.subr.bf16.mxu1 %v671_v13 }
  0x1e   : > { %418 = vmatpush1.bf16.msra.mxu0 %v673_v14  ;;  %638 = vmatpush1.bf16.msra.mxu1 %v673_v14 }
  0x1f   : > { %419 = vmatprep.subr.bf16.mxu0 %v674_v15  ;;  %623 = vmatprep.subr.bf16.mxu1 %v674_v15 }
  0x22   : > { %420 = vmatpush1.bf16.msra.mxu0 %v676_v16  ;;  %639 = vmatpush1.bf16.msra.mxu1 %v676_v16 }
  0x23   : > { %421 = vmatprep.subr.bf16.mxu0 %v677_v17  ;;  %624 = vmatprep.subr.bf16.mxu1 %v677_v17 }
  0x26   : > { %422 = vmatpush1.bf16.msra.mxu0 %v679_v18  ;;  %640 = vmatpush1.bf16.msra.mxu1 %v679_v18 }
  0x27   : > { %423 = vmatprep.subr.bf16.mxu0 %v680_v19  ;;  %625 = vmatprep.subr.bf16.mxu1 %v680_v19 }
  0x2a   : > { %424 = vmatpush1.bf16.msra.mxu0 %v682_v20  ;;  %641 = vmatpush1.bf16.msra.mxu1 %v682_v20 }
  0x2b   : > { %425 = vmatprep.subr.bf16.mxu0 %v683_v21  ;;  %626 = vmatprep.subr.bf16.mxu1 %v683_v21 }
  0x2e   : > { %426 = vmatpush1.bf16.msra.mxu0 %v685_v22  ;;  %642 = vmatpush1.bf16.msra.mxu1 %v685_v22 }
  0x2f   : > { %427 = vmatprep.subr.bf16.mxu0 %v686_v23  ;;  %627 = vmatprep.subr.bf16.mxu1 %v686_v23 }
  0x32   : > { %428 = vmatpush1.bf16.msra.mxu0 %v688_v24  ;;  %643 = vmatpush1.bf16.msra.mxu1 %v688_v24 }
  0x33   : > { %429 = vmatprep.subr.bf16.mxu0 %v689_v25  ;;  %628 = vmatprep.subr.bf16.mxu1 %v689_v25 }
  0x36   : > { %430 = vmatpush1.bf16.msra.mxu0 %v691_v26  ;;  %644 = vmatpush1.bf16.msra.mxu1 %v691_v26 }
  0x37   : > { %431 = vmatprep.subr.bf16.mxu0 %v692_v27  ;;  %629 = vmatprep.subr.bf16.mxu1 %v692_v27 }
  0x3a   : > { %432 = vmatpush1.bf16.msra.mxu0 %v694_v28  ;;  %645 = vmatpush1.bf16.msra.mxu1 %v694_v28 }
  0x3b   : > { %433 = vmatprep.subr.bf16.mxu0 %v695_v29  ;;  %630 = vmatprep.subr.bf16.mxu1 %v695_v29 }
  0x3e   : > { %434 = vmatpush1.bf16.msra.mxu0 %v697_v30  ;;  %646 = vmatpush1.bf16.msra.mxu1 %v697_v30 }
  0x3f   : > { %435 = vmatprep.subr.bf16.mxu0 %v698_v31  ;;  %631 = vmatprep.subr.bf16.mxu1 %v698_v31 }
  0x42   : > { %436 = vmatpush1.bf16.msra.mxu0 %v700_v32  ;;  %647 = vmatpush1.bf16.msra.mxu1 %v700_v32 }
  0x43   : > { %437 = vmatprep.subr.bf16.mxu0 %v701_v33  ;;  %632 = vmatprep.subr.bf16.mxu1 %v701_v33 }
  0x46   : > { %438 = vmatpush1.bf16.msra.mxu0 %v703_v34  ;;  %648 = vmatpush1.bf16.msra.mxu1 %v703_v34 }
  0x47   : > { %439 = vmatprep.subr.bf16.mxu0 %v704_v35  ;;  %633 = vmatprep.subr.bf16.mxu1 %v704_v35 }
  0x4a   : > { %440 = vmatpush1.bf16.msra.mxu0 %v706_v36  ;;  %649 = vmatpush1.bf16.msra.mxu1 %v706_v36 }
  0x4b   : > { %441 = vmatprep.subr.bf16.mxu0 %v707_v37  ;;  %634 = vmatprep.subr.bf16.mxu1 %v707_v37 }
  0x4e   : > { %442 = vmatpush1.bf16.msra.mxu0 %v709_v38  ;;  %650 = vmatpush1.bf16.msra.mxu1 %v709_v38 }
  0x51   : > { %444 = vmatmul.mubr.bf16.vlgmr.msra.gmra.mrb[0].mxu0 %v710_v39  ;;  %454 = vmatmul.mubr.bf16.vlgmr.msra.gmra.mrb[0].mxu1 %v713_v40 }
  0x86   : > { %v224_v41 = vpop.permute.xlu1 %223 }
  0x87   : > { %v214_v42 = vpop.permute.xlu0 %213 }
  0x8a   : > { %v229_v43 = vpop.permute.xlu1 %228 }
  0x8b   : > { %v219_v44 = vpop.permute.xlu0 %218 }
 0x124   : > { %v445_v45 = vpop.f32.mrb[0].mxu0  ;;  %v455_v46 = vpop.f32.mrb[0].mxu1 }
 0x125   : > { %v446_v47 = vadd.f32 %v445_v45, %v214_v42  ;;  %v456_v48 = vadd.f32 %v455_v46, %v224_v41  ;;  %v447_v49 = vpop.f32.mrb[1].mxu0  ;;  %v457_v50 = vpop.f32.mrb[1].mxu1 }
 0x126   : > { %v448_v51 = vadd.f32 %v447_v49, %v214_v42  ;;  %v458_v52 = vadd.f32 %v457_v50, %v224_v41  ;;  %v449_v53 = vpop.f32.mrb[2].mxu0  ;;  %v459_v54 = vpop.f32.mrb[2].mxu1 }
 0x127   : > { %v464_v55 = vmax.f32 %v446_v47, 0.0  ;;  %v468_v56 = vmax.f32 %v456_v48, 0.0  ;;  %v450_v57 = vadd.f32 %v449_v53, %v219_v44  ;;  %v460_v58 = vadd.f32 %v459_v54, %v229_v43  ;;  %v451_v59 = vpop.f32.mrb[3].mxu0  ;;  %v461_v60 = vpop.f32.mrb[3].mxu1 }
 0x128   : > { %v465_v61 = vmax.f32 %v448_v51, 0.0  ;;  %v469_v62 = vmax.f32 %v458_v52, 0.0  ;;  %v452_v63 = vadd.f32 %v451_v59, %v219_v44  ;;  %v462_v0 = vadd.f32 %v461_v60, %v229_v43 }
 0x129   : > { %v466_v1 = vmax.f32 %v450_v57, 0.0  ;;  %v470_v2 = vmax.f32 %v460_v58, 0.0 }
 0x12a   : > { %v472_v3 = vmax.f32 %v464_v55, %v465_v61  ;;  %v474_v4 = vmax.f32 %v468_v56, %v469_v62  ;;  %v467_v5 = vmax.f32 %v452_v63, 0.0  ;;  %v471_v6 = vmax.f32 %v462_v0, 0.0 }
 0x12c   : > { %v473_v7 = vmax.f32 %v466_v1, %v467_v5  ;;  %v475_v8 = vmax.f32 %v470_v2, %v471_v6 }
 0x12e   : > { %v611_v9 = vpack.c.bf16 %v473_v7, %v472_v3  ;;  %v616_v10 = vpack.c.bf16 %v475_v8, %v474_v4 }
 0x130   : > { %612 = vst [vmem:[%s170_s10] sm:$0xff] %v611_v9   ;;  %618 = vst [vmem:[%s170_s10 + $0x8] sm:$0xff] %v616_v10  }
 0x131 PF: > { %s13_s12 = sadd.s32 1, %s722_s12  }
 0x132   : > { %p10_p4 = scmp.ge.s32.totalorder %s13_s12, 4  }
 0x134   :  { %12 = sbr.rel (!%p10_p4) target bundleno = 1 (0x1), region = 62 }

// kernel: base_model_forward.35
= control target key start
LH: loop header
LB: loop body
LE: loop exit
PB: predicated region body
PF: predicated region fallthrough
CT: control target
= control target key end

     0   :  { %s1148_s12 = smov 0   ;;  %s1402_s0 = inlined_call_operand.vmem [shape: bf16[2,512,128], index: 0, kind: input, shape index: {}]   ;;  %s1403_s1 = inlined_call_operand.vmem [shape: bf16[64,512], index: 1, kind: input, shape index: {}]   ;;  %s1404_s2 = inlined_call_operand.vmem [shape: f32[64,1], index: 2, kind: input, shape index: {}]   ;;  %s1405_s3 = inlined_call_operand.vmem [shape: f32[2,64,4], index: 3, kind: output, shape index: {}]  }
   0x1 LB: > { %s911_s13 = sadd.s32 4294967295, %s1125_s12   ;;  %p915_p0 = scmp.ge.s32.totalorder %s1125_s12, 1  ;;  %s1125_s12 = sphi %s1148_s12, %s13_s12  }
   0x2   : > { %p137_p1 = scmp.lt.s32.totalorder %s1125_s12, 3 }
   0x4   : > { %p138_p2 = pnand %p915_p0, %p137_p1 }
   0x5   : > { %p161_p3 = scmp.lt.s32.totalorder (!%p138_p2), %s911_s13, 1  ;;  %v1097_v0 = vld [vmem:[%s1403_s1 + $0x4] ss:$16 sps:$4 sm:$0xff] (!%p138_p2)   ;;  %v1127_v1 = vmov (!%p138_p2), 0   ;;  %v1100_v2 = vld [vmem:[%s1403_s1 + $0xc] ss:$16 sps:$4 sm:$0xff] (!%p138_p2)   ;;  %v710_v57 = vlaneseq (!%p138_p2) }
   0x6   : > { %141 = sbr.rel (%p138_p2) target bundleno = 480 (0x1e0), region = 32  ;;  %1061 = vset.pattern.permute.xlu0 (!%p138_p2), %v1127_v1  ;;  %1062 = vset.pattern.permute.xlu1 (!%p138_p2), %v1127_v1  ;;  %v1095_v33 = vld [vmem:[%s1403_s1] ss:$16 sps:$4 sm:$0xff] (!%p138_p2)   ;;  %v1098_v36 = vld [vmem:[%s1403_s1 + $0x8] ss:$16 sps:$4 sm:$0xff] (!%p138_p2)   ;;  %vm820_vm10 = vcmask (!%p138_p2), 7168  }
   0x7   : > { %604 = vmatprep.mubr.bf16.mxu0 (!%p138_p2), %v1097_v0  ;;  %669 = vmatprep.mubr.bf16.mxu1 (!%p138_p2), %v1100_v2  ;;  %v1101_v37 = vld [vmem:[%s1403_s1 + $0x24] ss:$16 sps:$4 sm:$0xff] (!%p138_p2)   ;;  %v1104_v38 = vld [vmem:[%s1403_s1 + $0x2c] ss:$16 sps:$4 sm:$0xff] (!%p138_p2)   ;;  %v1103_v42 = vld [vmem:[%s1403_s1 + $0x20] ss:$16 sps:$4 sm:$0xff] (!%p138_p2)  }
   0x8   : > { %v252_v39 = vld [vmem:[%s1404_s2] sm:$0xff] (!%p138_p2)  ;;  %v253_v40 = vld [vmem:[%s1404_s2 + $0x8] sm:$0xff] (!%p138_p2)  ;;  %v254_v41 = vld [vmem:[%s1404_s2 + $0x10] sm:$0xff] (!%p138_p2)  ;;  %v1268_v60 = vand.u32 (!%p138_p2), 127, %v710_v57  ;;  %vm829_vm11 = vcmask (!%p138_p2), 15360   ;;  %vm838_vm12 = vcmask (!%p138_p2), 23552  }
   0x9   : > { %262 = vperm.xlu0 (!%p138_p2), %1061, %v252_v39   ;;  %272 = vperm.xlu1 (!%p138_p2), %1062, %v254_v41   ;;  %v1106_v43 = vld [vmem:[%s1403_s1 + $0x28] ss:$16 sps:$4 sm:$0xff] (!%p138_p2)   ;;  %v1107_v44 = vld [vmem:[%s1403_s1 + $0x44] ss:$16 sps:$4 sm:$0xff] (!%p138_p2)   ;;  %v1110_v46 = vld [vmem:[%s1403_s1 + $0x4c] ss:$16 sps:$4 sm:$0xff] (!%p138_p2)  }
   0xa   : > { %v255_v45 = vld [vmem:[%s1404_s2 + $0x18] sm:$0xff] (!%p138_p2)  ;;  %v256_v47 = vld [vmem:[%s1404_s2 + $0x20] sm:$0xff] (!%p138_p2)  ;;  %v257_v48 = vld [vmem:[%s1404_s2 + $0x28] sm:$0xff] (!%p138_p2)  ;;  %vm739_vm0 = vcmp.ge.s32.totalorder (!%p138_p2), %v1268_v60, 12  ;;  %vm740_vm1 = vcmp.lt.s32.totalorder (!%p138_p2), %v1268_v60, 25  ;;  %vm713_vm3 = vcmp.lt.s32.totalorder (!%p138_p2), %v1268_v60, 13 }
   0xb   : > { %v258_v49 = vld [vmem:[%s1404_s2 + $0x30] sm:$0xff] (!%p138_p2)  ;;  %v1112_v51 = vld [vmem:[%s1403_s1 + $0x48] ss:$16 sps:$4 sm:$0xff] (!%p138_p2)   ;;  %v1116_v54 = vld [vmem:[%s1403_s1 + $0x6c] ss:$16 sps:$4 sm:$0xff] (!%p138_p2)   ;;  %vm766_vm4 = vcmp.ge.s32.totalorder (!%p138_p2), %v1268_v60, 25 }
   0xc   : > { %v1109_v50 = vld [vmem:[%s1403_s1 + $0x40] ss:$16 sps:$4 sm:$0xff] (!%p138_p2)   ;;  %v1113_v52 = vld [vmem:[%s1403_s1 + $0x64] ss:$16 sps:$4 sm:$0xff] (!%p138_p2)   ;;  %v259_v53 = vld [vmem:[%s1404_s2 + $0x38] sm:$0xff] (!%p138_p2)  ;;  %vm767_vm5 = vcmp.lt.s32.totalorder (!%p138_p2), %v1268_v60, 38 }
   0xd   : > { %s1413_s13 = smov (!%p161_p3, %s911_s13), 1  ;;  %267 = vperm.xlu0 %1061, %v253_v40   ;;  %277 = vperm.xlu1 %1062, %v255_v45   ;;  %v1115_v55 = vld [vmem:[%s1403_s1 + $0x60] ss:$16 sps:$4 sm:$0xff]   ;;  %v1118_v56 = vld [vmem:[%s1403_s1 + $0x68] ss:$16 sps:$4 sm:$0xff]   ;;  %vm1272_vm2 = vmand %vm739_vm0, %vm740_vm1  ;;  %vm793_vm7 = vcmp.ge.s32.totalorder %v1268_v60, 37 }
   0xe   : > { %s970_s18 = sshll.u32 %s1413_s13, 8  ;;  %vm1283_vm6 = vmand %vm766_vm4, %vm767_vm5  ;;  %vm794_vm8 = vcmp.lt.s32.totalorder %v1268_v60, 50  ;;  %s971_s16 = sshll.u32 %s1413_s13, 6  ;;  %vm847_vm13 = vcmask 31744  }
   0xf   : > { %s1168_s21 = scalar_lea.vmem %s1402_s0, %s970_s18  ;;  %vm1293_vm9 = vmand %vm793_vm7, %vm794_vm8  ;;  %s1358_s19 = scalar_lea.vmem %s1405_s3, %s971_s16 }
  0x10   : > { %v1063_v3 = vld [vmem:[%s1168_s21 + $0x40] sm:$0xff]   ;;  %v1067_v7 = vld [vmem:[%s1168_s21 + $0x48] sm:$0xff]   ;;  %v1071_v11 = vld [vmem:[%s1168_s21 + $0x50] sm:$0xff]  }
  0x11   : > { %v1064_v4 = vld [vmem:[%s1168_s21 + $0xc0] sm:$0xff]   ;;  %972 = vmatprep.subr.bf16.mxu0 %v1063_v3  ;;  %v1068_v8 = vld [vmem:[%s1168_s21 + $0xc8] sm:$0xff]   ;;  %v1072_v12 = vld [vmem:[%s1168_s21 + $0xd0] sm:$0xff]   ;;  %282 = vperm.xlu0 %1061, %v256_v47  }
  0x12   : > { %v1065_v5 = vld [vmem:[%s1168_s21] sm:$0xff]   ;;  %1012 = vmatprep.subr.bf16.mxu1 %v1064_v4  ;;  %v1069_v9 = vld [vmem:[%s1168_s21 + $0x8] sm:$0xff]   ;;  %v1073_v13 = vld [vmem:[%s1168_s21 + $0x10] sm:$0xff]   ;;  %287 = vperm.xlu1 %1062, %v257_v48  }
  0x13   : > { %v1066_v6 = vld [vmem:[%s1168_s21 + $0x80] sm:$0xff]   ;;  %973 = vmatpush3.bf16.msra.mxu0 %v1065_v5  ;;  %v1070_v10 = vld [vmem:[%s1168_s21 + $0x88] sm:$0xff]   ;;  %v1074_v14 = vld [vmem:[%s1168_s21 + $0x90] sm:$0xff]  }
  0x14   : > { %1013 = vmatpush3.bf16.msra.mxu1 %v1066_v6  ;;  %974 = vmatprep.subr.bf16.mxu0 %v1067_v7  ;;  %v1075_v15 = vld [vmem:[%s1168_s21 + $0x58] sm:$0xff]   ;;  %v1079_v19 = vld [vmem:[%s1168_s21 + $0x60] sm:$0xff]   ;;  %v1083_v23 = vld [vmem:[%s1168_s21 + $0x68] sm:$0xff]  }
  0x15   : > { %1014 = vmatprep.subr.bf16.mxu1 %v1068_v8  ;;  %v1076_v16 = vld [vmem:[%s1168_s21 + $0xd8] sm:$0xff]   ;;  %v1080_v20 = vld [vmem:[%s1168_s21 + $0xe0] sm:$0xff]   ;;  %v1084_v24 = vld [vmem:[%s1168_s21 + $0xe8] sm:$0xff]   ;;  %292 = vperm.xlu0 %1061, %v258_v49  }
  0x16   : > { %v1077_v17 = vld [vmem:[%s1168_s21 + $0x18] sm:$0xff]   ;;  %v1081_v21 = vld [vmem:[%s1168_s21 + $0x20] sm:$0xff]   ;;  %v1085_v25 = vld [vmem:[%s1168_s21 + $0x28] sm:$0xff]   ;;  %297 = vperm.xlu1 %1062, %v259_v53  }
  0x17   : > { %975 = vmatpush3.bf16.msra.mxu0 %v1069_v9  ;;  %v1078_v18 = vld [vmem:[%s1168_s21 + $0x98] sm:$0xff]   ;;  %v1082_v22 = vld [vmem:[%s1168_s21 + $0xa0] sm:$0xff]   ;;  %v1086_v26 = vld [vmem:[%s1168_s21 + $0xa8] sm:$0xff]  }
  0x18   : > { %1015 = vmatpush3.bf16.msra.mxu1 %v1070_v10  ;;  %976 = vmatprep.subr.bf16.mxu0 %v1071_v11  ;;  %v1087_v27 = vld [vmem:[%s1168_s21 + $0x70] sm:$0xff]   ;;  %v1091_v31 = vld [vmem:[%s1168_s21 + $0x78] sm:$0xff]  }
  0x19   : > { %1016 = vmatprep.subr.bf16.mxu1 %v1072_v12  ;;  %v1088_v28 = vld [vmem:[%s1168_s21 + $0xf0] sm:$0xff]   ;;  %v1092_v32 = vld [vmem:[%s1168_s21 + $0xf8] sm:$0xff]  }
  0x1a   : > { %v1089_v29 = vld [vmem:[%s1168_s21 + $0x30] sm:$0xff]   ;;  %v1093_v34 = vld [vmem:[%s1168_s21 + $0x38] sm:$0xff]  }
  0x1b   : > { %977 = vmatpush3.bf16.msra.mxu0 %v1073_v13  ;;  %v1090_v30 = vld [vmem:[%s1168_s21 + $0xb0] sm:$0xff]   ;;  %v1094_v35 = vld [vmem:[%s1168_s21 + $0xb8] sm:$0xff]  }
  0x1c   : > { %1017 = vmatpush3.bf16.msra.mxu1 %v1074_v14  ;;  %978 = vmatprep.subr.bf16.mxu0 %v1075_v15 }
  0x1d   : > { %1018 = vmatprep.subr.bf16.mxu1 %v1076_v16 }
  0x1f   : > { %979 = vmatpush3.bf16.msra.mxu0 %v1077_v17 }
  0x20   : > { %1019 = vmatpush3.bf16.msra.mxu1 %v1078_v18  ;;  %980 = vmatprep.subr.bf16.mxu0 %v1079_v19 }
  0x21   : > { %1020 = vmatprep.subr.bf16.mxu1 %v1080_v20 }
  0x23   : > { %981 = vmatpush3.bf16.msra.mxu0 %v1081_v21 }
  0x24   : > { %1021 = vmatpush3.bf16.msra.mxu1 %v1082_v22  ;;  %982 = vmatprep.subr.bf16.mxu0 %v1083_v23 }
  0x25   : > { %1022 = vmatprep.subr.bf16.mxu1 %v1084_v24 }
  0x27   : > { %983 = vmatpush3.bf16.msra.mxu0 %v1085_v25 }
  0x28   : > { %1023 = vmatpush3.bf16.msra.mxu1 %v1086_v26  ;;  %984 = vmatprep.subr.bf16.mxu0 %v1087_v27 }
  0x29   : > { %1024 = vmatprep.subr.bf16.mxu1 %v1088_v28 }
  0x2b   : > { %985 = vmatpush3.bf16.msra.mxu0 %v1089_v29 }
  0x2c   : > { %1025 = vmatpush3.bf16.msra.mxu1 %v1090_v30  ;;  %986 = vmatprep.subr.bf16.mxu0 %v1091_v31 }
  0x2d   : > { %1026 = vmatprep.subr.bf16.mxu1 %v1092_v32 }
  0x2f   : > { %987 = vmatpush3.bf16.msra.mxu0 %v1093_v34 }
  0x30   : > { %1027 = vmatpush3.bf16.msra.mxu1 %v1094_v35 }
  0x32   : > { %605 = vmatmul.mubr.bf16.vlgmr.msra.gmra.mrb[0].mxu0 %v1095_v33 }
  0x33   : > { %670 = vmatmul.mubr.bf16.vlgmr.msra.gmra.mrb[0].mxu1 %v1098_v36  ;;  %612 = vmatprep.mubr.bf16.mxu0 %v1101_v37 }
  0x34   : > { %677 = vmatprep.mubr.bf16.mxu1 %v1104_v38 }
  0x3a   : > { %613 = vmatmul.mubr.bf16.gmra.mrb[4].mxu0 %v1103_v42 }
  0x3b   : > { %678 = vmatmul.mubr.bf16.gmra.mrb[4].mxu1 %v1106_v43  ;;  %620 = vmatprep.mubr.bf16.mxu0 %v1107_v44 }
  0x3c   : > { %685 = vmatprep.mubr.bf16.mxu1 %v1110_v46 }
  0x42   : > { %621 = vmatmul.mubr.bf16.gmra.mrb[8].mxu0 %v1109_v50 }
  0x43   : > { %686 = vmatmul.mubr.bf16.gmra.mrb[8].mxu1 %v1112_v51  ;;  %628 = vmatprep.mubr.bf16.mxu0 %v1113_v52 }
  0x44   : > { %693 = vmatprep.mubr.bf16.mxu1 %v1116_v54 }
  0x4a   : > { %629 = vmatmul.mubr.bf16.gmra.mrb[12].mxu0 %v1115_v55 }
  0x4b   : > { %694 = vmatmul.mubr.bf16.gmra.mrb[12].mxu1 %v1118_v56 }
  0x88   : > { %v263_v58 = vpop.permute.xlu0 %262  ;;  %v273_v12 = vpop.permute.xlu1 %272 }
  0x8c   : > { %v268_v8 = vpop.permute.xlu0 %267  ;;  %v278_v32 = vpop.permute.xlu1 %277 }
  0x90   : > { %v283_v39 = vpop.permute.xlu0 %282 }
  0x91   : > { %v288_v56 = vpop.permute.xlu1 %287 }
 0x105   : > { %v988_v59 = vpop.f32.mrb[0].mxu0 }
 0x106   : > { %v1028_v61 = vpop.f32.mrb[0].mxu1  ;;  %v989_v62 = vpop.f32.mrb[1].mxu0 }
 0x107   : > { %v990_v63 = vadd.f32 %v989_v62, %v988_v59  ;;  %v1029_v0 = vpop.f32.mrb[1].mxu1  ;;  %v991_v1 = vpop.f32.mrb[2].mxu0 }
 0x108   : > { %v1030_v2 = vadd.f32 %v1029_v0, %v1028_v61  ;;  %v1031_v3 = vpop.f32.mrb[2].mxu1  ;;  %v992_v4 = vpop.f32.mrb[3].mxu0 }
 0x109   : > { %v607_v5 = vadd.f32 %v990_v63, %v263_v58  ;;  %v993_v6 = vadd.f32 %v992_v4, %v991_v1  ;;  %v1032_v7 = vpop.f32.mrb[3].mxu1  ;;  %v293_v63 = vpop.permute.xlu0 %292 }
 0x10a   : > { %v1033_v9 = vadd.f32 %v1032_v7, %v1031_v3 }
 0x10b   : > { %v672_v10 = vadd.f32 %v1030_v2, %v607_v5  ;;  %v610_v11 = vadd.f32 %v993_v6, %v268_v8 }
 0x10d   : > { %v702_v14 = vmax.f32 %v672_v10, 0.0  ;;  %v675_v15 = vadd.f32 %v1033_v9, %v610_v11  ;;  %v994_v16 = vpop.f32.mrb[4].mxu0 }
 0x10e   : > { %v995_v17 = vpop.f32.mrb[5].mxu0  ;;  %v1034_v18 = vpop.f32.mrb[4].mxu1 }
 0x10f   : > { %v703_v19 = vmax.f32 %v675_v15, 0.0  ;;  %v742_v20 = vsel %vm1272_vm2, %v702_v14, 0.0  ;;  %v715_v21 = vsel %vm713_vm3, %v702_v14, 0.0  ;;  %v996_v22 = vadd.f32 %v995_v17, %v994_v16  ;;  %v997_v23 = vpop.f32.mrb[6].mxu0  ;;  %v1035_v24 = vpop.f32.mrb[5].mxu1 }
 0x110   : > { %750 = vmax.xlane.f32.xlu1 %v742_v20  ;;  %723 = vmax.xlane.f32.xlu0 %v715_v21  ;;  %v998_v25 = vpop.f32.mrb[7].mxu0  ;;  %v1036_v26 = vadd.f32 %v1035_v24, %v1034_v18  ;;  %v1037_v28 = vpop.f32.mrb[6].mxu1  ;;  %v769_v36 = vsel %vm1283_vm6, %v702_v14, 0.0  ;;  %v796_v47 = vsel %vm1293_vm9, %v702_v14, 0.0 }
 0x111   : > { %v615_v29 = vadd.f32 %v996_v22, %v273_v12  ;;  %v999_v30 = vadd.f32 %v998_v25, %v997_v23  ;;  %v1038_v31 = vpop.f32.mrb[7].mxu1  ;;  %v743_v37 = vsel %vm1272_vm2, %v703_v19, 0.0  ;;  %v770_v48 = vsel %vm1283_vm6, %v703_v19, 0.0  ;;  %v298_v17 = vpop.permute.xlu1 %297 }
 0x112   : > { %v1039_v33 = vadd.f32 %v1038_v31, %v1037_v28  ;;  %v716_v61 = vsel %vm713_vm3, %v703_v19, 0.0  ;;  %v797_v62 = vsel %vm1293_vm9, %v703_v19, 0.0 }
 0x113   : > { %v618_v34 = vadd.f32 %v999_v30, %v278_v32  ;;  %v680_v35 = vadd.f32 %v1036_v26, %v615_v29 }
 0x114   : > { %777 = vmax.xlane.f32.xlu1 %v769_v36  ;;  %752 = vmax.xlane.f32.xlu0 %v743_v37 }
 0x115   : > { %v1000_v40 = vpop.f32.mrb[8].mxu0  ;;  %v683_v41 = vadd.f32 %v1039_v33, %v618_v34  ;;  %v704_v52 = vmax.f32 %v680_v35, 0.0 }
 0x116   : > { %v1001_v42 = vpop.f32.mrb[9].mxu0  ;;  %v1040_v43 = vpop.f32.mrb[8].mxu1 }
 0x117   : > { %v1002_v44 = vadd.f32 %v1001_v42, %v1000_v40  ;;  %v1003_v45 = vpop.f32.mrb[10].mxu0  ;;  %v1041_v46 = vpop.f32.mrb[9].mxu1  ;;  %v744_v2 = vsel %vm1272_vm2, %v704_v52, 0.0  ;;  %v717_v3 = vsel %vm713_vm3, %v704_v52, 0.0  ;;  %v705_v6 = vmax.f32 %v683_v41, 0.0 }
 0x118   : > { %v1004_v49 = vpop.f32.mrb[11].mxu0  ;;  %v1042_v50 = vadd.f32 %v1041_v46, %v1040_v43  ;;  %804 = vmax.xlane.f32.xlu1 %v796_v47  ;;  %779 = vmax.xlane.f32.xlu0 %v770_v48  ;;  %v1043_v51 = vpop.f32.mrb[10].mxu1  ;;  %v771_v21 = vsel %vm1283_vm6, %v704_v52, 0.0  ;;  %v798_v25 = vsel %vm1293_vm9, %v704_v52, 0.0 }
 0x119   : > { %v623_v53 = vadd.f32 %v1002_v44, %v283_v39  ;;  %v1005_v54 = vadd.f32 %v1004_v49, %v1003_v45  ;;  %v1044_v55 = vpop.f32.mrb[11].mxu1  ;;  %v718_v22 = vsel %vm713_vm3, %v705_v6, 0.0  ;;  %v745_v26 = vsel %vm1272_vm2, %v705_v6, 0.0 }
 0x11a   : > { %v1045_v57 = vadd.f32 %v1044_v55, %v1043_v51  ;;  %v772_v29 = vsel %vm1283_vm6, %v705_v6, 0.0  ;;  %v799_v32 = vsel %vm1293_vm9, %v705_v6, 0.0 }
 0x11b   : > { %v626_v58 = vadd.f32 %v1005_v54, %v288_v56  ;;  %v688_v59 = vadd.f32 %v1042_v50, %v623_v53 }
 0x11c   : > { %725 = vmax.xlane.f32.xlu1 %v716_v61  ;;  %806 = vmax.xlane.f32.xlu0 %v797_v62 }
 0x11d   : > { %v691_v0 = vadd.f32 %v1045_v57, %v626_v58  ;;  %v1006_v1 = vpop.f32.mrb[12].mxu0  ;;  %v706_v24 = vmax.f32 %v688_v59, 0.0 }
 0x11e   : > { %v1007_v4 = vpop.f32.mrb[13].mxu0  ;;  %v1046_v5 = vpop.f32.mrb[12].mxu1 }
 0x11f   : > { %v1008_v7 = vadd.f32 %v1007_v4, %v1006_v1  ;;  %v1009_v8 = vpop.f32.mrb[14].mxu0  ;;  %v1047_v9 = vpop.f32.mrb[13].mxu1  ;;  %v719_v28 = vsel %vm713_vm3, %v706_v24, 0.0  ;;  %v707_v30 = vmax.f32 %v691_v0, 0.0  ;;  %v746_v31 = vsel %vm1272_vm2, %v706_v24, 0.0 }
 0x120   : > { %v1010_v10 = vpop.f32.mrb[15].mxu0  ;;  %v1048_v11 = vadd.f32 %v1047_v9, %v1046_v5  ;;  %754 = vmax.xlane.f32.xlu1 %v744_v2  ;;  %727 = vmax.xlane.f32.xlu0 %v717_v3  ;;  %v1049_v12 = vpop.f32.mrb[14].mxu1  ;;  %v773_v33 = vsel %vm1283_vm6, %v706_v24, 0.0  ;;  %v800_v36 = vsel %vm1293_vm9, %v706_v24, 0.0 }
 0x121   : > { %v631_v14 = vadd.f32 %v1008_v7, %v293_v63  ;;  %v1011_v15 = vadd.f32 %v1010_v10, %v1009_v8  ;;  %v1050_v16 = vpop.f32.mrb[15].mxu1  ;;  %v720_v34 = vsel %vm713_vm3, %v707_v30, 0.0  ;;  %v747_v37 = vsel %vm1272_vm2, %v707_v30, 0.0 }
 0x122   : > { %v1051_v18 = vadd.f32 %v1050_v16, %v1049_v12  ;;  %v774_v40 = vsel %vm1283_vm6, %v707_v30, 0.0  ;;  %v801_v43 = vsel %vm1293_vm9, %v707_v30, 0.0 }
 0x123   : > { %v634_v19 = vadd.f32 %v1011_v15, %v298_v17  ;;  %v696_v20 = vadd.f32 %v1048_v11, %v631_v14 }
 0x124   : > { %781 = vmax.xlane.f32.xlu1 %v771_v21  ;;  %729 = vmax.xlane.f32.xlu0 %v718_v22 }
 0x125   : > { %v699_v23 = vadd.f32 %v1051_v18, %v634_v19  ;;  %v708_v35 = vmax.f32 %v696_v20, 0.0 }
 0x127   : > { %v721_v39 = vsel %vm713_vm3, %v708_v35, 0.0  ;;  %v709_v41 = vmax.f32 %v699_v23, 0.0  ;;  %v748_v42 = vsel %vm1272_vm2, %v708_v35, 0.0  ;;  %v775_v44 = vsel %vm1283_vm6, %v708_v35, 0.0 }
 0x128   : > { %808 = vmax.xlane.f32.xlu1 %v798_v25  ;;  %756 = vmax.xlane.f32.xlu0 %v745_v26  ;;  %v802_v46 = vsel %vm1293_vm9, %v708_v35, 0.0 }
 0x129   : > { %v722_v45 = vsel %vm713_vm3, %v709_v41, 0.0  ;;  %v749_v47 = vsel %vm1272_vm2, %v709_v41, 0.0  ;;  %v776_v48 = vsel %vm1283_vm6, %v709_v41, 0.0  ;;  %v803_v49 = vsel %vm1293_vm9, %v709_v41, 0.0 }
 0x12c   : > { %731 = vmax.xlane.f32.xlu1 %v719_v28  ;;  %783 = vmax.xlane.f32.xlu0 %v772_v29 }
 0x130   : > { %758 = vmax.xlane.f32.xlu1 %v746_v31  ;;  %810 = vmax.xlane.f32.xlu0 %v799_v32 }
 0x134   : > { %785 = vmax.xlane.f32.xlu1 %v773_v33  ;;  %733 = vmax.xlane.f32.xlu0 %v720_v34 }
 0x138   : > { %812 = vmax.xlane.f32.xlu1 %v800_v36  ;;  %760 = vmax.xlane.f32.xlu0 %v747_v37 }
 0x13c   : > { %735 = vmax.xlane.f32.xlu1 %v721_v39  ;;  %787 = vmax.xlane.f32.xlu0 %v774_v40 }
 0x140   : > { %762 = vmax.xlane.f32.xlu1 %v748_v42  ;;  %814 = vmax.xlane.f32.xlu0 %v801_v43 }
 0x144   : > { %789 = vmax.xlane.f32.xlu1 %v775_v44  ;;  %737 = vmax.xlane.f32.xlu0 %v722_v45 }
 0x148   : > { %816 = vmax.xlane.f32.xlu1 %v802_v46  ;;  %764 = vmax.xlane.f32.xlu0 %v749_v47 }
 0x14c   : > { %791 = vmax.xlane.f32.xlu0 %v776_v48 }
 0x150   : > { %818 = vmax.xlane.f32.xlu0 %v803_v49 }
 0x19d   : > { %v751_v60 = vpop.xlane.xlu1 %750  ;;  %v724_v50 = vpop.xlane.xlu0 %723 }
 0x19e   : > { %v821_v13 = vsel %vm820_vm10, %v724_v50, %v751_v60 }
 0x1a1   : > { %v778_v51 = vpop.xlane.xlu1 %777  ;;  %v753_v52 = vpop.xlane.xlu0 %752 }
 0x1a2   : > { %v830_v27 = vsel %vm829_vm11, %v821_v13, %v778_v51 }
 0x1a5   : > { %v805_v38 = vpop.xlane.xlu1 %804  ;;  %v780_v53 = vpop.xlane.xlu0 %779 }
 0x1a6   : > { %v839_v54 = vsel %vm838_vm12, %v830_v27, %v805_v38 }
 0x1a7   : > { %848 = vst.msk [vmem:[%s1358_s19] sm:$0xff] %vm847_vm13, %v839_v54 }
 0x1a9   : > { %v726_v55 = vpop.xlane.xlu1 %725  ;;  %v807_v56 = vpop.xlane.xlu0 %806 }
 0x1aa   : > { %v822_v57 = vsel %vm820_vm10, %v726_v55, %v753_v52 }
 0x1ab   : > { %v831_v58 = vsel %vm829_vm11, %v822_v57, %v780_v53 }
 0x1ac   : > { %v840_v59 = vsel %vm838_vm12, %v831_v58, %v807_v56 }
 0x1ad   : > { %849 = vst.msk [vmem:[%s1358_s19 + $0x8] sm:$0xff] %vm847_vm13, %v840_v59  ;;  %v755_v61 = vpop.xlane.xlu1 %754  ;;  %v728_v62 = vpop.xlane.xlu0 %727 }
 0x1ae   : > { %v823_v1 = vsel %vm820_vm10, %v728_v62, %v755_v61 }
 0x1b1   : > { %v782_v63 = vpop.xlane.xlu1 %781  ;;  %v730_v0 = vpop.xlane.xlu0 %729 }
 0x1b2   : > { %v832_v2 = vsel %vm829_vm11, %v823_v1, %v782_v63 }
 0x1b5   : > { %v809_v3 = vpop.xlane.xlu1 %808  ;;  %v757_v4 = vpop.xlane.xlu0 %756 }
 0x1b6   : > { %v841_v5 = vsel %vm838_vm12, %v832_v2, %v809_v3  ;;  %v824_v8 = vsel %vm820_vm10, %v730_v0, %v757_v4 }
 0x1b7   : > { %850 = vst.msk [vmem:[%s1358_s19 + $0x10] sm:$0xff] %vm847_vm13, %v841_v5 }
 0x1b9   : > { %v732_v6 = vpop.xlane.xlu1 %731  ;;  %v784_v7 = vpop.xlane.xlu0 %783 }
 0x1ba   : > { %v833_v9 = vsel %vm829_vm11, %v824_v8, %v784_v7 }
 0x1bd   : > { %v759_v10 = vpop.xlane.xlu1 %758  ;;  %v811_v11 = vpop.xlane.xlu0 %810 }
 0x1be   : > { %v842_v12 = vsel %vm838_vm12, %v833_v9, %v811_v11  ;;  %v825_v16 = vsel %vm820_vm10, %v732_v6, %v759_v10 }
 0x1bf   : > { %851 = vst.msk [vmem:[%s1358_s19 + $0x18] sm:$0xff] %vm847_vm13, %v842_v12 }
 0x1c1   : > { %v786_v14 = vpop.xlane.xlu1 %785  ;;  %v734_v15 = vpop.xlane.xlu0 %733 }
 0x1c2   : > { %v834_v17 = vsel %vm829_vm11, %v825_v16, %v786_v14 }
 0x1c5   : > { %v813_v18 = vpop.xlane.xlu1 %812  ;;  %v761_v19 = vpop.xlane.xlu0 %760 }
 0x1c6   : > { %v843_v20 = vsel %vm838_vm12, %v834_v17, %v813_v18  ;;  %v826_v23 = vsel %vm820_vm10, %v734_v15, %v761_v19 }
 0x1c7   : > { %852 = vst.msk [vmem:[%s1358_s19 + $0x20] sm:$0xff] %vm847_vm13, %v843_v20 }
 0x1c9   : > { %v736_v21 = vpop.xlane.xlu1 %735  ;;  %v788_v22 = vpop.xlane.xlu0 %787 }
 0x1ca   : > { %v835_v24 = vsel %vm829_vm11, %v826_v23, %v788_v22 }
 0x1cd   : > { %v763_v25 = vpop.xlane.xlu1 %762  ;;  %v815_v26 = vpop.xlane.xlu0 %814 }
 0x1ce   : > { %v844_v28 = vsel %vm838_vm12, %v835_v24, %v815_v26  ;;  %v827_v31 = vsel %vm820_vm10, %v736_v21, %v763_v25 }
 0x1cf   : > { %853 = vst.msk [vmem:[%s1358_s19 + $0x28] sm:$0xff] %vm847_vm13, %v844_v28 }
 0x1d1   : > { %v790_v29 = vpop.xlane.xlu1 %789  ;;  %v738_v30 = vpop.xlane.xlu0 %737 }
 0x1d2   : > { %v836_v32 = vsel %vm829_vm11, %v827_v31, %v790_v29 }
 0x1d5   : > { %v817_v33 = vpop.xlane.xlu1 %816  ;;  %v765_v34 = vpop.xlane.xlu0 %764 }
 0x1d6   : > { %v845_v35 = vsel %vm838_vm12, %v836_v32, %v817_v33  ;;  %v828_v37 = vsel %vm820_vm10, %v738_v30, %v765_v34 }
 0x1d7   : > { %854 = vst.msk [vmem:[%s1358_s19 + $0x30] sm:$0xff] %vm847_vm13, %v845_v35 }
 0x1d9   : > { %v792_v36 = vpop.xlane.xlu0 %791 }
 0x1da   : > { %v837_v39 = vsel %vm829_vm11, %v828_v37, %v792_v36 }
 0x1dd   : > { %v819_v40 = vpop.xlane.xlu0 %818 }
 0x1de   : > { %v846_v41 = vsel %vm838_vm12, %v837_v39, %v819_v40 }
 0x1df   : > { %855 = vst.msk [vmem:[%s1358_s19 + $0x38] sm:$0xff] %vm847_vm13, %v846_v41 }
 0x1e0 PF: > { %s13_s12 = sadd.s32 1, %s1125_s12  }
 0x1e1   : > { %p10_p4 = scmp.ge.s32.totalorder %s13_s12, 4  }
 0x1e3   :  { %12 = sbr.rel (!%p10_p4) target bundleno = 1 (0x1), region = 62 }

// kernel: base_model_forward.36
= control target key start
LH: loop header
LB: loop body
LE: loop exit
PB: predicated region body
PF: predicated region fallthrough
CT: control target
= control target key end

     0   :  { %s932_s12 = smov 0   ;;  %s1036_s0 = inlined_call_operand.vmem [shape: bf16[2,128,1024], index: 0, kind: input, shape index: {}]   ;;  %s1037_s1 = inlined_call_operand.vmem [shape: bf16[8,128], index: 1, kind: input, shape index: {}]   ;;  %s1038_s2 = inlined_call_operand.vmem [shape: f32[8,1], index: 2, kind: input, shape index: {}]   ;;  %s1039_s3 = inlined_call_operand.vmem [shape: bf16[2,8,512], index: 3, kind: output, shape index: {}]  }
   0x1 LB: > { %s812_s13 = sadd.s32 4294967295, %s909_s12   ;;  %p816_p0 = scmp.ge.s32.totalorder %s909_s12, 1  ;;  %s909_s12 = sphi %s932_s12, %s13_s12  }
   0x2   : > { %p137_p1 = scmp.lt.s32.totalorder %s909_s12, 3 }
   0x4   : > { %p138_p2 = pnand %p816_p0, %p137_p1 }
   0x5   : > { %p161_p3 = scmp.lt.s32.totalorder (!%p138_p2), %s812_s13, 1  ;;  %v237_v0 = vld [vmem:[%s1038_s2] sm:$0xff] (!%p138_p2)  ;;  %v911_v1 = vmov (!%p138_p2), 0  }
   0x6   : > { %141 = sbr.rel (%p138_p2) target bundleno = 306 (0x132), region = 32  ;;  %595 = vmatprep.mubr.bf16.mxu0 (!%p138_p2), %v911_v1  ;;  %636 = vmatprep.mubr.bf16.mxu1 (!%p138_p2), %v911_v1 }
   0x7   : > { %902 = vset.pattern.permute.xlu0 (!%p138_p2), %v911_v1 }
   0x8   : > { %240 = vperm.xlu0 (!%p138_p2), %902, %v237_v0  }
   0xd   : > { %s1041_s13 = smov (!%p161_p3, %s812_s13), 1 }
   0xe   : > { %s889_s16 = sshll.u32 %s1041_s13, 9  ;;  %s890_s22 = sshll.u32 %s1041_s13, 4 }
   0xf   : > { %s952_s19 = scalar_lea.vmem %s1036_s0, %s889_s16  ;;  %s170_s25 = scalar_lea.vmem %s1039_s3, %s890_s22 }
  0x10   : > { %v173_v2 = vld [vmem:[%s952_s19] sm:$0xff]  ;;  %v174_v4 = vld [vmem:[%s952_s19 + $0x8] sm:$0xff]  ;;  %v175_v0 = vld [vmem:[%s952_s19 + $0x10] sm:$0xff] }
  0x11   : > { %v177_v3 = vld [vmem:[%s952_s19 + $0x20] sm:$0xff]  ;;  %v178_v6 = vld [vmem:[%s952_s19 + $0x28] sm:$0xff] }
  0x12   : > { %v822_v5 = vcombine.high %v173_v2, %v177_v3  ;;  %v821_v7 = vcombine.low %v173_v2, %v177_v3  ;;  %v181_v8 = vld [vmem:[%s952_s19 + $0x40] sm:$0xff]  ;;  %v824_v10 = vcombine.high %v174_v4, %v178_v6  ;;  %v823_v11 = vcombine.low %v174_v4, %v178_v6  ;;  %v182_v13 = vld [vmem:[%s952_s19 + $0x48] sm:$0xff]  ;;  %v179_v2 = vld [vmem:[%s952_s19 + $0x30] sm:$0xff] }
  0x13   : > { %v185_v9 = vld [vmem:[%s952_s19 + $0x60] sm:$0xff]  ;;  %v186_v14 = vld [vmem:[%s952_s19 + $0x68] sm:$0xff]  ;;  %v176_v3 = vld [vmem:[%s952_s19 + $0x18] sm:$0xff] }
  0x14   : > { %v830_v12 = vcombine.high %v181_v8, %v185_v9  ;;  %v189_v15 = vld [vmem:[%s952_s19 + $0x80] sm:$0xff]  ;;  %563 = vmatprep.subr.bf16.mxu0 %v822_v5  ;;  %v832_v16 = vcombine.high %v182_v13, %v186_v14  ;;  %v190_v18 = vld [vmem:[%s952_s19 + $0x88] sm:$0xff]  ;;  %604 = vmatprep.subr.bf16.mxu1 %v824_v10  ;;  %v829_v20 = vcombine.low %v181_v8, %v185_v9  ;;  %v180_v4 = vld [vmem:[%s952_s19 + $0x38] sm:$0xff] }
  0x15   : > { %v193_v17 = vld [vmem:[%s952_s19 + $0xa0] sm:$0xff]  ;;  %v194_v19 = vld [vmem:[%s952_s19 + $0xa8] sm:$0xff]  ;;  %564 = vmatpush1.bf16.msra.mxu0 %v821_v7  ;;  %605 = vmatpush1.bf16.msra.mxu1 %v823_v11  ;;  %v831_v21 = vcombine.low %v182_v13, %v186_v14  ;;  %v826_v7 = vcombine.high %v175_v0, %v179_v2  ;;  %v828_v8 = vcombine.high %v176_v3, %v180_v4  ;;  %v183_v9 = vld [vmem:[%s952_s19 + $0x50] sm:$0xff] }
  0x16   : > { %565 = vmatprep.subr.bf16.mxu0 %v830_v12  ;;  %v838_v22 = vcombine.high %v189_v15, %v193_v17  ;;  %606 = vmatprep.subr.bf16.mxu1 %v832_v16  ;;  %v840_v23 = vcombine.high %v190_v18, %v194_v19  ;;  %v197_v24 = vld [vmem:[%s952_s19 + $0xc0] sm:$0xff]  ;;  %v198_v26 = vld [vmem:[%s952_s19 + $0xc8] sm:$0xff]  ;;  %v837_v28 = vcombine.low %v189_v15, %v193_v17  ;;  %v187_v10 = vld [vmem:[%s952_s19 + $0x70] sm:$0xff] }
  0x17   : > { %v201_v25 = vld [vmem:[%s952_s19 + $0xe0] sm:$0xff]  ;;  %v202_v27 = vld [vmem:[%s952_s19 + $0xe8] sm:$0xff]  ;;  %v839_v29 = vcombine.low %v190_v18, %v194_v19  ;;  %v184_v11 = vld [vmem:[%s952_s19 + $0x58] sm:$0xff]  ;;  %v825_v14 = vcombine.low %v175_v0, %v179_v2  ;;  %v827_v15 = vcombine.low %v176_v3, %v180_v4  ;;  %v834_v16 = vcombine.high %v183_v9, %v187_v10 }
  0x18   : > { %v846_v30 = vcombine.high %v197_v24, %v201_v25  ;;  %v848_v31 = vcombine.high %v198_v26, %v202_v27  ;;  %v205_v32 = vld [vmem:[%s952_s19 + $0x100] sm:$0xff]  ;;  %v206_v34 = vld [vmem:[%s952_s19 + $0x108] sm:$0xff]  ;;  %v845_v36 = vcombine.low %v197_v24, %v201_v25  ;;  %v847_v37 = vcombine.low %v198_v26, %v202_v27  ;;  %v188_v12 = vld [vmem:[%s952_s19 + $0x78] sm:$0xff] }
  0x19   : > { %566 = vmatpush1.bf16.msra.mxu0 %v829_v20  ;;  %607 = vmatpush1.bf16.msra.mxu1 %v831_v21  ;;  %v209_v33 = vld [vmem:[%s952_s19 + $0x120] sm:$0xff]  ;;  %v210_v35 = vld [vmem:[%s952_s19 + $0x128] sm:$0xff]  ;;  %v836_v17 = vcombine.high %v184_v11, %v188_v12  ;;  %v191_v18 = vld [vmem:[%s952_s19 + $0x90] sm:$0xff] }
  0x1a   : > { %567 = vmatprep.subr.bf16.mxu0 %v838_v22  ;;  %608 = vmatprep.subr.bf16.mxu1 %v840_v23  ;;  %v854_v38 = vcombine.high %v205_v32, %v209_v33  ;;  %v856_v39 = vcombine.high %v206_v34, %v210_v35  ;;  %v213_v40 = vld [vmem:[%s952_s19 + $0x140] sm:$0xff]  ;;  %v214_v42 = vld [vmem:[%s952_s19 + $0x148] sm:$0xff]  ;;  %v853_v44 = vcombine.low %v205_v32, %v209_v33  ;;  %v195_v19 = vld [vmem:[%s952_s19 + $0xb0] sm:$0xff] }
  0x1b   : > { %v217_v41 = vld [vmem:[%s952_s19 + $0x160] sm:$0xff]  ;;  %v218_v43 = vld [vmem:[%s952_s19 + $0x168] sm:$0xff]  ;;  %v855_v45 = vcombine.low %v206_v34, %v210_v35  ;;  %v192_v20 = vld [vmem:[%s952_s19 + $0x98] sm:$0xff]  ;;  %v833_v22 = vcombine.low %v183_v9, %v187_v10  ;;  %v835_v23 = vcombine.low %v184_v11, %v188_v12  ;;  %v842_v24 = vcombine.high %v191_v18, %v195_v19 }
  0x1c   : > { %v862_v46 = vcombine.high %v213_v40, %v217_v41  ;;  %v864_v47 = vcombine.high %v214_v42, %v218_v43  ;;  %v221_v48 = vld [vmem:[%s952_s19 + $0x180] sm:$0xff]  ;;  %v222_v50 = vld [vmem:[%s952_s19 + $0x188] sm:$0xff]  ;;  %v861_v52 = vcombine.low %v213_v40, %v217_v41  ;;  %v863_v53 = vcombine.low %v214_v42, %v218_v43  ;;  %v196_v21 = vld [vmem:[%s952_s19 + $0xb8] sm:$0xff] }
  0x1d   : > { %568 = vmatpush1.bf16.msra.mxu0 %v837_v28  ;;  %609 = vmatpush1.bf16.msra.mxu1 %v839_v29  ;;  %v225_v49 = vld [vmem:[%s952_s19 + $0x1a0] sm:$0xff]  ;;  %v226_v51 = vld [vmem:[%s952_s19 + $0x1a8] sm:$0xff]  ;;  %v844_v25 = vcombine.high %v192_v20, %v196_v21  ;;  %v199_v26 = vld [vmem:[%s952_s19 + $0xd0] sm:$0xff] }
  0x1e   : > { %569 = vmatprep.subr.bf16.mxu0 %v846_v30  ;;  %610 = vmatprep.subr.bf16.mxu1 %v848_v31  ;;  %v870_v54 = vcombine.high %v221_v48, %v225_v49  ;;  %v872_v55 = vcombine.high %v222_v50, %v226_v51  ;;  %v229_v56 = vld [vmem:[%s952_s19 + $0x1c0] sm:$0xff]  ;;  %v230_v58 = vld [vmem:[%s952_s19 + $0x1c8] sm:$0xff]  ;;  %v869_v60 = vcombine.low %v221_v48, %v225_v49  ;;  %v203_v27 = vld [vmem:[%s952_s19 + $0xf0] sm:$0xff] }
  0x1f   : > { %v233_v57 = vld [vmem:[%s952_s19 + $0x1e0] sm:$0xff]  ;;  %v234_v59 = vld [vmem:[%s952_s19 + $0x1e8] sm:$0xff]  ;;  %v871_v61 = vcombine.low %v222_v50, %v226_v51  ;;  %v200_v28 = vld [vmem:[%s952_s19 + $0xd8] sm:$0xff]  ;;  %v841_v30 = vcombine.low %v191_v18, %v195_v19  ;;  %v843_v31 = vcombine.low %v192_v20, %v196_v21  ;;  %v850_v32 = vcombine.high %v199_v26, %v203_v27 }
  0x20   : > { %v878_v62 = vcombine.high %v229_v56, %v233_v57  ;;  %v880_v63 = vcombine.high %v230_v58, %v234_v59  ;;  %v877_v5 = vcombine.low %v229_v56, %v233_v57  ;;  %v879_v6 = vcombine.low %v230_v58, %v234_v59  ;;  %v997_v13 = vld [vmem:[%s1037_s1] sm:$0xf]  ;;  %v204_v29 = vld [vmem:[%s952_s19 + $0xf8] sm:$0xff]  ;;  %v207_v34 = vld [vmem:[%s952_s19 + $0x110] sm:$0xff] }
  0x21   : > { %570 = vmatpush1.bf16.msra.mxu0 %v845_v36  ;;  %611 = vmatpush1.bf16.msra.mxu1 %v847_v37  ;;  %v852_v33 = vcombine.high %v200_v28, %v204_v29  ;;  %v211_v35 = vld [vmem:[%s952_s19 + $0x130] sm:$0xff]  ;;  %v208_v36 = vld [vmem:[%s952_s19 + $0x118] sm:$0xff] }
  0x22   : > { %571 = vmatprep.subr.bf16.mxu0 %v854_v38  ;;  %612 = vmatprep.subr.bf16.mxu1 %v856_v39  ;;  %v212_v37 = vld [vmem:[%s952_s19 + $0x138] sm:$0xff]  ;;  %v849_v38 = vcombine.low %v199_v26, %v203_v27  ;;  %v858_v39 = vcombine.high %v207_v34, %v211_v35  ;;  %v215_v41 = vld [vmem:[%s952_s19 + $0x150] sm:$0xff] }
  0x23   : > { %v860_v40 = vcombine.high %v208_v36, %v212_v37  ;;  %v219_v42 = vld [vmem:[%s952_s19 + $0x170] sm:$0xff]  ;;  %v216_v43 = vld [vmem:[%s952_s19 + $0x158] sm:$0xff] }
  0x24   : > { %v223_v49 = vld [vmem:[%s952_s19 + $0x190] sm:$0xff]  ;;  %v224_v51 = vld [vmem:[%s952_s19 + $0x198] sm:$0xff] }
  0x25   : > { %572 = vmatpush1.bf16.msra.mxu0 %v853_v44  ;;  %613 = vmatpush1.bf16.msra.mxu1 %v855_v45  ;;  %v220_v44 = vld [vmem:[%s952_s19 + $0x178] sm:$0xff]  ;;  %v857_v45 = vcombine.low %v207_v34, %v211_v35  ;;  %v227_v50 = vld [vmem:[%s952_s19 + $0x1b0] sm:$0xff] }
  0x26   : > { %573 = vmatprep.subr.bf16.mxu0 %v862_v46  ;;  %614 = vmatprep.subr.bf16.mxu1 %v864_v47  ;;  %v859_v46 = vcombine.low %v208_v36, %v212_v37  ;;  %v866_v47 = vcombine.high %v215_v41, %v219_v42  ;;  %v868_v48 = vcombine.high %v216_v43, %v220_v44  ;;  %v231_v57 = vld [vmem:[%s952_s19 + $0x1d0] sm:$0xff]  ;;  %v232_v59 = vld [vmem:[%s952_s19 + $0x1d8] sm:$0xff] }
  0x27   : > { %v235_v58 = vld [vmem:[%s952_s19 + $0x1f0] sm:$0xff] }
  0x28   : > { %v881_v2 = vcombine.low %v231_v57, %v235_v58 }
  0x29   : > { %574 = vmatpush1.bf16.msra.mxu0 %v861_v52  ;;  %615 = vmatpush1.bf16.msra.mxu1 %v863_v53  ;;  %v228_v52 = vld [vmem:[%s952_s19 + $0x1b8] sm:$0xff]  ;;  %v865_v53 = vcombine.low %v215_v41, %v219_v42 }
  0x2a   : > { %575 = vmatprep.subr.bf16.mxu0 %v870_v54  ;;  %616 = vmatprep.subr.bf16.mxu1 %v872_v55  ;;  %v867_v54 = vcombine.low %v216_v43, %v220_v44  ;;  %v874_v55 = vcombine.high %v223_v49, %v227_v50  ;;  %v876_v56 = vcombine.high %v224_v51, %v228_v52 }
  0x2d   : > { %576 = vmatpush1.bf16.msra.mxu0 %v869_v60  ;;  %617 = vmatpush1.bf16.msra.mxu1 %v871_v61  ;;  %v236_v60 = vld [vmem:[%s952_s19 + $0x1f8] sm:$0xff]  ;;  %v873_v61 = vcombine.low %v223_v49, %v227_v50 }
  0x2e   : > { %577 = vmatprep.subr.bf16.mxu0 %v878_v62  ;;  %618 = vmatprep.subr.bf16.mxu1 %v880_v63  ;;  %v875_v62 = vcombine.low %v224_v51, %v228_v52  ;;  %v882_v63 = vcombine.high %v231_v57, %v235_v58  ;;  %v884_v0 = vcombine.high %v232_v59, %v236_v60 }
  0x2f   : > { %v883_v3 = vcombine.low %v232_v59, %v236_v60 }
  0x31   : > { %578 = vmatpush1.bf16.msra.mxu0 %v877_v5  ;;  %619 = vmatpush1.bf16.msra.mxu1 %v879_v6 }
  0x32   : > { %645 = vmatprep.subr.bf16.mxu0 %v826_v7  ;;  %686 = vmatprep.subr.bf16.mxu1 %v828_v8 }
  0x34   : > { %596 = vmatmul.mubr.bf16.vlgmr.msra.gmra.mrb[0].mxu0 %v997_v13  ;;  %637 = vmatmul.mubr.bf16.vlgmr.msra.gmra.mrb[0].mxu1 %v997_v13 }
  0x35   : > { %646 = vmatpush1.bf16.msra.mxu0 %v825_v14  ;;  %687 = vmatpush1.bf16.msra.mxu1 %v827_v15 }
  0x36   : > { %647 = vmatprep.subr.bf16.mxu0 %v834_v16  ;;  %688 = vmatprep.subr.bf16.mxu1 %v836_v17 }
  0x37   : > { %677 = vmatprep.mubr.bf16.mxu0 %v911_v1  ;;  %718 = vmatprep.mubr.bf16.mxu1 %v911_v1  ;;  %v851_v1 = vcombine.low %v200_v28, %v204_v29 }
  0x39   : > { %648 = vmatpush1.bf16.msra.mxu0 %v833_v22  ;;  %689 = vmatpush1.bf16.msra.mxu1 %v835_v23 }
  0x3a   : > { %649 = vmatprep.subr.bf16.mxu0 %v842_v24  ;;  %690 = vmatprep.subr.bf16.mxu1 %v844_v25 }
  0x3d   : > { %650 = vmatpush1.bf16.msra.mxu0 %v841_v30  ;;  %691 = vmatpush1.bf16.msra.mxu1 %v843_v31 }
  0x3e   : > { %651 = vmatprep.subr.bf16.mxu0 %v850_v32  ;;  %692 = vmatprep.subr.bf16.mxu1 %v852_v33 }
  0x41   : > { %652 = vmatpush1.bf16.msra.mxu0 %v849_v38  ;;  %693 = vmatpush1.bf16.msra.mxu1 %v851_v1 }
  0x42   : > { %653 = vmatprep.subr.bf16.mxu0 %v858_v39  ;;  %694 = vmatprep.subr.bf16.mxu1 %v860_v40 }
  0x45   : > { %654 = vmatpush1.bf16.msra.mxu0 %v857_v45  ;;  %695 = vmatpush1.bf16.msra.mxu1 %v859_v46 }
  0x46   : > { %655 = vmatprep.subr.bf16.mxu0 %v866_v47  ;;  %696 = vmatprep.subr.bf16.mxu1 %v868_v48 }
  0x49   : > { %656 = vmatpush1.bf16.msra.mxu0 %v865_v53  ;;  %697 = vmatpush1.bf16.msra.mxu1 %v867_v54 }
  0x4a   : > { %657 = vmatprep.subr.bf16.mxu0 %v874_v55  ;;  %698 = vmatprep.subr.bf16.mxu1 %v876_v56 }
  0x4d   : > { %658 = vmatpush1.bf16.msra.mxu0 %v873_v61  ;;  %699 = vmatpush1.bf16.msra.mxu1 %v875_v62 }
  0x4e   : > { %659 = vmatprep.subr.bf16.mxu0 %v882_v63  ;;  %700 = vmatprep.subr.bf16.mxu1 %v884_v0 }
  0x51   : > { %660 = vmatpush1.bf16.msra.mxu0 %v881_v2  ;;  %701 = vmatpush1.bf16.msra.mxu1 %v883_v3 }
  0x54   : > { %678 = vmatmul.mubr.bf16.vlgmr.msra.gmra.mrb[4].mxu0 %v997_v13  ;;  %719 = vmatmul.mubr.bf16.vlgmr.msra.gmra.mrb[4].mxu1 %v997_v13 }
  0x87   : > { %v241_v12 = vpop.permute.xlu0 %240 }
 0x107   : > { %v597_v4 = vpop.f32.mrb[0].mxu0  ;;  %v638_v5 = vpop.f32.mrb[0].mxu1 }
 0x108   : > { %v599_v6 = vpop.f32.mrb[1].mxu0  ;;  %v640_v7 = vpop.f32.mrb[1].mxu1  ;;  %v598_v14 = vadd.f32 %v597_v4, %v241_v12  ;;  %v639_v17 = vadd.f32 %v638_v5, %v241_v12 }
 0x109   : > { %v601_v8 = vpop.f32.mrb[2].mxu0  ;;  %v642_v9 = vpop.f32.mrb[2].mxu1  ;;  %v600_v15 = vadd.f32 %v599_v6, %v241_v12  ;;  %v641_v18 = vadd.f32 %v640_v7, %v241_v12 }
 0x10a   : > { %v602_v10 = vpop.f32.mrb[3].mxu0  ;;  %v643_v11 = vpop.f32.mrb[3].mxu1  ;;  %v727_v25 = vmax.f32 %v598_v14, 0.0  ;;  %v729_v31 = vmax.f32 %v639_v17, 0.0 }
 0x10b   : > { %v728_v30 = vmax.f32 %v600_v15, 0.0  ;;  %v730_v35 = vmax.f32 %v641_v18, 0.0 }
 0x127   : > { %v679_v16 = vpop.f32.mrb[4].mxu0  ;;  %v720_v20 = vpop.f32.mrb[4].mxu1 }
 0x128   : > { %v680_v19 = vadd.f32 %v679_v16, %v241_v12  ;;  %v681_v21 = vpop.f32.mrb[5].mxu0  ;;  %v721_v22 = vadd.f32 %v720_v20, %v241_v12  ;;  %v722_v23 = vpop.f32.mrb[5].mxu1 }
 0x129   : > { %v682_v13 = vadd.f32 %v681_v21, %v241_v12  ;;  %v683_v24 = vpop.f32.mrb[6].mxu0  ;;  %v723_v27 = vadd.f32 %v722_v23, %v241_v12  ;;  %v724_v28 = vpop.f32.mrb[6].mxu1 }
 0x12a   : > { %v731_v26 = vmax.f32 %v680_v19, 0.0  ;;  %v684_v29 = vpop.f32.mrb[7].mxu0  ;;  %v733_v32 = vmax.f32 %v721_v22, 0.0  ;;  %v725_v34 = vpop.f32.mrb[7].mxu1 }
 0x12b   : > { %v732_v33 = vmax.f32 %v682_v13, 0.0  ;;  %v734_v37 = vmax.f32 %v723_v27, 0.0 }
 0x12c   : > { %v735_v36 = vmax.f32 %v727_v25, %v731_v26  ;;  %v737_v38 = vmax.f32 %v729_v31, %v733_v32 }
 0x12d   : > { %v736_v1 = vmax.f32 %v728_v30, %v732_v33  ;;  %v738_v39 = vmax.f32 %v730_v35, %v734_v37 }
 0x12f   : > { %v891_v40 = vpack.c.bf16 %v736_v1, %v735_v36  ;;  %v892_v41 = vpack.c.bf16 %v738_v39, %v737_v38 }
 0x131   : > { %755 = vst [vmem:[%s170_s25] sm:$0xff] %v891_v40  ;;  %756 = vst [vmem:[%s170_s25 + $0x8] sm:$0xff] %v892_v41 }
 0x132 PF: > { %s13_s12 = sadd.s32 1, %s909_s12  }
 0x133   : > { %p10_p4 = scmp.ge.s32.totalorder %s13_s12, 4  }
 0x135   :  { %12 = sbr.rel (!%p10_p4) target bundleno = 1 (0x1), region = 62 }

// kernel: base_model_forward.37
= control target key start
LH: loop header
LB: loop body
LE: loop exit
PB: predicated region body
PF: predicated region fallthrough
CT: control target
= control target key end

     0   :  { %s967_s12 = smov 0   ;;  %s1066_s0 = inlined_call_operand.vmem [shape: bf16[2,256,512], index: 0, kind: input, shape index: {}]   ;;  %s1067_s1 = inlined_call_operand.vmem [shape: bf16[16,256], index: 1, kind: input, shape index: {}]   ;;  %s1068_s2 = inlined_call_operand.vmem [shape: f32[16,1], index: 2, kind: input, shape index: {}]   ;;  %s1069_s3 = inlined_call_operand.vmem [shape: bf16[2,16,256], index: 3, kind: output, shape index: {}]  }
   0x1 LB: > { %s746_s13 = sadd.s32 4294967295, %s944_s12   ;;  %p750_p0 = scmp.ge.s32.totalorder %s944_s12, 1  ;;  %s944_s12 = sphi %s967_s12, %s13_s12  }
   0x2   : > { %p137_p1 = scmp.lt.s32.totalorder %s944_s12, 3 }
   0x4   : > { %p138_p2 = pnand %p750_p0, %p137_p1 }
   0x5   : > { %p161_p3 = scmp.lt.s32.totalorder (!%p138_p2), %s746_s13, 1  ;;  %v937_v0 = vld [vmem:[%s1067_s1 + $0x4] ss:$8 sps:$4 sm:$0xff] (!%p138_p2)   ;;  %v946_v1 = vmov (!%p138_p2), 0  }
   0x6   : > { %141 = sbr.rel (%p138_p2) target bundleno = 305 (0x131), region = 32  ;;  %838 = vset.pattern.permute.xlu0 (!%p138_p2), %v946_v1  ;;  %v237_v2 = vld [vmem:[%s1068_s2] sm:$0xff] (!%p138_p2)  ;;  %611 = vmatprep.mubr.bf16.mxu0 (!%p138_p2), %v937_v0  ;;  %v238_v3 = vld [vmem:[%s1068_s2 + $0x8] sm:$0xff] (!%p138_p2) }
   0x7   : > { %241 = vperm.xlu0 (!%p138_p2), %838, %v237_v2   ;;  %654 = vmatprep.mubr.bf16.mxu1 (!%p138_p2), %v937_v0 }
   0xb   : > { %246 = vperm.xlu0 (!%p138_p2), %838, %v238_v3  }
   0xd   : > { %s1071_s13 = smov (!%p161_p3, %s746_s13), 1 }
   0xe   : > { %s825_s20 = sshll.u32 %s1071_s13, 9  ;;  %s826_s26 = sshll.u32 %s1071_s13, 4 }
   0xf   : > { %s990_s23 = scalar_lea.vmem %s1066_s0, %s825_s20  ;;  %s170_s29 = scalar_lea.vmem %s1069_s3, %s826_s26 }
  0x10   : > { %v839_v4 = vld [vmem:[%s990_s23 + $0x4] ss:$16 sps:$4 sm:$0xff]   ;;  %v841_v5 = vld [vmem:[%s990_s23 + $0xc] ss:$16 sps:$4 sm:$0xff]   ;;  %v843_v6 = vld [vmem:[%s990_s23] ss:$16 sps:$4 sm:$0xff]  }
  0x11   : > { %579 = vmatprep.subr.bf16.mxu0 %v839_v4  ;;  %v844_v7 = vld [vmem:[%s990_s23 + $0x8] ss:$16 sps:$4 sm:$0xff]   ;;  %622 = vmatprep.subr.bf16.mxu1 %v841_v5  ;;  %v845_v8 = vld [vmem:[%s990_s23 + $0x24] ss:$16 sps:$4 sm:$0xff]   ;;  %v847_v9 = vld [vmem:[%s990_s23 + $0x2c] ss:$16 sps:$4 sm:$0xff]  }
  0x12   : > { %580 = vmatpush1.bf16.msra.mxu0 %v843_v6  ;;  %623 = vmatpush1.bf16.msra.mxu1 %v844_v7  ;;  %v849_v10 = vld [vmem:[%s990_s23 + $0x20] ss:$16 sps:$4 sm:$0xff]   ;;  %v850_v11 = vld [vmem:[%s990_s23 + $0x28] ss:$16 sps:$4 sm:$0xff]   ;;  %v851_v12 = vld [vmem:[%s990_s23 + $0x44] ss:$16 sps:$4 sm:$0xff]  }
  0x13   : > { %581 = vmatprep.subr.bf16.mxu0 %v845_v8  ;;  %624 = vmatprep.subr.bf16.mxu1 %v847_v9  ;;  %v853_v13 = vld [vmem:[%s990_s23 + $0x4c] ss:$16 sps:$4 sm:$0xff]   ;;  %v855_v14 = vld [vmem:[%s990_s23 + $0x40] ss:$16 sps:$4 sm:$0xff]   ;;  %v856_v15 = vld [vmem:[%s990_s23 + $0x48] ss:$16 sps:$4 sm:$0xff]  }
  0x14   : > { %v857_v16 = vld [vmem:[%s990_s23 + $0x64] ss:$16 sps:$4 sm:$0xff]   ;;  %v859_v17 = vld [vmem:[%s990_s23 + $0x6c] ss:$16 sps:$4 sm:$0xff]   ;;  %v861_v18 = vld [vmem:[%s990_s23 + $0x60] ss:$16 sps:$4 sm:$0xff]  }
  0x15   : > { %v862_v19 = vld [vmem:[%s990_s23 + $0x68] ss:$16 sps:$4 sm:$0xff]   ;;  %v863_v20 = vld [vmem:[%s990_s23 + $0x84] ss:$16 sps:$4 sm:$0xff]   ;;  %v865_v21 = vld [vmem:[%s990_s23 + $0x8c] ss:$16 sps:$4 sm:$0xff]  }
  0x16   : > { %582 = vmatpush1.bf16.msra.mxu0 %v849_v10  ;;  %625 = vmatpush1.bf16.msra.mxu1 %v850_v11  ;;  %v867_v22 = vld [vmem:[%s990_s23 + $0x80] ss:$16 sps:$4 sm:$0xff]   ;;  %v868_v23 = vld [vmem:[%s990_s23 + $0x88] ss:$16 sps:$4 sm:$0xff]   ;;  %v869_v24 = vld [vmem:[%s990_s23 + $0xa4] ss:$16 sps:$4 sm:$0xff]  }
  0x17   : > { %583 = vmatprep.subr.bf16.mxu0 %v851_v12  ;;  %626 = vmatprep.subr.bf16.mxu1 %v853_v13  ;;  %v871_v25 = vld [vmem:[%s990_s23 + $0xac] ss:$16 sps:$4 sm:$0xff]   ;;  %v873_v26 = vld [vmem:[%s990_s23 + $0xa0] ss:$16 sps:$4 sm:$0xff]   ;;  %v874_v27 = vld [vmem:[%s990_s23 + $0xa8] ss:$16 sps:$4 sm:$0xff]  }
  0x18   : > { %v875_v28 = vld [vmem:[%s990_s23 + $0xc4] ss:$16 sps:$4 sm:$0xff]   ;;  %v877_v29 = vld [vmem:[%s990_s23 + $0xcc] ss:$16 sps:$4 sm:$0xff]   ;;  %v879_v30 = vld [vmem:[%s990_s23 + $0xc0] ss:$16 sps:$4 sm:$0xff]  }
  0x19   : > { %v880_v31 = vld [vmem:[%s990_s23 + $0xc8] ss:$16 sps:$4 sm:$0xff]   ;;  %v881_v32 = vld [vmem:[%s990_s23 + $0xe4] ss:$16 sps:$4 sm:$0xff]   ;;  %v883_v33 = vld [vmem:[%s990_s23 + $0xec] ss:$16 sps:$4 sm:$0xff]  }
  0x1a   : > { %584 = vmatpush1.bf16.msra.mxu0 %v855_v14  ;;  %627 = vmatpush1.bf16.msra.mxu1 %v856_v15  ;;  %v885_v34 = vld [vmem:[%s990_s23 + $0xe0] ss:$16 sps:$4 sm:$0xff]   ;;  %v886_v35 = vld [vmem:[%s990_s23 + $0xe8] ss:$16 sps:$4 sm:$0xff]   ;;  %v887_v36 = vld [vmem:[%s990_s23 + $0x104] ss:$16 sps:$4 sm:$0xff]  }
  0x1b   : > { %585 = vmatprep.subr.bf16.mxu0 %v857_v16  ;;  %628 = vmatprep.subr.bf16.mxu1 %v859_v17  ;;  %v889_v37 = vld [vmem:[%s990_s23 + $0x10c] ss:$16 sps:$4 sm:$0xff]   ;;  %v891_v38 = vld [vmem:[%s990_s23 + $0x100] ss:$16 sps:$4 sm:$0xff]   ;;  %v892_v39 = vld [vmem:[%s990_s23 + $0x108] ss:$16 sps:$4 sm:$0xff]  }
  0x1c   : > { %v893_v40 = vld [vmem:[%s990_s23 + $0x124] ss:$16 sps:$4 sm:$0xff]   ;;  %v895_v41 = vld [vmem:[%s990_s23 + $0x12c] ss:$16 sps:$4 sm:$0xff]   ;;  %v897_v42 = vld [vmem:[%s990_s23 + $0x120] ss:$16 sps:$4 sm:$0xff]  }
  0x1d   : > { %v898_v43 = vld [vmem:[%s990_s23 + $0x128] ss:$16 sps:$4 sm:$0xff]   ;;  %v899_v44 = vld [vmem:[%s990_s23 + $0x144] ss:$16 sps:$4 sm:$0xff]   ;;  %v901_v45 = vld [vmem:[%s990_s23 + $0x14c] ss:$16 sps:$4 sm:$0xff]  }
  0x1e   : > { %586 = vmatpush1.bf16.msra.mxu0 %v861_v18  ;;  %629 = vmatpush1.bf16.msra.mxu1 %v862_v19  ;;  %v903_v46 = vld [vmem:[%s990_s23 + $0x140] ss:$16 sps:$4 sm:$0xff]   ;;  %v904_v47 = vld [vmem:[%s990_s23 + $0x148] ss:$16 sps:$4 sm:$0xff]   ;;  %v905_v48 = vld [vmem:[%s990_s23 + $0x164] ss:$16 sps:$4 sm:$0xff]  }
  0x1f   : > { %587 = vmatprep.subr.bf16.mxu0 %v863_v20  ;;  %630 = vmatprep.subr.bf16.mxu1 %v865_v21  ;;  %v907_v49 = vld [vmem:[%s990_s23 + $0x16c] ss:$16 sps:$4 sm:$0xff]   ;;  %v909_v50 = vld [vmem:[%s990_s23 + $0x160] ss:$16 sps:$4 sm:$0xff]   ;;  %v910_v51 = vld [vmem:[%s990_s23 + $0x168] ss:$16 sps:$4 sm:$0xff]  }
  0x20   : > { %v911_v52 = vld [vmem:[%s990_s23 + $0x184] ss:$16 sps:$4 sm:$0xff]   ;;  %v913_v53 = vld [vmem:[%s990_s23 + $0x18c] ss:$16 sps:$4 sm:$0xff]   ;;  %v915_v54 = vld [vmem:[%s990_s23 + $0x180] ss:$16 sps:$4 sm:$0xff]  }
  0x21   : > { %v916_v55 = vld [vmem:[%s990_s23 + $0x188] ss:$16 sps:$4 sm:$0xff]   ;;  %v917_v56 = vld [vmem:[%s990_s23 + $0x1a4] ss:$16 sps:$4 sm:$0xff]   ;;  %v919_v57 = vld [vmem:[%s990_s23 + $0x1ac] ss:$16 sps:$4 sm:$0xff]  }
  0x22   : > { %588 = vmatpush1.bf16.msra.mxu0 %v867_v22  ;;  %631 = vmatpush1.bf16.msra.mxu1 %v868_v23  ;;  %v921_v58 = vld [vmem:[%s990_s23 + $0x1a0] ss:$16 sps:$4 sm:$0xff]   ;;  %v922_v59 = vld [vmem:[%s990_s23 + $0x1a8] ss:$16 sps:$4 sm:$0xff]   ;;  %v923_v60 = vld [vmem:[%s990_s23 + $0x1c4] ss:$16 sps:$4 sm:$0xff]  }
  0x23   : > { %589 = vmatprep.subr.bf16.mxu0 %v869_v24  ;;  %632 = vmatprep.subr.bf16.mxu1 %v871_v25  ;;  %v925_v61 = vld [vmem:[%s990_s23 + $0x1cc] ss:$16 sps:$4 sm:$0xff]   ;;  %v927_v62 = vld [vmem:[%s990_s23 + $0x1c0] ss:$16 sps:$4 sm:$0xff]   ;;  %v928_v63 = vld [vmem:[%s990_s23 + $0x1c8] ss:$16 sps:$4 sm:$0xff]  }
  0x24   : > { %v929_v0 = vld [vmem:[%s990_s23 + $0x1e4] ss:$16 sps:$4 sm:$0xff]   ;;  %v931_v1 = vld [vmem:[%s990_s23 + $0x1ec] ss:$16 sps:$4 sm:$0xff]   ;;  %v933_v2 = vld [vmem:[%s990_s23 + $0x1e0] ss:$16 sps:$4 sm:$0xff]  }
  0x25   : > { %v934_v3 = vld [vmem:[%s990_s23 + $0x1e8] ss:$16 sps:$4 sm:$0xff]  }
  0x26   : > { %590 = vmatpush1.bf16.msra.mxu0 %v873_v26  ;;  %633 = vmatpush1.bf16.msra.mxu1 %v874_v27  ;;  %v935_v4 = vld [vmem:[%s1067_s1] ss:$8 sps:$4 sm:$0xff]  }
  0x27   : > { %591 = vmatprep.subr.bf16.mxu0 %v875_v28  ;;  %634 = vmatprep.subr.bf16.mxu1 %v877_v29 }
  0x2a   : > { %592 = vmatpush1.bf16.msra.mxu0 %v879_v30  ;;  %635 = vmatpush1.bf16.msra.mxu1 %v880_v31 }
  0x2b   : > { %593 = vmatprep.subr.bf16.mxu0 %v881_v32  ;;  %636 = vmatprep.subr.bf16.mxu1 %v883_v33 }
  0x2e   : > { %594 = vmatpush1.bf16.msra.mxu0 %v885_v34  ;;  %637 = vmatpush1.bf16.msra.mxu1 %v886_v35 }
  0x2f   : > { %595 = vmatprep.subr.bf16.mxu0 %v887_v36  ;;  %638 = vmatprep.subr.bf16.mxu1 %v889_v37 }
  0x32   : > { %596 = vmatpush1.bf16.msra.mxu0 %v891_v38  ;;  %639 = vmatpush1.bf16.msra.mxu1 %v892_v39 }
  0x33   : > { %597 = vmatprep.subr.bf16.mxu0 %v893_v40  ;;  %640 = vmatprep.subr.bf16.mxu1 %v895_v41 }
  0x36   : > { %598 = vmatpush1.bf16.msra.mxu0 %v897_v42  ;;  %641 = vmatpush1.bf16.msra.mxu1 %v898_v43 }
  0x37   : > { %599 = vmatprep.subr.bf16.mxu0 %v899_v44  ;;  %642 = vmatprep.subr.bf16.mxu1 %v901_v45 }
  0x3a   : > { %600 = vmatpush1.bf16.msra.mxu0 %v903_v46  ;;  %643 = vmatpush1.bf16.msra.mxu1 %v904_v47 }
  0x3b   : > { %601 = vmatprep.subr.bf16.mxu0 %v905_v48  ;;  %644 = vmatprep.subr.bf16.mxu1 %v907_v49 }
  0x3e   : > { %602 = vmatpush1.bf16.msra.mxu0 %v909_v50  ;;  %645 = vmatpush1.bf16.msra.mxu1 %v910_v51 }
  0x3f   : > { %603 = vmatprep.subr.bf16.mxu0 %v911_v52  ;;  %646 = vmatprep.subr.bf16.mxu1 %v913_v53 }
  0x42   : > { %604 = vmatpush1.bf16.msra.mxu0 %v915_v54  ;;  %647 = vmatpush1.bf16.msra.mxu1 %v916_v55 }
  0x43   : > { %605 = vmatprep.subr.bf16.mxu0 %v917_v56  ;;  %648 = vmatprep.subr.bf16.mxu1 %v919_v57 }
  0x46   : > { %606 = vmatpush1.bf16.msra.mxu0 %v921_v58  ;;  %649 = vmatpush1.bf16.msra.mxu1 %v922_v59 }
  0x47   : > { %607 = vmatprep.subr.bf16.mxu0 %v923_v60  ;;  %650 = vmatprep.subr.bf16.mxu1 %v925_v61 }
  0x4a   : > { %608 = vmatpush1.bf16.msra.mxu0 %v927_v62  ;;  %651 = vmatpush1.bf16.msra.mxu1 %v928_v63 }
  0x4b   : > { %609 = vmatprep.subr.bf16.mxu0 %v929_v0  ;;  %652 = vmatprep.subr.bf16.mxu1 %v931_v1 }
  0x4e   : > { %610 = vmatpush1.bf16.msra.mxu0 %v933_v2  ;;  %653 = vmatpush1.bf16.msra.mxu1 %v934_v3 }
  0x51   : > { %612 = vmatmul.mubr.bf16.vlgmr.msra.gmra.mrb[0].mxu0 %v935_v4  ;;  %655 = vmatmul.mubr.bf16.vlgmr.msra.gmra.mrb[0].mxu1 %v935_v4 }
  0x86   : > { %v242_v5 = vpop.permute.xlu0 %241 }
  0x8a   : > { %v247_v6 = vpop.permute.xlu0 %246 }
 0x124   : > { %v613_v7 = vpop.f32.mrb[0].mxu0  ;;  %v656_v8 = vpop.f32.mrb[0].mxu1 }
 0x125   : > { %v614_v9 = vadd.f32 %v613_v7, %v242_v5  ;;  %v657_v10 = vadd.f32 %v656_v8, %v242_v5  ;;  %v615_v11 = vpop.f32.mrb[1].mxu0  ;;  %v658_v12 = vpop.f32.mrb[1].mxu1 }
 0x126   : > { %v616_v13 = vadd.f32 %v615_v11, %v242_v5  ;;  %v659_v14 = vadd.f32 %v658_v12, %v242_v5  ;;  %v617_v15 = vpop.f32.mrb[2].mxu0  ;;  %v660_v16 = vpop.f32.mrb[2].mxu1 }
 0x127   : > { %v665_v17 = vmax.f32 %v614_v9, 0.0  ;;  %v667_v18 = vmax.f32 %v657_v10, 0.0  ;;  %v618_v19 = vadd.f32 %v617_v15, %v247_v6  ;;  %v661_v20 = vadd.f32 %v660_v16, %v247_v6  ;;  %v619_v21 = vpop.f32.mrb[3].mxu0  ;;  %v662_v22 = vpop.f32.mrb[3].mxu1 }
 0x128   : > { %v666_v23 = vmax.f32 %v616_v13, 0.0  ;;  %v668_v24 = vmax.f32 %v659_v14, 0.0  ;;  %v620_v25 = vadd.f32 %v619_v21, %v247_v6  ;;  %v663_v26 = vadd.f32 %v662_v22, %v247_v6 }
 0x129   : > { %v673_v27 = vmax.f32 %v665_v17, %v667_v18  ;;  %v669_v28 = vmax.f32 %v618_v19, 0.0  ;;  %v671_v29 = vmax.f32 %v661_v20, 0.0 }
 0x12a   : > { %v674_v30 = vmax.f32 %v666_v23, %v668_v24  ;;  %v670_v31 = vmax.f32 %v620_v25, 0.0  ;;  %v672_v32 = vmax.f32 %v663_v26, 0.0 }
 0x12b   : > { %v675_v33 = vmax.f32 %v669_v28, %v671_v29 }
 0x12c   : > { %v827_v34 = vpack.c.bf16 %v674_v30, %v673_v27  ;;  %v676_v35 = vmax.f32 %v670_v31, %v672_v32 }
 0x12e   : > { %689 = vst [vmem:[%s170_s29] sm:$0xff] %v827_v34  ;;  %v828_v36 = vpack.c.bf16 %v676_v35, %v675_v33 }
 0x130   : > { %690 = vst [vmem:[%s170_s29 + $0x8] sm:$0xff] %v828_v36 }
 0x131 PF: > { %s13_s12 = sadd.s32 1, %s944_s12  }
 0x132   : > { %p10_p4 = scmp.ge.s32.totalorder %s13_s12, 4  }
 0x134   :  { %12 = sbr.rel (!%p10_p4) target bundleno = 1 (0x1), region = 62 }

// kernel: base_model_forward.38
= control target key start
LH: loop header
LB: loop body
LE: loop exit
PB: predicated region body
PF: predicated region fallthrough
CT: control target
= control target key end

     0   :  { %s1088_s12 = smov 0   ;;  %s1211_s0 = inlined_call_operand.vmem [shape: bf16[2,512,256], index: 0, kind: input, shape index: {}]   ;;  %s1212_s1 = inlined_call_operand.vmem [shape: bf16[32,512], index: 1, kind: input, shape index: {}]   ;;  %s1213_s2 = inlined_call_operand.vmem [shape: f32[32,1], index: 2, kind: input, shape index: {}]   ;;  %s1214_s3 = inlined_call_operand.vmem [shape: bf16[2,32,128], index: 3, kind: output, shape index: {}]  }
   0x1 LB: > { %s820_s13 = sadd.s32 4294967295, %s1065_s12   ;;  %p824_p0 = scmp.ge.s32.totalorder %s1065_s12, 1  ;;  %s1065_s12 = sphi %s1088_s12, %s13_s12  }
   0x2   : > { %p137_p1 = scmp.lt.s32.totalorder %s1065_s12, 3 }
   0x4   : > { %p138_p2 = pnand %p824_p0, %p137_p1 }
   0x5   : > { %p161_p3 = scmp.lt.s32.totalorder (!%p138_p2), %s820_s13, 1  ;;  %v1049_v0 = vld [vmem:[%s1212_s1 + $0x4] ss:$16 sps:$4 sm:$0xff] (!%p138_p2)   ;;  %v1067_v1 = vmov (!%p138_p2), 0   ;;  %v1052_v2 = vld [vmem:[%s1212_s1 + $0xc] ss:$16 sps:$4 sm:$0xff] (!%p138_p2)  }
   0x6   : > { %141 = sbr.rel (%p138_p2) target bundleno = 315 (0x13b), region = 32  ;;  %949 = vset.pattern.permute.xlu0 (!%p138_p2), %v1067_v1  ;;  %950 = vset.pattern.permute.xlu1 (!%p138_p2), %v1067_v1  ;;  %v243_v3 = vld [vmem:[%s1213_s2] sm:$0xff] (!%p138_p2)  ;;  %v244_v5 = vld [vmem:[%s1213_s2 + $0x8] sm:$0xff] (!%p138_p2)  ;;  %v245_v51 = vld [vmem:[%s1213_s2 + $0x10] sm:$0xff] (!%p138_p2) }
   0x7   : > { %659 = vmatprep.mubr.bf16.mxu1 (!%p138_p2), %v1049_v0  ;;  %712 = vmatprep.mubr.bf16.mxu0 (!%p138_p2), %v1052_v2  ;;  %v246_v54 = vld [vmem:[%s1213_s2 + $0x18] sm:$0xff] (!%p138_p2) }
   0x8   : > { %249 = vperm.xlu0 (!%p138_p2), %949, %v243_v3   ;;  %259 = vperm.xlu1 (!%p138_p2), %950, %v245_v51  }
   0xc   : > { %254 = vperm.xlu0 (!%p138_p2), %949, %v244_v5   ;;  %264 = vperm.xlu1 (!%p138_p2), %950, %v246_v54  }
   0xd   : > { %s1216_s13 = smov (!%p161_p3, %s820_s13), 1 }
   0xe   : > { %s907_s18 = sshll.u32 %s1216_s13, 9  ;;  %s908_s17 = sshll.u32 %s1216_s13, 4 }
   0xf   : > { %s1108_s21 = scalar_lea.vmem %s1211_s0, %s907_s18  ;;  %s170_s20 = scalar_lea.vmem %s1214_s3, %s908_s17 }
  0x10   : > { %v951_v4 = vld [vmem:[%s1108_s21 + $0x4] ss:$8 sps:$4 sm:$0xff]   ;;  %v955_v7 = vld [vmem:[%s1108_s21] ss:$8 sps:$4 sm:$0xff]   ;;  %v957_v9 = vld [vmem:[%s1108_s21 + $0x14] ss:$8 sps:$4 sm:$0xff]  }
  0x11   : > { %v953_v6 = vld [vmem:[%s1108_s21 + $0x104] ss:$8 sps:$4 sm:$0xff]   ;;  %627 = vmatprep.subr.bf16.mxu1 %v951_v4  ;;  %v956_v8 = vld [vmem:[%s1108_s21 + $0x100] ss:$8 sps:$4 sm:$0xff]   ;;  %v959_v10 = vld [vmem:[%s1108_s21 + $0x114] ss:$8 sps:$4 sm:$0xff]  }
  0x12   : > { %680 = vmatprep.subr.bf16.mxu0 %v953_v6  ;;  %628 = vmatpush1.bf16.msra.mxu1 %v955_v7  ;;  %v961_v11 = vld [vmem:[%s1108_s21 + $0x10] ss:$8 sps:$4 sm:$0xff]   ;;  %v963_v13 = vld [vmem:[%s1108_s21 + $0x24] ss:$8 sps:$4 sm:$0xff]   ;;  %v967_v15 = vld [vmem:[%s1108_s21 + $0x20] ss:$8 sps:$4 sm:$0xff]  }
  0x13   : > { %681 = vmatpush1.bf16.msra.mxu0 %v956_v8  ;;  %629 = vmatprep.subr.bf16.mxu1 %v957_v9  ;;  %v962_v12 = vld [vmem:[%s1108_s21 + $0x110] ss:$8 sps:$4 sm:$0xff]   ;;  %v965_v14 = vld [vmem:[%s1108_s21 + $0x124] ss:$8 sps:$4 sm:$0xff]   ;;  %v968_v16 = vld [vmem:[%s1108_s21 + $0x120] ss:$8 sps:$4 sm:$0xff]  }
  0x14   : > { %682 = vmatprep.subr.bf16.mxu0 %v959_v10  ;;  %v969_v17 = vld [vmem:[%s1108_s21 + $0x34] ss:$8 sps:$4 sm:$0xff]   ;;  %v973_v19 = vld [vmem:[%s1108_s21 + $0x30] ss:$8 sps:$4 sm:$0xff]   ;;  %v975_v21 = vld [vmem:[%s1108_s21 + $0x44] ss:$8 sps:$4 sm:$0xff]  }
  0x15   : > { %v971_v18 = vld [vmem:[%s1108_s21 + $0x134] ss:$8 sps:$4 sm:$0xff]   ;;  %v974_v20 = vld [vmem:[%s1108_s21 + $0x130] ss:$8 sps:$4 sm:$0xff]   ;;  %v977_v22 = vld [vmem:[%s1108_s21 + $0x144] ss:$8 sps:$4 sm:$0xff]  }
  0x16   : > { %630 = vmatpush1.bf16.msra.mxu1 %v961_v11  ;;  %v979_v23 = vld [vmem:[%s1108_s21 + $0x40] ss:$8 sps:$4 sm:$0xff]   ;;  %v981_v25 = vld [vmem:[%s1108_s21 + $0x54] ss:$8 sps:$4 sm:$0xff]   ;;  %v985_v27 = vld [vmem:[%s1108_s21 + $0x50] ss:$8 sps:$4 sm:$0xff]  }
  0x17   : > { %683 = vmatpush1.bf16.msra.mxu0 %v962_v12  ;;  %631 = vmatprep.subr.bf16.mxu1 %v963_v13  ;;  %v980_v24 = vld [vmem:[%s1108_s21 + $0x140] ss:$8 sps:$4 sm:$0xff]   ;;  %v983_v26 = vld [vmem:[%s1108_s21 + $0x154] ss:$8 sps:$4 sm:$0xff]   ;;  %v986_v28 = vld [vmem:[%s1108_s21 + $0x150] ss:$8 sps:$4 sm:$0xff]  }
  0x18   : > { %684 = vmatprep.subr.bf16.mxu0 %v965_v14  ;;  %v987_v29 = vld [vmem:[%s1108_s21 + $0x64] ss:$8 sps:$4 sm:$0xff]   ;;  %v991_v31 = vld [vmem:[%s1108_s21 + $0x60] ss:$8 sps:$4 sm:$0xff]   ;;  %v993_v33 = vld [vmem:[%s1108_s21 + $0x74] ss:$8 sps:$4 sm:$0xff]  }
  0x19   : > { %v989_v30 = vld [vmem:[%s1108_s21 + $0x164] ss:$8 sps:$4 sm:$0xff]   ;;  %v992_v32 = vld [vmem:[%s1108_s21 + $0x160] ss:$8 sps:$4 sm:$0xff]   ;;  %v995_v34 = vld [vmem:[%s1108_s21 + $0x174] ss:$8 sps:$4 sm:$0xff]  }
  0x1a   : > { %632 = vmatpush1.bf16.msra.mxu1 %v967_v15  ;;  %v997_v35 = vld [vmem:[%s1108_s21 + $0x70] ss:$8 sps:$4 sm:$0xff]   ;;  %v999_v37 = vld [vmem:[%s1108_s21 + $0x84] ss:$8 sps:$4 sm:$0xff]   ;;  %v1003_v39 = vld [vmem:[%s1108_s21 + $0x80] ss:$8 sps:$4 sm:$0xff]  }
  0x1b   : > { %685 = vmatpush1.bf16.msra.mxu0 %v968_v16  ;;  %633 = vmatprep.subr.bf16.mxu1 %v969_v17  ;;  %v998_v36 = vld [vmem:[%s1108_s21 + $0x170] ss:$8 sps:$4 sm:$0xff]   ;;  %v1001_v38 = vld [vmem:[%s1108_s21 + $0x184] ss:$8 sps:$4 sm:$0xff]   ;;  %v1004_v40 = vld [vmem:[%s1108_s21 + $0x180] ss:$8 sps:$4 sm:$0xff]  }
  0x1c   : > { %686 = vmatprep.subr.bf16.mxu0 %v971_v18  ;;  %v1005_v41 = vld [vmem:[%s1108_s21 + $0x94] ss:$8 sps:$4 sm:$0xff]   ;;  %v1009_v43 = vld [vmem:[%s1108_s21 + $0x90] ss:$8 sps:$4 sm:$0xff]   ;;  %v1011_v45 = vld [vmem:[%s1108_s21 + $0xa4] ss:$8 sps:$4 sm:$0xff]  }
  0x1d   : > { %v1007_v42 = vld [vmem:[%s1108_s21 + $0x194] ss:$8 sps:$4 sm:$0xff]   ;;  %v1010_v44 = vld [vmem:[%s1108_s21 + $0x190] ss:$8 sps:$4 sm:$0xff]   ;;  %v1013_v46 = vld [vmem:[%s1108_s21 + $0x1a4] ss:$8 sps:$4 sm:$0xff]  }
  0x1e   : > { %634 = vmatpush1.bf16.msra.mxu1 %v973_v19  ;;  %v1015_v47 = vld [vmem:[%s1108_s21 + $0xa0] ss:$8 sps:$4 sm:$0xff]   ;;  %v1017_v49 = vld [vmem:[%s1108_s21 + $0xb4] ss:$8 sps:$4 sm:$0xff]   ;;  %v1021_v52 = vld [vmem:[%s1108_s21 + $0xb0] ss:$8 sps:$4 sm:$0xff]  }
  0x1f   : > { %687 = vmatpush1.bf16.msra.mxu0 %v974_v20  ;;  %635 = vmatprep.subr.bf16.mxu1 %v975_v21  ;;  %v1016_v48 = vld [vmem:[%s1108_s21 + $0x1a0] ss:$8 sps:$4 sm:$0xff]   ;;  %v1019_v50 = vld [vmem:[%s1108_s21 + $0x1b4] ss:$8 sps:$4 sm:$0xff]   ;;  %v1022_v53 = vld [vmem:[%s1108_s21 + $0x1b0] ss:$8 sps:$4 sm:$0xff]  }
  0x20   : > { %688 = vmatprep.subr.bf16.mxu0 %v977_v22  ;;  %v1023_v55 = vld [vmem:[%s1108_s21 + $0xc4] ss:$8 sps:$4 sm:$0xff]   ;;  %v1027_v57 = vld [vmem:[%s1108_s21 + $0xc0] ss:$8 sps:$4 sm:$0xff]   ;;  %v1029_v59 = vld [vmem:[%s1108_s21 + $0xd4] ss:$8 sps:$4 sm:$0xff]  }
  0x21   : > { %v1025_v56 = vld [vmem:[%s1108_s21 + $0x1c4] ss:$8 sps:$4 sm:$0xff]   ;;  %v1028_v58 = vld [vmem:[%s1108_s21 + $0x1c0] ss:$8 sps:$4 sm:$0xff]   ;;  %v1031_v60 = vld [vmem:[%s1108_s21 + $0x1d4] ss:$8 sps:$4 sm:$0xff]  }
  0x22   : > { %636 = vmatpush1.bf16.msra.mxu1 %v979_v23  ;;  %v1033_v61 = vld [vmem:[%s1108_s21 + $0xd0] ss:$8 sps:$4 sm:$0xff]   ;;  %v1035_v63 = vld [vmem:[%s1108_s21 + $0xe4] ss:$8 sps:$4 sm:$0xff]   ;;  %v1039_v1 = vld [vmem:[%s1108_s21 + $0xe0] ss:$8 sps:$4 sm:$0xff]  }
  0x23   : > { %689 = vmatpush1.bf16.msra.mxu0 %v980_v24  ;;  %637 = vmatprep.subr.bf16.mxu1 %v981_v25  ;;  %v1034_v62 = vld [vmem:[%s1108_s21 + $0x1d0] ss:$8 sps:$4 sm:$0xff]   ;;  %v1037_v0 = vld [vmem:[%s1108_s21 + $0x1e4] ss:$8 sps:$4 sm:$0xff]   ;;  %v1040_v2 = vld [vmem:[%s1108_s21 + $0x1e0] ss:$8 sps:$4 sm:$0xff]  }
  0x24   : > { %690 = vmatprep.subr.bf16.mxu0 %v983_v26  ;;  %v1041_v3 = vld [vmem:[%s1108_s21 + $0xf4] ss:$8 sps:$4 sm:$0xff]   ;;  %v1045_v5 = vld [vmem:[%s1108_s21 + $0xf0] ss:$8 sps:$4 sm:$0xff]  }
  0x25   : > { %v1043_v4 = vld [vmem:[%s1108_s21 + $0x1f4] ss:$8 sps:$4 sm:$0xff]   ;;  %v1046_v6 = vld [vmem:[%s1108_s21 + $0x1f0] ss:$8 sps:$4 sm:$0xff]  }
  0x26   : > { %638 = vmatpush1.bf16.msra.mxu1 %v985_v27  ;;  %v1047_v7 = vld [vmem:[%s1212_s1] ss:$16 sps:$4 sm:$0xff]   ;;  %v1050_v8 = vld [vmem:[%s1212_s1 + $0x8] ss:$16 sps:$4 sm:$0xff]   ;;  %v1053_v9 = vld [vmem:[%s1212_s1 + $0x24] ss:$16 sps:$4 sm:$0xff]  }
  0x27   : > { %691 = vmatpush1.bf16.msra.mxu0 %v986_v28  ;;  %639 = vmatprep.subr.bf16.mxu1 %v987_v29  ;;  %v1055_v10 = vld [vmem:[%s1212_s1 + $0x2c] ss:$16 sps:$4 sm:$0xff]   ;;  %v1057_v11 = vld [vmem:[%s1212_s1 + $0x20] ss:$16 sps:$4 sm:$0xff]   ;;  %v1058_v12 = vld [vmem:[%s1212_s1 + $0x28] ss:$16 sps:$4 sm:$0xff]  }
  0x28   : > { %692 = vmatprep.subr.bf16.mxu0 %v989_v30 }
  0x2a   : > { %640 = vmatpush1.bf16.msra.mxu1 %v991_v31 }
  0x2b   : > { %693 = vmatpush1.bf16.msra.mxu0 %v992_v32  ;;  %641 = vmatprep.subr.bf16.mxu1 %v993_v33 }
  0x2c   : > { %694 = vmatprep.subr.bf16.mxu0 %v995_v34 }
  0x2e   : > { %642 = vmatpush1.bf16.msra.mxu1 %v997_v35 }
  0x2f   : > { %695 = vmatpush1.bf16.msra.mxu0 %v998_v36  ;;  %643 = vmatprep.subr.bf16.mxu1 %v999_v37 }
  0x30   : > { %696 = vmatprep.subr.bf16.mxu0 %v1001_v38 }
  0x32   : > { %644 = vmatpush1.bf16.msra.mxu1 %v1003_v39 }
  0x33   : > { %697 = vmatpush1.bf16.msra.mxu0 %v1004_v40  ;;  %645 = vmatprep.subr.bf16.mxu1 %v1005_v41 }
  0x34   : > { %698 = vmatprep.subr.bf16.mxu0 %v1007_v42 }
  0x36   : > { %646 = vmatpush1.bf16.msra.mxu1 %v1009_v43 }
  0x37   : > { %699 = vmatpush1.bf16.msra.mxu0 %v1010_v44  ;;  %647 = vmatprep.subr.bf16.mxu1 %v1011_v45 }
  0x38   : > { %700 = vmatprep.subr.bf16.mxu0 %v1013_v46 }
  0x3a   : > { %648 = vmatpush1.bf16.msra.mxu1 %v1015_v47 }
  0x3b   : > { %701 = vmatpush1.bf16.msra.mxu0 %v1016_v48  ;;  %649 = vmatprep.subr.bf16.mxu1 %v1017_v49 }
  0x3c   : > { %702 = vmatprep.subr.bf16.mxu0 %v1019_v50 }
  0x3e   : > { %650 = vmatpush1.bf16.msra.mxu1 %v1021_v52 }
  0x3f   : > { %703 = vmatpush1.bf16.msra.mxu0 %v1022_v53  ;;  %651 = vmatprep.subr.bf16.mxu1 %v1023_v55 }
  0x40   : > { %704 = vmatprep.subr.bf16.mxu0 %v1025_v56 }
  0x42   : > { %652 = vmatpush1.bf16.msra.mxu1 %v1027_v57 }
  0x43   : > { %705 = vmatpush1.bf16.msra.mxu0 %v1028_v58  ;;  %653 = vmatprep.subr.bf16.mxu1 %v1029_v59 }
  0x44   : > { %706 = vmatprep.subr.bf16.mxu0 %v1031_v60 }
  0x46   : > { %654 = vmatpush1.bf16.msra.mxu1 %v1033_v61 }
  0x47   : > { %707 = vmatpush1.bf16.msra.mxu0 %v1034_v62  ;;  %655 = vmatprep.subr.bf16.mxu1 %v1035_v63 }
  0x48   : > { %708 = vmatprep.subr.bf16.mxu0 %v1037_v0 }
  0x4a   : > { %656 = vmatpush1.bf16.msra.mxu1 %v1039_v1 }
  0x4b   : > { %709 = vmatpush1.bf16.msra.mxu0 %v1040_v2  ;;  %657 = vmatprep.subr.bf16.mxu1 %v1041_v3 }
  0x4c   : > { %710 = vmatprep.subr.bf16.mxu0 %v1043_v4 }
  0x4e   : > { %658 = vmatpush1.bf16.msra.mxu1 %v1045_v5 }
  0x4f   : > { %711 = vmatpush1.bf16.msra.mxu0 %v1046_v6 }
  0x51   : > { %660 = vmatmul.mubr.bf16.vlgmr.msra.gmra.mrb[0].mxu1 %v1047_v7 }
  0x52   : > { %713 = vmatmul.mubr.bf16.vlgmr.msra.gmra.mrb[0].mxu0 %v1050_v8  ;;  %669 = vmatprep.mubr.bf16.mxu1 %v1053_v9 }
  0x53   : > { %722 = vmatprep.mubr.bf16.mxu0 %v1055_v10 }
  0x59   : > { %670 = vmatmul.mubr.bf16.gmra.mrb[4].mxu1 %v1057_v11 }
  0x5a   : > { %723 = vmatmul.mubr.bf16.gmra.mrb[4].mxu0 %v1058_v12 }
  0x87   : > { %v250_v13 = vpop.permute.xlu0 %249  ;;  %v260_v15 = vpop.permute.xlu1 %259 }
  0x8b   : > { %v255_v14 = vpop.permute.xlu0 %254  ;;  %v265_v35 = vpop.permute.xlu1 %264 }
 0x124   : > { %v661_v16 = vpop.f32.mrb[0].mxu1 }
 0x125   : > { %v714_v17 = vpop.f32.mrb[0].mxu0  ;;  %v662_v18 = vadd.f32 %v661_v16, %v250_v13  ;;  %v663_v19 = vpop.f32.mrb[1].mxu1 }
 0x126   : > { %v716_v20 = vpop.f32.mrb[1].mxu0  ;;  %v664_v21 = vadd.f32 %v663_v19, %v250_v13  ;;  %v665_v22 = vpop.f32.mrb[2].mxu1 }
 0x127   : > { %v718_v23 = vpop.f32.mrb[2].mxu0  ;;  %v715_v24 = vadd.f32 %v714_v17, %v662_v18  ;;  %v666_v25 = vadd.f32 %v665_v22, %v255_v14  ;;  %v667_v26 = vpop.f32.mrb[3].mxu1 }
 0x128   : > { %v720_v27 = vpop.f32.mrb[3].mxu0  ;;  %v717_v28 = vadd.f32 %v716_v20, %v664_v21  ;;  %v668_v29 = vadd.f32 %v667_v26, %v255_v14 }
 0x129   : > { %v733_v30 = vmax.f32 %v715_v24, 0.0  ;;  %v719_v31 = vadd.f32 %v718_v23, %v666_v25 }
 0x12a   : > { %v734_v32 = vmax.f32 %v717_v28, 0.0  ;;  %v721_v33 = vadd.f32 %v720_v27, %v668_v29 }
 0x12b   : > { %v735_v34 = vmax.f32 %v719_v31, 0.0 }
 0x12c   : > { %v741_v36 = vmax.f32 %v733_v30, %v734_v32  ;;  %v736_v37 = vmax.f32 %v721_v33, 0.0  ;;  %v671_v38 = vpop.f32.mrb[4].mxu1 }
 0x12d   : > { %v724_v39 = vpop.f32.mrb[4].mxu0  ;;  %v672_v40 = vadd.f32 %v671_v38, %v260_v15  ;;  %v673_v41 = vpop.f32.mrb[5].mxu1 }
 0x12e   : > { %v726_v42 = vpop.f32.mrb[5].mxu0  ;;  %v742_v43 = vmax.f32 %v735_v34, %v736_v37  ;;  %v674_v44 = vadd.f32 %v673_v41, %v260_v15  ;;  %v675_v45 = vpop.f32.mrb[6].mxu1 }
 0x12f   : > { %v728_v46 = vpop.f32.mrb[6].mxu0  ;;  %v725_v47 = vadd.f32 %v724_v39, %v672_v40  ;;  %v676_v48 = vadd.f32 %v675_v45, %v265_v35  ;;  %v677_v49 = vpop.f32.mrb[7].mxu1 }
 0x130   : > { %v730_v50 = vpop.f32.mrb[7].mxu0  ;;  %v916_v51 = vpack.c.bf16 %v742_v43, %v741_v36  ;;  %v727_v52 = vadd.f32 %v726_v42, %v674_v44  ;;  %v678_v53 = vadd.f32 %v677_v49, %v265_v35 }
 0x131   : > { %v737_v54 = vmax.f32 %v725_v47, 0.0  ;;  %v729_v55 = vadd.f32 %v728_v46, %v676_v48 }
 0x132   : > { %917 = vst [vmem:[%s170_s20] sm:$0xff] %v916_v51   ;;  %v738_v56 = vmax.f32 %v727_v52, 0.0  ;;  %v731_v57 = vadd.f32 %v730_v50, %v678_v53 }
 0x133   : > { %v739_v58 = vmax.f32 %v729_v55, 0.0 }
 0x134   : > { %v743_v59 = vmax.f32 %v737_v54, %v738_v56  ;;  %v740_v60 = vmax.f32 %v731_v57, 0.0 }
 0x136   : > { %v744_v61 = vmax.f32 %v739_v58, %v740_v60 }
 0x138   : > { %v921_v62 = vpack.c.bf16 %v744_v61, %v743_v59 }
 0x13a   : > { %923 = vst [vmem:[%s170_s20 + $0x8] sm:$0xff] %v921_v62  }
 0x13b PF: > { %s13_s12 = sadd.s32 1, %s1065_s12  }
 0x13c   : > { %p10_p4 = scmp.ge.s32.totalorder %s13_s12, 4  }
 0x13e   :  { %12 = sbr.rel (!%p10_p4) target bundleno = 1 (0x1), region = 62 }

// kernel: base_model_forward.39
= control target key start
LH: loop header
LB: loop body
LE: loop exit
PB: predicated region body
PF: predicated region fallthrough
CT: control target
= control target key end

     0   :  { %s2098_s12 = smov 0   ;;  %s2413_s0 = inlined_call_operand.vmem [shape: bf16[2,1024,256], index: 0, kind: input, shape index: {}]   ;;  %s2414_s1 = inlined_call_operand.vmem [shape: bf16[64,1024], index: 1, kind: input, shape index: {}]   ;;  %s2415_s2 = inlined_call_operand.vmem [shape: f32[64,1], index: 2, kind: input, shape index: {}]   ;;  %s2416_s3 = inlined_call_operand.vmem [shape: bf16[2,64,128], index: 3, kind: output, shape index: {}]  }
   0x1 LB: > { %s1590_s13 = sadd.s32 4294967295, %s2075_s12   ;;  %p1594_p0 = scmp.ge.s32.totalorder %s2075_s12, 1  ;;  %s2075_s12 = sphi %s2098_s12, %s13_s12  }
   0x2   : > { %p137_p1 = scmp.lt.s32.totalorder %s2075_s12, 3 }
   0x4   : > { %p138_p2 = pnand %p1594_p0, %p137_p1 }
   0x5   : > { %p161_p3 = scmp.lt.s32.totalorder (!%p138_p2), %s1590_s13, 1  ;;  %v2109_v0 = vld [vmem:[%s2414_s1] sm:$0xff] (!%p138_p2)  ;;  %v2119_v2 = vld [vmem:[%s2414_s1 + $0x10] sm:$0xff] (!%p138_p2)  ;;  %v2077_v42 = vmov (!%p138_p2), 0  }
   0x6   : > { %141 = sbr.rel (%p138_p2) target bundleno = 395 (0x18b), region = 32  ;;  %v2114_v1 = vld [vmem:[%s2414_s1 + $0x20] sm:$0xff] (!%p138_p2)  ;;  %v2128_v5 = vld [vmem:[%s2414_s1 + $0x30] sm:$0xff] (!%p138_p2)  ;;  %1875 = vset.pattern.permute.xlu0 (!%p138_p2), %v2077_v42  ;;  %1876 = vset.pattern.permute.xlu1 (!%p138_p2), %v2077_v42 }
   0x7   : > { %v1599_v3 = vcombine.low (!%p138_p2), %v2109_v0, %v2114_v1  ;;  %v1600_v4 = vcombine.high (!%p138_p2), %v2109_v0, %v2114_v1  ;;  %v1603_v6 = vcombine.low (!%p138_p2), %v2119_v2, %v2128_v5  ;;  %v1604_v7 = vcombine.high (!%p138_p2), %v2119_v2, %v2128_v5  ;;  %v187_v0 = vld [vmem:[%s2414_s1 + $0x80] sm:$0xff] (!%p138_p2)  ;;  %v189_v2 = vld [vmem:[%s2414_s1 + $0x90] sm:$0xff] (!%p138_p2) }
   0x8   : > { %v191_v1 = vld [vmem:[%s2414_s1 + $0xa0] sm:$0xff] (!%p138_p2) }
   0x9   : > { %1211 = vmatprep.mubr.bf16.mxu1 (!%p138_p2), %v1600_v4  ;;  %1357 = vmatprep.mubr.bf16.mxu0 (!%p138_p2), %v1604_v7  ;;  %v199_v42 = vld [vmem:[%s2414_s1 + $0xe0] sm:$0xff] (!%p138_p2) }
   0xd   : > { %s2418_s13 = smov (!%p161_p3, %s1590_s13), 1 }
   0xe   : > { %s1769_s22 = sshll.u32 %s2418_s13, 10  ;;  %s1770_s24 = sshll.u32 %s2418_s13, 5 }
   0xf   : > { %s2140_s25 = scalar_lea.vmem %s2413_s0, %s1769_s22  ;;  %s2404_s28 = scalar_lea.vmem %s2416_s3, %s1770_s24 }
  0x10   : > { %v1877_v8 = vld [vmem:[%s2140_s25 + $0x4] ss:$8 sps:$4 sm:$0xff]   ;;  %v1881_v10 = vld [vmem:[%s2140_s25] ss:$8 sps:$4 sm:$0xff]   ;;  %v1883_v12 = vld [vmem:[%s2140_s25 + $0x14] ss:$8 sps:$4 sm:$0xff]  }
  0x11   : > { %v1879_v9 = vld [vmem:[%s2140_s25 + $0x204] ss:$8 sps:$4 sm:$0xff]   ;;  %1179 = vmatprep.subr.bf16.mxu1 %v1877_v8  ;;  %v1882_v11 = vld [vmem:[%s2140_s25 + $0x200] ss:$8 sps:$4 sm:$0xff]   ;;  %v1885_v13 = vld [vmem:[%s2140_s25 + $0x214] ss:$8 sps:$4 sm:$0xff]  }
  0x12   : > { %1325 = vmatprep.subr.bf16.mxu0 %v1879_v9  ;;  %1180 = vmatpush1.bf16.msra.mxu1 %v1881_v10  ;;  %v1887_v14 = vld [vmem:[%s2140_s25 + $0x10] ss:$8 sps:$4 sm:$0xff]   ;;  %v1889_v16 = vld [vmem:[%s2140_s25 + $0x24] ss:$8 sps:$4 sm:$0xff]   ;;  %v1893_v18 = vld [vmem:[%s2140_s25 + $0x20] ss:$8 sps:$4 sm:$0xff]  }
  0x13   : > { %1326 = vmatpush1.bf16.msra.mxu0 %v1882_v11  ;;  %1181 = vmatprep.subr.bf16.mxu1 %v1883_v12  ;;  %v1888_v15 = vld [vmem:[%s2140_s25 + $0x210] ss:$8 sps:$4 sm:$0xff]   ;;  %v1891_v17 = vld [vmem:[%s2140_s25 + $0x224] ss:$8 sps:$4 sm:$0xff]   ;;  %v1894_v19 = vld [vmem:[%s2140_s25 + $0x220] ss:$8 sps:$4 sm:$0xff]  }
  0x14   : > { %1327 = vmatprep.subr.bf16.mxu0 %v1885_v13  ;;  %v1895_v20 = vld [vmem:[%s2140_s25 + $0x34] ss:$8 sps:$4 sm:$0xff]   ;;  %v1899_v22 = vld [vmem:[%s2140_s25 + $0x30] ss:$8 sps:$4 sm:$0xff]   ;;  %v1901_v24 = vld [vmem:[%s2140_s25 + $0x44] ss:$8 sps:$4 sm:$0xff]  }
  0x15   : > { %v1897_v21 = vld [vmem:[%s2140_s25 + $0x234] ss:$8 sps:$4 sm:$0xff]   ;;  %v1900_v23 = vld [vmem:[%s2140_s25 + $0x230] ss:$8 sps:$4 sm:$0xff]   ;;  %v1903_v25 = vld [vmem:[%s2140_s25 + $0x244] ss:$8 sps:$4 sm:$0xff]  }
  0x16   : > { %1182 = vmatpush1.bf16.msra.mxu1 %v1887_v14  ;;  %v1905_v26 = vld [vmem:[%s2140_s25 + $0x40] ss:$8 sps:$4 sm:$0xff]   ;;  %v1907_v28 = vld [vmem:[%s2140_s25 + $0x54] ss:$8 sps:$4 sm:$0xff]   ;;  %v1911_v30 = vld [vmem:[%s2140_s25 + $0x50] ss:$8 sps:$4 sm:$0xff]  }
  0x17   : > { %1328 = vmatpush1.bf16.msra.mxu0 %v1888_v15  ;;  %1183 = vmatprep.subr.bf16.mxu1 %v1889_v16  ;;  %v1906_v27 = vld [vmem:[%s2140_s25 + $0x240] ss:$8 sps:$4 sm:$0xff]   ;;  %v1909_v29 = vld [vmem:[%s2140_s25 + $0x254] ss:$8 sps:$4 sm:$0xff]   ;;  %v1912_v31 = vld [vmem:[%s2140_s25 + $0x250] ss:$8 sps:$4 sm:$0xff]  }
  0x18   : > { %1329 = vmatprep.subr.bf16.mxu0 %v1891_v17  ;;  %v1913_v32 = vld [vmem:[%s2140_s25 + $0x64] ss:$8 sps:$4 sm:$0xff]   ;;  %v1917_v34 = vld [vmem:[%s2140_s25 + $0x60] ss:$8 sps:$4 sm:$0xff]   ;;  %v1919_v36 = vld [vmem:[%s2140_s25 + $0x74] ss:$8 sps:$4 sm:$0xff]  }
  0x19   : > { %v1915_v33 = vld [vmem:[%s2140_s25 + $0x264] ss:$8 sps:$4 sm:$0xff]   ;;  %v1918_v35 = vld [vmem:[%s2140_s25 + $0x260] ss:$8 sps:$4 sm:$0xff]   ;;  %v1921_v37 = vld [vmem:[%s2140_s25 + $0x274] ss:$8 sps:$4 sm:$0xff]  }
  0x1a   : > { %1184 = vmatpush1.bf16.msra.mxu1 %v1893_v18  ;;  %v1923_v38 = vld [vmem:[%s2140_s25 + $0x70] ss:$8 sps:$4 sm:$0xff]   ;;  %v1925_v40 = vld [vmem:[%s2140_s25 + $0x84] ss:$8 sps:$4 sm:$0xff]   ;;  %v1929_v43 = vld [vmem:[%s2140_s25 + $0x80] ss:$8 sps:$4 sm:$0xff]  }
  0x1b   : > { %1330 = vmatpush1.bf16.msra.mxu0 %v1894_v19  ;;  %1185 = vmatprep.subr.bf16.mxu1 %v1895_v20  ;;  %v1924_v39 = vld [vmem:[%s2140_s25 + $0x270] ss:$8 sps:$4 sm:$0xff]   ;;  %v1927_v41 = vld [vmem:[%s2140_s25 + $0x284] ss:$8 sps:$4 sm:$0xff]   ;;  %v1930_v44 = vld [vmem:[%s2140_s25 + $0x280] ss:$8 sps:$4 sm:$0xff]  }
  0x1c   : > { %1331 = vmatprep.subr.bf16.mxu0 %v1897_v21  ;;  %v1931_v45 = vld [vmem:[%s2140_s25 + $0x94] ss:$8 sps:$4 sm:$0xff]   ;;  %v1935_v47 = vld [vmem:[%s2140_s25 + $0x90] ss:$8 sps:$4 sm:$0xff]   ;;  %v1937_v49 = vld [vmem:[%s2140_s25 + $0xa4] ss:$8 sps:$4 sm:$0xff]  }
  0x1d   : > { %v1933_v46 = vld [vmem:[%s2140_s25 + $0x294] ss:$8 sps:$4 sm:$0xff]   ;;  %v1936_v48 = vld [vmem:[%s2140_s25 + $0x290] ss:$8 sps:$4 sm:$0xff]   ;;  %v1939_v50 = vld [vmem:[%s2140_s25 + $0x2a4] ss:$8 sps:$4 sm:$0xff]  }
  0x1e   : > { %1186 = vmatpush1.bf16.msra.mxu1 %v1899_v22  ;;  %v1941_v51 = vld [vmem:[%s2140_s25 + $0xa0] ss:$8 sps:$4 sm:$0xff]   ;;  %v1943_v53 = vld [vmem:[%s2140_s25 + $0xb4] ss:$8 sps:$4 sm:$0xff]   ;;  %v1947_v55 = vld [vmem:[%s2140_s25 + $0xb0] ss:$8 sps:$4 sm:$0xff]  }
  0x1f   : > { %1332 = vmatpush1.bf16.msra.mxu0 %v1900_v23  ;;  %1187 = vmatprep.subr.bf16.mxu1 %v1901_v24  ;;  %v1942_v52 = vld [vmem:[%s2140_s25 + $0x2a0] ss:$8 sps:$4 sm:$0xff]   ;;  %v1945_v54 = vld [vmem:[%s2140_s25 + $0x2b4] ss:$8 sps:$4 sm:$0xff]   ;;  %v1948_v56 = vld [vmem:[%s2140_s25 + $0x2b0] ss:$8 sps:$4 sm:$0xff]  }
  0x20   : > { %1333 = vmatprep.subr.bf16.mxu0 %v1903_v25  ;;  %v1949_v57 = vld [vmem:[%s2140_s25 + $0xc4] ss:$8 sps:$4 sm:$0xff]   ;;  %v1953_v59 = vld [vmem:[%s2140_s25 + $0xc0] ss:$8 sps:$4 sm:$0xff]   ;;  %v1955_v61 = vld [vmem:[%s2140_s25 + $0xd4] ss:$8 sps:$4 sm:$0xff]  }
  0x21   : > { %v1951_v58 = vld [vmem:[%s2140_s25 + $0x2c4] ss:$8 sps:$4 sm:$0xff]   ;;  %v1954_v60 = vld [vmem:[%s2140_s25 + $0x2c0] ss:$8 sps:$4 sm:$0xff]   ;;  %v1957_v62 = vld [vmem:[%s2140_s25 + $0x2d4] ss:$8 sps:$4 sm:$0xff]  }
  0x22   : > { %1188 = vmatpush1.bf16.msra.mxu1 %v1905_v26  ;;  %v1959_v63 = vld [vmem:[%s2140_s25 + $0xd0] ss:$8 sps:$4 sm:$0xff]   ;;  %v1961_v7 = vld [vmem:[%s2140_s25 + $0xe4] ss:$8 sps:$4 sm:$0xff]   ;;  %v1965_v9 = vld [vmem:[%s2140_s25 + $0xe0] ss:$8 sps:$4 sm:$0xff]  }
  0x23   : > { %1334 = vmatpush1.bf16.msra.mxu0 %v1906_v27  ;;  %1189 = vmatprep.subr.bf16.mxu1 %v1907_v28  ;;  %v1960_v4 = vld [vmem:[%s2140_s25 + $0x2d0] ss:$8 sps:$4 sm:$0xff]   ;;  %v1963_v8 = vld [vmem:[%s2140_s25 + $0x2e4] ss:$8 sps:$4 sm:$0xff]   ;;  %v1966_v10 = vld [vmem:[%s2140_s25 + $0x2e0] ss:$8 sps:$4 sm:$0xff]  }
  0x24   : > { %1335 = vmatprep.subr.bf16.mxu0 %v1909_v29  ;;  %v1967_v11 = vld [vmem:[%s2140_s25 + $0xf4] ss:$8 sps:$4 sm:$0xff]   ;;  %v1971_v13 = vld [vmem:[%s2140_s25 + $0xf0] ss:$8 sps:$4 sm:$0xff]   ;;  %v1975_v15 = vld [vmem:[%s2140_s25 + $0x104] ss:$8 sps:$4 sm:$0xff]  }
  0x25   : > { %v1969_v12 = vld [vmem:[%s2140_s25 + $0x2f4] ss:$8 sps:$4 sm:$0xff]   ;;  %v1972_v14 = vld [vmem:[%s2140_s25 + $0x2f0] ss:$8 sps:$4 sm:$0xff]   ;;  %v1978_v16 = vld [vmem:[%s2140_s25 + $0x304] ss:$8 sps:$4 sm:$0xff]  }
  0x26   : > { %1190 = vmatpush1.bf16.msra.mxu1 %v1911_v30  ;;  %v179_v17 = vld [vmem:[%s2414_s1 + $0x40] sm:$0xff]  ;;  %v181_v19 = vld [vmem:[%s2414_s1 + $0x50] sm:$0xff] }
  0x27   : > { %1336 = vmatpush1.bf16.msra.mxu0 %v1912_v31  ;;  %1191 = vmatprep.subr.bf16.mxu1 %v1913_v32  ;;  %v183_v18 = vld [vmem:[%s2414_s1 + $0x60] sm:$0xff]  ;;  %v185_v20 = vld [vmem:[%s2414_s1 + $0x70] sm:$0xff] }
  0x28   : > { %1337 = vmatprep.subr.bf16.mxu0 %v1915_v33  ;;  %v1973_v21 = vld [vmem:[%s2140_s25 + $0x100] ss:$8 sps:$4 sm:$0xff]   ;;  %v1981_v23 = vld [vmem:[%s2140_s25 + $0x114] ss:$8 sps:$4 sm:$0xff]   ;;  %v1608_v25 = vcombine.high %v179_v17, %v183_v18  ;;  %v1612_v26 = vcombine.high %v181_v19, %v185_v20  ;;  %v1979_v27 = vld [vmem:[%s2140_s25 + $0x110] ss:$8 sps:$4 sm:$0xff]   ;;  %v1607_v31 = vcombine.low %v179_v17, %v183_v18  ;;  %v1611_v32 = vcombine.low %v181_v19, %v185_v20 }
  0x29   : > { %v1976_v22 = vld [vmem:[%s2140_s25 + $0x300] ss:$8 sps:$4 sm:$0xff]   ;;  %v1984_v24 = vld [vmem:[%s2140_s25 + $0x314] ss:$8 sps:$4 sm:$0xff]   ;;  %v1982_v28 = vld [vmem:[%s2140_s25 + $0x310] ss:$8 sps:$4 sm:$0xff]  }
  0x2a   : > { %1192 = vmatpush1.bf16.msra.mxu1 %v1917_v34  ;;  %v1987_v29 = vld [vmem:[%s2140_s25 + $0x124] ss:$8 sps:$4 sm:$0xff]   ;;  %v1985_v5 = vld [vmem:[%s2140_s25 + $0x120] ss:$8 sps:$4 sm:$0xff]   ;;  %v1993_v33 = vld [vmem:[%s2140_s25 + $0x134] ss:$8 sps:$4 sm:$0xff]  }
  0x2b   : > { %1338 = vmatpush1.bf16.msra.mxu0 %v1918_v35  ;;  %1193 = vmatprep.subr.bf16.mxu1 %v1919_v36  ;;  %v1990_v30 = vld [vmem:[%s2140_s25 + $0x324] ss:$8 sps:$4 sm:$0xff]   ;;  %v1996_v34 = vld [vmem:[%s2140_s25 + $0x334] ss:$8 sps:$4 sm:$0xff]   ;;  %v1616_v35 = vcombine.high %v187_v0, %v191_v1  ;;  %v2021_v17 = vld [vmem:[%s2140_s25 + $0x180] ss:$8 sps:$4 sm:$0xff]  }
  0x2c   : > { %1339 = vmatprep.subr.bf16.mxu0 %v1921_v37  ;;  %v1991_v37 = vld [vmem:[%s2140_s25 + $0x130] ss:$8 sps:$4 sm:$0xff]   ;;  %v2024_v18 = vld [vmem:[%s2140_s25 + $0x380] ss:$8 sps:$4 sm:$0xff]  }
  0x2d   : > { %v332_v19 = vld [vmem:[%s2415_s2 + $0x8] sm:$0xff]  ;;  %v334_v20 = vld [vmem:[%s2415_s2 + $0x18] sm:$0xff] }
  0x2e   : > { %1194 = vmatpush1.bf16.msra.mxu1 %v1923_v38  ;;  %v1994_v38 = vld [vmem:[%s2140_s25 + $0x330] ss:$8 sps:$4 sm:$0xff]  }
  0x2f   : > { %1340 = vmatpush1.bf16.msra.mxu0 %v1924_v39  ;;  %1195 = vmatprep.subr.bf16.mxu1 %v1925_v40  ;;  %v1999_v39 = vld [vmem:[%s2140_s25 + $0x144] ss:$8 sps:$4 sm:$0xff]  }
  0x30   : > { %1341 = vmatprep.subr.bf16.mxu0 %v1927_v41  ;;  %v2002_v40 = vld [vmem:[%s2140_s25 + $0x344] ss:$8 sps:$4 sm:$0xff]  }
  0x31   : > { %v195_v41 = vld [vmem:[%s2414_s1 + $0xc0] sm:$0xff] }
  0x32   : > { %1196 = vmatpush1.bf16.msra.mxu1 %v1929_v43  ;;  %v197_v43 = vld [vmem:[%s2414_s1 + $0xd0] sm:$0xff] }
  0x33   : > { %1342 = vmatpush1.bf16.msra.mxu0 %v1930_v44  ;;  %1197 = vmatprep.subr.bf16.mxu1 %v1931_v45  ;;  %v201_v44 = vld [vmem:[%s2414_s1 + $0xf0] sm:$0xff]  ;;  %v1997_v45 = vld [vmem:[%s2140_s25 + $0x140] ss:$8 sps:$4 sm:$0xff]  }
  0x34   : > { %1343 = vmatprep.subr.bf16.mxu0 %v1933_v46  ;;  %v2000_v46 = vld [vmem:[%s2140_s25 + $0x340] ss:$8 sps:$4 sm:$0xff]  }
  0x36   : > { %1198 = vmatpush1.bf16.msra.mxu1 %v1935_v47  ;;  %v1615_v47 = vcombine.low %v187_v0, %v191_v1  ;;  %v338_v0 = vld [vmem:[%s2415_s2 + $0x38] sm:$0xff]  ;;  %v337_v1 = vld [vmem:[%s2415_s2 + $0x30] sm:$0xff] }
  0x37   : > { %1344 = vmatpush1.bf16.msra.mxu0 %v1936_v48  ;;  %1199 = vmatprep.subr.bf16.mxu1 %v1937_v49  ;;  %v2005_v49 = vld [vmem:[%s2140_s25 + $0x154] ss:$8 sps:$4 sm:$0xff]  }
  0x38   : > { %1345 = vmatprep.subr.bf16.mxu0 %v1939_v50  ;;  %v2008_v50 = vld [vmem:[%s2140_s25 + $0x354] ss:$8 sps:$4 sm:$0xff]  }
  0x3a   : > { %1200 = vmatpush1.bf16.msra.mxu1 %v1941_v51  ;;  %v1624_v51 = vcombine.high %v195_v41, %v199_v42 }
  0x3b   : > { %1346 = vmatpush1.bf16.msra.mxu0 %v1942_v52  ;;  %1201 = vmatprep.subr.bf16.mxu1 %v1943_v53  ;;  %v1628_v52 = vcombine.high %v197_v43, %v201_v44  ;;  %v2003_v53 = vld [vmem:[%s2140_s25 + $0x150] ss:$8 sps:$4 sm:$0xff]  }
  0x3c   : > { %1347 = vmatprep.subr.bf16.mxu0 %v1945_v54  ;;  %v2006_v54 = vld [vmem:[%s2140_s25 + $0x350] ss:$8 sps:$4 sm:$0xff]  }
  0x3e   : > { %1202 = vmatpush1.bf16.msra.mxu1 %v1947_v55  ;;  %v2011_v55 = vld [vmem:[%s2140_s25 + $0x164] ss:$8 sps:$4 sm:$0xff]  }
  0x3f   : > { %1348 = vmatpush1.bf16.msra.mxu0 %v1948_v56  ;;  %1203 = vmatprep.subr.bf16.mxu1 %v1949_v57  ;;  %v2014_v56 = vld [vmem:[%s2140_s25 + $0x364] ss:$8 sps:$4 sm:$0xff]  }
  0x40   : > { %1349 = vmatprep.subr.bf16.mxu0 %v1951_v58  ;;  %v2277_v57 = vld [vmem:[%s2414_s1 + $0x8] sm:$0xff]  ;;  %v1623_v58 = vcombine.low %v195_v41, %v199_v42 }
  0x41   : > { %v2057_v41 = vld [vmem:[%s2140_s25 + $0x1e0] ss:$8 sps:$4 sm:$0xff]  }
  0x42   : > { %1204 = vmatpush1.bf16.msra.mxu1 %v1953_v59  ;;  %v1627_v59 = vcombine.low %v197_v43, %v201_v44  ;;  %v2060_v42 = vld [vmem:[%s2140_s25 + $0x3e0] ss:$8 sps:$4 sm:$0xff]   ;;  %v2065_v43 = vld [vmem:[%s2140_s25 + $0x1f4] ss:$8 sps:$4 sm:$0xff]  }
  0x43   : > { %1350 = vmatpush1.bf16.msra.mxu0 %v1954_v60  ;;  %1205 = vmatprep.subr.bf16.mxu1 %v1955_v61  ;;  %v2282_v60 = vld [vmem:[%s2414_s1 + $0x28] sm:$0xff]  ;;  %v2287_v61 = vld [vmem:[%s2414_s1 + $0x18] sm:$0xff] }
  0x44   : > { %1351 = vmatprep.subr.bf16.mxu0 %v1957_v62  ;;  %v2292_v62 = vld [vmem:[%s2414_s1 + $0x38] sm:$0xff] }
  0x45   : > { %v2068_v44 = vld [vmem:[%s2140_s25 + $0x3f4] ss:$8 sps:$4 sm:$0xff]  }
  0x46   : > { %1206 = vmatpush1.bf16.msra.mxu1 %v1959_v63  ;;  %v2009_v63 = vld [vmem:[%s2140_s25 + $0x160] ss:$8 sps:$4 sm:$0xff]  }
  0x47   : > { %1352 = vmatpush1.bf16.msra.mxu0 %v1960_v4  ;;  %1207 = vmatprep.subr.bf16.mxu1 %v1961_v7  ;;  %v2012_v4 = vld [vmem:[%s2140_s25 + $0x360] ss:$8 sps:$4 sm:$0xff]   ;;  %v2017_v7 = vld [vmem:[%s2140_s25 + $0x174] ss:$8 sps:$4 sm:$0xff]  }
  0x48   : > { %1353 = vmatprep.subr.bf16.mxu0 %v1963_v8  ;;  %v2020_v8 = vld [vmem:[%s2140_s25 + $0x374] ss:$8 sps:$4 sm:$0xff]  }
  0x4a   : > { %1208 = vmatpush1.bf16.msra.mxu1 %v1965_v9  ;;  %v1602_v9 = vcombine.high %v2277_v57, %v2282_v60 }
  0x4b   : > { %1354 = vmatpush1.bf16.msra.mxu0 %v1966_v10  ;;  %1209 = vmatprep.subr.bf16.mxu1 %v1967_v11  ;;  %v1606_v10 = vcombine.high %v2287_v61, %v2292_v62  ;;  %v2015_v11 = vld [vmem:[%s2140_s25 + $0x170] ss:$8 sps:$4 sm:$0xff]  }
  0x4c   : > { %1355 = vmatprep.subr.bf16.mxu0 %v1969_v12  ;;  %v2018_v12 = vld [vmem:[%s2140_s25 + $0x370] ss:$8 sps:$4 sm:$0xff]  }
  0x4e   : > { %1210 = vmatpush1.bf16.msra.mxu1 %v1971_v13  ;;  %v331_v13 = vld [vmem:[%s2415_s2] sm:$0xff] }
  0x4f   : > { %1356 = vmatpush1.bf16.msra.mxu0 %v1972_v14  ;;  %1252 = vmatprep.subr.bf16.mxu1 %v1975_v15  ;;  %v333_v14 = vld [vmem:[%s2415_s2 + $0x10] sm:$0xff]  ;;  %v2023_v15 = vld [vmem:[%s2140_s25 + $0x184] ss:$8 sps:$4 sm:$0xff]  }
  0x50   : > { %1398 = vmatprep.subr.bf16.mxu0 %v1978_v16  ;;  %v2026_v16 = vld [vmem:[%s2140_s25 + $0x384] ss:$8 sps:$4 sm:$0xff]   ;;  %341 = vperm.xlu0 %1875, %v331_v13  }
  0x51   : > { %1212 = vmatmul.mubr.bf16.vlgmr.msra.gmra.mrb[0].mxu1 %v1599_v3  ;;  %v193_v3 = vld [vmem:[%s2414_s1 + $0xb0] sm:$0xff]  ;;  %351 = vperm.xlu1 %1876, %v333_v14  }
  0x52   : > { %1358 = vmatmul.mubr.bf16.vlgmr.msra.gmra.mrb[0].mxu0 %v1603_v6  ;;  %1253 = vmatpush1.bf16.msra.mxu1 %v1973_v21  ;;  %v1988_v6 = vld [vmem:[%s2140_s25 + $0x320] ss:$8 sps:$4 sm:$0xff]   ;;  %v1620_v36 = vcombine.high %v189_v2, %v193_v3  ;;  %v1619_v48 = vcombine.low %v189_v2, %v193_v3  ;;  %v2029_v21 = vld [vmem:[%s2140_s25 + $0x194] ss:$8 sps:$4 sm:$0xff]  }
  0x53   : > { %1399 = vmatpush1.bf16.msra.mxu0 %v1976_v22  ;;  %1254 = vmatprep.subr.bf16.mxu1 %v1981_v23  ;;  %v2032_v22 = vld [vmem:[%s2140_s25 + $0x394] ss:$8 sps:$4 sm:$0xff]   ;;  %v2027_v23 = vld [vmem:[%s2140_s25 + $0x190] ss:$8 sps:$4 sm:$0xff]  }
  0x54   : > { %1400 = vmatprep.subr.bf16.mxu0 %v1984_v24  ;;  %1221 = vmatprep.mubr.bf16.mxu1 %v1608_v25  ;;  %v2030_v24 = vld [vmem:[%s2140_s25 + $0x390] ss:$8 sps:$4 sm:$0xff]   ;;  %v336_v25 = vld [vmem:[%s2415_s2 + $0x28] sm:$0xff]  ;;  %v2041_v2 = vld [vmem:[%s2140_s25 + $0x1b4] ss:$8 sps:$4 sm:$0xff]  }
  0x55   : > { %1367 = vmatprep.mubr.bf16.mxu0 %v1612_v26  ;;  %346 = vperm.xlu0 %1875, %v332_v19   ;;  %v335_v26 = vld [vmem:[%s2415_s2 + $0x20] sm:$0xff]  ;;  %v2044_v3 = vld [vmem:[%s2140_s25 + $0x3b4] ss:$8 sps:$4 sm:$0xff]  }
  0x56   : > { %1255 = vmatpush1.bf16.msra.mxu1 %v1979_v27  ;;  %356 = vperm.xlu1 %1876, %v334_v20   ;;  %v2035_v27 = vld [vmem:[%s2140_s25 + $0x1a4] ss:$8 sps:$4 sm:$0xff]  }
  0x57   : > { %1401 = vmatpush1.bf16.msra.mxu0 %v1982_v28  ;;  %1256 = vmatprep.subr.bf16.mxu1 %v1987_v29  ;;  %v2038_v28 = vld [vmem:[%s2140_s25 + $0x3a4] ss:$8 sps:$4 sm:$0xff]   ;;  %v2033_v29 = vld [vmem:[%s2140_s25 + $0x1a0] ss:$8 sps:$4 sm:$0xff]  }
  0x58   : > { %1402 = vmatprep.subr.bf16.mxu0 %v1990_v30  ;;  %v2036_v30 = vld [vmem:[%s2140_s25 + $0x3a0] ss:$8 sps:$4 sm:$0xff]  }
  0x59   : > { %1222 = vmatmul.mubr.bf16.gmra.mrb[4].mxu1 %v1607_v31  ;;  %361 = vperm.xlu0 %1875, %v335_v26   ;;  %v2047_v31 = vld [vmem:[%s2140_s25 + $0x1c4] ss:$8 sps:$4 sm:$0xff]  }
  0x5a   : > { %1368 = vmatmul.mubr.bf16.gmra.mrb[4].mxu0 %v1611_v32  ;;  %1257 = vmatpush1.bf16.msra.mxu1 %v1985_v5  ;;  %v2039_v5 = vld [vmem:[%s2140_s25 + $0x1b0] ss:$8 sps:$4 sm:$0xff]   ;;  %v2050_v32 = vld [vmem:[%s2140_s25 + $0x3c4] ss:$8 sps:$4 sm:$0xff]  }
  0x5b   : > { %1403 = vmatpush1.bf16.msra.mxu0 %v1988_v6  ;;  %1258 = vmatprep.subr.bf16.mxu1 %v1993_v33  ;;  %v2042_v6 = vld [vmem:[%s2140_s25 + $0x3b0] ss:$8 sps:$4 sm:$0xff]   ;;  %v2045_v33 = vld [vmem:[%s2140_s25 + $0x1c0] ss:$8 sps:$4 sm:$0xff]  }
  0x5c   : > { %1404 = vmatprep.subr.bf16.mxu0 %v1996_v34  ;;  %1231 = vmatprep.mubr.bf16.mxu1 %v1616_v35  ;;  %v2048_v34 = vld [vmem:[%s2140_s25 + $0x3c0] ss:$8 sps:$4 sm:$0xff]   ;;  %v2053_v35 = vld [vmem:[%s2140_s25 + $0x1d4] ss:$8 sps:$4 sm:$0xff]  }
  0x5d   : > { %1377 = vmatprep.mubr.bf16.mxu0 %v1620_v36  ;;  %366 = vperm.xlu1 %1876, %v336_v25   ;;  %v2056_v36 = vld [vmem:[%s2140_s25 + $0x3d4] ss:$8 sps:$4 sm:$0xff]  }
  0x5e   : > { %1259 = vmatpush1.bf16.msra.mxu1 %v1991_v37  ;;  %371 = vperm.xlu0 %1875, %v337_v1   ;;  %v2051_v37 = vld [vmem:[%s2140_s25 + $0x1d0] ss:$8 sps:$4 sm:$0xff]  }
  0x5f   : > { %1405 = vmatpush1.bf16.msra.mxu0 %v1994_v38  ;;  %1260 = vmatprep.subr.bf16.mxu1 %v1999_v39  ;;  %v2054_v38 = vld [vmem:[%s2140_s25 + $0x3d0] ss:$8 sps:$4 sm:$0xff]   ;;  %v2059_v39 = vld [vmem:[%s2140_s25 + $0x1e4] ss:$8 sps:$4 sm:$0xff]  }
  0x60   : > { %1406 = vmatprep.subr.bf16.mxu0 %v2002_v40  ;;  %v2062_v40 = vld [vmem:[%s2140_s25 + $0x3e4] ss:$8 sps:$4 sm:$0xff]  }
  0x61   : > { %1232 = vmatmul.mubr.bf16.gmra.mrb[8].mxu1 %v1615_v47  ;;  %376 = vperm.xlu1 %1876, %v338_v0   ;;  %v180_v47 = vld [vmem:[%s2414_s1 + $0x48] sm:$0xff] }
  0x62   : > { %1378 = vmatmul.mubr.bf16.gmra.mrb[8].mxu0 %v1619_v48  ;;  %1261 = vmatpush1.bf16.msra.mxu1 %v1997_v45  ;;  %v2063_v45 = vld [vmem:[%s2140_s25 + $0x1f0] ss:$8 sps:$4 sm:$0xff]   ;;  %v184_v48 = vld [vmem:[%s2414_s1 + $0x68] sm:$0xff] }
  0x63   : > { %1407 = vmatpush1.bf16.msra.mxu0 %v2000_v46  ;;  %1262 = vmatprep.subr.bf16.mxu1 %v2005_v49  ;;  %v2066_v46 = vld [vmem:[%s2140_s25 + $0x3f0] ss:$8 sps:$4 sm:$0xff]  }
  0x64   : > { %1408 = vmatprep.subr.bf16.mxu0 %v2008_v50  ;;  %1241 = vmatprep.mubr.bf16.mxu1 %v1624_v51  ;;  %v182_v49 = vld [vmem:[%s2414_s1 + $0x58] sm:$0xff]  ;;  %v1601_v51 = vcombine.low %v2277_v57, %v2282_v60 }
  0x65   : > { %1387 = vmatprep.mubr.bf16.mxu0 %v1628_v52  ;;  %v186_v50 = vld [vmem:[%s2414_s1 + $0x78] sm:$0xff]  ;;  %v1605_v52 = vcombine.low %v2287_v61, %v2292_v62 }
  0x66   : > { %1263 = vmatpush1.bf16.msra.mxu1 %v2003_v53  ;;  %v1610_v53 = vcombine.high %v180_v47, %v184_v48  ;;  %v190_v57 = vld [vmem:[%s2414_s1 + $0x98] sm:$0xff]  ;;  %v1613_v60 = vcombine.low %v182_v49, %v186_v50 }
  0x67   : > { %1409 = vmatpush1.bf16.msra.mxu0 %v2006_v54  ;;  %1264 = vmatprep.subr.bf16.mxu1 %v2011_v55  ;;  %v1614_v54 = vcombine.high %v182_v49, %v186_v50  ;;  %v188_v55 = vld [vmem:[%s2414_s1 + $0x88] sm:$0xff] }
  0x68   : > { %1410 = vmatprep.subr.bf16.mxu0 %v2014_v56  ;;  %v192_v56 = vld [vmem:[%s2414_s1 + $0xa8] sm:$0xff] }
  0x69   : > { %1242 = vmatmul.mubr.bf16.gmra.mrb[12].mxu1 %v1623_v58  ;;  %v194_v58 = vld [vmem:[%s2414_s1 + $0xb8] sm:$0xff]  ;;  %v1618_v61 = vcombine.high %v188_v55, %v192_v56 }
  0x6a   : > { %1388 = vmatmul.mubr.bf16.gmra.mrb[12].mxu0 %v1627_v59  ;;  %1265 = vmatpush1.bf16.msra.mxu1 %v2009_v63  ;;  %v1609_v59 = vcombine.low %v180_v47, %v184_v48  ;;  %v1622_v62 = vcombine.high %v190_v57, %v194_v58  ;;  %v196_v63 = vld [vmem:[%s2414_s1 + $0xc8] sm:$0xff] }
  0x6b   : > { %1411 = vmatpush1.bf16.msra.mxu0 %v2012_v4  ;;  %1266 = vmatprep.subr.bf16.mxu1 %v2017_v7  ;;  %v200_v4 = vld [vmem:[%s2414_s1 + $0xe8] sm:$0xff]  ;;  %v198_v7 = vld [vmem:[%s2414_s1 + $0xd8] sm:$0xff] }
  0x6c   : > { %1412 = vmatprep.subr.bf16.mxu0 %v2020_v8  ;;  %1284 = vmatprep.mubr.bf16.mxu1 %v1602_v9  ;;  %v202_v8 = vld [vmem:[%s2414_s1 + $0xf8] sm:$0xff]  ;;  %v1617_v9 = vcombine.low %v188_v55, %v192_v56  ;;  %v1625_v13 = vcombine.low %v196_v63, %v200_v4 }
  0x6d   : > { %1430 = vmatprep.mubr.bf16.mxu0 %v1606_v10  ;;  %v1621_v10 = vcombine.low %v190_v57, %v194_v58  ;;  %v1629_v14 = vcombine.low %v198_v7, %v202_v8 }
  0x6e   : > { %1267 = vmatpush1.bf16.msra.mxu1 %v2015_v11  ;;  %v1626_v11 = vcombine.high %v196_v63, %v200_v4 }
  0x6f   : > { %1413 = vmatpush1.bf16.msra.mxu0 %v2018_v12  ;;  %1268 = vmatprep.subr.bf16.mxu1 %v2023_v15  ;;  %v1630_v12 = vcombine.high %v198_v7, %v202_v8 }
  0x70   : > { %1414 = vmatprep.subr.bf16.mxu0 %v2026_v16 }
  0x72   : > { %1269 = vmatpush1.bf16.msra.mxu1 %v2021_v17 }
  0x73   : > { %1415 = vmatpush1.bf16.msra.mxu0 %v2024_v18  ;;  %1270 = vmatprep.subr.bf16.mxu1 %v2029_v21 }
  0x74   : > { %1416 = vmatprep.subr.bf16.mxu0 %v2032_v22 }
  0x76   : > { %1271 = vmatpush1.bf16.msra.mxu1 %v2027_v23 }
  0x77   : > { %1417 = vmatpush1.bf16.msra.mxu0 %v2030_v24  ;;  %1272 = vmatprep.subr.bf16.mxu1 %v2035_v27 }
  0x78   : > { %1418 = vmatprep.subr.bf16.mxu0 %v2038_v28 }
  0x7a   : > { %1273 = vmatpush1.bf16.msra.mxu1 %v2033_v29 }
  0x7b   : > { %1419 = vmatpush1.bf16.msra.mxu0 %v2036_v30  ;;  %1274 = vmatprep.subr.bf16.mxu1 %v2041_v2 }
  0x7c   : > { %1420 = vmatprep.subr.bf16.mxu0 %v2044_v3 }
  0x7e   : > { %1275 = vmatpush1.bf16.msra.mxu1 %v2039_v5 }
  0x7f   : > { %1421 = vmatpush1.bf16.msra.mxu0 %v2042_v6  ;;  %1276 = vmatprep.subr.bf16.mxu1 %v2047_v31 }
  0x80   : > { %1422 = vmatprep.subr.bf16.mxu0 %v2050_v32 }
  0x82   : > { %1277 = vmatpush1.bf16.msra.mxu1 %v2045_v33 }
  0x83   : > { %1423 = vmatpush1.bf16.msra.mxu0 %v2048_v34  ;;  %1278 = vmatprep.subr.bf16.mxu1 %v2053_v35 }
  0x84   : > { %1424 = vmatprep.subr.bf16.mxu0 %v2056_v36 }
  0x86   : > { %1279 = vmatpush1.bf16.msra.mxu1 %v2051_v37 }
  0x87   : > { %1425 = vmatpush1.bf16.msra.mxu0 %v2054_v38  ;;  %1280 = vmatprep.subr.bf16.mxu1 %v2059_v39 }
  0x88   : > { %1426 = vmatprep.subr.bf16.mxu0 %v2062_v40 }
  0x8a   : > { %1281 = vmatpush1.bf16.msra.mxu1 %v2057_v41 }
  0x8b   : > { %1427 = vmatpush1.bf16.msra.mxu0 %v2060_v42  ;;  %1282 = vmatprep.subr.bf16.mxu1 %v2065_v43 }
  0x8c   : > { %1428 = vmatprep.subr.bf16.mxu0 %v2068_v44 }
  0x8e   : > { %1283 = vmatpush1.bf16.msra.mxu1 %v2063_v45 }
  0x8f   : > { %1429 = vmatpush1.bf16.msra.mxu0 %v2066_v46 }
  0x91   : > { %1285 = vmatmul.mubr.bf16.vlgmr.msra.gmra.mrb[0].mxu1 %v1601_v51 }
  0x92   : > { %1431 = vmatmul.mubr.bf16.vlgmr.msra.gmra.mrb[0].mxu0 %v1605_v52  ;;  %1294 = vmatprep.mubr.bf16.mxu1 %v1610_v53 }
  0x93   : > { %1440 = vmatprep.mubr.bf16.mxu0 %v1614_v54 }
  0x99   : > { %1295 = vmatmul.mubr.bf16.gmra.mrb[4].mxu1 %v1609_v59 }
  0x9a   : > { %1441 = vmatmul.mubr.bf16.gmra.mrb[4].mxu0 %v1613_v60  ;;  %1304 = vmatprep.mubr.bf16.mxu1 %v1618_v61 }
  0x9b   : > { %1450 = vmatprep.mubr.bf16.mxu0 %v1622_v62 }
  0xa1   : > { %1305 = vmatmul.mubr.bf16.gmra.mrb[8].mxu1 %v1617_v9 }
  0xa2   : > { %1451 = vmatmul.mubr.bf16.gmra.mrb[8].mxu0 %v1621_v10  ;;  %1314 = vmatprep.mubr.bf16.mxu1 %v1626_v11 }
  0xa3   : > { %1460 = vmatprep.mubr.bf16.mxu0 %v1630_v12 }
  0xa9   : > { %1315 = vmatmul.mubr.bf16.gmra.mrb[12].mxu1 %v1625_v13 }
  0xaa   : > { %1461 = vmatmul.mubr.bf16.gmra.mrb[12].mxu0 %v1629_v14 }
  0xcf   : > { %v342_v15 = vpop.permute.xlu0 %341 }
  0xd0   : > { %v352_v17 = vpop.permute.xlu1 %351 }
  0xd4   : > { %v347_v16 = vpop.permute.xlu0 %346 }
  0xd5   : > { %v357_v31 = vpop.permute.xlu1 %356 }
  0xd8   : > { %v362_v56 = vpop.permute.xlu0 %361 }
  0xdc   : > { %v367_v55 = vpop.permute.xlu1 %366 }
 0x164   : > { %v1286_v18 = vpop.f32.mrb[0].mxu1 }
 0x165   : > { %v1432_v19 = vpop.f32.mrb[0].mxu0  ;;  %v1802_v20 = vadd.f32 %v1286_v18, %v342_v15  ;;  %v1288_v21 = vpop.f32.mrb[1].mxu1 }
 0x166   : > { %v1434_v22 = vpop.f32.mrb[1].mxu0  ;;  %v1804_v23 = vadd.f32 %v1288_v21, %v342_v15  ;;  %v1290_v24 = vpop.f32.mrb[2].mxu1 }
 0x167   : > { %v1436_v25 = vpop.f32.mrb[2].mxu0  ;;  %v1803_v26 = vadd.f32 %v1802_v20, %v1432_v19  ;;  %v1806_v27 = vadd.f32 %v1290_v24, %v347_v16  ;;  %v1292_v28 = vpop.f32.mrb[3].mxu1 }
 0x168   : > { %v1438_v29 = vpop.f32.mrb[3].mxu0  ;;  %v1805_v30 = vadd.f32 %v1804_v23, %v1434_v22  ;;  %v1808_v0 = vadd.f32 %v1292_v28, %v347_v16  ;;  %v377_v21 = vpop.permute.xlu1 %376 }
 0x169   : > { %v1471_v1 = vmax.f32 %v1803_v26, 0.0  ;;  %v1807_v2 = vadd.f32 %v1806_v27, %v1436_v25  ;;  %v372_v22 = vpop.permute.xlu0 %371 }
 0x16a   : > { %v1472_v3 = vmax.f32 %v1805_v30, 0.0  ;;  %v1809_v5 = vadd.f32 %v1808_v0, %v1438_v29 }
 0x16b   : > { %v1473_v6 = vmax.f32 %v1807_v2, 0.0 }
 0x16c   : > { %v1487_v32 = vmax.f32 %v1471_v1, %v1472_v3  ;;  %v1474_v33 = vmax.f32 %v1809_v5, 0.0  ;;  %v1296_v34 = vpop.f32.mrb[4].mxu1 }
 0x16d   : > { %v1442_v35 = vpop.f32.mrb[4].mxu0  ;;  %v1810_v36 = vadd.f32 %v1296_v34, %v352_v17  ;;  %v1298_v37 = vpop.f32.mrb[5].mxu1 }
 0x16e   : > { %v1444_v38 = vpop.f32.mrb[5].mxu0  ;;  %v1488_v39 = vmax.f32 %v1473_v6, %v1474_v33  ;;  %v1812_v40 = vadd.f32 %v1298_v37, %v352_v17  ;;  %v1300_v41 = vpop.f32.mrb[6].mxu1 }
 0x16f   : > { %v1446_v42 = vpop.f32.mrb[6].mxu0  ;;  %v1811_v43 = vadd.f32 %v1810_v36, %v1442_v35  ;;  %v1814_v44 = vadd.f32 %v1300_v41, %v357_v31  ;;  %v1302_v45 = vpop.f32.mrb[7].mxu1 }
 0x170   : > { %v1448_v46 = vpop.f32.mrb[7].mxu0  ;;  %v1782_v47 = vpack.c.bf16 %v1488_v39, %v1487_v32  ;;  %v1813_v48 = vadd.f32 %v1812_v40, %v1444_v38  ;;  %v1816_v49 = vadd.f32 %v1302_v45, %v357_v31 }
 0x171   : > { %v1475_v50 = vmax.f32 %v1811_v43, 0.0  ;;  %v1815_v51 = vadd.f32 %v1814_v44, %v1446_v42 }
 0x172   : > { %1783 = vst [vmem:[%s2404_s28] sm:$0xff] %v1782_v47   ;;  %v1476_v52 = vmax.f32 %v1813_v48, 0.0  ;;  %v1817_v53 = vadd.f32 %v1816_v49, %v1448_v46 }
 0x173   : > { %v1477_v54 = vmax.f32 %v1815_v51, 0.0 }
 0x174   : > { %v1489_v57 = vmax.f32 %v1475_v50, %v1476_v52  ;;  %v1478_v58 = vmax.f32 %v1817_v53, 0.0  ;;  %v1306_v59 = vpop.f32.mrb[8].mxu1 }
 0x175   : > { %v1452_v60 = vpop.f32.mrb[8].mxu0  ;;  %v1818_v61 = vadd.f32 %v1306_v59, %v362_v56  ;;  %v1308_v62 = vpop.f32.mrb[9].mxu1 }
 0x176   : > { %v1454_v63 = vpop.f32.mrb[9].mxu0  ;;  %v1490_v4 = vmax.f32 %v1477_v54, %v1478_v58  ;;  %v1820_v7 = vadd.f32 %v1308_v62, %v362_v56  ;;  %v1310_v8 = vpop.f32.mrb[10].mxu1 }
 0x177   : > { %v1456_v9 = vpop.f32.mrb[10].mxu0  ;;  %v1819_v10 = vadd.f32 %v1818_v61, %v1452_v60  ;;  %v1822_v11 = vadd.f32 %v1310_v8, %v367_v55  ;;  %v1312_v12 = vpop.f32.mrb[11].mxu1 }
 0x178   : > { %v1458_v13 = vpop.f32.mrb[11].mxu0  ;;  %v1787_v14 = vpack.c.bf16 %v1490_v4, %v1489_v57  ;;  %v1821_v15 = vadd.f32 %v1820_v7, %v1454_v63  ;;  %v1824_v16 = vadd.f32 %v1312_v12, %v367_v55 }
 0x179   : > { %v1479_v17 = vmax.f32 %v1819_v10, 0.0  ;;  %v1823_v18 = vadd.f32 %v1822_v11, %v1456_v9 }
 0x17a   : > { %1799 = vst [vmem:[%s2404_s28 + $0x8] sm:$0xff] %v1787_v14   ;;  %v1480_v19 = vmax.f32 %v1821_v15, 0.0  ;;  %v1825_v20 = vadd.f32 %v1824_v16, %v1458_v13 }
 0x17b   : > { %v1481_v23 = vmax.f32 %v1823_v18, 0.0 }
 0x17c   : > { %v1491_v24 = vmax.f32 %v1479_v17, %v1480_v19  ;;  %v1482_v25 = vmax.f32 %v1825_v20, 0.0  ;;  %v1316_v26 = vpop.f32.mrb[12].mxu1 }
 0x17d   : > { %v1462_v27 = vpop.f32.mrb[12].mxu0  ;;  %v1826_v28 = vadd.f32 %v1316_v26, %v372_v22  ;;  %v1318_v29 = vpop.f32.mrb[13].mxu1 }
 0x17e   : > { %v1464_v30 = vpop.f32.mrb[13].mxu0  ;;  %v1492_v0 = vmax.f32 %v1481_v23, %v1482_v25  ;;  %v1828_v1 = vadd.f32 %v1318_v29, %v372_v22  ;;  %v1320_v2 = vpop.f32.mrb[14].mxu1 }
 0x17f   : > { %v1466_v3 = vpop.f32.mrb[14].mxu0  ;;  %v1827_v5 = vadd.f32 %v1826_v28, %v1462_v27  ;;  %v1830_v6 = vadd.f32 %v1320_v2, %v377_v21  ;;  %v1322_v31 = vpop.f32.mrb[15].mxu1 }
 0x180   : > { %v1468_v32 = vpop.f32.mrb[15].mxu0  ;;  %v1792_v33 = vpack.c.bf16 %v1492_v0, %v1491_v24  ;;  %v1829_v34 = vadd.f32 %v1828_v1, %v1464_v30  ;;  %v1832_v35 = vadd.f32 %v1322_v31, %v377_v21 }
 0x181   : > { %v1483_v36 = vmax.f32 %v1827_v5, 0.0  ;;  %v1831_v37 = vadd.f32 %v1830_v6, %v1466_v3 }
 0x182   : > { %1800 = vst [vmem:[%s2404_s28 + $0x10] sm:$0xff] %v1792_v33   ;;  %v1484_v38 = vmax.f32 %v1829_v34, 0.0  ;;  %v1833_v39 = vadd.f32 %v1832_v35, %v1468_v32 }
 0x183   : > { %v1485_v40 = vmax.f32 %v1831_v37, 0.0 }
 0x184   : > { %v1493_v41 = vmax.f32 %v1483_v36, %v1484_v38  ;;  %v1486_v42 = vmax.f32 %v1833_v39, 0.0 }
 0x186   : > { %v1494_v43 = vmax.f32 %v1485_v40, %v1486_v42 }
 0x188   : > { %v1797_v44 = vpack.c.bf16 %v1494_v43, %v1493_v41 }
 0x18a   : > { %1801 = vst [vmem:[%s2404_s28 + $0x18] sm:$0xff] %v1797_v44  }
 0x18b PF: > { %s13_s12 = sadd.s32 1, %s2075_s12  }
 0x18c   : > { %p10_p4 = scmp.ge.s32.totalorder %s13_s12, 4  }
 0x18e   :  { %12 = sbr.rel (!%p10_p4) target bundleno = 1 (0x1), region = 62 }

// kernel: base_model_forward.40
= control target key start
LH: loop header
LB: loop body
LE: loop exit
PB: predicated region body
PF: predicated region fallthrough
CT: control target
= control target key end

     0   :  { %s4130_s12 = smov 0   ;;  %s5235_s0 = inlined_call_operand.vmem [shape: bf16[2,2048,128], index: 0, kind: input, shape index: {}]   ;;  %s5236_s1 = inlined_call_operand.vmem [shape: bf16[128,2048], index: 1, kind: input, shape index: {}]   ;;  %s5237_s2 = inlined_call_operand.vmem [shape: f32[128,1], index: 2, kind: input, shape index: {}]   ;;  %s5238_s3 = inlined_call_operand.vmem [shape: f32[2,128,4], index: 3, kind: output, shape index: {}]  }
   0x1 LB: > { %s3181_s13 = sadd.s32 4294967295, %s4107_s12   ;;  %p3185_p0 = scmp.ge.s32.totalorder %s4107_s12, 1  ;;  %s4107_s12 = sphi %s4130_s12, %s13_s12  }
   0x2   : > { %p137_p1 = scmp.lt.s32.totalorder %s4107_s12, 3 }
   0x4   : > { %p138_p2 = pnand %p3185_p0, %p137_p1 }
   0x5   : > { %p161_p3 = scmp.lt.s32.totalorder (!%p138_p2), %s3181_s13, 1  ;;  %v4141_v0 = vld [vmem:[%s5236_s1] sm:$0xff] (!%p138_p2)  ;;  %v4151_v2 = vld [vmem:[%s5236_s1 + $0x8] sm:$0xff] (!%p138_p2)  ;;  %v4109_v5 = vmov (!%p138_p2), 0   ;;  %vm3058_vm10 = vcmask (!%p138_p2), 7168   ;;  %vm3075_vm11 = vcmask (!%p138_p2), 15360  }
   0x6   : > { %141 = sbr.rel (%p138_p2) target bundleno = 736 (0x2e0), region = 32  ;;  %v4146_v1 = vld [vmem:[%s5236_s1 + $0x40] sm:$0xff] (!%p138_p2)  ;;  %v4158_v4 = vld [vmem:[%s5236_s1 + $0x48] sm:$0xff] (!%p138_p2)  ;;  %3971 = vset.pattern.permute.xlu0 (!%p138_p2), %v4109_v5  ;;  %3972 = vset.pattern.permute.xlu1 (!%p138_p2), %v4109_v5  ;;  %vm3092_vm12 = vcmask (!%p138_p2), 23552   ;;  %vm3109_vm13 = vcmask (!%p138_p2), 31744  }
   0x7   : > { %v3191_v3 = vcombine.high (!%p138_p2), %v4141_v0, %v4146_v1  ;;  %v3193_v6 = vcombine.high (!%p138_p2), %v4151_v2, %v4158_v4  ;;  %v188_v36 = vld [vmem:[%s5236_s1 + $0x80] sm:$0xff] (!%p138_p2)  ;;  %v189_v39 = vld [vmem:[%s5236_s1 + $0x88] sm:$0xff] (!%p138_p2)  ;;  %v3190_v43 = vcombine.low (!%p138_p2), %v4141_v0, %v4146_v1  ;;  %v3192_v44 = vcombine.low (!%p138_p2), %v4151_v2, %v4158_v4 }
   0x8   : > { %v196_v37 = vld [vmem:[%s5236_s1 + $0xc0] sm:$0xff] (!%p138_p2)  ;;  %v197_v40 = vld [vmem:[%s5236_s1 + $0xc8] sm:$0xff] (!%p138_p2) }
   0x9   : > { %2092 = vmatprep.mubr.bf16.mxu0 (!%p138_p2), %v3191_v3  ;;  %2189 = vmatprep.mubr.bf16.mxu1 (!%p138_p2), %v3193_v6  ;;  %v3207_v47 = vcombine.high (!%p138_p2), %v188_v36, %v196_v37  ;;  %v3209_v49 = vcombine.high (!%p138_p2), %v189_v39, %v197_v40  ;;  %v204_v51 = vld [vmem:[%s5236_s1 + $0x100] sm:$0xff] (!%p138_p2)  ;;  %v205_v54 = vld [vmem:[%s5236_s1 + $0x108] sm:$0xff] (!%p138_p2)  ;;  %v3206_v58 = vcombine.low (!%p138_p2), %v188_v36, %v196_v37 }
   0xa   : > { %v212_v52 = vld [vmem:[%s5236_s1 + $0x140] sm:$0xff] (!%p138_p2)  ;;  %v213_v55 = vld [vmem:[%s5236_s1 + $0x148] sm:$0xff] (!%p138_p2)  ;;  %v3208_v60 = vcombine.low (!%p138_p2), %v189_v39, %v197_v40 }
   0xb   : > { %v3223_v61 = vcombine.high (!%p138_p2), %v204_v51, %v212_v52  ;;  %v3225_v63 = vcombine.high (!%p138_p2), %v205_v54, %v213_v55  ;;  %v220_v3 = vld [vmem:[%s5236_s1 + $0x180] sm:$0xff] (!%p138_p2)  ;;  %v221_v5 = vld [vmem:[%s5236_s1 + $0x188] sm:$0xff] (!%p138_p2) }
   0xc   : > { %v228_v4 = vld [vmem:[%s5236_s1 + $0x1c0] sm:$0xff] (!%p138_p2)  ;;  %v229_v6 = vld [vmem:[%s5236_s1 + $0x1c8] sm:$0xff] (!%p138_p2) }
   0xd   : > { %s5246_s13 = smov (!%p161_p3, %s3181_s13), 1 }
   0xe   : > { %s3448_s22 = sshll.u32 %s5246_s13, 10  ;;  %s3449_s11 = sshll.u32 %s5246_s13, 7 }
   0xf   : > { %s4168_s25 = scalar_lea.vmem %s5235_s0, %s3448_s22  ;;  %s5151_s16 = scalar_lea.vmem %s5238_s3, %s3449_s11 }
  0x10   : > { %v3973_v7 = vld [vmem:[%s4168_s25 + $0x40] sm:$0xff]   ;;  %v3977_v11 = vld [vmem:[%s4168_s25 + $0x48] sm:$0xff]   ;;  %v3981_v15 = vld [vmem:[%s4168_s25 + $0x50] sm:$0xff]  }
  0x11   : > { %v3974_v8 = vld [vmem:[%s4168_s25 + $0xc0] sm:$0xff]   ;;  %3450 = vmatprep.subr.bf16.mxu0 %v3973_v7  ;;  %v3978_v12 = vld [vmem:[%s4168_s25 + $0xc8] sm:$0xff]   ;;  %v3982_v16 = vld [vmem:[%s4168_s25 + $0xd0] sm:$0xff]  }
  0x12   : > { %v3975_v9 = vld [vmem:[%s4168_s25] sm:$0xff]   ;;  %3514 = vmatprep.subr.bf16.mxu1 %v3974_v8  ;;  %v3979_v13 = vld [vmem:[%s4168_s25 + $0x8] sm:$0xff]   ;;  %v3983_v17 = vld [vmem:[%s4168_s25 + $0x10] sm:$0xff]  }
  0x13   : > { %v3976_v10 = vld [vmem:[%s4168_s25 + $0x80] sm:$0xff]   ;;  %3451 = vmatpush3.bf16.msra.mxu0 %v3975_v9  ;;  %v3980_v14 = vld [vmem:[%s4168_s25 + $0x88] sm:$0xff]   ;;  %v3984_v18 = vld [vmem:[%s4168_s25 + $0x90] sm:$0xff]  }
  0x14   : > { %3515 = vmatpush3.bf16.msra.mxu1 %v3976_v10  ;;  %3452 = vmatprep.subr.bf16.mxu0 %v3977_v11  ;;  %v3985_v19 = vld [vmem:[%s4168_s25 + $0x58] sm:$0xff]   ;;  %v3989_v23 = vld [vmem:[%s4168_s25 + $0x60] sm:$0xff]   ;;  %v3993_v27 = vld [vmem:[%s4168_s25 + $0x68] sm:$0xff]   ;;  %v3222_v10 = vcombine.low %v204_v51, %v212_v52 }
  0x15   : > { %3516 = vmatprep.subr.bf16.mxu1 %v3978_v12  ;;  %v3986_v20 = vld [vmem:[%s4168_s25 + $0xd8] sm:$0xff]   ;;  %v3990_v24 = vld [vmem:[%s4168_s25 + $0xe0] sm:$0xff]   ;;  %v3994_v28 = vld [vmem:[%s4168_s25 + $0xe8] sm:$0xff]   ;;  %v3224_v12 = vcombine.low %v205_v54, %v213_v55 }
  0x16   : > { %v3987_v21 = vld [vmem:[%s4168_s25 + $0x18] sm:$0xff]   ;;  %v3991_v25 = vld [vmem:[%s4168_s25 + $0x20] sm:$0xff]   ;;  %v3995_v29 = vld [vmem:[%s4168_s25 + $0x28] sm:$0xff]  }
  0x17   : > { %3453 = vmatpush3.bf16.msra.mxu0 %v3979_v13  ;;  %v3988_v22 = vld [vmem:[%s4168_s25 + $0x98] sm:$0xff]   ;;  %v3992_v26 = vld [vmem:[%s4168_s25 + $0xa0] sm:$0xff]   ;;  %v3996_v30 = vld [vmem:[%s4168_s25 + $0xa8] sm:$0xff]   ;;  %v3239_v13 = vcombine.high %v220_v3, %v228_v4 }
  0x18   : > { %3517 = vmatpush3.bf16.msra.mxu1 %v3980_v14  ;;  %3454 = vmatprep.subr.bf16.mxu0 %v3981_v15  ;;  %v3997_v31 = vld [vmem:[%s4168_s25 + $0x70] sm:$0xff]   ;;  %v4001_v35 = vld [vmem:[%s4168_s25 + $0x78] sm:$0xff]   ;;  %v4005_v45 = vld [vmem:[%s4168_s25 + $0x140] sm:$0xff]   ;;  %v3241_v14 = vcombine.high %v221_v5, %v229_v6 }
  0x19   : > { %3518 = vmatprep.subr.bf16.mxu1 %v3982_v16  ;;  %v3998_v32 = vld [vmem:[%s4168_s25 + $0xf0] sm:$0xff]   ;;  %v4002_v38 = vld [vmem:[%s4168_s25 + $0xf8] sm:$0xff]   ;;  %v4006_v46 = vld [vmem:[%s4168_s25 + $0x100] sm:$0xff]  }
  0x1a   : > { %v3999_v33 = vld [vmem:[%s4168_s25 + $0x30] sm:$0xff]   ;;  %v4003_v41 = vld [vmem:[%s4168_s25 + $0x38] sm:$0xff]   ;;  %v4007_v48 = vld [vmem:[%s4168_s25 + $0x1c0] sm:$0xff]  }
  0x1b   : > { %3455 = vmatpush3.bf16.msra.mxu0 %v3983_v17  ;;  %v4000_v34 = vld [vmem:[%s4168_s25 + $0xb0] sm:$0xff]   ;;  %v4004_v42 = vld [vmem:[%s4168_s25 + $0xb8] sm:$0xff]   ;;  %v4008_v50 = vld [vmem:[%s4168_s25 + $0x180] sm:$0xff]  }
  0x1c   : > { %3519 = vmatpush3.bf16.msra.mxu1 %v3984_v18  ;;  %3456 = vmatprep.subr.bf16.mxu0 %v3985_v19  ;;  %v4009_v53 = vld [vmem:[%s4168_s25 + $0x148] sm:$0xff]   ;;  %v4013_v62 = vld [vmem:[%s4168_s25 + $0x150] sm:$0xff]   ;;  %v4017_v7 = vld [vmem:[%s4168_s25 + $0x158] sm:$0xff]  }
  0x1d   : > { %3520 = vmatprep.subr.bf16.mxu1 %v3986_v20  ;;  %v4010_v56 = vld [vmem:[%s4168_s25 + $0x108] sm:$0xff]   ;;  %v4014_v0 = vld [vmem:[%s4168_s25 + $0x110] sm:$0xff]   ;;  %v4018_v8 = vld [vmem:[%s4168_s25 + $0x118] sm:$0xff]  }
  0x1e   : > { %v4011_v57 = vld [vmem:[%s4168_s25 + $0x1c8] sm:$0xff]   ;;  %v4015_v1 = vld [vmem:[%s4168_s25 + $0x1d0] sm:$0xff]   ;;  %v4019_v9 = vld [vmem:[%s4168_s25 + $0x1d8] sm:$0xff]  }
  0x1f   : > { %3457 = vmatpush3.bf16.msra.mxu0 %v3987_v21  ;;  %v4012_v59 = vld [vmem:[%s4168_s25 + $0x188] sm:$0xff]   ;;  %v4016_v2 = vld [vmem:[%s4168_s25 + $0x190] sm:$0xff]   ;;  %v4020_v11 = vld [vmem:[%s4168_s25 + $0x198] sm:$0xff]  }
  0x20   : > { %3521 = vmatpush3.bf16.msra.mxu1 %v3988_v22  ;;  %3458 = vmatprep.subr.bf16.mxu0 %v3989_v23  ;;  %v4021_v15 = vld [vmem:[%s4168_s25 + $0x160] sm:$0xff]   ;;  %v237_v21 = vld [vmem:[%s5236_s1 + $0x208] sm:$0xff]  ;;  %v4030_v36 = vld [vmem:[%s4168_s25 + $0x130] sm:$0xff]  }
  0x21   : > { %3522 = vmatprep.subr.bf16.mxu1 %v3990_v24  ;;  %v4022_v16 = vld [vmem:[%s4168_s25 + $0x120] sm:$0xff]   ;;  %v245_v22 = vld [vmem:[%s5236_s1 + $0x248] sm:$0xff]  ;;  %v3238_v24 = vcombine.low %v220_v3, %v228_v4  ;;  %v4031_v37 = vld [vmem:[%s4168_s25 + $0x1f0] sm:$0xff]  }
  0x22   : > { %v4023_v17 = vld [vmem:[%s4168_s25 + $0x1e0] sm:$0xff]   ;;  %v4025_v23 = vld [vmem:[%s4168_s25 + $0x168] sm:$0xff]   ;;  %v4032_v39 = vld [vmem:[%s4168_s25 + $0x1b0] sm:$0xff]   ;;  %v3256_v40 = vcombine.low %v237_v21, %v245_v22 }
  0x23   : > { %3459 = vmatpush3.bf16.msra.mxu0 %v3991_v25  ;;  %v236_v18 = vld [vmem:[%s5236_s1 + $0x200] sm:$0xff]  ;;  %v4026_v25 = vld [vmem:[%s4168_s25 + $0x128] sm:$0xff]   ;;  %v182_v3 = vld [vmem:[%s5236_s1 + $0x50] sm:$0xff] }
  0x24   : > { %3523 = vmatpush3.bf16.msra.mxu1 %v3992_v26  ;;  %3460 = vmatprep.subr.bf16.mxu0 %v3993_v27  ;;  %v4024_v19 = vld [vmem:[%s4168_s25 + $0x1a0] sm:$0xff]   ;;  %v3240_v26 = vcombine.low %v221_v5, %v229_v6  ;;  %v175_v4 = vld [vmem:[%s5236_s1 + $0x18] sm:$0xff] }
  0x25   : > { %3524 = vmatprep.subr.bf16.mxu1 %v3994_v28  ;;  %v244_v20 = vld [vmem:[%s5236_s1 + $0x240] sm:$0xff]  ;;  %v4027_v28 = vld [vmem:[%s4168_s25 + $0x1e8] sm:$0xff]   ;;  %v183_v5 = vld [vmem:[%s5236_s1 + $0x58] sm:$0xff] }
  0x26   : > { %v3255_v27 = vcombine.high %v236_v18, %v244_v20  ;;  %v4037_v51 = vld [vmem:[%s4168_s25 + $0x240] sm:$0xff]  }
  0x27   : > { %3461 = vmatpush3.bf16.msra.mxu0 %v3995_v29  ;;  %v3257_v29 = vcombine.high %v237_v21, %v245_v22  ;;  %v4039_v55 = vld [vmem:[%s4168_s25 + $0x2c0] sm:$0xff]  }
  0x28   : > { %3525 = vmatpush3.bf16.msra.mxu1 %v3996_v30  ;;  %3462 = vmatprep.subr.bf16.mxu0 %v3997_v31  ;;  %v4028_v30 = vld [vmem:[%s4168_s25 + $0x1a8] sm:$0xff]   ;;  %v252_v31 = vld [vmem:[%s5236_s1 + $0x280] sm:$0xff] }
  0x29   : > { %3526 = vmatprep.subr.bf16.mxu1 %v3998_v32  ;;  %v260_v32 = vld [vmem:[%s5236_s1 + $0x2c0] sm:$0xff] }
  0x2a   : > { %v3270_v52 = vcombine.low %v252_v31, %v260_v32  ;;  %v4040_v21 = vld [vmem:[%s4168_s25 + $0x280] sm:$0xff]  }
  0x2b   : > { %3463 = vmatpush3.bf16.msra.mxu0 %v3999_v33  ;;  %v253_v33 = vld [vmem:[%s5236_s1 + $0x288] sm:$0xff] }
  0x2c   : > { %3527 = vmatpush3.bf16.msra.mxu1 %v4000_v34  ;;  %3464 = vmatprep.subr.bf16.mxu0 %v4001_v35  ;;  %v261_v34 = vld [vmem:[%s5236_s1 + $0x2c8] sm:$0xff]  ;;  %v4029_v35 = vld [vmem:[%s4168_s25 + $0x170] sm:$0xff]  }
  0x2d   : > { %3528 = vmatprep.subr.bf16.mxu1 %v4002_v38  ;;  %v3254_v38 = vcombine.low %v236_v18, %v244_v20  ;;  %v3196_v18 = vcombine.low %v175_v4, %v183_v5  ;;  %v560_v20 = vld [vmem:[%s5237_s2 + $0x20] sm:$0xff] }
  0x2f   : > { %3465 = vmatpush3.bf16.msra.mxu0 %v4003_v41  ;;  %v3271_v41 = vcombine.high %v252_v31, %v260_v32  ;;  %v215_v31 = vld [vmem:[%s5236_s1 + $0x158] sm:$0xff]  ;;  %v561_v32 = vld [vmem:[%s5237_s2 + $0x28] sm:$0xff] }
  0x30   : > { %3529 = vmatpush3.bf16.msra.mxu1 %v4004_v42  ;;  %3578 = vmatprep.subr.bf16.mxu0 %v4005_v45  ;;  %v3273_v42 = vcombine.high %v253_v33, %v261_v34  ;;  %v4035_v45 = vld [vmem:[%s4168_s25 + $0x1f8] sm:$0xff]  }
  0x31   : > { %3642 = vmatprep.subr.bf16.mxu1 %v4007_v48  ;;  %v276_v48 = vld [vmem:[%s5236_s1 + $0x340] sm:$0xff] }
  0x32   : > { %2093 = vmatmul.mubr.bf16.vlgmr.msra.gmra.mrb[0].mxu0 %v3190_v43  ;;  %v4033_v43 = vld [vmem:[%s4168_s25 + $0x178] sm:$0xff]  }
  0x33   : > { %2190 = vmatmul.mubr.bf16.vlgmr.msra.gmra.mrb[0].mxu1 %v3192_v44  ;;  %3579 = vmatpush3.bf16.msra.mxu0 %v4006_v46  ;;  %v4034_v44 = vld [vmem:[%s4168_s25 + $0x138] sm:$0xff]   ;;  %v268_v46 = vld [vmem:[%s5236_s1 + $0x300] sm:$0xff] }
  0x34   : > { %2100 = vmatprep.mubr.bf16.mxu0 %v3207_v47  ;;  %3643 = vmatpush3.bf16.msra.mxu1 %v4008_v50  ;;  %v4036_v47 = vld [vmem:[%s4168_s25 + $0x1b8] sm:$0xff]   ;;  %v277_v50 = vld [vmem:[%s5236_s1 + $0x348] sm:$0xff]  ;;  %v3287_v54 = vcombine.high %v268_v46, %v276_v48 }
  0x35   : > { %2197 = vmatprep.mubr.bf16.mxu1 %v3209_v49  ;;  %3580 = vmatprep.subr.bf16.mxu0 %v4009_v53  ;;  %v269_v49 = vld [vmem:[%s5236_s1 + $0x308] sm:$0xff]  ;;  %v3272_v53 = vcombine.low %v253_v33, %v261_v34  ;;  %v4045_v33 = vld [vmem:[%s4168_s25 + $0x250] sm:$0xff]  }
  0x36   : > { %3644 = vmatprep.subr.bf16.mxu1 %v4011_v57  ;;  %v284_v57 = vld [vmem:[%s5236_s1 + $0x380] sm:$0xff]  ;;  %v4047_v34 = vld [vmem:[%s4168_s25 + $0x2d0] sm:$0xff]  }
  0x37   : > { %3581 = vmatpush3.bf16.msra.mxu0 %v4010_v56  ;;  %v3289_v56 = vcombine.high %v269_v49, %v277_v50 }
  0x38   : > { %3645 = vmatpush3.bf16.msra.mxu1 %v4012_v59  ;;  %3582 = vmatprep.subr.bf16.mxu0 %v4013_v62  ;;  %v285_v59 = vld [vmem:[%s5236_s1 + $0x388] sm:$0xff]  ;;  %v3288_v62 = vcombine.low %v269_v49, %v277_v50  ;;  %v231_v49 = vld [vmem:[%s5236_s1 + $0x1d8] sm:$0xff] }
  0x39   : > { %3646 = vmatprep.subr.bf16.mxu1 %v4015_v1  ;;  %v556_v1 = vld [vmem:[%s5237_s2] sm:$0xff]  ;;  %v4050_v50 = vld [vmem:[%s4168_s25 + $0x218] sm:$0xff]  }
  0x3a   : > { %2101 = vmatmul.mubr.bf16.gmra.mrb[4].mxu0 %v3206_v58  ;;  %v292_v58 = vld [vmem:[%s5236_s1 + $0x3c0] sm:$0xff]  ;;  %574 = vperm.xlu0 %3971, %v556_v1   ;;  %v4059_v1 = vld [vmem:[%s4168_s25 + $0x2e8] sm:$0xff]  }
  0x3b   : > { %2198 = vmatmul.mubr.bf16.gmra.mrb[4].mxu1 %v3208_v60  ;;  %2108 = vmatprep.mubr.bf16.mxu0 %v3223_v61  ;;  %v293_v60 = vld [vmem:[%s5236_s1 + $0x3c8] sm:$0xff]  ;;  %v3286_v61 = vcombine.low %v268_v46, %v276_v48  ;;  %v3302_v6 = vcombine.low %v284_v57, %v292_v58  ;;  %v4051_v46 = vld [vmem:[%s4168_s25 + $0x2d8] sm:$0xff]   ;;  %v564_v48 = vld [vmem:[%s5237_s2 + $0x40] sm:$0xff] }
  0x3c   : > { %2205 = vmatprep.mubr.bf16.mxu1 %v3225_v63  ;;  %3583 = vmatpush3.bf16.msra.mxu0 %v4014_v0  ;;  %v3303_v63 = vcombine.high %v284_v57, %v292_v58  ;;  %v3305_v0 = vcombine.high %v285_v59, %v293_v60 }
  0x3d   : > { %3584 = vmatprep.subr.bf16.mxu0 %v4017_v7  ;;  %3647 = vmatpush3.bf16.msra.mxu1 %v4016_v2  ;;  %v174_v2 = vld [vmem:[%s5236_s1 + $0x10] sm:$0xff]  ;;  %v557_v7 = vld [vmem:[%s5237_s2 + $0x8] sm:$0xff] }
  0x3e   : > { %3648 = vmatprep.subr.bf16.mxu1 %v4019_v9  ;;  %v3195_v9 = vcombine.high %v174_v2, %v182_v3  ;;  %579 = vperm.xlu0 %3971, %v557_v7   ;;  %v4061_v7 = vld [vmem:[%s4168_s25 + $0x270] sm:$0xff]  }
  0x40   : > { %3585 = vmatpush3.bf16.msra.mxu0 %v4018_v8  ;;  %v3304_v8 = vcombine.low %v285_v59, %v293_v60  ;;  %v4054_v59 = vld [vmem:[%s4168_s25 + $0x220] sm:$0xff]  }
  0x41   : > { %3649 = vmatpush3.bf16.msra.mxu1 %v4020_v11  ;;  %3586 = vmatprep.subr.bf16.mxu0 %v4021_v15  ;;  %v558_v11 = vld [vmem:[%s5237_s2 + $0x10] sm:$0xff]  ;;  %v191_v15 = vld [vmem:[%s5236_s1 + $0x98] sm:$0xff]  ;;  %v4056_v60 = vld [vmem:[%s4168_s25 + $0x2a0] sm:$0xff]  }
  0x42   : > { %2109 = vmatmul.mubr.bf16.gmra.mrb[8].mxu0 %v3222_v10  ;;  %3650 = vmatprep.subr.bf16.mxu1 %v4023_v17  ;;  %v3197_v10 = vcombine.high %v175_v4, %v183_v5  ;;  %v199_v17 = vld [vmem:[%s5236_s1 + $0xd8] sm:$0xff]  ;;  %v566_v4 = vld [vmem:[%s5237_s2 + $0x50] sm:$0xff]  ;;  %v4060_v5 = vld [vmem:[%s4168_s25 + $0x2a8] sm:$0xff]  }
  0x43   : > { %2206 = vmatmul.mubr.bf16.gmra.mrb[8].mxu1 %v3224_v12  ;;  %2116 = vmatprep.mubr.bf16.mxu0 %v3239_v13  ;;  %v190_v12 = vld [vmem:[%s5236_s1 + $0x90] sm:$0xff] }
  0x44   : > { %2213 = vmatprep.mubr.bf16.mxu1 %v3241_v14  ;;  %3587 = vmatpush3.bf16.msra.mxu0 %v4022_v16  ;;  %v198_v13 = vld [vmem:[%s5236_s1 + $0xd0] sm:$0xff]  ;;  %v559_v14 = vld [vmem:[%s5237_s2 + $0x18] sm:$0xff]  ;;  %v3194_v16 = vcombine.low %v174_v2, %v182_v3 }
  0x45   : > { %3651 = vmatpush3.bf16.msra.mxu1 %v4024_v19  ;;  %3588 = vmatprep.subr.bf16.mxu0 %v4025_v23  ;;  %v4038_v19 = vld [vmem:[%s4168_s25 + $0x200] sm:$0xff]   ;;  %v3211_v22 = vcombine.high %v190_v12, %v198_v13  ;;  %v4041_v23 = vld [vmem:[%s4168_s25 + $0x248] sm:$0xff]   ;;  %v239_v2 = vld [vmem:[%s5236_s1 + $0x218] sm:$0xff] }
  0x46   : > { %3652 = vmatprep.subr.bf16.mxu1 %v4027_v28  ;;  %584 = vperm.xlu1 %3972, %v558_v11   ;;  %v206_v28 = vld [vmem:[%s5236_s1 + $0x110] sm:$0xff]  ;;  %v247_v3 = vld [vmem:[%s5236_s1 + $0x258] sm:$0xff] }
  0x47   : > { %594 = vperm.xlu0 %3971, %v560_v20   ;;  %v255_v20 = vld [vmem:[%s5236_s1 + $0x298] sm:$0xff] }
  0x48   : > { %3589 = vmatpush3.bf16.msra.mxu0 %v4026_v25  ;;  %v4042_v25 = vld [vmem:[%s4168_s25 + $0x208] sm:$0xff]  }
  0x49   : > { %3653 = vmatpush3.bf16.msra.mxu1 %v4028_v30  ;;  %3590 = vmatprep.subr.bf16.mxu0 %v4029_v35  ;;  %v4378_v30 = vld [vmem:[%s5236_s1 + $0x118] sm:$0xff]  ;;  %v562_v35 = vld [vmem:[%s5237_s2 + $0x30] sm:$0xff] }
  0x4a   : > { %2117 = vmatmul.mubr.bf16.gmra.mrb[12].mxu0 %v3238_v24  ;;  %3654 = vmatprep.subr.bf16.mxu1 %v4031_v37  ;;  %v3213_v24 = vcombine.high %v191_v15, %v199_v17  ;;  %v3212_v37 = vcombine.low %v191_v15, %v199_v17  ;;  %v4065_v15 = vld [vmem:[%s4168_s25 + $0x278] sm:$0xff]   ;;  %v262_v17 = vld [vmem:[%s5236_s1 + $0x2d0] sm:$0xff] }
  0x4b   : > { %2214 = vmatmul.mubr.bf16.gmra.mrb[12].mxu1 %v3240_v26  ;;  %2124 = vmatprep.mubr.bf16.mxu0 %v3255_v27  ;;  %v4043_v26 = vld [vmem:[%s4168_s25 + $0x2c8] sm:$0xff]  }
  0x4c   : > { %2221 = vmatprep.mubr.bf16.mxu1 %v3257_v29  ;;  %3591 = vmatpush3.bf16.msra.mxu0 %v4030_v36  ;;  %v4044_v27 = vld [vmem:[%s4168_s25 + $0x288] sm:$0xff]   ;;  %v214_v29 = vld [vmem:[%s5236_s1 + $0x150] sm:$0xff]  ;;  %v3210_v36 = vcombine.low %v190_v12, %v198_v13  ;;  %v3261_v12 = vcombine.high %v239_v2, %v247_v3 }
  0x4d   : > { %3655 = vmatpush3.bf16.msra.mxu1 %v4032_v39  ;;  %3592 = vmatprep.subr.bf16.mxu0 %v4033_v43  ;;  %v4046_v39 = vld [vmem:[%s4168_s25 + $0x210] sm:$0xff]   ;;  %v4049_v43 = vld [vmem:[%s4168_s25 + $0x258] sm:$0xff]  }
  0x4e   : > { %3656 = vmatprep.subr.bf16.mxu1 %v4035_v45  ;;  %589 = vperm.xlu1 %3972, %v559_v14   ;;  %v230_v45 = vld [vmem:[%s5236_s1 + $0x1d0] sm:$0xff] }
  0x4f   : > { %604 = vperm.xlu0 %3971, %v562_v35   ;;  %v4062_v13 = vld [vmem:[%s4168_s25 + $0x230] sm:$0xff]   ;;  %v271_v35 = vld [vmem:[%s5236_s1 + $0x318] sm:$0xff] }
  0x50   : > { %3593 = vmatpush3.bf16.msra.mxu0 %v4034_v44  ;;  %v4401_v44 = vld [vmem:[%s5236_s1 + $0x190] sm:$0xff] }
  0x51   : > { %3657 = vmatpush3.bf16.msra.mxu1 %v4036_v47  ;;  %3706 = vmatprep.subr.bf16.mxu0 %v4037_v51  ;;  %v4410_v47 = vld [vmem:[%s5236_s1 + $0x198] sm:$0xff]  ;;  %v3243_v57 = vcombine.high %v4401_v44, %v230_v45  ;;  %v4064_v14 = vld [vmem:[%s4168_s25 + $0x2b0] sm:$0xff]  }
  0x52   : > { %2125 = vmatmul.mubr.bf16.gmra.mrb[16].mxu0 %v3254_v38  ;;  %3770 = vmatprep.subr.bf16.mxu1 %v4039_v55  ;;  %v3227_v38 = vcombine.high %v206_v28, %v214_v29  ;;  %v4052_v51 = vld [vmem:[%s4168_s25 + $0x298] sm:$0xff]   ;;  %v565_v55 = vld [vmem:[%s5237_s2 + $0x48] sm:$0xff]  ;;  %v3245_v58 = vcombine.high %v4410_v47, %v231_v49 }
  0x53   : > { %2222 = vmatmul.mubr.bf16.gmra.mrb[16].mxu1 %v3256_v40  ;;  %2132 = vmatprep.mubr.bf16.mxu0 %v3271_v41  ;;  %v3229_v40 = vcombine.high %v4378_v30, %v215_v31  ;;  %v4048_v41 = vld [vmem:[%s4168_s25 + $0x290] sm:$0xff]  }
  0x54   : > { %2229 = vmatprep.mubr.bf16.mxu1 %v3273_v42  ;;  %599 = vperm.xlu1 %3972, %v561_v32   ;;  %v563_v42 = vld [vmem:[%s5237_s2 + $0x38] sm:$0xff] }
  0x55   : > { %614 = vperm.xlu0 %3971, %v564_v48   ;;  %v571_v32 = vld [vmem:[%s5237_s2 + $0x78] sm:$0xff] }
  0x58   : > { %609 = vperm.xlu1 %3972, %v563_v42   ;;  %v294_v42 = vld [vmem:[%s5236_s1 + $0x3d0] sm:$0xff] }
  0x59   : > { %624 = vperm.xlu0 %3971, %v566_v4   ;;  %v4075_v4 = vld [vmem:[%s4168_s25 + $0x3c8] sm:$0xff]  }
  0x5a   : > { %2133 = vmatmul.mubr.bf16.gmra.mrb[20].mxu0 %v3270_v52  ;;  %v4053_v52 = vld [vmem:[%s4168_s25 + $0x260] sm:$0xff]  }
  0x5b   : > { %2230 = vmatmul.mubr.bf16.gmra.mrb[20].mxu1 %v3272_v53  ;;  %2140 = vmatprep.mubr.bf16.mxu0 %v3287_v54  ;;  %v3226_v53 = vcombine.low %v206_v28, %v214_v29  ;;  %v4055_v54 = vld [vmem:[%s4168_s25 + $0x2e0] sm:$0xff]   ;;  %v3260_v28 = vcombine.low %v239_v2, %v247_v3  ;;  %v4073_v3 = vld [vmem:[%s4168_s25 + $0x348] sm:$0xff]  }
  0x5c   : > { %2237 = vmatprep.mubr.bf16.mxu1 %v3289_v56  ;;  %v3228_v56 = vcombine.low %v4378_v30, %v215_v31  ;;  %619 = vperm.xlu1 %3972, %v565_v55   ;;  %v570_v31 = vld [vmem:[%s5237_s2 + $0x70] sm:$0xff] }
  0x62   : > { %2141 = vmatmul.mubr.bf16.gmra.mrb[24].mxu0 %v3286_v61  ;;  %v4057_v61 = vld [vmem:[%s4168_s25 + $0x268] sm:$0xff]  }
  0x63   : > { %2238 = vmatmul.mubr.bf16.gmra.mrb[24].mxu1 %v3288_v62  ;;  %2148 = vmatprep.mubr.bf16.mxu0 %v3303_v63  ;;  %v238_v62 = vld [vmem:[%s5236_s1 + $0x210] sm:$0xff] }
  0x64   : > { %2245 = vmatprep.mubr.bf16.mxu1 %v3305_v0  ;;  %v246_v63 = vld [vmem:[%s5236_s1 + $0x250] sm:$0xff]  ;;  %v4058_v0 = vld [vmem:[%s4168_s25 + $0x228] sm:$0xff]  }
  0x65   : > { %v3259_v11 = vcombine.high %v238_v62, %v246_v63 }
  0x6a   : > { %2149 = vmatmul.mubr.bf16.gmra.mrb[28].mxu0 %v3302_v6  ;;  %v567_v6 = vld [vmem:[%s5237_s2 + $0x58] sm:$0xff] }
  0x6b   : > { %2246 = vmatmul.mubr.bf16.gmra.mrb[28].mxu1 %v3304_v8  ;;  %2286 = vmatprep.mubr.bf16.mxu0 %v3195_v9  ;;  %v3242_v8 = vcombine.low %v4401_v44, %v230_v45  ;;  %v4063_v9 = vld [vmem:[%s4168_s25 + $0x2f0] sm:$0xff]   ;;  %v295_v44 = vld [vmem:[%s5236_s1 + $0x3d8] sm:$0xff] }
  0x6c   : > { %2383 = vmatprep.mubr.bf16.mxu1 %v3197_v10  ;;  %v3244_v10 = vcombine.low %v4410_v47, %v231_v49  ;;  %629 = vperm.xlu1 %3972, %v567_v6   ;;  %v176_v49 = vld [vmem:[%s5236_s1 + $0x20] sm:$0xff]  ;;  %v4076_v6 = vld [vmem:[%s4168_s25 + $0x388] sm:$0xff]  }
  0x72   : > { %2287 = vmatmul.mubr.bf16.vlgmr.msra.gmra.mrb[32].mxu0 %v3194_v16  ;;  %v254_v16 = vld [vmem:[%s5236_s1 + $0x290] sm:$0xff] }
  0x73   : > { %2384 = vmatmul.mubr.bf16.vlgmr.msra.gmra.mrb[32].mxu1 %v3196_v18  ;;  %3707 = vmatpush3.bf16.msra.mxu0 %v4038_v19  ;;  %v4066_v18 = vld [vmem:[%s4168_s25 + $0x238] sm:$0xff]   ;;  %v3275_v29 = vcombine.high %v254_v16, %v262_v17 }
  0x74   : > { %3771 = vmatpush3.bf16.msra.mxu1 %v4040_v21  ;;  %2294 = vmatprep.mubr.bf16.mxu0 %v3211_v22  ;;  %v4067_v19 = vld [vmem:[%s4168_s25 + $0x2f8] sm:$0xff]   ;;  %v568_v22 = vld [vmem:[%s5237_s2 + $0x60] sm:$0xff] }
  0x75   : > { %2391 = vmatprep.mubr.bf16.mxu1 %v3213_v24  ;;  %3708 = vmatprep.subr.bf16.mxu0 %v4041_v23  ;;  %v263_v21 = vld [vmem:[%s5236_s1 + $0x2d8] sm:$0xff]  ;;  %v569_v23 = vld [vmem:[%s5237_s2 + $0x68] sm:$0xff] }
  0x76   : > { %3772 = vmatprep.subr.bf16.mxu1 %v4043_v26  ;;  %v4068_v24 = vld [vmem:[%s4168_s25 + $0x2b8] sm:$0xff]   ;;  %v3258_v26 = vcombine.low %v238_v62, %v246_v63  ;;  %634 = vperm.xlu0 %3971, %v568_v22   ;;  %v3277_v30 = vcombine.high %v255_v20, %v263_v21  ;;  %v4070_v63 = vld [vmem:[%s4168_s25 + $0x300] sm:$0xff]  }
  0x77   : > { %3709 = vmatpush3.bf16.msra.mxu0 %v4042_v25  ;;  %v4069_v25 = vld [vmem:[%s4168_s25 + $0x340] sm:$0xff]   ;;  %639 = vperm.xlu1 %3972, %v569_v23   ;;  %v225_v23 = vld [vmem:[%s5236_s1 + $0x1a8] sm:$0xff] }
  0x78   : > { %3773 = vmatpush3.bf16.msra.mxu1 %v4044_v27  ;;  %3710 = vmatprep.subr.bf16.mxu0 %v4045_v33  ;;  %v4071_v27 = vld [vmem:[%s4168_s25 + $0x3c0] sm:$0xff]   ;;  %v270_v33 = vld [vmem:[%s5236_s1 + $0x310] sm:$0xff] }
  0x79   : > { %3774 = vmatprep.subr.bf16.mxu1 %v4047_v34  ;;  %v278_v34 = vld [vmem:[%s5236_s1 + $0x350] sm:$0xff]  ;;  %v232_v22 = vld [vmem:[%s5236_s1 + $0x1e0] sm:$0xff] }
  0x7a   : > { %2295 = vmatmul.mubr.bf16.gmra.mrb[36].mxu0 %v3210_v36  ;;  %644 = vperm.xlu0 %3971, %v570_v31   ;;  %v279_v36 = vld [vmem:[%s5236_s1 + $0x358] sm:$0xff]  ;;  %v3290_v45 = vcombine.low %v270_v33, %v278_v34 }
  0x7b   : > { %2392 = vmatmul.mubr.bf16.gmra.mrb[36].mxu1 %v3212_v37  ;;  %2302 = vmatprep.mubr.bf16.mxu0 %v3227_v38  ;;  %v3274_v37 = vcombine.low %v254_v16, %v262_v17  ;;  %v3276_v38 = vcombine.low %v255_v20, %v263_v21  ;;  %v4078_v17 = vld [vmem:[%s4168_s25 + $0x310] sm:$0xff]   ;;  %v4083_v20 = vld [vmem:[%s4168_s25 + $0x3d8] sm:$0xff]   ;;  %v224_v21 = vld [vmem:[%s5236_s1 + $0x1a0] sm:$0xff] }
  0x7c   : > { %2399 = vmatprep.mubr.bf16.mxu1 %v3229_v40  ;;  %3711 = vmatpush3.bf16.msra.mxu0 %v4046_v39  ;;  %v3291_v39 = vcombine.high %v270_v33, %v278_v34  ;;  %v3293_v40 = vcombine.high %v271_v35, %v279_v36  ;;  %v3247_v31 = vcombine.high %v224_v21, %v232_v22  ;;  %v4086_v33 = vld [vmem:[%s4168_s25 + $0x320] sm:$0xff]  }
  0x7d   : > { %3775 = vmatpush3.bf16.msra.mxu1 %v4048_v41  ;;  %3712 = vmatprep.subr.bf16.mxu0 %v4049_v43  ;;  %v286_v41 = vld [vmem:[%s5236_s1 + $0x390] sm:$0xff]  ;;  %v287_v43 = vld [vmem:[%s5236_s1 + $0x398] sm:$0xff]  ;;  %v4088_v34 = vld [vmem:[%s4168_s25 + $0x3a0] sm:$0xff]  }
  0x7e   : > { %3776 = vmatprep.subr.bf16.mxu1 %v4051_v46  ;;  %649 = vperm.xlu1 %3972, %v571_v32   ;;  %v3292_v46 = vcombine.low %v271_v35, %v279_v36  ;;  %v3307_v47 = vcombine.high %v286_v41, %v294_v42  ;;  %v3309_v48 = vcombine.high %v287_v43, %v295_v44  ;;  %v4089_v35 = vld [vmem:[%s4168_s25 + $0x368] sm:$0xff]  }
  0x7f   : > { %v4091_v36 = vld [vmem:[%s4168_s25 + $0x3e8] sm:$0xff]  }
  0x80   : > { %3713 = vmatpush3.bf16.msra.mxu0 %v4050_v50  ;;  %v184_v50 = vld [vmem:[%s5236_s1 + $0x60] sm:$0xff] }
  0x81   : > { %3777 = vmatpush3.bf16.msra.mxu1 %v4052_v51  ;;  %3714 = vmatprep.subr.bf16.mxu0 %v4053_v52  ;;  %v177_v51 = vld [vmem:[%s5236_s1 + $0x28] sm:$0xff]  ;;  %v3199_v55 = vcombine.high %v176_v49, %v184_v50 }
  0x82   : > { %2303 = vmatmul.mubr.bf16.gmra.mrb[40].mxu0 %v3226_v53  ;;  %3778 = vmatprep.subr.bf16.mxu1 %v4055_v54  ;;  %v185_v52 = vld [vmem:[%s5236_s1 + $0x68] sm:$0xff]  ;;  %v3306_v53 = vcombine.low %v286_v41, %v294_v42  ;;  %v3308_v54 = vcombine.low %v287_v43, %v295_v44  ;;  %v4093_v43 = vld [vmem:[%s4168_s25 + $0x370] sm:$0xff]   ;;  %v3246_v44 = vcombine.low %v224_v21, %v232_v22 }
  0x83   : > { %2400 = vmatmul.mubr.bf16.gmra.mrb[40].mxu1 %v3228_v56  ;;  %2310 = vmatprep.mubr.bf16.mxu0 %v3243_v57  ;;  %v3201_v56 = vcombine.high %v177_v51, %v185_v52  ;;  %v192_v57 = vld [vmem:[%s5236_s1 + $0xa0] sm:$0xff]  ;;  %v3200_v62 = vcombine.low %v177_v51, %v185_v52  ;;  %v249_v41 = vld [vmem:[%s5236_s1 + $0x268] sm:$0xff]  ;;  %v4097_v51 = vld [vmem:[%s4168_s25 + $0x378] sm:$0xff]  }
  0x84   : > { %2407 = vmatprep.mubr.bf16.mxu1 %v3245_v58  ;;  %3715 = vmatpush3.bf16.msra.mxu0 %v4054_v59  ;;  %v200_v58 = vld [vmem:[%s5236_s1 + $0xe0] sm:$0xff]  ;;  %v3198_v59 = vcombine.low %v176_v49, %v184_v50  ;;  %v4092_v42 = vld [vmem:[%s4168_s25 + $0x3a8] sm:$0xff]   ;;  %v4094_v49 = vld [vmem:[%s4168_s25 + $0x330] sm:$0xff]  }
  0x85   : > { %3779 = vmatpush3.bf16.msra.mxu1 %v4056_v60  ;;  %3716 = vmatprep.subr.bf16.mxu0 %v4057_v61  ;;  %v193_v60 = vld [vmem:[%s5236_s1 + $0xa8] sm:$0xff]  ;;  %v4096_v50 = vld [vmem:[%s4168_s25 + $0x3b0] sm:$0xff]   ;;  %v4099_v52 = vld [vmem:[%s4168_s25 + $0x3f8] sm:$0xff]  }
  0x86   : > { %3780 = vmatprep.subr.bf16.mxu1 %v4059_v1  ;;  %v201_v61 = vld [vmem:[%s5236_s1 + $0xe8] sm:$0xff]  ;;  %v3215_v1 = vcombine.high %v192_v57, %v200_v58 }
  0x87   : > { %v3217_v2 = vcombine.high %v193_v60, %v201_v61 }
  0x88   : > { %3717 = vmatpush3.bf16.msra.mxu0 %v4058_v0  ;;  %v4072_v0 = vld [vmem:[%s4168_s25 + $0x380] sm:$0xff]  }
  0x89   : > { %3781 = vmatpush3.bf16.msra.mxu1 %v4060_v5  ;;  %3718 = vmatprep.subr.bf16.mxu0 %v4061_v7  ;;  %v4074_v5 = vld [vmem:[%s4168_s25 + $0x308] sm:$0xff]   ;;  %v208_v7 = vld [vmem:[%s5236_s1 + $0x120] sm:$0xff] }
  0x8a   : > { %2311 = vmatmul.mubr.bf16.gmra.mrb[44].mxu0 %v3242_v8  ;;  %3782 = vmatprep.subr.bf16.mxu1 %v4063_v9  ;;  %v216_v8 = vld [vmem:[%s5236_s1 + $0x160] sm:$0xff]  ;;  %v4077_v9 = vld [vmem:[%s4168_s25 + $0x350] sm:$0xff]  }
  0x8b   : > { %2408 = vmatmul.mubr.bf16.gmra.mrb[44].mxu1 %v3244_v10  ;;  %2318 = vmatprep.mubr.bf16.mxu0 %v3259_v11  ;;  %v209_v10 = vld [vmem:[%s5236_s1 + $0x128] sm:$0xff] }
  0x8c   : > { %2415 = vmatprep.mubr.bf16.mxu1 %v3261_v12  ;;  %3719 = vmatpush3.bf16.msra.mxu0 %v4062_v13  ;;  %v217_v11 = vld [vmem:[%s5236_s1 + $0x168] sm:$0xff]  ;;  %v4079_v12 = vld [vmem:[%s4168_s25 + $0x3d0] sm:$0xff]   ;;  %v3214_v13 = vcombine.low %v192_v57, %v200_v58  ;;  %v4100_v58 = vld [vmem:[%s4168_s25 + $0x3b8] sm:$0xff]  }
  0x8d   : > { %3783 = vmatpush3.bf16.msra.mxu1 %v4064_v14  ;;  %3720 = vmatprep.subr.bf16.mxu0 %v4065_v15  ;;  %v3216_v14 = vcombine.low %v193_v60, %v201_v61  ;;  %v3231_v15 = vcombine.high %v208_v7, %v216_v8  ;;  %v3233_v16 = vcombine.high %v209_v10, %v217_v11  ;;  %v265_v57 = vld [vmem:[%s5236_s1 + $0x2e8] sm:$0xff] }
  0x8e   : > { %3784 = vmatprep.subr.bf16.mxu1 %v4067_v19  ;;  %v4081_v19 = vld [vmem:[%s4168_s25 + $0x358] sm:$0xff]  }
  0x90   : > { %3721 = vmatpush3.bf16.msra.mxu0 %v4066_v18  ;;  %v4080_v18 = vld [vmem:[%s4168_s25 + $0x390] sm:$0xff]  }
  0x91   : > { %3785 = vmatpush3.bf16.msra.mxu1 %v4068_v24  ;;  %3834 = vmatprep.subr.bf16.mxu0 %v4069_v25  ;;  %v4082_v24 = vld [vmem:[%s4168_s25 + $0x318] sm:$0xff]   ;;  %v233_v25 = vld [vmem:[%s5236_s1 + $0x1e8] sm:$0xff] }
  0x92   : > { %2319 = vmatmul.mubr.bf16.gmra.mrb[48].mxu0 %v3258_v26  ;;  %3898 = vmatprep.subr.bf16.mxu1 %v4071_v27  ;;  %v4084_v26 = vld [vmem:[%s4168_s25 + $0x398] sm:$0xff]   ;;  %v4085_v27 = vld [vmem:[%s4168_s25 + $0x360] sm:$0xff]   ;;  %v3249_v32 = vcombine.high %v225_v23, %v233_v25 }
  0x93   : > { %2416 = vmatmul.mubr.bf16.gmra.mrb[48].mxu1 %v3260_v28  ;;  %2326 = vmatprep.mubr.bf16.mxu0 %v3275_v29  ;;  %v3230_v28 = vcombine.low %v208_v7, %v216_v8  ;;  %v4087_v29 = vld [vmem:[%s4168_s25 + $0x3e0] sm:$0xff]  }
  0x94   : > { %2423 = vmatprep.mubr.bf16.mxu1 %v3277_v30  ;;  %v3232_v30 = vcombine.low %v209_v10, %v217_v11  ;;  %v288_v7 = vld [vmem:[%s5236_s1 + $0x3a0] sm:$0xff]  ;;  %v297_v10 = vld [vmem:[%s5236_s1 + $0x3e8] sm:$0xff] }
  0x95   : > { %v296_v8 = vld [vmem:[%s5236_s1 + $0x3e0] sm:$0xff] }
  0x9a   : > { %2327 = vmatmul.mubr.bf16.gmra.mrb[52].mxu0 %v3274_v37  ;;  %v240_v37 = vld [vmem:[%s5236_s1 + $0x220] sm:$0xff] }
  0x9b   : > { %2424 = vmatmul.mubr.bf16.gmra.mrb[52].mxu1 %v3276_v38  ;;  %2334 = vmatprep.mubr.bf16.mxu0 %v3291_v39  ;;  %v248_v38 = vld [vmem:[%s5236_s1 + $0x260] sm:$0xff]  ;;  %v241_v39 = vld [vmem:[%s5236_s1 + $0x228] sm:$0xff] }
  0x9c   : > { %2431 = vmatprep.mubr.bf16.mxu1 %v3293_v40  ;;  %v4090_v40 = vld [vmem:[%s4168_s25 + $0x328] sm:$0xff]   ;;  %v3264_v60 = vcombine.low %v241_v39, %v249_v41 }
  0xa2   : > { %2335 = vmatmul.mubr.bf16.gmra.mrb[56].mxu0 %v3290_v45  ;;  %v4095_v45 = vld [vmem:[%s4168_s25 + $0x3f0] sm:$0xff]  }
  0xa3   : > { %2432 = vmatmul.mubr.bf16.gmra.mrb[56].mxu1 %v3292_v46  ;;  %2342 = vmatprep.mubr.bf16.mxu0 %v3307_v47  ;;  %v3248_v46 = vcombine.low %v225_v23, %v233_v25  ;;  %v3263_v47 = vcombine.high %v240_v37, %v248_v38  ;;  %v194_v23 = vld [vmem:[%s5236_s1 + $0xb0] sm:$0xff]  ;;  %v195_v25 = vld [vmem:[%s5236_s1 + $0xb8] sm:$0xff] }
  0xa4   : > { %2439 = vmatprep.mubr.bf16.mxu1 %v3309_v48  ;;  %v3265_v48 = vcombine.high %v241_v39, %v249_v41  ;;  %v226_v39 = vld [vmem:[%s5236_s1 + $0x1b0] sm:$0xff]  ;;  %v227_v41 = vld [vmem:[%s5236_s1 + $0x1b8] sm:$0xff] }
  0xaa   : > { %2343 = vmatmul.mubr.bf16.gmra.mrb[60].mxu0 %v3306_v53  ;;  %v256_v53 = vld [vmem:[%s5236_s1 + $0x2a0] sm:$0xff] }
  0xab   : > { %2440 = vmatmul.mubr.bf16.gmra.mrb[60].mxu1 %v3308_v54  ;;  %2480 = vmatprep.mubr.bf16.mxu0 %v3199_v55  ;;  %v264_v54 = vld [vmem:[%s5236_s1 + $0x2e0] sm:$0xff]  ;;  %v4098_v55 = vld [vmem:[%s4168_s25 + $0x338] sm:$0xff]  }
  0xac   : > { %2577 = vmatprep.mubr.bf16.mxu1 %v3201_v56  ;;  %v257_v56 = vld [vmem:[%s5236_s1 + $0x2a8] sm:$0xff]  ;;  %v3279_v61 = vcombine.high %v256_v53, %v264_v54 }
  0xb2   : > { %2481 = vmatmul.mubr.bf16.vlgmr.msra.gmra.mrb[64].mxu0 %v3198_v59  ;;  %v3262_v59 = vcombine.low %v240_v37, %v248_v38 }
  0xb3   : > { %2578 = vmatmul.mubr.bf16.vlgmr.msra.gmra.mrb[64].mxu1 %v3200_v62  ;;  %3835 = vmatpush3.bf16.msra.mxu0 %v4070_v63  ;;  %v3281_v62 = vcombine.high %v257_v56, %v265_v57  ;;  %v272_v63 = vld [vmem:[%s5236_s1 + $0x320] sm:$0xff] }
  0xb4   : > { %3899 = vmatpush3.bf16.msra.mxu1 %v4072_v0  ;;  %2488 = vmatprep.mubr.bf16.mxu0 %v3215_v1  ;;  %v280_v0 = vld [vmem:[%s5236_s1 + $0x360] sm:$0xff]  ;;  %v273_v1 = vld [vmem:[%s5236_s1 + $0x328] sm:$0xff] }
  0xb5   : > { %2585 = vmatprep.mubr.bf16.mxu1 %v3217_v2  ;;  %3836 = vmatprep.subr.bf16.mxu0 %v4073_v3  ;;  %v281_v2 = vld [vmem:[%s5236_s1 + $0x368] sm:$0xff]  ;;  %v3278_v3 = vcombine.low %v256_v53, %v264_v54  ;;  %v3294_v11 = vcombine.low %v272_v63, %v280_v0  ;;  %v243_v53 = vld [vmem:[%s5236_s1 + $0x238] sm:$0xff] }
  0xb6   : > { %3900 = vmatprep.subr.bf16.mxu1 %v4075_v4  ;;  %v3280_v4 = vcombine.low %v257_v56, %v265_v57  ;;  %v251_v54 = vld [vmem:[%s5236_s1 + $0x278] sm:$0xff] }
  0xb7   : > { %3837 = vmatpush3.bf16.msra.mxu0 %v4074_v5  ;;  %v3295_v5 = vcombine.high %v272_v63, %v280_v0 }
  0xb8   : > { %3901 = vmatpush3.bf16.msra.mxu1 %v4076_v6  ;;  %3838 = vmatprep.subr.bf16.mxu0 %v4077_v9  ;;  %v3297_v6 = vcombine.high %v273_v1, %v281_v2  ;;  %v289_v9 = vld [vmem:[%s5236_s1 + $0x3a8] sm:$0xff] }
  0xb9   : > { %3902 = vmatprep.subr.bf16.mxu1 %v4079_v12  ;;  %v3296_v12 = vcombine.low %v273_v1, %v281_v2  ;;  %v3269_v2 = vcombine.high %v243_v53, %v251_v54 }
  0xba   : > { %2489 = vmatmul.mubr.bf16.gmra.mrb[68].mxu0 %v3214_v13  ;;  %v3311_v13 = vcombine.high %v288_v7, %v296_v8 }
  0xbb   : > { %2586 = vmatmul.mubr.bf16.gmra.mrb[68].mxu1 %v3216_v14  ;;  %2496 = vmatprep.mubr.bf16.mxu0 %v3231_v15  ;;  %v3313_v14 = vcombine.high %v289_v9, %v297_v10  ;;  %v178_v15 = vld [vmem:[%s5236_s1 + $0x30] sm:$0xff] }
  0xbc   : > { %2593 = vmatprep.mubr.bf16.mxu1 %v3233_v16  ;;  %3839 = vmatpush3.bf16.msra.mxu0 %v4078_v17  ;;  %v186_v16 = vld [vmem:[%s5236_s1 + $0x70] sm:$0xff]  ;;  %v179_v17 = vld [vmem:[%s5236_s1 + $0x38] sm:$0xff] }
  0xbd   : > { %3903 = vmatpush3.bf16.msra.mxu1 %v4080_v18  ;;  %3840 = vmatprep.subr.bf16.mxu0 %v4081_v19  ;;  %v187_v18 = vld [vmem:[%s5236_s1 + $0x78] sm:$0xff]  ;;  %v3310_v19 = vcombine.low %v288_v7, %v296_v8  ;;  %v3203_v21 = vcombine.high %v178_v15, %v186_v16 }
  0xbe   : > { %3904 = vmatprep.subr.bf16.mxu1 %v4083_v20  ;;  %v3312_v20 = vcombine.low %v289_v9, %v297_v10  ;;  %v3205_v22 = vcombine.high %v179_v17, %v187_v18  ;;  %v258_v9 = vld [vmem:[%s5236_s1 + $0x2b0] sm:$0xff] }
  0xbf   : > { %v266_v10 = vld [vmem:[%s5236_s1 + $0x2f0] sm:$0xff] }
  0xc0   : > { %3841 = vmatpush3.bf16.msra.mxu0 %v4082_v24  ;;  %v202_v24 = vld [vmem:[%s5236_s1 + $0xf0] sm:$0xff] }
  0xc1   : > { %3905 = vmatpush3.bf16.msra.mxu1 %v4084_v26  ;;  %3842 = vmatprep.subr.bf16.mxu0 %v4085_v27  ;;  %v203_v26 = vld [vmem:[%s5236_s1 + $0xf8] sm:$0xff]  ;;  %v3202_v27 = vcombine.low %v178_v15, %v186_v16 }
  0xc2   : > { %2497 = vmatmul.mubr.bf16.gmra.mrb[72].mxu0 %v3230_v28  ;;  %3906 = vmatprep.subr.bf16.mxu1 %v4087_v29  ;;  %v3204_v28 = vcombine.low %v179_v17, %v187_v18  ;;  %v3219_v29 = vcombine.high %v194_v23, %v202_v24  ;;  %v267_v15 = vld [vmem:[%s5236_s1 + $0x2f8] sm:$0xff] }
  0xc3   : > { %2594 = vmatmul.mubr.bf16.gmra.mrb[72].mxu1 %v3232_v30  ;;  %2504 = vmatprep.mubr.bf16.mxu0 %v3247_v31  ;;  %v3221_v30 = vcombine.high %v195_v25, %v203_v26  ;;  %v210_v31 = vld [vmem:[%s5236_s1 + $0x130] sm:$0xff] }
  0xc4   : > { %2601 = vmatprep.mubr.bf16.mxu1 %v3249_v32  ;;  %3843 = vmatpush3.bf16.msra.mxu0 %v4086_v33  ;;  %v218_v32 = vld [vmem:[%s5236_s1 + $0x170] sm:$0xff]  ;;  %v211_v33 = vld [vmem:[%s5236_s1 + $0x138] sm:$0xff] }
  0xc5   : > { %3907 = vmatpush3.bf16.msra.mxu1 %v4088_v34  ;;  %3844 = vmatprep.subr.bf16.mxu0 %v4089_v35  ;;  %v219_v34 = vld [vmem:[%s5236_s1 + $0x178] sm:$0xff]  ;;  %v3218_v35 = vcombine.low %v194_v23, %v202_v24  ;;  %v3235_v37 = vcombine.high %v210_v31, %v218_v32  ;;  %v3283_v23 = vcombine.high %v258_v9, %v266_v10 }
  0xc6   : > { %3908 = vmatprep.subr.bf16.mxu1 %v4091_v36  ;;  %v3220_v36 = vcombine.low %v195_v25, %v203_v26  ;;  %v3237_v38 = vcombine.high %v211_v33, %v219_v34 }
  0xc8   : > { %3845 = vmatpush3.bf16.msra.mxu0 %v4090_v40  ;;  %v234_v40 = vld [vmem:[%s5236_s1 + $0x1f0] sm:$0xff] }
  0xc9   : > { %3909 = vmatpush3.bf16.msra.mxu1 %v4092_v42  ;;  %3846 = vmatprep.subr.bf16.mxu0 %v4093_v43  ;;  %v235_v42 = vld [vmem:[%s5236_s1 + $0x1f8] sm:$0xff]  ;;  %v3234_v43 = vcombine.low %v210_v31, %v218_v32  ;;  %v3250_v57 = vcombine.low %v226_v39, %v234_v40 }
  0xca   : > { %2505 = vmatmul.mubr.bf16.gmra.mrb[76].mxu0 %v3246_v44  ;;  %3910 = vmatprep.subr.bf16.mxu1 %v4095_v45  ;;  %v575_v44 = vpop.permute.xlu0 %574  ;;  %v3236_v45 = vcombine.low %v211_v33, %v219_v34 }
  0xcb   : > { %2602 = vmatmul.mubr.bf16.gmra.mrb[76].mxu1 %v3248_v46  ;;  %2512 = vmatprep.mubr.bf16.mxu0 %v3263_v47  ;;  %v3251_v46 = vcombine.high %v226_v39, %v234_v40  ;;  %v3253_v47 = vcombine.high %v227_v41, %v235_v42  ;;  %v275_v40 = vld [vmem:[%s5236_s1 + $0x338] sm:$0xff] }
  0xcc   : > { %2609 = vmatprep.mubr.bf16.mxu1 %v3265_v48  ;;  %3847 = vmatpush3.bf16.msra.mxu0 %v4094_v49  ;;  %v242_v49 = vld [vmem:[%s5236_s1 + $0x230] sm:$0xff] }
  0xcd   : > { %3911 = vmatpush3.bf16.msra.mxu1 %v4096_v50  ;;  %3848 = vmatprep.subr.bf16.mxu0 %v4097_v51  ;;  %v250_v50 = vld [vmem:[%s5236_s1 + $0x270] sm:$0xff] }
  0xce   : > { %3912 = vmatprep.subr.bf16.mxu1 %v4099_v52  ;;  %v580_v48 = vpop.permute.xlu0 %579  ;;  %v585_v52 = vpop.permute.xlu1 %584  ;;  %v3266_v18 = vcombine.low %v242_v49, %v250_v50 }
  0xd0   : > { %3849 = vmatpush3.bf16.msra.mxu0 %v4098_v55 }
  0xd1   : > { %3913 = vmatpush3.bf16.msra.mxu1 %v4100_v58 }
  0xd2   : > { %2513 = vmatmul.mubr.bf16.gmra.mrb[80].mxu0 %v3262_v59  ;;  %v595_v34 = vpop.permute.xlu0 %594 }
  0xd3   : > { %2610 = vmatmul.mubr.bf16.gmra.mrb[80].mxu1 %v3264_v60  ;;  %2520 = vmatprep.mubr.bf16.mxu0 %v3279_v61  ;;  %v3252_v61 = vcombine.low %v227_v41, %v235_v42  ;;  %v283_v41 = vld [vmem:[%s5236_s1 + $0x378] sm:$0xff] }
  0xd4   : > { %2617 = vmatprep.mubr.bf16.mxu1 %v3281_v62  ;;  %v3267_v62 = vcombine.high %v242_v49, %v250_v50 }
  0xda   : > { %2521 = vmatmul.mubr.bf16.gmra.mrb[84].mxu0 %v3278_v3 }
  0xdb   : > { %2618 = vmatmul.mubr.bf16.gmra.mrb[84].mxu1 %v3280_v4  ;;  %2528 = vmatprep.mubr.bf16.mxu0 %v3295_v5 }
  0xdc   : > { %2625 = vmatprep.mubr.bf16.mxu1 %v3297_v6 }
  0xe2   : > { %2529 = vmatmul.mubr.bf16.gmra.mrb[88].mxu0 %v3294_v11 }
  0xe3   : > { %2626 = vmatmul.mubr.bf16.gmra.mrb[88].mxu1 %v3296_v12  ;;  %2536 = vmatprep.mubr.bf16.mxu0 %v3311_v13  ;;  %v590_v13 = vpop.permute.xlu1 %589 }
  0xe4   : > { %2633 = vmatprep.mubr.bf16.mxu1 %v3313_v14  ;;  %v259_v14 = vld [vmem:[%s5236_s1 + $0x2b8] sm:$0xff] }
  0xe7   : > { %v600_v39 = vpop.permute.xlu1 %599 }
  0xea   : > { %2537 = vmatmul.mubr.bf16.gmra.mrb[92].mxu0 %v3310_v19 }
  0xeb   : > { %2634 = vmatmul.mubr.bf16.gmra.mrb[92].mxu1 %v3312_v20  ;;  %2674 = vmatprep.mubr.bf16.mxu0 %v3203_v21 }
  0xec   : > { %2771 = vmatprep.mubr.bf16.mxu1 %v3205_v22  ;;  %v3268_v22 = vcombine.low %v243_v53, %v251_v54  ;;  %v3301_v53 = vcombine.high %v275_v40, %v283_v41 }
  0xf2   : > { %2675 = vmatmul.mubr.bf16.vlgmr.msra.gmra.mrb[96].mxu0 %v3202_v27  ;;  %v3285_v27 = vcombine.high %v259_v14, %v267_v15 }
  0xf3   : > { %2772 = vmatmul.mubr.bf16.vlgmr.msra.gmra.mrb[96].mxu1 %v3204_v28  ;;  %2682 = vmatprep.mubr.bf16.mxu0 %v3219_v29 }
  0xf4   : > { %2779 = vmatprep.mubr.bf16.mxu1 %v3221_v30 }
  0xfa   : > { %2683 = vmatmul.mubr.bf16.gmra.mrb[100].mxu0 %v3218_v35  ;;  %v274_v35 = vld [vmem:[%s5236_s1 + $0x330] sm:$0xff] }
  0xfb   : > { %2780 = vmatmul.mubr.bf16.gmra.mrb[100].mxu1 %v3220_v36  ;;  %2690 = vmatprep.mubr.bf16.mxu0 %v3235_v37  ;;  %v282_v36 = vld [vmem:[%s5236_s1 + $0x370] sm:$0xff] }
  0xfc   : > { %2787 = vmatprep.mubr.bf16.mxu1 %v3237_v38  ;;  %v3299_v49 = vcombine.high %v274_v35, %v282_v36 }
 0x102   : > { %2691 = vmatmul.mubr.bf16.gmra.mrb[104].mxu0 %v3234_v43 }
 0x103   : > { %2788 = vmatmul.mubr.bf16.gmra.mrb[104].mxu1 %v3236_v45  ;;  %2698 = vmatprep.mubr.bf16.mxu0 %v3251_v46 }
 0x104   : > { %2795 = vmatprep.mubr.bf16.mxu1 %v3253_v47 }
 0x105   : > { %v3466_v51 = vpop.f32.mrb[0].mxu0 }
 0x106   : > { %v3530_v55 = vpop.f32.mrb[0].mxu1  ;;  %v3467_v56 = vpop.f32.mrb[1].mxu0 }
 0x107   : > { %v3468_v58 = vadd.f32 %v3467_v56, %v3466_v51  ;;  %v3531_v59 = vpop.f32.mrb[1].mxu1  ;;  %v3469_v60 = vpop.f32.mrb[2].mxu0 }
 0x108   : > { %v3532_v63 = vadd.f32 %v3531_v59, %v3530_v55  ;;  %v3533_v0 = vpop.f32.mrb[2].mxu1  ;;  %v3470_v1 = vpop.f32.mrb[3].mxu0 }
 0x109   : > { %v2095_v3 = vadd.f32 %v3468_v58, %v575_v44  ;;  %v3471_v4 = vadd.f32 %v3470_v1, %v3469_v60  ;;  %v3534_v5 = vpop.f32.mrb[3].mxu1  ;;  %v3282_v44 = vcombine.low %v258_v9, %v266_v10  ;;  %v605_v60 = vpop.permute.xlu0 %604 }
 0x10a   : > { %v3535_v6 = vadd.f32 %v3534_v5, %v3533_v0  ;;  %2699 = vmatmul.mubr.bf16.gmra.mrb[108].mxu0 %v3250_v57  ;;  %v610_v1 = vpop.permute.xlu1 %609 }
 0x10b   : > { %v4698_v7 = vadd.f32 %v3532_v63, %v2095_v3  ;;  %v2098_v8 = vadd.f32 %v3471_v4, %v580_v48  ;;  %2796 = vmatmul.mubr.bf16.gmra.mrb[108].mxu1 %v3252_v61  ;;  %2706 = vmatprep.mubr.bf16.mxu0 %v3267_v62  ;;  %v3284_v48 = vcombine.low %v259_v14, %v267_v15  ;;  %v290_v61 = vld [vmem:[%s5236_s1 + $0x3b0] sm:$0xff]  ;;  %v299_v3 = vld [vmem:[%s5236_s1 + $0x3f8] sm:$0xff] }
 0x10c   : > { %2803 = vmatprep.mubr.bf16.mxu1 %v3269_v2  ;;  %v298_v62 = vld [vmem:[%s5236_s1 + $0x3f0] sm:$0xff]  ;;  %v291_v2 = vld [vmem:[%s5236_s1 + $0x3b8] sm:$0xff] }
 0x10d   : > { %v4706_v11 = vadd.f32 %v3535_v6, %v2098_v8  ;;  %v3472_v12 = vpop.f32.mrb[4].mxu0  ;;  %v3298_v6 = vcombine.low %v274_v35, %v282_v36  ;;  %v3316_v35 = vcombine.low %v291_v2, %v299_v3 }
 0x10e   : > { %v3536_v16 = vpop.f32.mrb[4].mxu1  ;;  %v3473_v17 = vpop.f32.mrb[5].mxu0 }
 0x10f   : > { %v3474_v19 = vadd.f32 %v3473_v17, %v3472_v12  ;;  %v3537_v20 = vpop.f32.mrb[5].mxu1  ;;  %v3475_v21 = vpop.f32.mrb[6].mxu0  ;;  %v3300_v12 = vcombine.low %v275_v40, %v283_v41  ;;  %v3317_v17 = vcombine.high %v291_v2, %v299_v3 }
 0x110   : > { %v3538_v24 = vadd.f32 %v3537_v20, %v3536_v16  ;;  %v3539_v25 = vpop.f32.mrb[6].mxu1  ;;  %v3476_v26 = vpop.f32.mrb[7].mxu0 }
 0x111   : > { %v2103_v28 = vadd.f32 %v3474_v19, %v585_v52  ;;  %v3477_v29 = vadd.f32 %v3476_v26, %v3475_v21  ;;  %v3540_v30 = vpop.f32.mrb[7].mxu1 }
 0x112   : > { %v3541_v31 = vadd.f32 %v3540_v30, %v3539_v25  ;;  %2707 = vmatmul.mubr.bf16.gmra.mrb[112].mxu0 %v3266_v18  ;;  %v3314_v30 = vcombine.low %v290_v61, %v298_v62 }
 0x113   : > { %v4714_v32 = vadd.f32 %v3538_v24, %v2103_v28  ;;  %v2106_v33 = vadd.f32 %v3477_v29, %v590_v13  ;;  %2804 = vmatmul.mubr.bf16.gmra.mrb[112].mxu1 %v3268_v22  ;;  %2714 = vmatprep.mubr.bf16.mxu0 %v3283_v23  ;;  %v3315_v13 = vcombine.high %v290_v61, %v298_v62  ;;  %v615_v24 = vpop.permute.xlu0 %614 }
 0x114   : > { %2811 = vmatprep.mubr.bf16.mxu1 %v3285_v27  ;;  %v620_v27 = vpop.permute.xlu1 %619 }
 0x115   : > { %v4722_v37 = vadd.f32 %v3541_v31, %v2106_v33  ;;  %v3478_v38 = vpop.f32.mrb[8].mxu0 }
 0x116   : > { %v3542_v42 = vpop.f32.mrb[8].mxu1  ;;  %v3479_v43 = vpop.f32.mrb[9].mxu0 }
 0x117   : > { %v3480_v45 = vadd.f32 %v3479_v43, %v3478_v38  ;;  %v3543_v46 = vpop.f32.mrb[9].mxu1  ;;  %v3481_v47 = vpop.f32.mrb[10].mxu0 }
 0x118   : > { %v3544_v50 = vadd.f32 %v3543_v46, %v3542_v42  ;;  %v3545_v51 = vpop.f32.mrb[10].mxu1  ;;  %v3482_v52 = vpop.f32.mrb[11].mxu0 }
 0x119   : > { %v2111_v54 = vadd.f32 %v3480_v45, %v595_v34  ;;  %v3483_v55 = vadd.f32 %v3482_v52, %v3481_v47  ;;  %v3546_v56 = vpop.f32.mrb[11].mxu1  ;;  %v625_v46 = vpop.permute.xlu0 %624 }
 0x11a   : > { %v3547_v57 = vadd.f32 %v3546_v56, %v3545_v51  ;;  %2715 = vmatmul.mubr.bf16.gmra.mrb[116].mxu0 %v3282_v44 }
 0x11b   : > { %v4730_v58 = vadd.f32 %v3544_v50, %v2111_v54  ;;  %v2114_v59 = vadd.f32 %v3483_v55, %v600_v39  ;;  %2812 = vmatmul.mubr.bf16.gmra.mrb[116].mxu1 %v3284_v48  ;;  %2722 = vmatprep.mubr.bf16.mxu0 %v3299_v49  ;;  %v630_v49 = vpop.permute.xlu1 %629 }
 0x11c   : > { %2819 = vmatprep.mubr.bf16.mxu1 %v3301_v53 }
 0x11d   : > { %v4738_v63 = vadd.f32 %v3547_v57, %v2114_v59  ;;  %v3484_v0 = vpop.f32.mrb[12].mxu0  ;;  %v635_v2 = vpop.permute.xlu0 %634 }
 0x11e   : > { %v3548_v4 = vpop.f32.mrb[12].mxu1  ;;  %v3485_v5 = vpop.f32.mrb[13].mxu0 }
 0x11f   : > { %v3486_v8 = vadd.f32 %v3485_v5, %v3484_v0  ;;  %v3549_v9 = vpop.f32.mrb[13].mxu1  ;;  %v3487_v10 = vpop.f32.mrb[14].mxu0 }
 0x120   : > { %v3550_v14 = vadd.f32 %v3549_v9, %v3548_v4  ;;  %v3551_v15 = vpop.f32.mrb[14].mxu1  ;;  %v3488_v16 = vpop.f32.mrb[15].mxu0 }
 0x121   : > { %v2119_v18 = vadd.f32 %v3486_v8, %v605_v60  ;;  %v3489_v19 = vadd.f32 %v3488_v16, %v3487_v10  ;;  %v3552_v20 = vpop.f32.mrb[15].mxu1  ;;  %v640_v5 = vpop.permute.xlu1 %639 }
 0x122   : > { %v3553_v21 = vadd.f32 %v3552_v20, %v3551_v15  ;;  %2723 = vmatmul.mubr.bf16.gmra.mrb[120].mxu0 %v3298_v6 }
 0x123   : > { %v4746_v22 = vadd.f32 %v3550_v14, %v2119_v18  ;;  %v2122_v23 = vadd.f32 %v3489_v19, %v610_v1  ;;  %2820 = vmatmul.mubr.bf16.gmra.mrb[120].mxu1 %v3300_v12  ;;  %2730 = vmatprep.mubr.bf16.mxu0 %v3315_v13 }
 0x124   : > { %2827 = vmatprep.mubr.bf16.mxu1 %v3317_v17 }
 0x125   : > { %v4748_v25 = vadd.f32 %v3553_v21, %v2122_v23  ;;  %v3490_v26 = vpop.f32.mrb[16].mxu0  ;;  %v645_v23 = vpop.permute.xlu0 %644 }
 0x126   : > { %v3554_v28 = vpop.f32.mrb[16].mxu1  ;;  %v3491_v29 = vpop.f32.mrb[17].mxu0 }
 0x127   : > { %v3492_v31 = vadd.f32 %v3491_v29, %v3490_v26  ;;  %v3555_v33 = vpop.f32.mrb[17].mxu1  ;;  %v3493_v34 = vpop.f32.mrb[18].mxu0 }
 0x128   : > { %v3556_v36 = vadd.f32 %v3555_v33, %v3554_v28  ;;  %v3557_v38 = vpop.f32.mrb[18].mxu1  ;;  %v3494_v39 = vpop.f32.mrb[19].mxu0 }
 0x129   : > { %v2127_v40 = vadd.f32 %v3492_v31, %v615_v24  ;;  %v3495_v41 = vadd.f32 %v3494_v39, %v3493_v34  ;;  %v3558_v42 = vpop.f32.mrb[19].mxu1 }
 0x12a   : > { %v3559_v43 = vadd.f32 %v3558_v42, %v3557_v38  ;;  %2731 = vmatmul.mubr.bf16.gmra.mrb[124].mxu0 %v3314_v30 }
 0x12b   : > { %v4750_v44 = vadd.f32 %v3556_v36, %v2127_v40  ;;  %v2130_v45 = vadd.f32 %v3495_v41, %v620_v27  ;;  %2828 = vmatmul.mubr.bf16.gmra.mrb[124].mxu1 %v3316_v35  ;;  %v650_v27 = vpop.permute.xlu1 %649 }
 0x12d   : > { %v4752_v47 = vadd.f32 %v3559_v43, %v2130_v45  ;;  %v3496_v48 = vpop.f32.mrb[20].mxu0 }
 0x12e   : > { %v3560_v50 = vpop.f32.mrb[20].mxu1  ;;  %v3497_v51 = vpop.f32.mrb[21].mxu0 }
 0x12f   : > { %v3498_v52 = vadd.f32 %v3497_v51, %v3496_v48  ;;  %v3561_v53 = vpop.f32.mrb[21].mxu1  ;;  %v3499_v54 = vpop.f32.mrb[22].mxu0 }
 0x130   : > { %v3562_v55 = vadd.f32 %v3561_v53, %v3560_v50  ;;  %v3563_v56 = vpop.f32.mrb[22].mxu1  ;;  %v3500_v57 = vpop.f32.mrb[23].mxu0 }
 0x131   : > { %v2135_v59 = vadd.f32 %v3498_v52, %v625_v46  ;;  %v3501_v60 = vadd.f32 %v3500_v57, %v3499_v54  ;;  %v3564_v61 = vpop.f32.mrb[23].mxu1 }
 0x132   : > { %v3565_v62 = vadd.f32 %v3564_v61, %v3563_v56 }
 0x133   : > { %v4754_v0 = vadd.f32 %v3562_v55, %v2135_v59  ;;  %v2138_v1 = vadd.f32 %v3501_v60, %v630_v49 }
 0x135   : > { %v4756_v3 = vadd.f32 %v3565_v62, %v2138_v1  ;;  %v3502_v4 = vpop.f32.mrb[24].mxu0 }
 0x136   : > { %v3566_v6 = vpop.f32.mrb[24].mxu1  ;;  %v3503_v8 = vpop.f32.mrb[25].mxu0 }
 0x137   : > { %v3504_v9 = vadd.f32 %v3503_v8, %v3502_v4  ;;  %v3567_v10 = vpop.f32.mrb[25].mxu1  ;;  %v3505_v12 = vpop.f32.mrb[26].mxu0 }
 0x138   : > { %v3568_v13 = vadd.f32 %v3567_v10, %v3566_v6  ;;  %v3569_v14 = vpop.f32.mrb[26].mxu1  ;;  %v3506_v15 = vpop.f32.mrb[27].mxu0 }
 0x139   : > { %v2143_v16 = vadd.f32 %v3504_v9, %v635_v2  ;;  %v3507_v17 = vadd.f32 %v3506_v15, %v3505_v12  ;;  %v3570_v18 = vpop.f32.mrb[27].mxu1 }
 0x13a   : > { %v3571_v19 = vadd.f32 %v3570_v18, %v3569_v14 }
 0x13b   : > { %v4758_v20 = vadd.f32 %v3568_v13, %v2143_v16  ;;  %v2146_v21 = vadd.f32 %v3507_v17, %v640_v5 }
 0x13d   : > { %v4760_v24 = vadd.f32 %v3571_v19, %v2146_v21  ;;  %v3508_v26 = vpop.f32.mrb[28].mxu0 }
 0x13e   : > { %v3572_v28 = vpop.f32.mrb[28].mxu1  ;;  %v3509_v29 = vpop.f32.mrb[29].mxu0 }
 0x13f   : > { %v3510_v30 = vadd.f32 %v3509_v29, %v3508_v26  ;;  %v3573_v31 = vpop.f32.mrb[29].mxu1  ;;  %v3511_v33 = vpop.f32.mrb[30].mxu0 }
 0x140   : > { %v3574_v34 = vadd.f32 %v3573_v31, %v3572_v28  ;;  %v3575_v35 = vpop.f32.mrb[30].mxu1  ;;  %v3512_v36 = vpop.f32.mrb[31].mxu0 }
 0x141   : > { %v2151_v38 = vadd.f32 %v3510_v30, %v645_v23  ;;  %v3513_v39 = vadd.f32 %v3512_v36, %v3511_v33  ;;  %v3576_v40 = vpop.f32.mrb[31].mxu1 }
 0x142   : > { %v3577_v41 = vadd.f32 %v3576_v40, %v3575_v35 }
 0x143   : > { %v4762_v42 = vadd.f32 %v3574_v34, %v2151_v38  ;;  %v2154_v43 = vadd.f32 %v3513_v39, %v650_v27 }
 0x145   : > { %v4764_v45 = vadd.f32 %v3577_v41, %v2154_v43  ;;  %v3594_v46 = vpop.f32.mrb[32].mxu0 }
 0x146   : > { %v3658_v48 = vpop.f32.mrb[32].mxu1  ;;  %v3595_v49 = vpop.f32.mrb[33].mxu0 }
 0x147   : > { %v3596_v50 = vadd.f32 %v3595_v49, %v3594_v46  ;;  %v3659_v51 = vpop.f32.mrb[33].mxu1  ;;  %v3597_v52 = vpop.f32.mrb[34].mxu0 }
 0x148   : > { %v3660_v53 = vadd.f32 %v3659_v51, %v3658_v48  ;;  %v3661_v54 = vpop.f32.mrb[34].mxu1  ;;  %v3598_v55 = vpop.f32.mrb[35].mxu0 }
 0x149   : > { %v2289_v56 = vadd.f32 %v3596_v50, %v4698_v7  ;;  %v3599_v57 = vadd.f32 %v3598_v55, %v3597_v52  ;;  %v3662_v59 = vpop.f32.mrb[35].mxu1 }
 0x14a   : > { %v3663_v60 = vadd.f32 %v3662_v59, %v3661_v54 }
 0x14b   : > { %v4767_v61 = vadd.f32 %v3660_v53, %v2289_v56  ;;  %v2292_v62 = vadd.f32 %v3599_v57, %v4706_v11 }
 0x14d   : > { %v4770_v1 = vadd.f32 %v3663_v60, %v2292_v62  ;;  %v3600_v2 = vpop.f32.mrb[36].mxu0 }
 0x14e   : > { %v3664_v4 = vpop.f32.mrb[36].mxu1  ;;  %v3601_v5 = vpop.f32.mrb[37].mxu0 }
 0x14f   : > { %v3602_v6 = vadd.f32 %v3601_v5, %v3600_v2  ;;  %v3665_v8 = vpop.f32.mrb[37].mxu1  ;;  %v3603_v9 = vpop.f32.mrb[38].mxu0 }
 0x150   : > { %v3666_v10 = vadd.f32 %v3665_v8, %v3664_v4  ;;  %v3667_v12 = vpop.f32.mrb[38].mxu1  ;;  %v3604_v13 = vpop.f32.mrb[39].mxu0 }
 0x151   : > { %v2297_v7 = vadd.f32 %v3602_v6, %v4714_v32  ;;  %v3605_v14 = vadd.f32 %v3604_v13, %v3603_v9  ;;  %v3668_v15 = vpop.f32.mrb[39].mxu1 }
 0x152   : > { %v3669_v16 = vadd.f32 %v3668_v15, %v3667_v12 }
 0x153   : > { %v4773_v17 = vadd.f32 %v3666_v10, %v2297_v7  ;;  %v2300_v11 = vadd.f32 %v3605_v14, %v4722_v37 }
 0x155   : > { %v4776_v18 = vadd.f32 %v3669_v16, %v2300_v11  ;;  %v3606_v19 = vpop.f32.mrb[40].mxu0 }
 0x156   : > { %v3670_v21 = vpop.f32.mrb[40].mxu1  ;;  %v3607_v23 = vpop.f32.mrb[41].mxu0 }
 0x157   : > { %v3608_v26 = vadd.f32 %v3607_v23, %v3606_v19  ;;  %v3671_v27 = vpop.f32.mrb[41].mxu1  ;;  %v3609_v28 = vpop.f32.mrb[42].mxu0 }
 0x158   : > { %v3672_v29 = vadd.f32 %v3671_v27, %v3670_v21  ;;  %v3673_v30 = vpop.f32.mrb[42].mxu1  ;;  %v3610_v31 = vpop.f32.mrb[43].mxu0 }
 0x159   : > { %v2305_v32 = vadd.f32 %v3608_v26, %v4730_v58  ;;  %v3611_v33 = vadd.f32 %v3610_v31, %v3609_v28  ;;  %v3674_v34 = vpop.f32.mrb[43].mxu1 }
 0x15a   : > { %v3675_v35 = vadd.f32 %v3674_v34, %v3673_v30 }
 0x15b   : > { %v4779_v36 = vadd.f32 %v3672_v29, %v2305_v32  ;;  %v2308_v37 = vadd.f32 %v3611_v33, %v4738_v63 }
 0x15d   : > { %v4782_v38 = vadd.f32 %v3675_v35, %v2308_v37  ;;  %v3612_v39 = vpop.f32.mrb[44].mxu0 }
 0x15e   : > { %v3676_v40 = vpop.f32.mrb[44].mxu1  ;;  %v3613_v41 = vpop.f32.mrb[45].mxu0 }
 0x15f   : > { %v3614_v43 = vadd.f32 %v3613_v41, %v3612_v39  ;;  %v3677_v46 = vpop.f32.mrb[45].mxu1  ;;  %v3615_v48 = vpop.f32.mrb[46].mxu0 }
 0x160   : > { %v3678_v49 = vadd.f32 %v3677_v46, %v3676_v40  ;;  %v3679_v50 = vpop.f32.mrb[46].mxu1  ;;  %v3616_v51 = vpop.f32.mrb[47].mxu0 }
 0x161   : > { %v2313_v58 = vadd.f32 %v3614_v43, %v4746_v22  ;;  %v3617_v52 = vadd.f32 %v3616_v51, %v3615_v48  ;;  %v3680_v53 = vpop.f32.mrb[47].mxu1 }
 0x162   : > { %v3681_v54 = vadd.f32 %v3680_v53, %v3679_v50 }
 0x163   : > { %v4785_v55 = vadd.f32 %v3678_v49, %v2313_v58  ;;  %v2316_v63 = vadd.f32 %v3617_v52, %v4748_v25 }
 0x165   : > { %v4788_v56 = vadd.f32 %v3681_v54, %v2316_v63  ;;  %v3618_v57 = vpop.f32.mrb[48].mxu0 }
 0x166   : > { %v3682_v59 = vpop.f32.mrb[48].mxu1  ;;  %v3619_v60 = vpop.f32.mrb[49].mxu0 }
 0x167   : > { %v3620_v62 = vadd.f32 %v3619_v60, %v3618_v57  ;;  %v3683_v2 = vpop.f32.mrb[49].mxu1  ;;  %v3621_v4 = vpop.f32.mrb[50].mxu0 }
 0x168   : > { %v3684_v5 = vadd.f32 %v3683_v2, %v3682_v59  ;;  %v3685_v6 = vpop.f32.mrb[50].mxu1  ;;  %v3622_v8 = vpop.f32.mrb[51].mxu0 }
 0x169   : > { %v2321_v22 = vadd.f32 %v3620_v62, %v4750_v44  ;;  %v3623_v9 = vadd.f32 %v3622_v8, %v3621_v4  ;;  %v3686_v10 = vpop.f32.mrb[51].mxu1 }
 0x16a   : > { %v3687_v12 = vadd.f32 %v3686_v10, %v3685_v6 }
 0x16b   : > { %v4791_v13 = vadd.f32 %v3684_v5, %v2321_v22  ;;  %v2324_v25 = vadd.f32 %v3623_v9, %v4752_v47 }
 0x16d   : > { %v4794_v7 = vadd.f32 %v3687_v12, %v2324_v25  ;;  %v3624_v14 = vpop.f32.mrb[52].mxu0 }
 0x16e   : > { %v3688_v15 = vpop.f32.mrb[52].mxu1  ;;  %v3625_v16 = vpop.f32.mrb[53].mxu0 }
 0x16f   : > { %v3626_v11 = vadd.f32 %v3625_v16, %v3624_v14  ;;  %v3689_v19 = vpop.f32.mrb[53].mxu1  ;;  %v3627_v21 = vpop.f32.mrb[54].mxu0 }
 0x170   : > { %v3690_v23 = vadd.f32 %v3689_v19, %v3688_v15  ;;  %v3691_v26 = vpop.f32.mrb[54].mxu1  ;;  %v3628_v27 = vpop.f32.mrb[55].mxu0 }
 0x171   : > { %v2329_v44 = vadd.f32 %v3626_v11, %v4754_v0  ;;  %v3629_v28 = vadd.f32 %v3628_v27, %v3627_v21  ;;  %v3692_v29 = vpop.f32.mrb[55].mxu1 }
 0x172   : > { %v3693_v30 = vadd.f32 %v3692_v29, %v3691_v26 }
 0x173   : > { %v4797_v31 = vadd.f32 %v3690_v23, %v2329_v44  ;;  %v2332_v47 = vadd.f32 %v3629_v28, %v4756_v3 }
 0x175   : > { %v4800_v32 = vadd.f32 %v3693_v30, %v2332_v47  ;;  %v3630_v33 = vpop.f32.mrb[56].mxu0 }
 0x176   : > { %v3694_v34 = vpop.f32.mrb[56].mxu1  ;;  %v3631_v35 = vpop.f32.mrb[57].mxu0 }
 0x177   : > { %v3632_v37 = vadd.f32 %v3631_v35, %v3630_v33  ;;  %v3695_v39 = vpop.f32.mrb[57].mxu1  ;;  %v3633_v40 = vpop.f32.mrb[58].mxu0 }
 0x178   : > { %v3696_v41 = vadd.f32 %v3695_v39, %v3694_v34  ;;  %v3697_v43 = vpop.f32.mrb[58].mxu1  ;;  %v3634_v46 = vpop.f32.mrb[59].mxu0 }
 0x179   : > { %v2337_v0 = vadd.f32 %v3632_v37, %v4758_v20  ;;  %v3635_v48 = vadd.f32 %v3634_v46, %v3633_v40  ;;  %v3698_v49 = vpop.f32.mrb[59].mxu1 }
 0x17a   : > { %v3699_v50 = vadd.f32 %v3698_v49, %v3697_v43 }
 0x17b   : > { %v4803_v51 = vadd.f32 %v3696_v41, %v2337_v0  ;;  %v2340_v3 = vadd.f32 %v3635_v48, %v4760_v24 }
 0x17d   : > { %v4806_v58 = vadd.f32 %v3699_v50, %v2340_v3  ;;  %v3636_v52 = vpop.f32.mrb[60].mxu0 }
 0x17e   : > { %v3700_v53 = vpop.f32.mrb[60].mxu1  ;;  %v3637_v54 = vpop.f32.mrb[61].mxu0 }
 0x17f   : > { %v3638_v63 = vadd.f32 %v3637_v54, %v3636_v52  ;;  %v3701_v57 = vpop.f32.mrb[61].mxu1  ;;  %v3639_v59 = vpop.f32.mrb[62].mxu0 }
 0x180   : > { %v3702_v60 = vadd.f32 %v3701_v57, %v3700_v53  ;;  %v3703_v62 = vpop.f32.mrb[62].mxu1  ;;  %v3640_v2 = vpop.f32.mrb[63].mxu0 }
 0x181   : > { %v2345_v20 = vadd.f32 %v3638_v63, %v4762_v42  ;;  %v3641_v4 = vadd.f32 %v3640_v2, %v3639_v59  ;;  %v3704_v5 = vpop.f32.mrb[63].mxu1 }
 0x182   : > { %v3705_v6 = vadd.f32 %v3704_v5, %v3703_v62 }
 0x183   : > { %v4809_v8 = vadd.f32 %v3702_v60, %v2345_v20  ;;  %v2348_v24 = vadd.f32 %v3641_v4, %v4764_v45 }
 0x185   : > { %v4812_v22 = vadd.f32 %v3705_v6, %v2348_v24  ;;  %v3722_v9 = vpop.f32.mrb[64].mxu0 }
 0x186   : > { %v3786_v10 = vpop.f32.mrb[64].mxu1  ;;  %v3723_v12 = vpop.f32.mrb[65].mxu0 }
 0x187   : > { %v3724_v25 = vadd.f32 %v3723_v12, %v3722_v9  ;;  %v3787_v14 = vpop.f32.mrb[65].mxu1  ;;  %v3725_v15 = vpop.f32.mrb[66].mxu0 }
 0x188   : > { %v3788_v16 = vadd.f32 %v3787_v14, %v3786_v10  ;;  %v3789_v11 = vpop.f32.mrb[66].mxu1  ;;  %v3726_v19 = vpop.f32.mrb[67].mxu0 }
 0x189   : > { %v2483_v42 = vadd.f32 %v3724_v25, %v4767_v61  ;;  %v3727_v21 = vadd.f32 %v3726_v19, %v3725_v15  ;;  %v3790_v23 = vpop.f32.mrb[67].mxu1 }
 0x18a   : > { %v3791_v26 = vadd.f32 %v3790_v23, %v3789_v11 }
 0x18b   : > { %v4815_v27 = vadd.f32 %v3788_v16, %v2483_v42  ;;  %v2486_v45 = vadd.f32 %v3727_v21, %v4770_v1 }
 0x18d   : > { %v4818_v44 = vadd.f32 %v3791_v26, %v2486_v45  ;;  %v3728_v28 = vpop.f32.mrb[68].mxu0 }
 0x18e   : > { %v3792_v29 = vpop.f32.mrb[68].mxu1  ;;  %v3729_v30 = vpop.f32.mrb[69].mxu0 }
 0x18f   : > { %v3730_v47 = vadd.f32 %v3729_v30, %v3728_v28  ;;  %v3793_v33 = vpop.f32.mrb[69].mxu1  ;;  %v3731_v34 = vpop.f32.mrb[70].mxu0 }
 0x190   : > { %v3794_v35 = vadd.f32 %v3793_v33, %v3792_v29  ;;  %v3795_v37 = vpop.f32.mrb[70].mxu1  ;;  %v3732_v39 = vpop.f32.mrb[71].mxu0 }
 0x191   : > { %v2491_v61 = vadd.f32 %v3730_v47, %v4773_v17  ;;  %v3733_v40 = vadd.f32 %v3732_v39, %v3731_v34  ;;  %v3796_v41 = vpop.f32.mrb[71].mxu1 }
 0x192   : > { %v3797_v43 = vadd.f32 %v3796_v41, %v3795_v37 }
 0x193   : > { %v4821_v46 = vadd.f32 %v3794_v35, %v2491_v61  ;;  %v2494_v1 = vadd.f32 %v3733_v40, %v4776_v18 }
 0x195   : > { %v4824_v0 = vadd.f32 %v3797_v43, %v2494_v1  ;;  %v3734_v48 = vpop.f32.mrb[72].mxu0 }
 0x196   : > { %v3798_v49 = vpop.f32.mrb[72].mxu1  ;;  %v3735_v50 = vpop.f32.mrb[73].mxu0 }
 0x197   : > { %v3736_v3 = vadd.f32 %v3735_v50, %v3734_v48  ;;  %v3799_v52 = vpop.f32.mrb[73].mxu1  ;;  %v3737_v53 = vpop.f32.mrb[74].mxu0 }
 0x198   : > { %v3800_v54 = vadd.f32 %v3799_v52, %v3798_v49  ;;  %v3801_v63 = vpop.f32.mrb[74].mxu1  ;;  %v3738_v57 = vpop.f32.mrb[75].mxu0 }
 0x199   : > { %v2499_v17 = vadd.f32 %v3736_v3, %v4779_v36  ;;  %v3739_v59 = vadd.f32 %v3738_v57, %v3737_v53  ;;  %v3802_v60 = vpop.f32.mrb[75].mxu1 }
 0x19a   : > { %v3803_v62 = vadd.f32 %v3802_v60, %v3801_v63 }
 0x19b   : > { %v4827_v2 = vadd.f32 %v3800_v54, %v2499_v17  ;;  %v2502_v18 = vadd.f32 %v3739_v59, %v4782_v38 }
 0x19d   : > { %v4830_v20 = vadd.f32 %v3803_v62, %v2502_v18  ;;  %v3740_v4 = vpop.f32.mrb[76].mxu0 }
 0x19e   : > { %v3804_v5 = vpop.f32.mrb[76].mxu1  ;;  %v3741_v6 = vpop.f32.mrb[77].mxu0 }
 0x19f   : > { %v3742_v24 = vadd.f32 %v3741_v6, %v3740_v4  ;;  %v3805_v9 = vpop.f32.mrb[77].mxu1  ;;  %v3743_v10 = vpop.f32.mrb[78].mxu0 }
 0x1a0   : > { %v3806_v12 = vadd.f32 %v3805_v9, %v3804_v5  ;;  %v3807_v25 = vpop.f32.mrb[78].mxu1  ;;  %v3744_v14 = vpop.f32.mrb[79].mxu0 }
 0x1a1   : > { %v2507_v36 = vadd.f32 %v3742_v24, %v4785_v55  ;;  %v3745_v15 = vadd.f32 %v3744_v14, %v3743_v10  ;;  %v3808_v16 = vpop.f32.mrb[79].mxu1 }
 0x1a2   : > { %v3809_v11 = vadd.f32 %v3808_v16, %v3807_v25 }
 0x1a3   : > { %v4833_v19 = vadd.f32 %v3806_v12, %v2507_v36  ;;  %v2510_v38 = vadd.f32 %v3745_v15, %v4788_v56 }
 0x1a5   : > { %v4836_v42 = vadd.f32 %v3809_v11, %v2510_v38  ;;  %v3746_v21 = vpop.f32.mrb[80].mxu0 }
 0x1a6   : > { %v3810_v23 = vpop.f32.mrb[80].mxu1  ;;  %v3747_v26 = vpop.f32.mrb[81].mxu0 }
 0x1a7   : > { %v3748_v45 = vadd.f32 %v3747_v26, %v3746_v21  ;;  %v3811_v28 = vpop.f32.mrb[81].mxu1  ;;  %v3749_v29 = vpop.f32.mrb[82].mxu0 }
 0x1a8   : > { %v3812_v30 = vadd.f32 %v3811_v28, %v3810_v23  ;;  %v3813_v47 = vpop.f32.mrb[82].mxu1  ;;  %v3750_v33 = vpop.f32.mrb[83].mxu0 }
 0x1a9   : > { %v2515_v55 = vadd.f32 %v3748_v45, %v4791_v13  ;;  %v3751_v34 = vadd.f32 %v3750_v33, %v3749_v29  ;;  %v3814_v35 = vpop.f32.mrb[83].mxu1 }
 0x1aa   : > { %v3815_v37 = vadd.f32 %v3814_v35, %v3813_v47  ;;  %v2852_v47 = vlaneseq }
 0x1ab   : > { %v4839_v39 = vadd.f32 %v3812_v30, %v2515_v55  ;;  %v2518_v56 = vadd.f32 %v3751_v34, %v4794_v7 }
 0x1ad   : > { %v4842_v61 = vadd.f32 %v3815_v37, %v2518_v56  ;;  %v3752_v40 = vpop.f32.mrb[84].mxu0  ;;  %v4862_v37 = vand.u32 127, %v2852_v47 }
 0x1ae   : > { %v3816_v41 = vpop.f32.mrb[84].mxu1  ;;  %v3753_v43 = vpop.f32.mrb[85].mxu0 }
 0x1af   : > { %v3754_v1 = vadd.f32 %v3753_v43, %v3752_v40  ;;  %v3817_v48 = vpop.f32.mrb[85].mxu1  ;;  %v3755_v49 = vpop.f32.mrb[86].mxu0  ;;  %vm2905_vm0 = vcmp.ge.s32.totalorder %v4862_v37, 4  ;;  %vm2906_vm1 = vcmp.lt.s32.totalorder %v4862_v37, 10  ;;  %vm2855_vm3 = vcmp.lt.s32.totalorder %v4862_v37, 5 }
 0x1b0   : > { %v3818_v50 = vadd.f32 %v3817_v48, %v3816_v41  ;;  %v3819_v3 = vpop.f32.mrb[86].mxu1  ;;  %v3756_v52 = vpop.f32.mrb[87].mxu0  ;;  %vm4868_vm2 = vmand %vm2905_vm0, %vm2906_vm1  ;;  %vm2956_vm4 = vcmp.ge.s32.totalorder %v4862_v37, 9  ;;  %vm2957_vm5 = vcmp.lt.s32.totalorder %v4862_v37, 15  ;;  %vm3007_vm7 = vcmp.ge.s32.totalorder %v4862_v37, 14 }
 0x1b1   : > { %v2523_v13 = vadd.f32 %v3754_v1, %v4797_v31  ;;  %v3757_v53 = vadd.f32 %v3756_v52, %v3755_v49  ;;  %v3820_v54 = vpop.f32.mrb[87].mxu1  ;;  %vm4881_vm6 = vmand %vm2956_vm4, %vm2957_vm5  ;;  %vm3008_vm8 = vcmp.lt.s32.totalorder %v4862_v37, 19 }
 0x1b2   : > { %v3821_v63 = vadd.f32 %v3820_v54, %v3819_v3  ;;  %vm4893_vm9 = vmand %vm3007_vm7, %vm3008_vm8 }
 0x1b3   : > { %v4845_v57 = vadd.f32 %v3818_v50, %v2523_v13  ;;  %v2526_v7 = vadd.f32 %v3757_v53, %v4800_v32 }
 0x1b5   : > { %v4848_v17 = vadd.f32 %v3821_v63, %v2526_v7  ;;  %v3758_v59 = vpop.f32.mrb[88].mxu0 }
 0x1b6   : > { %v3822_v60 = vpop.f32.mrb[88].mxu1  ;;  %v3759_v62 = vpop.f32.mrb[89].mxu0 }
 0x1b7   : > { %v3760_v18 = vadd.f32 %v3759_v62, %v3758_v59  ;;  %v3823_v4 = vpop.f32.mrb[89].mxu1  ;;  %v3761_v5 = vpop.f32.mrb[90].mxu0 }
 0x1b8   : > { %v3824_v6 = vadd.f32 %v3823_v4, %v3822_v60  ;;  %v3825_v24 = vpop.f32.mrb[90].mxu1  ;;  %v3762_v9 = vpop.f32.mrb[91].mxu0 }
 0x1b9   : > { %v2531_v31 = vadd.f32 %v3760_v18, %v4803_v51  ;;  %v3763_v10 = vadd.f32 %v3762_v9, %v3761_v5  ;;  %v3826_v12 = vpop.f32.mrb[91].mxu1 }
 0x1ba   : > { %v3827_v25 = vadd.f32 %v3826_v12, %v3825_v24 }
 0x1bb   : > { %v4851_v14 = vadd.f32 %v3824_v6, %v2531_v31  ;;  %v2534_v32 = vadd.f32 %v3763_v10, %v4806_v58 }
 0x1bd   : > { %v4854_v36 = vadd.f32 %v3827_v25, %v2534_v32  ;;  %v3764_v15 = vpop.f32.mrb[92].mxu0 }
 0x1be   : > { %v3828_v16 = vpop.f32.mrb[92].mxu1  ;;  %v3765_v11 = vpop.f32.mrb[93].mxu0 }
 0x1bf   : > { %v3766_v38 = vadd.f32 %v3765_v11, %v3764_v15  ;;  %v3829_v21 = vpop.f32.mrb[93].mxu1  ;;  %v3767_v23 = vpop.f32.mrb[94].mxu0 }
 0x1c0   : > { %v3830_v26 = vadd.f32 %v3829_v21, %v3828_v16  ;;  %v3831_v45 = vpop.f32.mrb[94].mxu1  ;;  %v3768_v28 = vpop.f32.mrb[95].mxu0 }
 0x1c1   : > { %v2539_v51 = vadd.f32 %v3766_v38, %v4809_v8  ;;  %v3769_v29 = vadd.f32 %v3768_v28, %v3767_v23  ;;  %v3832_v30 = vpop.f32.mrb[95].mxu1 }
 0x1c2   : > { %v3833_v33 = vadd.f32 %v3832_v30, %v3831_v45 }
 0x1c3   : > { %v4857_v55 = vadd.f32 %v3830_v26, %v2539_v51  ;;  %v2542_v58 = vadd.f32 %v3769_v29, %v4812_v22 }
 0x1c5   : > { %v4860_v34 = vadd.f32 %v3833_v33, %v2542_v58  ;;  %v3850_v35 = vpop.f32.mrb[96].mxu0 }
 0x1c6   : > { %v3914_v56 = vpop.f32.mrb[96].mxu1  ;;  %v3851_v40 = vpop.f32.mrb[97].mxu0 }
 0x1c7   : > { %v3852_v41 = vadd.f32 %v3851_v40, %v3850_v35  ;;  %v3915_v43 = vpop.f32.mrb[97].mxu1  ;;  %v3853_v1 = vpop.f32.mrb[98].mxu0 }
 0x1c8   : > { %v3916_v48 = vadd.f32 %v3915_v43, %v3914_v56  ;;  %v3917_v8 = vpop.f32.mrb[98].mxu1  ;;  %v3854_v49 = vpop.f32.mrb[99].mxu0 }
 0x1c9   : > { %v2677_v50 = vadd.f32 %v3852_v41, %v4815_v27  ;;  %v3855_v3 = vadd.f32 %v3854_v49, %v3853_v1  ;;  %v3918_v52 = vpop.f32.mrb[99].mxu1 }
 0x1ca   : > { %v3919_v22 = vadd.f32 %v3918_v52, %v3917_v8 }
 0x1cb   : > { %v2774_v13 = vadd.f32 %v3916_v48, %v2677_v50  ;;  %v2680_v53 = vadd.f32 %v3855_v3, %v4818_v44 }
 0x1cd   : > { %v2836_v63 = vmax.f32 %v2774_v13, 0.0  ;;  %v2777_v7 = vadd.f32 %v3919_v22, %v2680_v53  ;;  %v3856_v59 = vpop.f32.mrb[100].mxu0 }
 0x1ce   : > { %v3857_v27 = vpop.f32.mrb[101].mxu0  ;;  %v3920_v60 = vpop.f32.mrb[100].mxu1 }
 0x1cf   : > { %v2837_v62 = vmax.f32 %v2777_v7, 0.0  ;;  %v3858_v18 = vadd.f32 %v3857_v27, %v3856_v59  ;;  %v3859_v4 = vpop.f32.mrb[102].mxu0  ;;  %v3921_v5 = vpop.f32.mrb[101].mxu1  ;;  %v2908_v44 = vsel %vm4868_vm2, %v2836_v63, 0.0  ;;  %v2857_v6 = vsel %vm2855_vm3, %v2836_v63, 0.0 }
 0x1d0   : > { %v3860_v24 = vpop.f32.mrb[103].mxu0  ;;  %v3922_v9 = vadd.f32 %v3921_v5, %v3920_v60  ;;  %2924 = vmax.xlane.f32.xlu1 %v2908_v44  ;;  %2873 = vmax.xlane.f32.xlu0 %v2857_v6  ;;  %v3923_v31 = vpop.f32.mrb[102].mxu1  ;;  %v2959_v38 = vsel %vm4881_vm6, %v2836_v63, 0.0  ;;  %v3010_v30 = vsel %vm4893_vm9, %v2836_v63, 0.0 }
 0x1d1   : > { %v2685_v12 = vadd.f32 %v3858_v18, %v4821_v46  ;;  %v3861_v25 = vadd.f32 %v3860_v24, %v3859_v4  ;;  %v3924_v32 = vpop.f32.mrb[103].mxu1  ;;  %v2909_v21 = vsel %vm4868_vm2, %v2837_v62, 0.0  ;;  %v2960_v47 = vsel %vm4881_vm6, %v2837_v62, 0.0 }
 0x1d2   : > { %v3925_v15 = vadd.f32 %v3924_v32, %v3923_v31  ;;  %v2858_v1 = vsel %vm2855_vm3, %v2837_v62, 0.0  ;;  %v3011_v50 = vsel %vm4893_vm9, %v2837_v62, 0.0 }
 0x1d3   : > { %v2688_v16 = vadd.f32 %v3861_v25, %v4824_v0  ;;  %v2782_v11 = vadd.f32 %v3922_v9, %v2685_v12 }
 0x1d4   : > { %2975 = vmax.xlane.f32.xlu1 %v2959_v38  ;;  %2926 = vmax.xlane.f32.xlu0 %v2909_v21 }
 0x1d5   : > { %v2785_v23 = vadd.f32 %v3925_v15, %v2688_v16  ;;  %v3862_v26 = vpop.f32.mrb[104].mxu0  ;;  %v2838_v48 = vmax.f32 %v2782_v11, 0.0 }
 0x1d6   : > { %v3863_v45 = vpop.f32.mrb[105].mxu0  ;;  %v3926_v28 = vpop.f32.mrb[104].mxu1 }
 0x1d7   : > { %v3864_v51 = vadd.f32 %v3863_v45, %v3862_v26  ;;  %v3865_v29 = vpop.f32.mrb[106].mxu0  ;;  %v3927_v0 = vpop.f32.mrb[105].mxu1  ;;  %v2910_v59 = vsel %vm4868_vm2, %v2838_v48, 0.0  ;;  %v2961_v9 = vsel %vm4881_vm6, %v2838_v48, 0.0  ;;  %v3012_v38 = vsel %vm4893_vm9, %v2838_v48, 0.0 }
 0x1d8   : > { %v3866_v33 = vpop.f32.mrb[107].mxu0  ;;  %v3928_v58 = vadd.f32 %v3927_v0, %v3926_v28  ;;  %3026 = vmax.xlane.f32.xlu1 %v3010_v30  ;;  %2977 = vmax.xlane.f32.xlu0 %v2960_v47  ;;  %v3929_v35 = vpop.f32.mrb[106].mxu1 }
 0x1d9   : > { %v2693_v56 = vadd.f32 %v3864_v51, %v4827_v2  ;;  %v3867_v40 = vadd.f32 %v3866_v33, %v3865_v29  ;;  %v3930_v41 = vpop.f32.mrb[107].mxu1  ;;  %v2839_v2 = vmax.f32 %v2785_v23, 0.0 }
 0x1da   : > { %v3931_v43 = vadd.f32 %v3930_v41, %v3929_v35 }
 0x1db   : > { %v2696_v8 = vadd.f32 %v3867_v40, %v4830_v20  ;;  %v2790_v49 = vadd.f32 %v3928_v58, %v2693_v56  ;;  %v2859_v20 = vsel %vm2855_vm3, %v2838_v48, 0.0  ;;  %v2860_v31 = vsel %vm2855_vm3, %v2839_v2, 0.0 }
 0x1dc   : > { %2875 = vmax.xlane.f32.xlu1 %v2858_v1  ;;  %3028 = vmax.xlane.f32.xlu0 %v3011_v50  ;;  %v2911_v21 = vsel %vm4868_vm2, %v2839_v2, 0.0  ;;  %v2962_v58 = vsel %vm4881_vm6, %v2839_v2, 0.0 }
 0x1dd   : > { %v2793_v3 = vadd.f32 %v3931_v43, %v2696_v8  ;;  %v3868_v52 = vpop.f32.mrb[108].mxu0  ;;  %v4921_v15 = vmax.f32 %v2790_v49, 0.0 }
 0x1de   : > { %v3869_v22 = vpop.f32.mrb[109].mxu0  ;;  %v3932_v13 = vpop.f32.mrb[108].mxu1 }
 0x1df   : > { %v3870_v53 = vadd.f32 %v3869_v22, %v3868_v52  ;;  %v3871_v63 = vpop.f32.mrb[110].mxu0  ;;  %v3933_v7 = vpop.f32.mrb[109].mxu1  ;;  %v2861_v33 = vsel %vm2855_vm3, %v4921_v15, 0.0  ;;  %v2912_v50 = vsel %vm4868_vm2, %v4921_v15, 0.0 }
 0x1e0   : > { %v3872_v27 = vpop.f32.mrb[111].mxu0  ;;  %v3934_v60 = vadd.f32 %v3933_v7, %v3932_v13  ;;  %2928 = vmax.xlane.f32.xlu1 %v2910_v59  ;;  %2877 = vmax.xlane.f32.xlu0 %v2859_v20  ;;  %v3935_v62 = vpop.f32.mrb[110].mxu1 }
 0x1e1   : > { %v2701_v18 = vadd.f32 %v3870_v53, %v4833_v19  ;;  %v3873_v4 = vadd.f32 %v3872_v27, %v3871_v63  ;;  %v3936_v5 = vpop.f32.mrb[111].mxu1 }
 0x1e2   : > { %v3937_v44 = vadd.f32 %v3936_v5, %v3935_v62  ;;  %v2963_v5 = vsel %vm4881_vm6, %v4921_v15, 0.0 }
 0x1e3   : > { %v2704_v6 = vadd.f32 %v3873_v4, %v4836_v42  ;;  %v4913_v24 = vadd.f32 %v3934_v60, %v2701_v18 }
 0x1e4   : > { %2979 = vmax.xlane.f32.xlu1 %v2961_v9  ;;  %2879 = vmax.xlane.f32.xlu0 %v2860_v31 }
 0x1e5   : > { %v4919_v12 = vadd.f32 %v3937_v44, %v2704_v6  ;;  %v3874_v25 = vpop.f32.mrb[112].mxu0 }
 0x1e6   : > { %v3875_v32 = vpop.f32.mrb[113].mxu0  ;;  %v3938_v19 = vpop.f32.mrb[112].mxu1 }
 0x1e7   : > { %v3876_v16 = vadd.f32 %v3875_v32, %v3874_v25  ;;  %v3877_v11 = vpop.f32.mrb[114].mxu0  ;;  %v3939_v42 = vpop.f32.mrb[113].mxu1  ;;  %v4979_v25 = vmax.f32 %v4913_v24, 0.0 }
 0x1e8   : > { %v3878_v23 = vpop.f32.mrb[115].mxu0  ;;  %v3940_v26 = vadd.f32 %v3939_v42, %v3938_v19  ;;  %3030 = vmax.xlane.f32.xlu1 %v3012_v38  ;;  %2930 = vmax.xlane.f32.xlu0 %v2911_v21  ;;  %v3941_v45 = vpop.f32.mrb[114].mxu1  ;;  %v3014_v19 = vsel %vm4893_vm9, %v4921_v15, 0.0 }
 0x1e9   : > { %v2709_v28 = vadd.f32 %v3876_v16, %v4839_v39  ;;  %v3879_v51 = vadd.f32 %v3878_v23, %v3877_v11  ;;  %v3942_v29 = vpop.f32.mrb[115].mxu1  ;;  %v4936_v39 = vmax.f32 %v2793_v3, 0.0 }
 0x1ea   : > { %v3943_v0 = vadd.f32 %v3942_v29, %v3941_v45 }
 0x1eb   : > { %v2712_v30 = vadd.f32 %v3879_v51, %v4842_v61  ;;  %v2806_v47 = vadd.f32 %v3940_v26, %v2709_v28  ;;  %v3013_v61 = vsel %vm4893_vm9, %v2839_v2, 0.0  ;;  %v2862_v44 = vsel %vm2855_vm3, %v4936_v39, 0.0 }
 0x1ec   : > { %2881 = vmax.xlane.f32.xlu1 %v2861_v33  ;;  %2981 = vmax.xlane.f32.xlu0 %v2962_v58  ;;  %v2913_v16 = vsel %vm4868_vm2, %v4936_v39, 0.0 }
 0x1ed   : > { %v4934_v35 = vmax.f32 %v2806_v47, 0.0  ;;  %v2809_v56 = vadd.f32 %v3943_v0, %v2712_v30  ;;  %v3880_v40 = vpop.f32.mrb[116].mxu0 }
 0x1ee   : > { %v3881_v41 = vpop.f32.mrb[117].mxu0  ;;  %v3944_v43 = vpop.f32.mrb[116].mxu1 }
 0x1ef   : > { %v4940_v1 = vmax.f32 %v2809_v56, 0.0  ;;  %v3882_v48 = vadd.f32 %v3881_v41, %v3880_v40  ;;  %v3883_v8 = vpop.f32.mrb[118].mxu0  ;;  %v3945_v49 = vpop.f32.mrb[117].mxu1  ;;  %v2916_v52 = vsel %vm4868_vm2, %v4934_v35, 0.0  ;;  %v2967_v2 = vsel %vm4881_vm6, %v4934_v35, 0.0 }
 0x1f0   : > { %v3884_v3 = vpop.f32.mrb[119].mxu0  ;;  %v3946_v22 = vadd.f32 %v3945_v49, %v3944_v43  ;;  %2932 = vmax.xlane.f32.xlu1 %v2912_v50  ;;  %3032 = vmax.xlane.f32.xlu0 %v3013_v61  ;;  %v3947_v13 = vpop.f32.mrb[118].mxu1  ;;  %v3018_v53 = vsel %vm4893_vm9, %v4934_v35, 0.0  ;;  %v2863_v43 = vsel %vm2855_vm3, %v4979_v25, 0.0  ;;  %v2964_v61 = vsel %vm4881_vm6, %v4936_v39, 0.0 }
 0x1f1   : > { %v2717_v63 = vadd.f32 %v3882_v48, %v4845_v57  ;;  %v3885_v7 = vadd.f32 %v3884_v3, %v3883_v8  ;;  %v3948_v59 = vpop.f32.mrb[119].mxu1  ;;  %v4958_v20 = vsel %vm2855_vm3, %v4940_v1, 0.0  ;;  %v2917_v27 = vsel %vm4868_vm2, %v4940_v1, 0.0 }
 0x1f2   : > { %v3949_v60 = vadd.f32 %v3948_v59, %v3947_v13  ;;  %v2968_v62 = vsel %vm4881_vm6, %v4940_v1, 0.0  ;;  %v3019_v57 = vsel %vm4893_vm9, %v4940_v1, 0.0  ;;  %v2843_v50 = vmax.f32 %v4919_v12, 0.0 }
 0x1f3   : > { %v2720_v18 = vadd.f32 %v3885_v7, %v4848_v17  ;;  %v2814_v4 = vadd.f32 %v3946_v22, %v2717_v63  ;;  %v3015_v13 = vsel %vm4893_vm9, %v4936_v39, 0.0 }
 0x1f4   : > { %2983 = vmax.xlane.f32.xlu1 %v2963_v5  ;;  %2883 = vmax.xlane.f32.xlu0 %v2862_v44 }
 0x1f5   : > { %v4976_v6 = vmax.f32 %v2814_v4, 0.0  ;;  %v2817_v9 = vadd.f32 %v3949_v60, %v2720_v18  ;;  %v3886_v31 = vpop.f32.mrb[120].mxu0 }
 0x1f6   : > { %v3887_v32 = vpop.f32.mrb[121].mxu0  ;;  %v3950_v17 = vpop.f32.mrb[120].mxu1 }
 0x1f7   : > { %v4987_v11 = vmax.f32 %v2817_v9, 0.0  ;;  %v3888_v42 = vadd.f32 %v3887_v32, %v3886_v31  ;;  %v3889_v38 = vpop.f32.mrb[122].mxu0  ;;  %v3951_v21 = vpop.f32.mrb[121].mxu1  ;;  %v4992_v24 = vsel %vm2855_vm3, %v4976_v6, 0.0  ;;  %v2918_v23 = vsel %vm4868_vm2, %v4976_v6, 0.0 }
 0x1f8   : > { %v3890_v26 = vpop.f32.mrb[123].mxu0  ;;  %v3952_v15 = vadd.f32 %v3951_v21, %v3950_v17  ;;  %3034 = vmax.xlane.f32.xlu1 %v3014_v19  ;;  %2934 = vmax.xlane.f32.xlu0 %v2913_v16  ;;  %v3953_v45 = vpop.f32.mrb[122].mxu1  ;;  %v2969_v28 = vsel %vm4881_vm6, %v4976_v6, 0.0  ;;  %v3020_v51 = vsel %vm4893_vm9, %v4976_v6, 0.0 }
 0x1f9   : > { %v2725_v29 = vadd.f32 %v3888_v42, %v4851_v14  ;;  %v3891_v0 = vadd.f32 %v3890_v26, %v3889_v38  ;;  %v3954_v30 = vpop.f32.mrb[123].mxu1  ;;  %v5007_v47 = vsel %vm2855_vm3, %v4987_v11, 0.0  ;;  %v2919_v33 = vsel %vm4868_vm2, %v4987_v11, 0.0 }
 0x1fa   : > { %v3955_v58 = vadd.f32 %v3954_v30, %v3953_v45  ;;  %v2970_v56 = vsel %vm4881_vm6, %v4987_v11, 0.0  ;;  %v3021_v14 = vsel %vm4893_vm9, %v4987_v11, 0.0  ;;  %v2864_v45 = vsel %vm2855_vm3, %v2843_v50, 0.0 }
 0x1fb   : > { %v2728_v40 = vadd.f32 %v3891_v0, %v4854_v36  ;;  %v2822_v41 = vadd.f32 %v3952_v15, %v2725_v29  ;;  %v2914_v36 = vsel %vm4868_vm2, %v4979_v25, 0.0  ;;  %v2965_v15 = vsel %vm4881_vm6, %v4979_v25, 0.0 }
 0x1fc   : > { %2885 = vmax.xlane.f32.xlu1 %v2863_v43  ;;  %2985 = vmax.xlane.f32.xlu0 %v2964_v61  ;;  %v3016_v30 = vsel %vm4893_vm9, %v4979_v25, 0.0 }
 0x1fd   : > { %v5025_v48 = vmax.f32 %v2822_v41, 0.0  ;;  %v2825_v8 = vadd.f32 %v3955_v58, %v2728_v40  ;;  %v3892_v49 = vpop.f32.mrb[124].mxu0  ;;  %v2915_v58 = vsel %vm4868_vm2, %v2843_v50, 0.0 }
 0x1fe   : > { %v3893_v3 = vpop.f32.mrb[125].mxu0  ;;  %v3956_v22 = vpop.f32.mrb[124].mxu1 }
 0x1ff   : > { %v5034_v63 = vmax.f32 %v2825_v8, 0.0  ;;  %v3894_v7 = vadd.f32 %v3893_v3, %v3892_v49  ;;  %v3895_v59 = vpop.f32.mrb[126].mxu0  ;;  %v3957_v60 = vpop.f32.mrb[125].mxu1  ;;  %v2869_v18 = vsel %vm2855_vm3, %v5025_v48, 0.0  ;;  %v2920_v12 = vsel %vm4868_vm2, %v5025_v48, 0.0 }
 0x200   : > { %v3896_v4 = vpop.f32.mrb[127].mxu0  ;;  %v3958_v5 = vadd.f32 %v3957_v60, %v3956_v22  ;;  %2936 = vmax.xlane.f32.xlu1 %v2914_v36  ;;  %3036 = vmax.xlane.f32.xlu0 %v3015_v13  ;;  %v3959_v44 = vpop.f32.mrb[126].mxu1  ;;  %v2971_v39 = vsel %vm4881_vm6, %v5025_v48, 0.0  ;;  %v3022_v9 = vsel %vm4893_vm9, %v5025_v48, 0.0  ;;  %v2865_v3 = vsel %vm2855_vm3, %v4934_v35, 0.0 }
 0x201   : > { %v2733_v31 = vadd.f32 %v3894_v7, %v4857_v55  ;;  %v3897_v32 = vadd.f32 %v3896_v4, %v3895_v59  ;;  %v3960_v17 = vpop.f32.mrb[127].mxu1  ;;  %v2870_v19 = vsel %vm2855_vm3, %v5034_v63, 0.0  ;;  %v2921_v16 = vsel %vm4868_vm2, %v5034_v63, 0.0 }
 0x202   : > { %v3961_v42 = vadd.f32 %v3960_v17, %v3959_v44  ;;  %v2972_v38 = vsel %vm4881_vm6, %v5034_v63, 0.0  ;;  %v3023_v21 = vsel %vm4893_vm9, %v5034_v63, 0.0  ;;  %v2966_v22 = vsel %vm4881_vm6, %v2843_v50, 0.0 }
 0x203   : > { %v2736_v55 = vadd.f32 %v3897_v32, %v4860_v34  ;;  %v2830_v26 = vadd.f32 %v3958_v5, %v2733_v31  ;;  %v3017_v36 = vsel %vm4893_vm9, %v2843_v50, 0.0 }
 0x204   : > { %2987 = vmax.xlane.f32.xlu1 %v2965_v15  ;;  %2887 = vmax.xlane.f32.xlu0 %v2864_v45 }
 0x205   : > { %v2850_v29 = vmax.f32 %v2830_v26, 0.0  ;;  %v2833_v0 = vadd.f32 %v3961_v42, %v2736_v55 }
 0x207   : > { %v2851_v34 = vmax.f32 %v2833_v0, 0.0  ;;  %v2871_v40 = vsel %vm2855_vm3, %v2850_v29, 0.0  ;;  %v2922_v41 = vsel %vm4868_vm2, %v2850_v29, 0.0  ;;  %v2973_v43 = vsel %vm4881_vm6, %v2850_v29, 0.0 }
 0x208   : > { %3038 = vmax.xlane.f32.xlu1 %v3016_v30  ;;  %2938 = vmax.xlane.f32.xlu0 %v2915_v58  ;;  %v3024_v61 = vsel %vm4893_vm9, %v2850_v29, 0.0 }
 0x209   : > { %v2872_v25 = vsel %vm2855_vm3, %v2851_v34, 0.0  ;;  %v2923_v48 = vsel %vm4868_vm2, %v2851_v34, 0.0  ;;  %v2974_v8 = vsel %vm4881_vm6, %v2851_v34, 0.0  ;;  %v3025_v49 = vsel %vm4893_vm9, %v2851_v34, 0.0 }
 0x20c   : > { %2889 = vmax.xlane.f32.xlu1 %v2865_v3  ;;  %2989 = vmax.xlane.f32.xlu0 %v2966_v22 }
 0x210   : > { %2940 = vmax.xlane.f32.xlu1 %v2916_v52  ;;  %3040 = vmax.xlane.f32.xlu0 %v3017_v36 }
 0x214   : > { %2991 = vmax.xlane.f32.xlu1 %v2967_v2  ;;  %2891 = vmax.xlane.f32.xlu0 %v4958_v20 }
 0x218   : > { %3042 = vmax.xlane.f32.xlu1 %v3018_v53  ;;  %2942 = vmax.xlane.f32.xlu0 %v2917_v27 }
 0x21c   : > { %2893 = vmax.xlane.f32.xlu1 %v4992_v24  ;;  %2993 = vmax.xlane.f32.xlu0 %v2968_v62 }
 0x220   : > { %2944 = vmax.xlane.f32.xlu1 %v2918_v23  ;;  %3044 = vmax.xlane.f32.xlu0 %v3019_v57 }
 0x224   : > { %2995 = vmax.xlane.f32.xlu1 %v2969_v28  ;;  %2895 = vmax.xlane.f32.xlu0 %v5007_v47 }
 0x228   : > { %3046 = vmax.xlane.f32.xlu1 %v3020_v51  ;;  %2946 = vmax.xlane.f32.xlu0 %v2919_v33 }
 0x22c   : > { %2897 = vmax.xlane.f32.xlu1 %v2869_v18  ;;  %2997 = vmax.xlane.f32.xlu0 %v2970_v56 }
 0x230   : > { %2948 = vmax.xlane.f32.xlu1 %v2920_v12  ;;  %3048 = vmax.xlane.f32.xlu0 %v3021_v14 }
 0x234   : > { %2999 = vmax.xlane.f32.xlu1 %v2971_v39  ;;  %2899 = vmax.xlane.f32.xlu0 %v2870_v19 }
 0x238   : > { %3050 = vmax.xlane.f32.xlu1 %v3022_v9  ;;  %2950 = vmax.xlane.f32.xlu0 %v2921_v16 }
 0x23c   : > { %2901 = vmax.xlane.f32.xlu1 %v2871_v40  ;;  %3001 = vmax.xlane.f32.xlu0 %v2972_v38 }
 0x240   : > { %2952 = vmax.xlane.f32.xlu1 %v2922_v41  ;;  %3052 = vmax.xlane.f32.xlu0 %v3023_v21 }
 0x244   : > { %3003 = vmax.xlane.f32.xlu1 %v2973_v43  ;;  %2903 = vmax.xlane.f32.xlu0 %v2872_v25 }
 0x248   : > { %3054 = vmax.xlane.f32.xlu1 %v3024_v61  ;;  %2954 = vmax.xlane.f32.xlu0 %v2923_v48 }
 0x24c   : > { %3005 = vmax.xlane.f32.xlu0 %v2974_v8 }
 0x250   : > { %3056 = vmax.xlane.f32.xlu0 %v3025_v49 }
 0x25d   : > { %v2925_v37 = vpop.xlane.xlu1 %2924  ;;  %v2874_v54 = vpop.xlane.xlu0 %2873 }
 0x25e   : > { %v3059_v35 = vsel %vm3058_vm10, %v2874_v54, %v2925_v37 }
 0x261   : > { %v2976_v10 = vpop.xlane.xlu1 %2975  ;;  %v2927_v46 = vpop.xlane.xlu0 %2926 }
 0x262   : > { %v3076_v1 = vsel %vm3075_vm11, %v3059_v35, %v2976_v10 }
 0x265   : > { %v3027_v52 = vpop.xlane.xlu1 %3026  ;;  %v2978_v2 = vpop.xlane.xlu0 %2977 }
 0x266   : > { %v3093_v53 = vsel %vm3092_vm12, %v3076_v1, %v3027_v52 }
 0x267   : > { %3110 = vst.msk [vmem:[%s5151_s16] sm:$0xff] %vm3109_vm13, %v3093_v53 }
 0x269   : > { %v2876_v20 = vpop.xlane.xlu1 %2875  ;;  %v3029_v27 = vpop.xlane.xlu0 %3028 }
 0x26a   : > { %v3060_v62 = vsel %vm3058_vm10, %v2876_v20, %v2927_v46 }
 0x26b   : > { %v3077_v57 = vsel %vm3075_vm11, %v3060_v62, %v2978_v2 }
 0x26c   : > { %v3094_v6 = vsel %vm3092_vm12, %v3077_v57, %v3029_v27 }
 0x26d   : > { %3111 = vst.msk [vmem:[%s5151_s16 + $0x8] sm:$0xff] %vm3109_vm13, %v3094_v6  ;;  %v2929_v11 = vpop.xlane.xlu1 %2928  ;;  %v2878_v24 = vpop.xlane.xlu0 %2877 }
 0x26e   : > { %v3061_v51 = vsel %vm3058_vm10, %v2878_v24, %v2929_v11 }
 0x271   : > { %v2980_v23 = vpop.xlane.xlu1 %2979  ;;  %v2880_v28 = vpop.xlane.xlu0 %2879 }
 0x272   : > { %v3078_v47 = vsel %vm3075_vm11, %v3061_v51, %v2980_v23 }
 0x275   : > { %v3031_v33 = vpop.xlane.xlu1 %3030  ;;  %v2931_v56 = vpop.xlane.xlu0 %2930 }
 0x276   : > { %v3095_v14 = vsel %vm3092_vm12, %v3078_v47, %v3031_v33  ;;  %v3062_v63 = vsel %vm3058_vm10, %v2880_v28, %v2931_v56 }
 0x277   : > { %3112 = vst.msk [vmem:[%s5151_s16 + $0x10] sm:$0xff] %vm3109_vm13, %v3095_v14 }
 0x279   : > { %v2882_v50 = vpop.xlane.xlu1 %2881  ;;  %v2982_v13 = vpop.xlane.xlu0 %2981 }
 0x27a   : > { %v3079_v7 = vsel %vm3075_vm11, %v3062_v63, %v2982_v13 }
 0x27d   : > { %v2933_v59 = vpop.xlane.xlu1 %2932  ;;  %v3033_v60 = vpop.xlane.xlu0 %3032 }
 0x27e   : > { %v3096_v18 = vsel %vm3092_vm12, %v3079_v7, %v3033_v60  ;;  %v3063_v5 = vsel %vm3058_vm10, %v2882_v50, %v2933_v59 }
 0x27f   : > { %3113 = vst.msk [vmem:[%s5151_s16 + $0x18] sm:$0xff] %vm3109_vm13, %v3096_v18 }
 0x281   : > { %v2984_v12 = vpop.xlane.xlu1 %2983  ;;  %v2884_v4 = vpop.xlane.xlu0 %2883 }
 0x282   : > { %v3080_v44 = vsel %vm3075_vm11, %v3063_v5, %v2984_v12 }
 0x285   : > { %v3035_v39 = vpop.xlane.xlu1 %3034  ;;  %v2935_v9 = vpop.xlane.xlu0 %2934 }
 0x286   : > { %v3097_v31 = vsel %vm3092_vm12, %v3080_v44, %v3035_v39  ;;  %v3064_v19 = vsel %vm3058_vm10, %v2884_v4, %v2935_v9 }
 0x287   : > { %3114 = vst.msk [vmem:[%s5151_s16 + $0x20] sm:$0xff] %vm3109_vm13, %v3097_v31 }
 0x289   : > { %v2886_v32 = vpop.xlane.xlu1 %2885  ;;  %v2986_v17 = vpop.xlane.xlu0 %2985 }
 0x28a   : > { %v3081_v16 = vsel %vm3075_vm11, %v3064_v19, %v2986_v17 }
 0x28d   : > { %v2937_v42 = vpop.xlane.xlu1 %2936  ;;  %v3037_v38 = vpop.xlane.xlu0 %3036 }
 0x28e   : > { %v3098_v21 = vsel %vm3092_vm12, %v3081_v16, %v3037_v38  ;;  %v3065_v15 = vsel %vm3058_vm10, %v2886_v32, %v2937_v42 }
 0x28f   : > { %3115 = vst.msk [vmem:[%s5151_s16 + $0x28] sm:$0xff] %vm3109_vm13, %v3098_v21 }
 0x291   : > { %v2988_v55 = vpop.xlane.xlu1 %2987  ;;  %v2888_v26 = vpop.xlane.xlu0 %2887 }
 0x292   : > { %v3082_v45 = vsel %vm3075_vm11, %v3065_v15, %v2988_v55 }
 0x295   : > { %v3039_v29 = vpop.xlane.xlu1 %3038  ;;  %v2939_v0 = vpop.xlane.xlu0 %2938 }
 0x296   : > { %v3099_v30 = vsel %vm3092_vm12, %v3082_v45, %v3039_v29  ;;  %v3066_v40 = vsel %vm3058_vm10, %v2888_v26, %v2939_v0 }
 0x297   : > { %3116 = vst.msk [vmem:[%s5151_s16 + $0x30] sm:$0xff] %vm3109_vm13, %v3099_v30 }
 0x299   : > { %v2890_v58 = vpop.xlane.xlu1 %2889  ;;  %v2990_v34 = vpop.xlane.xlu0 %2989 }
 0x29a   : > { %v3083_v41 = vsel %vm3075_vm11, %v3066_v40, %v2990_v34 }
 0x29d   : > { %v2941_v43 = vpop.xlane.xlu1 %2940  ;;  %v3041_v61 = vpop.xlane.xlu0 %3040 }
 0x29e   : > { %v3100_v25 = vsel %vm3092_vm12, %v3083_v41, %v3041_v61  ;;  %v3067_v49 = vsel %vm3058_vm10, %v2890_v58, %v2941_v43 }
 0x29f   : > { %3117 = vst.msk [vmem:[%s5151_s16 + $0x38] sm:$0xff] %vm3109_vm13, %v3100_v25 }
 0x2a1   : > { %v2992_v48 = vpop.xlane.xlu1 %2991  ;;  %v2892_v8 = vpop.xlane.xlu0 %2891 }
 0x2a2   : > { %v3084_v3 = vsel %vm3075_vm11, %v3067_v49, %v2992_v48 }
 0x2a5   : > { %v3043_v22 = vpop.xlane.xlu1 %3042  ;;  %v2943_v36 = vpop.xlane.xlu0 %2942 }
 0x2a6   : > { %v3101_v37 = vsel %vm3092_vm12, %v3084_v3, %v3043_v22  ;;  %v3068_v46 = vsel %vm3058_vm10, %v2892_v8, %v2943_v36 }
 0x2a7   : > { %3118 = vst.msk [vmem:[%s5151_s16 + $0x40] sm:$0xff] %vm3109_vm13, %v3101_v37 }
 0x2a9   : > { %v2894_v54 = vpop.xlane.xlu1 %2893  ;;  %v2994_v10 = vpop.xlane.xlu0 %2993 }
 0x2aa   : > { %v3085_v35 = vsel %vm3075_vm11, %v3068_v46, %v2994_v10 }
 0x2ad   : > { %v2945_v1 = vpop.xlane.xlu1 %2944  ;;  %v3045_v52 = vpop.xlane.xlu0 %3044 }
 0x2ae   : > { %v3102_v2 = vsel %vm3092_vm12, %v3085_v35, %v3045_v52  ;;  %v3069_v27 = vsel %vm3058_vm10, %v2894_v54, %v2945_v1 }
 0x2af   : > { %3119 = vst.msk [vmem:[%s5151_s16 + $0x48] sm:$0xff] %vm3109_vm13, %v3102_v2 }
 0x2b1   : > { %v2996_v53 = vpop.xlane.xlu1 %2995  ;;  %v2896_v20 = vpop.xlane.xlu0 %2895 }
 0x2b2   : > { %v3086_v62 = vsel %vm3075_vm11, %v3069_v27, %v2996_v53 }
 0x2b5   : > { %v3047_v57 = vpop.xlane.xlu1 %3046  ;;  %v2947_v6 = vpop.xlane.xlu0 %2946 }
 0x2b6   : > { %v3103_v11 = vsel %vm3092_vm12, %v3086_v62, %v3047_v57  ;;  %v3070_v28 = vsel %vm3058_vm10, %v2896_v20, %v2947_v6 }
 0x2b7   : > { %3120 = vst.msk [vmem:[%s5151_s16 + $0x50] sm:$0xff] %vm3109_vm13, %v3103_v11 }
 0x2b9   : > { %v2898_v24 = vpop.xlane.xlu1 %2897  ;;  %v2998_v23 = vpop.xlane.xlu0 %2997 }
 0x2ba   : > { %v3087_v51 = vsel %vm3075_vm11, %v3070_v28, %v2998_v23 }
 0x2bd   : > { %v2949_v47 = vpop.xlane.xlu1 %2948  ;;  %v3049_v33 = vpop.xlane.xlu0 %3048 }
 0x2be   : > { %v3104_v56 = vsel %vm3092_vm12, %v3087_v51, %v3049_v33  ;;  %v3071_v13 = vsel %vm3058_vm10, %v2898_v24, %v2949_v47 }
 0x2bf   : > { %3121 = vst.msk [vmem:[%s5151_s16 + $0x58] sm:$0xff] %vm3109_vm13, %v3104_v56 }
 0x2c1   : > { %v3000_v14 = vpop.xlane.xlu1 %2999  ;;  %v2900_v50 = vpop.xlane.xlu0 %2899 }
 0x2c2   : > { %v3088_v63 = vsel %vm3075_vm11, %v3071_v13, %v3000_v14 }
 0x2c5   : > { %v3051_v7 = vpop.xlane.xlu1 %3050  ;;  %v2951_v59 = vpop.xlane.xlu0 %2950 }
 0x2c6   : > { %v3105_v60 = vsel %vm3092_vm12, %v3088_v63, %v3051_v7  ;;  %v3072_v4 = vsel %vm3058_vm10, %v2900_v50, %v2951_v59 }
 0x2c7   : > { %3122 = vst.msk [vmem:[%s5151_s16 + $0x60] sm:$0xff] %vm3109_vm13, %v3105_v60 }
 0x2c9   : > { %v2902_v18 = vpop.xlane.xlu1 %2901  ;;  %v3002_v12 = vpop.xlane.xlu0 %3001 }
 0x2ca   : > { %v3089_v5 = vsel %vm3075_vm11, %v3072_v4, %v3002_v12 }
 0x2cd   : > { %v2953_v44 = vpop.xlane.xlu1 %2952  ;;  %v3053_v39 = vpop.xlane.xlu0 %3052 }
 0x2ce   : > { %v3106_v9 = vsel %vm3092_vm12, %v3089_v5, %v3053_v39  ;;  %v3073_v17 = vsel %vm3058_vm10, %v2902_v18, %v2953_v44 }
 0x2cf   : > { %3123 = vst.msk [vmem:[%s5151_s16 + $0x68] sm:$0xff] %vm3109_vm13, %v3106_v9 }
 0x2d1   : > { %v3004_v31 = vpop.xlane.xlu1 %3003  ;;  %v2904_v32 = vpop.xlane.xlu0 %2903 }
 0x2d2   : > { %v3090_v19 = vsel %vm3075_vm11, %v3073_v17, %v3004_v31 }
 0x2d5   : > { %v3055_v16 = vpop.xlane.xlu1 %3054  ;;  %v2955_v42 = vpop.xlane.xlu0 %2954 }
 0x2d6   : > { %v3107_v38 = vsel %vm3092_vm12, %v3090_v19, %v3055_v16  ;;  %v3074_v55 = vsel %vm3058_vm10, %v2904_v32, %v2955_v42 }
 0x2d7   : > { %3124 = vst.msk [vmem:[%s5151_s16 + $0x70] sm:$0xff] %vm3109_vm13, %v3107_v38 }
 0x2d9   : > { %v3006_v21 = vpop.xlane.xlu0 %3005 }
 0x2da   : > { %v3091_v26 = vsel %vm3075_vm11, %v3074_v55, %v3006_v21 }
 0x2dd   : > { %v3057_v15 = vpop.xlane.xlu0 %3056 }
 0x2de   : > { %v3108_v45 = vsel %vm3092_vm12, %v3091_v26, %v3057_v15 }
 0x2df   : > { %3125 = vst.msk [vmem:[%s5151_s16 + $0x78] sm:$0xff] %vm3109_vm13, %v3108_v45 }
 0x2e0 PF: > { %s13_s12 = sadd.s32 1, %s4107_s12  }
 0x2e1   : > { %p10_p4 = scmp.ge.s32.totalorder %s13_s12, 4  }
 0x2e3   :  { %12 = sbr.rel (!%p10_p4) target bundleno = 1 (0x1), region = 62 }

// kernel: base_model_forward.41
= control target key start
LH: loop header
LB: loop body
LE: loop exit
PB: predicated region body
PF: predicated region fallthrough
CT: control target
= control target key end

     0   :  { %vm3267_vm0 = vmmov 0   ;;  %vm2262_vm1 = vcmask 523264   ;;  %vm2395_vm2 = vcmask 654336   ;;  %vm2439_vm3 = vcmask 23552   ;;  %s4191_s1 = inlined_call_operand.vmem [shape: bf16[1280,320], index: 1, kind: input, shape index: {}]   ;;  %s4192_s0 = inlined_call_operand.vmem [shape: bf16[8,1280], index: 0, kind: input, shape index: {}]   ;;  %s4193_s3 = inlined_call_operand.vmem [shape: bf16[320,80], index: 3, kind: input, shape index: {}]   ;;  %s4194_s2 = inlined_call_operand.vmem [shape: f32[1,320], index: 2, kind: input, shape index: {}]   ;;  %s4195_s5 = inlined_call_operand.vmem [shape: bf16[80,3], index: 5, kind: input, shape index: {}]   ;;  %s4196_s4 = inlined_call_operand.vmem [shape: f32[1,80], index: 4, kind: input, shape index: {}]   ;;  %s4197_s6 = inlined_call_operand.vmem [shape: f32[1,3], index: 6, kind: input, shape index: {}]   ;;  %s4198_s7 = inlined_call_operand.vmem [shape: f32[8,3], index: 7, kind: output, shape index: {}]  }
   0x1   :  { %v2911_v0 = vld [vmem:[%s4191_s1 + $0x4] ss:$12 sps:$4 sm:$0xff]   ;;  %v2915_v2 = vld [vmem:[%s4191_s1] ss:$12 sps:$4 sm:$0xff]   ;;  %v2917_v4 = vld [vmem:[%s4191_s1 + $0x1c] ss:$12 sps:$4 sm:$0xff]  }
   0x2   :  { %v2913_v1 = vld [vmem:[%s4191_s1 + $0x184] ss:$12 sps:$4 sm:$0xff]   ;;  %1684 = vmatprep.subr.bf16.mxu1 %v2911_v0  ;;  %v2916_v3 = vld [vmem:[%s4191_s1 + $0x180] ss:$12 sps:$4 sm:$0xff]   ;;  %v2919_v5 = vld [vmem:[%s4191_s1 + $0x19c] ss:$12 sps:$4 sm:$0xff]  }
   0x3   :  { %1725 = vmatprep.subr.bf16.mxu0 %v2913_v1  ;;  %1685 = vmatpush1.bf16.msra.mxu1 %v2915_v2  ;;  %v2921_v6 = vld [vmem:[%s4191_s1 + $0x18] ss:$12 sps:$4 sm:$0xff]   ;;  %v2923_v8 = vld [vmem:[%s4191_s1 + $0x34] ss:$12 sps:$4 sm:$0xff]   ;;  %v2927_v10 = vld [vmem:[%s4191_s1 + $0x30] ss:$12 sps:$4 sm:$0xff]  }
   0x4   :  { %1726 = vmatpush1.bf16.msra.mxu0 %v2916_v3  ;;  %1686 = vmatprep.subr.bf16.mxu1 %v2917_v4  ;;  %v2922_v7 = vld [vmem:[%s4191_s1 + $0x198] ss:$12 sps:$4 sm:$0xff]   ;;  %v2925_v9 = vld [vmem:[%s4191_s1 + $0x1b4] ss:$12 sps:$4 sm:$0xff]   ;;  %v2928_v11 = vld [vmem:[%s4191_s1 + $0x1b0] ss:$12 sps:$4 sm:$0xff]  }
   0x5   :  { %1727 = vmatprep.subr.bf16.mxu0 %v2919_v5  ;;  %v2929_v12 = vld [vmem:[%s4191_s1 + $0x4c] ss:$12 sps:$4 sm:$0xff]   ;;  %v2933_v14 = vld [vmem:[%s4191_s1 + $0x48] ss:$12 sps:$4 sm:$0xff]   ;;  %v2935_v16 = vld [vmem:[%s4191_s1 + $0x64] ss:$12 sps:$4 sm:$0xff]  }
   0x6   :  { %v2931_v13 = vld [vmem:[%s4191_s1 + $0x1cc] ss:$12 sps:$4 sm:$0xff]   ;;  %v2934_v15 = vld [vmem:[%s4191_s1 + $0x1c8] ss:$12 sps:$4 sm:$0xff]   ;;  %v2937_v17 = vld [vmem:[%s4191_s1 + $0x1e4] ss:$12 sps:$4 sm:$0xff]  }
   0x7   :  { %1687 = vmatpush1.bf16.msra.mxu1 %v2921_v6  ;;  %v2939_v18 = vld [vmem:[%s4191_s1 + $0x60] ss:$12 sps:$4 sm:$0xff]   ;;  %v2941_v20 = vld [vmem:[%s4191_s1 + $0x7c] ss:$12 sps:$4 sm:$0xff]   ;;  %v2945_v22 = vld [vmem:[%s4191_s1 + $0x78] ss:$12 sps:$4 sm:$0xff]  }
   0x8   :  { %1728 = vmatpush1.bf16.msra.mxu0 %v2922_v7  ;;  %1688 = vmatprep.subr.bf16.mxu1 %v2923_v8  ;;  %v2940_v19 = vld [vmem:[%s4191_s1 + $0x1e0] ss:$12 sps:$4 sm:$0xff]   ;;  %v2943_v21 = vld [vmem:[%s4191_s1 + $0x1fc] ss:$12 sps:$4 sm:$0xff]   ;;  %v2946_v23 = vld [vmem:[%s4191_s1 + $0x1f8] ss:$12 sps:$4 sm:$0xff]  }
   0x9   :  { %1729 = vmatprep.subr.bf16.mxu0 %v2925_v9  ;;  %v2947_v24 = vld [vmem:[%s4191_s1 + $0x94] ss:$12 sps:$4 sm:$0xff]   ;;  %v2951_v26 = vld [vmem:[%s4191_s1 + $0x90] ss:$12 sps:$4 sm:$0xff]   ;;  %v2953_v28 = vld [vmem:[%s4191_s1 + $0xac] ss:$12 sps:$4 sm:$0xff]  }
   0xa   :  { %v2949_v25 = vld [vmem:[%s4191_s1 + $0x214] ss:$12 sps:$4 sm:$0xff]   ;;  %v2952_v27 = vld [vmem:[%s4191_s1 + $0x210] ss:$12 sps:$4 sm:$0xff]   ;;  %v2955_v29 = vld [vmem:[%s4191_s1 + $0x22c] ss:$12 sps:$4 sm:$0xff]  }
   0xb   :  { %1689 = vmatpush1.bf16.msra.mxu1 %v2927_v10  ;;  %v2957_v30 = vld [vmem:[%s4191_s1 + $0xa8] ss:$12 sps:$4 sm:$0xff]   ;;  %v2959_v32 = vld [vmem:[%s4191_s1 + $0xc4] ss:$12 sps:$4 sm:$0xff]   ;;  %v2963_v34 = vld [vmem:[%s4191_s1 + $0xc0] ss:$12 sps:$4 sm:$0xff]  }
   0xc   :  { %1730 = vmatpush1.bf16.msra.mxu0 %v2928_v11  ;;  %1690 = vmatprep.subr.bf16.mxu1 %v2929_v12  ;;  %v2958_v31 = vld [vmem:[%s4191_s1 + $0x228] ss:$12 sps:$4 sm:$0xff]   ;;  %v2961_v33 = vld [vmem:[%s4191_s1 + $0x244] ss:$12 sps:$4 sm:$0xff]   ;;  %v2964_v35 = vld [vmem:[%s4191_s1 + $0x240] ss:$12 sps:$4 sm:$0xff]  }
   0xd   :  { %1731 = vmatprep.subr.bf16.mxu0 %v2931_v13  ;;  %v2965_v36 = vld [vmem:[%s4191_s1 + $0xdc] ss:$12 sps:$4 sm:$0xff]   ;;  %v2969_v38 = vld [vmem:[%s4191_s1 + $0xd8] ss:$12 sps:$4 sm:$0xff]   ;;  %v2971_v40 = vld [vmem:[%s4191_s1 + $0xf4] ss:$12 sps:$4 sm:$0xff]  }
   0xe   :  { %v2967_v37 = vld [vmem:[%s4191_s1 + $0x25c] ss:$12 sps:$4 sm:$0xff]   ;;  %v2970_v39 = vld [vmem:[%s4191_s1 + $0x258] ss:$12 sps:$4 sm:$0xff]   ;;  %v2973_v41 = vld [vmem:[%s4191_s1 + $0x274] ss:$12 sps:$4 sm:$0xff]  }
   0xf   :  { %1691 = vmatpush1.bf16.msra.mxu1 %v2933_v14  ;;  %v2975_v42 = vld [vmem:[%s4191_s1 + $0xf0] ss:$12 sps:$4 sm:$0xff]   ;;  %v2977_v44 = vld [vmem:[%s4191_s1 + $0x10c] ss:$12 sps:$4 sm:$0xff]   ;;  %v2981_v46 = vld [vmem:[%s4191_s1 + $0x108] ss:$12 sps:$4 sm:$0xff]  }
  0x10   :  { %1732 = vmatpush1.bf16.msra.mxu0 %v2934_v15  ;;  %1692 = vmatprep.subr.bf16.mxu1 %v2935_v16  ;;  %v2976_v43 = vld [vmem:[%s4191_s1 + $0x270] ss:$12 sps:$4 sm:$0xff]   ;;  %v2979_v45 = vld [vmem:[%s4191_s1 + $0x28c] ss:$12 sps:$4 sm:$0xff]   ;;  %v27_v47 = vld [vmem:[%s4192_s0] sm:$0xff] }
  0x11   :  { %1733 = vmatprep.subr.bf16.mxu0 %v2937_v17  ;;  %v3452_v48 = vcombine.high %v27_v47, %v27_v47  ;;  %v28_v49 = vld [vmem:[%s4192_s0 + $0x8] sm:$0xff]  ;;  %v2983_v51 = vld [vmem:[%s4191_s1 + $0x124] ss:$12 sps:$4 sm:$0xff]   ;;  %v2995_v60 = vld [vmem:[%s4191_s1 + $0x154] ss:$12 sps:$4 sm:$0xff]   ;;  %v3518_v6 = vcombine.low %v27_v47, %v27_v47 }
  0x12   :  { %v2982_v50 = vld [vmem:[%s4191_s1 + $0x288] ss:$12 sps:$4 sm:$0xff]   ;;  %v3463_v52 = vcombine.high %v28_v49, %v28_v49  ;;  %v2985_v53 = vld [vmem:[%s4191_s1 + $0x2a4] ss:$12 sps:$4 sm:$0xff]   ;;  %v2987_v54 = vld [vmem:[%s4191_s1 + $0x120] ss:$12 sps:$4 sm:$0xff]   ;;  %v3520_v7 = vcombine.low %v28_v49, %v28_v49 }
  0x13   :  { %1693 = vmatpush1.bf16.msra.mxu1 %v2939_v18  ;;  %1716 = vmatprep.mubr.bf16.mxu1 %v3452_v48  ;;  %v2988_v55 = vld [vmem:[%s4191_s1 + $0x2a0] ss:$12 sps:$4 sm:$0xff]   ;;  %v2989_v56 = vld [vmem:[%s4191_s1 + $0x13c] ss:$12 sps:$4 sm:$0xff]   ;;  %v2993_v58 = vld [vmem:[%s4191_s1 + $0x138] ss:$12 sps:$4 sm:$0xff]  }
  0x14   :  { %1734 = vmatpush1.bf16.msra.mxu0 %v2940_v19  ;;  %1694 = vmatprep.subr.bf16.mxu1 %v2941_v20  ;;  %v2991_v57 = vld [vmem:[%s4191_s1 + $0x2bc] ss:$12 sps:$4 sm:$0xff]   ;;  %v2994_v59 = vld [vmem:[%s4191_s1 + $0x2b8] ss:$12 sps:$4 sm:$0xff]   ;;  %v2997_v61 = vld [vmem:[%s4191_s1 + $0x2d4] ss:$12 sps:$4 sm:$0xff]  }
  0x15   :  { %1735 = vmatprep.subr.bf16.mxu0 %v2943_v21  ;;  %1757 = vmatprep.mubr.bf16.mxu0 %v3463_v52  ;;  %v2999_v62 = vld [vmem:[%s4191_s1 + $0x150] ss:$12 sps:$4 sm:$0xff]   ;;  %v3001_v0 = vld [vmem:[%s4191_s1 + $0x16c] ss:$12 sps:$4 sm:$0xff]   ;;  %v3005_v2 = vld [vmem:[%s4191_s1 + $0x168] ss:$12 sps:$4 sm:$0xff]  }
  0x16   :  { %v3000_v63 = vld [vmem:[%s4191_s1 + $0x2d0] ss:$12 sps:$4 sm:$0xff]   ;;  %v3003_v1 = vld [vmem:[%s4191_s1 + $0x2ec] ss:$12 sps:$4 sm:$0xff]   ;;  %v3006_v3 = vld [vmem:[%s4191_s1 + $0x2e8] ss:$12 sps:$4 sm:$0xff]  }
  0x17   :  { %1695 = vmatpush1.bf16.msra.mxu1 %v2945_v22  ;;  %v3013_v4 = vld [vmem:[%s4191_s1 + $0x304] ss:$12 sps:$4 sm:$0xff]   ;;  %v3014_v5 = vld [vmem:[%s4191_s1 + $0xc8] ss:$12 sps:$4 sm:$0xff]   ;;  %v3011_v8 = vld [vmem:[%s4191_s1 + $0x300] ss:$12 sps:$4 sm:$0xff]  }
  0x18   :  { %1736 = vmatpush1.bf16.msra.mxu0 %v2946_v23  ;;  %1696 = vmatprep.subr.bf16.mxu1 %v2947_v24  ;;  %v3015_v9 = vld [vmem:[%s4191_s1 + $0x8] ss:$12 sps:$4 sm:$0xff]   ;;  %v3019_v11 = vld [vmem:[%s4191_s1 + $0xe0] ss:$12 sps:$4 sm:$0xff]   ;;  %v3016_v12 = vld [vmem:[%s4191_s1 + $0x318] ss:$12 sps:$4 sm:$0xff]  }
  0x19   :  { %1737 = vmatprep.subr.bf16.mxu0 %v2949_v25  ;;  %v3018_v10 = vld [vmem:[%s4191_s1 + $0x31c] ss:$12 sps:$4 sm:$0xff]   ;;  %v3020_v13 = vld [vmem:[%s4191_s1 + $0x20] ss:$12 sps:$4 sm:$0xff]   ;;  %v3024_v15 = vld [vmem:[%s4191_s1 + $0xf8] ss:$12 sps:$4 sm:$0xff]  }
  0x1a   :  { %v3023_v14 = vld [vmem:[%s4191_s1 + $0x334] ss:$12 sps:$4 sm:$0xff]   ;;  %v3021_v16 = vld [vmem:[%s4191_s1 + $0x330] ss:$12 sps:$4 sm:$0xff]   ;;  %v3025_v17 = vld [vmem:[%s4191_s1 + $0x38] ss:$12 sps:$4 sm:$0xff]  }
  0x1b   :  { %1697 = vmatpush1.bf16.msra.mxu1 %v2951_v26  ;;  %v3028_v18 = vld [vmem:[%s4191_s1 + $0x34c] ss:$12 sps:$4 sm:$0xff]   ;;  %v3029_v19 = vld [vmem:[%s4191_s1 + $0x110] ss:$12 sps:$4 sm:$0xff]   ;;  %v3026_v20 = vld [vmem:[%s4191_s1 + $0x348] ss:$12 sps:$4 sm:$0xff]  }
  0x1c   :  { %1738 = vmatpush1.bf16.msra.mxu0 %v2952_v27  ;;  %1698 = vmatprep.subr.bf16.mxu1 %v2953_v28  ;;  %v3030_v21 = vld [vmem:[%s4191_s1 + $0x50] ss:$12 sps:$4 sm:$0xff]   ;;  %v3034_v23 = vld [vmem:[%s4191_s1 + $0x128] ss:$12 sps:$4 sm:$0xff]   ;;  %v3031_v24 = vld [vmem:[%s4191_s1 + $0x360] ss:$12 sps:$4 sm:$0xff]  }
  0x1d   :  { %1739 = vmatprep.subr.bf16.mxu0 %v2955_v29  ;;  %v3033_v22 = vld [vmem:[%s4191_s1 + $0x364] ss:$12 sps:$4 sm:$0xff]   ;;  %v3035_v25 = vld [vmem:[%s4191_s1 + $0x68] ss:$12 sps:$4 sm:$0xff]   ;;  %v3039_v27 = vld [vmem:[%s4191_s1 + $0x140] ss:$12 sps:$4 sm:$0xff]  }
  0x1e   :  { %v3038_v26 = vld [vmem:[%s4191_s1 + $0x37c] ss:$12 sps:$4 sm:$0xff]   ;;  %v3036_v28 = vld [vmem:[%s4191_s1 + $0x378] ss:$12 sps:$4 sm:$0xff]   ;;  %v3040_v29 = vld [vmem:[%s4191_s1 + $0x80] ss:$12 sps:$4 sm:$0xff]  }
  0x1f   :  { %1699 = vmatpush1.bf16.msra.mxu1 %v2957_v30  ;;  %v3043_v30 = vld [vmem:[%s4191_s1 + $0x394] ss:$12 sps:$4 sm:$0xff]   ;;  %v3064_v49 = vld [vmem:[%s4191_s1 + $0x278] ss:$12 sps:$4 sm:$0xff]  }
  0x20   :  { %1740 = vmatpush1.bf16.msra.mxu0 %v2958_v31  ;;  %1700 = vmatprep.subr.bf16.mxu1 %v2959_v32  ;;  %v3044_v31 = vld [vmem:[%s4191_s1 + $0x158] ss:$12 sps:$4 sm:$0xff]   ;;  %v3041_v32 = vld [vmem:[%s4191_s1 + $0x390] ss:$12 sps:$4 sm:$0xff]   ;;  %v3060_v47 = vld [vmem:[%s4191_s1 + $0x1a0] ss:$12 sps:$4 sm:$0xff]  }
  0x21   :  { %1741 = vmatprep.subr.bf16.mxu0 %v2961_v33  ;;  %v3045_v33 = vld [vmem:[%s4191_s1 + $0x98] ss:$12 sps:$4 sm:$0xff]  }
  0x23   :  { %1701 = vmatpush1.bf16.msra.mxu1 %v2963_v34  ;;  %v3048_v34 = vld [vmem:[%s4191_s1 + $0x3ac] ss:$12 sps:$4 sm:$0xff]  }
  0x24   :  { %1742 = vmatpush1.bf16.msra.mxu0 %v2964_v35  ;;  %1702 = vmatprep.subr.bf16.mxu1 %v2965_v36  ;;  %v3049_v35 = vld [vmem:[%s4191_s1 + $0x170] ss:$12 sps:$4 sm:$0xff]   ;;  %v3046_v36 = vld [vmem:[%s4191_s1 + $0x3a8] ss:$12 sps:$4 sm:$0xff]  }
  0x25   :  { %1743 = vmatprep.subr.bf16.mxu0 %v2967_v37  ;;  %v3050_v37 = vld [vmem:[%s4191_s1 + $0xb0] ss:$12 sps:$4 sm:$0xff]  }
  0x27   :  { %1703 = vmatpush1.bf16.msra.mxu1 %v2969_v38  ;;  %v3053_v38 = vld [vmem:[%s4191_s1 + $0x3c4] ss:$12 sps:$4 sm:$0xff]  }
  0x28   :  { %1744 = vmatpush1.bf16.msra.mxu0 %v2970_v39  ;;  %1704 = vmatprep.subr.bf16.mxu1 %v2971_v40  ;;  %v3054_v39 = vld [vmem:[%s4191_s1 + $0x248] ss:$12 sps:$4 sm:$0xff]   ;;  %v3051_v40 = vld [vmem:[%s4191_s1 + $0x3c0] ss:$12 sps:$4 sm:$0xff]  }
  0x29   :  { %1745 = vmatprep.subr.bf16.mxu0 %v2973_v41  ;;  %v3055_v41 = vld [vmem:[%s4191_s1 + $0x188] ss:$12 sps:$4 sm:$0xff]  }
  0x2b   :  { %1705 = vmatpush1.bf16.msra.mxu1 %v2975_v42  ;;  %v3058_v42 = vld [vmem:[%s4191_s1 + $0x3dc] ss:$12 sps:$4 sm:$0xff]  }
  0x2c   :  { %1746 = vmatpush1.bf16.msra.mxu0 %v2976_v43  ;;  %1706 = vmatprep.subr.bf16.mxu1 %v2977_v44  ;;  %v3633_v43 = vld [vmem:[%s4192_s0 + $0x10] sm:$0xff]  ;;  %v3059_v44 = vld [vmem:[%s4191_s1 + $0x260] ss:$12 sps:$4 sm:$0xff]  }
  0x2d   :  { %1747 = vmatprep.subr.bf16.mxu0 %v2979_v45  ;;  %v3640_v45 = vcombine.high %v3633_v43, %v3633_v43 }
  0x2f   :  { %1707 = vmatpush1.bf16.msra.mxu1 %v2981_v46  ;;  %v3056_v46 = vld [vmem:[%s4191_s1 + $0x3d8] ss:$12 sps:$4 sm:$0xff]  }
  0x30   :  { %1748 = vmatpush1.bf16.msra.mxu0 %v2982_v50  ;;  %1708 = vmatprep.subr.bf16.mxu1 %v2983_v51  ;;  %v3061_v50 = vld [vmem:[%s4191_s1 + $0x3f0] ss:$12 sps:$4 sm:$0xff]   ;;  %v3065_v51 = vld [vmem:[%s4191_s1 + $0x1b8] ss:$12 sps:$4 sm:$0xff]  }
  0x31   :  { %1749 = vmatprep.subr.bf16.mxu0 %v2985_v53  ;;  %v3068_v53 = vld [vmem:[%s4191_s1 + $0x40c] ss:$12 sps:$4 sm:$0xff]  }
  0x33   :  { %1709 = vmatpush1.bf16.msra.mxu1 %v2987_v54  ;;  %v3066_v54 = vld [vmem:[%s4191_s1 + $0x408] ss:$12 sps:$4 sm:$0xff]  }
  0x34   :  { %1750 = vmatpush1.bf16.msra.mxu0 %v2988_v55  ;;  %1710 = vmatprep.subr.bf16.mxu1 %v2989_v56  ;;  %v3070_v55 = vld [vmem:[%s4191_s1 + $0x1d0] ss:$12 sps:$4 sm:$0xff]  }
  0x35   :  { %1751 = vmatprep.subr.bf16.mxu0 %v2991_v57  ;;  %v3073_v56 = vld [vmem:[%s4191_s1 + $0x424] ss:$12 sps:$4 sm:$0xff]   ;;  %v3074_v57 = vld [vmem:[%s4191_s1 + $0x2a8] ss:$12 sps:$4 sm:$0xff]  }
  0x37   :  { %1711 = vmatpush1.bf16.msra.mxu1 %v2993_v58  ;;  %v3071_v58 = vld [vmem:[%s4191_s1 + $0x420] ss:$12 sps:$4 sm:$0xff]  }
  0x38   :  { %1752 = vmatpush1.bf16.msra.mxu0 %v2994_v59  ;;  %1712 = vmatprep.subr.bf16.mxu1 %v2995_v60  ;;  %v3075_v59 = vld [vmem:[%s4191_s1 + $0x1e8] ss:$12 sps:$4 sm:$0xff]  }
  0x39   :  { %1753 = vmatprep.subr.bf16.mxu0 %v2997_v61  ;;  %v3078_v60 = vld [vmem:[%s4191_s1 + $0x43c] ss:$12 sps:$4 sm:$0xff]   ;;  %v3079_v61 = vld [vmem:[%s4191_s1 + $0x2c0] ss:$12 sps:$4 sm:$0xff]  }
  0x3b   :  { %1713 = vmatpush1.bf16.msra.mxu1 %v2999_v62  ;;  %v3076_v62 = vld [vmem:[%s4191_s1 + $0x438] ss:$12 sps:$4 sm:$0xff]  }
  0x3c   :  { %1754 = vmatpush1.bf16.msra.mxu0 %v3000_v63  ;;  %1714 = vmatprep.subr.bf16.mxu1 %v3001_v0  ;;  %v3080_v63 = vld [vmem:[%s4191_s1 + $0x200] ss:$12 sps:$4 sm:$0xff]  }
  0x3d   :  { %1755 = vmatprep.subr.bf16.mxu0 %v3003_v1  ;;  %v3083_v0 = vld [vmem:[%s4191_s1 + $0x454] ss:$12 sps:$4 sm:$0xff]   ;;  %v3084_v1 = vld [vmem:[%s4191_s1 + $0x2d8] ss:$12 sps:$4 sm:$0xff]  }
  0x3f   :  { %1715 = vmatpush1.bf16.msra.mxu1 %v3005_v2  ;;  %v3081_v2 = vld [vmem:[%s4191_s1 + $0x450] ss:$12 sps:$4 sm:$0xff]  }
  0x40   :  { %1756 = vmatpush1.bf16.msra.mxu0 %v3006_v3  ;;  %2724 = vmatprep.subr.bf16.mxu1 %v3014_v5  ;;  %v3085_v3 = vld [vmem:[%s4191_s1 + $0x218] ss:$12 sps:$4 sm:$0xff]   ;;  %v3089_v5 = vld [vmem:[%s4191_s1 + $0x2f0] ss:$12 sps:$4 sm:$0xff]  }
  0x41   :  { %1766 = vmatprep.subr.bf16.mxu0 %v3013_v4  ;;  %v3088_v4 = vld [vmem:[%s4191_s1 + $0x46c] ss:$12 sps:$4 sm:$0xff]  }
  0x42   :  { %1717 = vmatmul.mubr.bf16.vlgmr.msra.gmra.mrb[0].mxu1 %v3518_v6 }
  0x43   :  { %1758 = vmatmul.mubr.bf16.vlgmr.msra.gmra.mrb[0].mxu0 %v3520_v7  ;;  %2725 = vmatpush3.bf16.msra.mxu1 %v3015_v9  ;;  %v3095_v9 = vld [vmem:[%s4191_s1 + $0x484] ss:$12 sps:$4 sm:$0xff]  }
  0x44   :  { %1767 = vmatpush1.bf16.msra.mxu0 %v3011_v8  ;;  %2726 = vmatprep.subr.bf16.mxu1 %v3019_v11  ;;  %v3090_v8 = vld [vmem:[%s4191_s1 + $0x230] ss:$12 sps:$4 sm:$0xff]   ;;  %v3093_v11 = vld [vmem:[%s4191_s1 + $0x480] ss:$12 sps:$4 sm:$0xff]  }
  0x45   :  { %1768 = vmatprep.subr.bf16.mxu0 %v3018_v10  ;;  %1921 = vmatprep.mubr.bf16.mxu1 %v3452_v48  ;;  %v3063_v48 = vld [vmem:[%s4191_s1 + $0x3f4] ss:$12 sps:$4 sm:$0xff]  }
  0x46   :  { %1798 = vmatprep.mubr.bf16.mxu0 %v3640_v45  ;;  %v3096_v10 = vld [vmem:[%s4191_s1 + $0x3c8] ss:$12 sps:$4 sm:$0xff]  }
  0x47   :  { %2727 = vmatpush3.bf16.msra.mxu1 %v3020_v13  ;;  %v3097_v13 = vld [vmem:[%s4191_s1 + $0x308] ss:$12 sps:$4 sm:$0xff]  }
  0x48   :  { %1769 = vmatpush1.bf16.msra.mxu0 %v3016_v12  ;;  %2728 = vmatprep.subr.bf16.mxu1 %v3024_v15  ;;  %v3734_v12 = vcombine.low %v3633_v43, %v3633_v43  ;;  %v3101_v15 = vld [vmem:[%s4191_s1 + $0x3e0] ss:$12 sps:$4 sm:$0xff]   ;;  %v3135_v43 = vld [vmem:[%s4191_s1 + $0x544] ss:$12 sps:$4 sm:$0xff]  }
  0x49   :  { %1770 = vmatprep.subr.bf16.mxu0 %v3023_v14  ;;  %v3100_v14 = vld [vmem:[%s4191_s1 + $0x49c] ss:$12 sps:$4 sm:$0xff]  }
  0x4b   :  { %2729 = vmatpush3.bf16.msra.mxu1 %v3025_v17  ;;  %v3102_v17 = vld [vmem:[%s4191_s1 + $0x320] ss:$12 sps:$4 sm:$0xff]  }
  0x4c   :  { %1771 = vmatpush1.bf16.msra.mxu0 %v3021_v16  ;;  %2730 = vmatprep.subr.bf16.mxu1 %v3029_v19  ;;  %v3098_v16 = vld [vmem:[%s4191_s1 + $0x498] ss:$12 sps:$4 sm:$0xff]   ;;  %v3103_v19 = vld [vmem:[%s4191_s1 + $0x4b0] ss:$12 sps:$4 sm:$0xff]  }
  0x4d   :  { %1772 = vmatprep.subr.bf16.mxu0 %v3028_v18  ;;  %v3105_v18 = vld [vmem:[%s4191_s1 + $0x4b4] ss:$12 sps:$4 sm:$0xff]  }
  0x4f   :  { %2731 = vmatpush3.bf16.msra.mxu1 %v3030_v21  ;;  %v3110_v21 = vld [vmem:[%s4191_s1 + $0x4cc] ss:$12 sps:$4 sm:$0xff]  }
  0x50   :  { %1773 = vmatpush1.bf16.msra.mxu0 %v3026_v20  ;;  %2732 = vmatprep.subr.bf16.mxu1 %v3034_v23  ;;  %v3107_v20 = vld [vmem:[%s4191_s1 + $0x338] ss:$12 sps:$4 sm:$0xff]   ;;  %v3108_v23 = vld [vmem:[%s4191_s1 + $0x4c8] ss:$12 sps:$4 sm:$0xff]  }
  0x51   :  { %1774 = vmatprep.subr.bf16.mxu0 %v3033_v22  ;;  %v3111_v22 = vld [vmem:[%s4191_s1 + $0x410] ss:$12 sps:$4 sm:$0xff]  }
  0x53   :  { %2733 = vmatpush3.bf16.msra.mxu1 %v3035_v25  ;;  %v3115_v25 = vld [vmem:[%s4191_s1 + $0x4e4] ss:$12 sps:$4 sm:$0xff]  }
  0x54   :  { %1775 = vmatpush1.bf16.msra.mxu0 %v3031_v24  ;;  %2734 = vmatprep.subr.bf16.mxu1 %v3039_v27  ;;  %v3112_v24 = vld [vmem:[%s4191_s1 + $0x350] ss:$12 sps:$4 sm:$0xff]   ;;  %v3113_v27 = vld [vmem:[%s4191_s1 + $0x4e0] ss:$12 sps:$4 sm:$0xff]  }
  0x55   :  { %1776 = vmatprep.subr.bf16.mxu0 %v3038_v26  ;;  %v3116_v26 = vld [vmem:[%s4191_s1 + $0x428] ss:$12 sps:$4 sm:$0xff]  }
  0x57   :  { %2735 = vmatpush3.bf16.msra.mxu1 %v3040_v29  ;;  %v3120_v29 = vld [vmem:[%s4191_s1 + $0x4fc] ss:$12 sps:$4 sm:$0xff]  }
  0x58   :  { %1777 = vmatpush1.bf16.msra.mxu0 %v3036_v28  ;;  %2736 = vmatprep.subr.bf16.mxu1 %v3044_v31  ;;  %v3117_v28 = vld [vmem:[%s4191_s1 + $0x368] ss:$12 sps:$4 sm:$0xff]   ;;  %v3118_v31 = vld [vmem:[%s4191_s1 + $0x4f8] ss:$12 sps:$4 sm:$0xff]  }
  0x59   :  { %1778 = vmatprep.subr.bf16.mxu0 %v3043_v30  ;;  %v3121_v30 = vld [vmem:[%s4191_s1 + $0x440] ss:$12 sps:$4 sm:$0xff]  }
  0x5b   :  { %2737 = vmatpush3.bf16.msra.mxu1 %v3045_v33  ;;  %v3125_v33 = vld [vmem:[%s4191_s1 + $0x514] ss:$12 sps:$4 sm:$0xff]  }
  0x5c   :  { %1779 = vmatpush1.bf16.msra.mxu0 %v3041_v32  ;;  %2738 = vmatprep.subr.bf16.mxu1 %v3049_v35  ;;  %v3122_v32 = vld [vmem:[%s4191_s1 + $0x380] ss:$12 sps:$4 sm:$0xff]   ;;  %v3811_v35 = vld [vmem:[%s4192_s0 + $0x18] sm:$0xff] }
  0x5d   :  { %1780 = vmatprep.subr.bf16.mxu0 %v3048_v34  ;;  %v3126_v34 = vld [vmem:[%s4191_s1 + $0x458] ss:$12 sps:$4 sm:$0xff]  }
  0x5f   :  { %2739 = vmatpush3.bf16.msra.mxu1 %v3050_v37  ;;  %v3127_v37 = vld [vmem:[%s4191_s1 + $0x398] ss:$12 sps:$4 sm:$0xff]  }
  0x60   :  { %1781 = vmatpush1.bf16.msra.mxu0 %v3046_v36  ;;  %2746 = vmatprep.subr.bf16.mxu1 %v3054_v39  ;;  %v3123_v36 = vld [vmem:[%s4191_s1 + $0x510] ss:$12 sps:$4 sm:$0xff]   ;;  %v3130_v39 = vld [vmem:[%s4191_s1 + $0x52c] ss:$12 sps:$4 sm:$0xff]  }
  0x61   :  { %1782 = vmatprep.subr.bf16.mxu0 %v3053_v38  ;;  %v2452_v38 = vcombine.high %v3811_v35, %v3811_v35 }
  0x62   :  { %1922 = vmatmul.mubr.bf16.vlgmr.msra.gmra.mrb[4].mxu1 %v3518_v6  ;;  %v3086_v6 = vld [vmem:[%s4191_s1 + $0x468] ss:$12 sps:$4 sm:$0xff]  }
  0x63   :  { %2747 = vmatpush3.bf16.msra.mxu1 %v3055_v41  ;;  %1961 = vmatprep.mubr.bf16.mxu1 %v3463_v52  ;;  %v3069_v52 = vld [vmem:[%s4191_s1 + $0x290] ss:$12 sps:$4 sm:$0xff]   ;;  %v3128_v41 = vld [vmem:[%s4191_s1 + $0x528] ss:$12 sps:$4 sm:$0xff]  }
  0x64   :  { %1783 = vmatpush1.bf16.msra.mxu0 %v3051_v40  ;;  %2748 = vmatprep.subr.bf16.mxu1 %v3059_v44  ;;  %v3131_v40 = vld [vmem:[%s4191_s1 + $0x470] ss:$12 sps:$4 sm:$0xff]   ;;  %v3136_v44 = vld [vmem:[%s4191_s1 + $0x548] ss:$12 sps:$4 sm:$0xff]  }
  0x65   :  { %1784 = vmatprep.subr.bf16.mxu0 %v3058_v42  ;;  %v3132_v42 = vld [vmem:[%s4191_s1 + $0x3b0] ss:$12 sps:$4 sm:$0xff]  }
  0x67   :  { %2749 = vmatpush3.bf16.msra.mxu1 %v3060_v47  ;;  %v3140_v47 = vld [vmem:[%s4191_s1 + $0x55c] ss:$12 sps:$4 sm:$0xff]  }
  0x68   :  { %1785 = vmatpush1.bf16.msra.mxu0 %v3056_v46  ;;  %2750 = vmatprep.subr.bf16.mxu1 %v3064_v49  ;;  %v3137_v46 = vld [vmem:[%s4191_s1 + $0x488] ss:$12 sps:$4 sm:$0xff]   ;;  %v3138_v49 = vld [vmem:[%s4191_s1 + $0x558] ss:$12 sps:$4 sm:$0xff]  }
  0x69   :  { %1786 = vmatprep.subr.bf16.mxu0 %v3063_v48  ;;  %v3141_v48 = vld [vmem:[%s4191_s1 + $0x560] ss:$12 sps:$4 sm:$0xff]  }
  0x6b   :  { %2751 = vmatpush3.bf16.msra.mxu1 %v3065_v51  ;;  %v3145_v51 = vld [vmem:[%s4191_s1 + $0x574] ss:$12 sps:$4 sm:$0xff]  }
  0x6c   :  { %1787 = vmatpush1.bf16.msra.mxu0 %v3061_v50  ;;  %2752 = vmatprep.subr.bf16.mxu1 %v3069_v52  ;;  %v3142_v50 = vld [vmem:[%s4191_s1 + $0x4a0] ss:$12 sps:$4 sm:$0xff]   ;;  %v3143_v52 = vld [vmem:[%s4191_s1 + $0x570] ss:$12 sps:$4 sm:$0xff]  }
  0x6d   :  { %1788 = vmatprep.subr.bf16.mxu0 %v3068_v53  ;;  %v3146_v53 = vld [vmem:[%s4191_s1 + $0x578] ss:$12 sps:$4 sm:$0xff]  }
  0x6f   :  { %2753 = vmatpush3.bf16.msra.mxu1 %v3070_v55  ;;  %v3150_v55 = vld [vmem:[%s4191_s1 + $0x58c] ss:$12 sps:$4 sm:$0xff]  }
  0x70   :  { %1789 = vmatpush1.bf16.msra.mxu0 %v3066_v54  ;;  %2754 = vmatprep.subr.bf16.mxu1 %v3074_v57  ;;  %v3147_v54 = vld [vmem:[%s4191_s1 + $0x4b8] ss:$12 sps:$4 sm:$0xff]   ;;  %v3148_v57 = vld [vmem:[%s4191_s1 + $0x588] ss:$12 sps:$4 sm:$0xff]  }
  0x71   :  { %1790 = vmatprep.subr.bf16.mxu0 %v3073_v56  ;;  %v3151_v56 = vld [vmem:[%s4191_s1 + $0x590] ss:$12 sps:$4 sm:$0xff]  }
  0x73   :  { %2755 = vmatpush3.bf16.msra.mxu1 %v3075_v59  ;;  %v3155_v59 = vld [vmem:[%s4191_s1 + $0x5a4] ss:$12 sps:$4 sm:$0xff]  }
  0x74   :  { %1791 = vmatpush1.bf16.msra.mxu0 %v3071_v58  ;;  %2756 = vmatprep.subr.bf16.mxu1 %v3079_v61  ;;  %v3152_v58 = vld [vmem:[%s4191_s1 + $0x4d0] ss:$12 sps:$4 sm:$0xff]   ;;  %v3153_v61 = vld [vmem:[%s4191_s1 + $0x5a0] ss:$12 sps:$4 sm:$0xff]  }
  0x75   :  { %1792 = vmatprep.subr.bf16.mxu0 %v3078_v60  ;;  %v3156_v60 = vld [vmem:[%s4191_s1 + $0x5a8] ss:$12 sps:$4 sm:$0xff]  }
  0x77   :  { %2757 = vmatpush3.bf16.msra.mxu1 %v3080_v63  ;;  %v3160_v63 = vld [vmem:[%s4191_s1 + $0x5bc] ss:$12 sps:$4 sm:$0xff]  }
  0x78   :  { %1793 = vmatpush1.bf16.msra.mxu0 %v3076_v62  ;;  %2758 = vmatprep.subr.bf16.mxu1 %v3084_v1  ;;  %v3157_v62 = vld [vmem:[%s4191_s1 + $0x4e8] ss:$12 sps:$4 sm:$0xff]   ;;  %v3158_v1 = vld [vmem:[%s4191_s1 + $0x5b8] ss:$12 sps:$4 sm:$0xff]  }
  0x79   :  { %1794 = vmatprep.subr.bf16.mxu0 %v3083_v0  ;;  %v3161_v0 = vld [vmem:[%s4191_s1 + $0x5c0] ss:$12 sps:$4 sm:$0xff]  }
  0x7b   :  { %2759 = vmatpush3.bf16.msra.mxu1 %v3085_v3  ;;  %v3165_v3 = vld [vmem:[%s4191_s1 + $0x5d4] ss:$12 sps:$4 sm:$0xff]  }
  0x7c   :  { %1795 = vmatpush1.bf16.msra.mxu0 %v3081_v2  ;;  %2760 = vmatprep.subr.bf16.mxu1 %v3089_v5  ;;  %v3162_v2 = vld [vmem:[%s4191_s1 + $0x500] ss:$12 sps:$4 sm:$0xff]   ;;  %v3163_v5 = vld [vmem:[%s4191_s1 + $0x5d0] ss:$12 sps:$4 sm:$0xff]  }
  0x7d   :  { %1796 = vmatprep.subr.bf16.mxu0 %v3088_v4  ;;  %v3166_v4 = vld [vmem:[%s4191_s1 + $0x5d8] ss:$12 sps:$4 sm:$0xff]  }
  0x7f   :  { %2761 = vmatpush3.bf16.msra.mxu1 %v3090_v8  ;;  %v3170_v8 = vld [vmem:[%s4191_s1 + $0x5ec] ss:$12 sps:$4 sm:$0xff]  }
  0x80   :  { %1797 = vmatpush1.bf16.msra.mxu0 %v3086_v6  ;;  %2768 = vmatprep.subr.bf16.mxu1 %v3096_v10  ;;  %v3167_v6 = vld [vmem:[%s4191_s1 + $0x518] ss:$12 sps:$4 sm:$0xff]   ;;  %v3168_v10 = vld [vmem:[%s4191_s1 + $0x5e8] ss:$12 sps:$4 sm:$0xff]  }
  0x81   :  { %1807 = vmatprep.subr.bf16.mxu0 %v3095_v9  ;;  %v3171_v9 = vld [vmem:[%s4191_s1 + $0x5f0] ss:$12 sps:$4 sm:$0xff]  }
  0x82   :  { %1962 = vmatmul.mubr.bf16.vlgmr.msra.gmra.mrb[8].mxu1 %v3520_v7  ;;  %v3106_v7 = vld [vmem:[%s4191_s1 + $0x3f8] ss:$12 sps:$4 sm:$0xff]  }
  0x83   :  { %1799 = vmatmul.mubr.bf16.vlgmr.msra.gmra.mrb[0].mxu0 %v3734_v12  ;;  %2769 = vmatpush3.bf16.msra.mxu1 %v3097_v13  ;;  %v3178_v13 = vld [vmem:[%s4191_s1 + $0x6c8] ss:$12 sps:$4 sm:$0xff]  }
  0x84   :  { %1808 = vmatpush1.bf16.msra.mxu0 %v3093_v11  ;;  %2770 = vmatprep.subr.bf16.mxu1 %v3101_v15  ;;  %v3172_v11 = vld [vmem:[%s4191_s1 + $0x530] ss:$12 sps:$4 sm:$0xff]   ;;  %v3941_v15 = vld [vmem:[%s4192_s0 + $0x20] sm:$0xff] }
  0x85   :  { %1809 = vmatprep.subr.bf16.mxu0 %v3100_v14  ;;  %2001 = vmatprep.mubr.bf16.mxu1 %v3640_v45  ;;  %v3133_v45 = vld [vmem:[%s4191_s1 + $0x540] ss:$12 sps:$4 sm:$0xff]   ;;  %v2451_v14 = vcombine.low %v3811_v35, %v3811_v35 }
  0x86   :  { %1839 = vmatprep.mubr.bf16.mxu0 %v2452_v38  ;;  %v3203_v35 = vld [vmem:[%s4191_s1 + $0x740] ss:$12 sps:$4 sm:$0xff]  }
  0x87   :  { %2771 = vmatpush3.bf16.msra.mxu1 %v3102_v17  ;;  %v3179_v17 = vld [vmem:[%s4191_s1 + $0x608] ss:$12 sps:$4 sm:$0xff]  }
  0x88   :  { %1810 = vmatpush1.bf16.msra.mxu0 %v3098_v16  ;;  %2772 = vmatprep.subr.bf16.mxu1 %v3106_v7  ;;  %v3175_v16 = vld [vmem:[%s4191_s1 + $0x600] ss:$12 sps:$4 sm:$0xff]  }
  0x89   :  { %1811 = vmatprep.subr.bf16.mxu0 %v3105_v18  ;;  %v3182_v18 = vld [vmem:[%s4191_s1 + $0x61c] ss:$12 sps:$4 sm:$0xff]   ;;  %v3183_v7 = vld [vmem:[%s4191_s1 + $0x6e0] ss:$12 sps:$4 sm:$0xff]  }
  0x8b   :  { %2773 = vmatpush3.bf16.msra.mxu1 %v3107_v20  ;;  %v3180_v20 = vld [vmem:[%s4191_s1 + $0x618] ss:$12 sps:$4 sm:$0xff]  }
  0x8c   :  { %1812 = vmatpush1.bf16.msra.mxu0 %v3103_v19  ;;  %2774 = vmatprep.subr.bf16.mxu1 %v3111_v22  ;;  %v2454_v19 = vcombine.high %v3941_v15, %v3941_v15  ;;  %v3187_v22 = vld [vmem:[%s4191_s1 + $0x634] ss:$12 sps:$4 sm:$0xff]  }
  0x8d   :  { %1813 = vmatprep.subr.bf16.mxu0 %v3110_v21  ;;  %v3184_v21 = vld [vmem:[%s4191_s1 + $0x620] ss:$12 sps:$4 sm:$0xff]  }
  0x8f   :  { %2775 = vmatpush3.bf16.msra.mxu1 %v3112_v24  ;;  %v3185_v24 = vld [vmem:[%s4191_s1 + $0x630] ss:$12 sps:$4 sm:$0xff]  }
  0x90   :  { %1814 = vmatpush1.bf16.msra.mxu0 %v3108_v23  ;;  %2776 = vmatprep.subr.bf16.mxu1 %v3116_v26  ;;  %v3188_v23 = vld [vmem:[%s4191_s1 + $0x6f8] ss:$12 sps:$4 sm:$0xff]  }
  0x91   :  { %1815 = vmatprep.subr.bf16.mxu0 %v3115_v25  ;;  %v3189_v25 = vld [vmem:[%s4191_s1 + $0x638] ss:$12 sps:$4 sm:$0xff]  }
  0x92   :  { %v3192_v26 = vld [vmem:[%s4191_s1 + $0x64c] ss:$12 sps:$4 sm:$0xff]  }
  0x93   :  { %2777 = vmatpush3.bf16.msra.mxu1 %v3117_v28  ;;  %v3190_v28 = vld [vmem:[%s4191_s1 + $0x648] ss:$12 sps:$4 sm:$0xff]  }
  0x94   :  { %1816 = vmatpush1.bf16.msra.mxu0 %v3113_v27  ;;  %2778 = vmatprep.subr.bf16.mxu1 %v3121_v30  ;;  %v3193_v27 = vld [vmem:[%s4191_s1 + $0x710] ss:$12 sps:$4 sm:$0xff]  }
  0x95   :  { %1817 = vmatprep.subr.bf16.mxu0 %v3120_v29  ;;  %v3194_v29 = vld [vmem:[%s4191_s1 + $0x650] ss:$12 sps:$4 sm:$0xff]  }
  0x96   :  { %v3197_v30 = vld [vmem:[%s4191_s1 + $0x664] ss:$12 sps:$4 sm:$0xff]  }
  0x97   :  { %2779 = vmatpush3.bf16.msra.mxu1 %v3122_v32  ;;  %v3195_v32 = vld [vmem:[%s4191_s1 + $0x660] ss:$12 sps:$4 sm:$0xff]  }
  0x98   :  { %1818 = vmatpush1.bf16.msra.mxu0 %v3118_v31  ;;  %2780 = vmatprep.subr.bf16.mxu1 %v3126_v34  ;;  %v3198_v31 = vld [vmem:[%s4191_s1 + $0x728] ss:$12 sps:$4 sm:$0xff]  }
  0x99   :  { %1819 = vmatprep.subr.bf16.mxu0 %v3125_v33  ;;  %v3199_v33 = vld [vmem:[%s4191_s1 + $0x668] ss:$12 sps:$4 sm:$0xff]  }
  0x9a   :  { %v3202_v34 = vld [vmem:[%s4191_s1 + $0x67c] ss:$12 sps:$4 sm:$0xff]  }
  0x9b   :  { %2781 = vmatpush3.bf16.msra.mxu1 %v3127_v37  ;;  %v3204_v37 = vld [vmem:[%s4191_s1 + $0x680] ss:$12 sps:$4 sm:$0xff]  }
  0x9c   :  { %1820 = vmatpush1.bf16.msra.mxu0 %v3123_v36  ;;  %2782 = vmatprep.subr.bf16.mxu1 %v3131_v40  ;;  %v3200_v36 = vld [vmem:[%s4191_s1 + $0x678] ss:$12 sps:$4 sm:$0xff]   ;;  %v3205_v40 = vld [vmem:[%s4191_s1 + $0x690] ss:$12 sps:$4 sm:$0xff]  }
  0x9d   :  { %1821 = vmatprep.subr.bf16.mxu0 %v3130_v39  ;;  %v3208_v39 = vld [vmem:[%s4191_s1 + $0x758] ss:$12 sps:$4 sm:$0xff]  }
  0x9f   :  { %2783 = vmatpush3.bf16.msra.mxu1 %v3132_v42  ;;  %v3212_v42 = vld [vmem:[%s4191_s1 + $0x6ac] ss:$12 sps:$4 sm:$0xff]  }
  0xa0   :  { %1822 = vmatpush1.bf16.msra.mxu0 %v3128_v41  ;;  %2790 = vmatprep.subr.bf16.mxu1 %v3136_v44  ;;  %v3209_v41 = vld [vmem:[%s4191_s1 + $0x698] ss:$12 sps:$4 sm:$0xff]   ;;  %v3210_v44 = vld [vmem:[%s4191_s1 + $0x6a8] ss:$12 sps:$4 sm:$0xff]  }
  0xa1   :  { %1823 = vmatprep.subr.bf16.mxu0 %v3135_v43  ;;  %v3213_v43 = vld [vmem:[%s4191_s1 + $0x770] ss:$12 sps:$4 sm:$0xff]  }
  0xa2   :  { %2002 = vmatmul.mubr.bf16.vlgmr.msra.gmra.mrb[12].mxu1 %v3734_v12  ;;  %v3177_v12 = vld [vmem:[%s4191_s1 + $0x604] ss:$12 sps:$4 sm:$0xff]  }
  0xa3   :  { %2791 = vmatpush3.bf16.msra.mxu1 %v3137_v46  ;;  %2041 = vmatprep.mubr.bf16.mxu1 %v2452_v38  ;;  %v3207_v38 = vld [vmem:[%s4191_s1 + $0x694] ss:$12 sps:$4 sm:$0xff]   ;;  %v3219_v46 = vld [vmem:[%s4191_s1 + $0x6c4] ss:$12 sps:$4 sm:$0xff]  }
  0xa4   :  { %1824 = vmatpush1.bf16.msra.mxu0 %v3133_v45  ;;  %2792 = vmatprep.subr.bf16.mxu1 %v3141_v48  ;;  %v3214_v45 = vld [vmem:[%s4191_s1 + $0x6b0] ss:$12 sps:$4 sm:$0xff]   ;;  %v3217_v48 = vld [vmem:[%s4191_s1 + $0x6c0] ss:$12 sps:$4 sm:$0xff]  }
  0xa5   :  { %1825 = vmatprep.subr.bf16.mxu0 %v3140_v47  ;;  %v2453_v47 = vcombine.low %v3941_v15, %v3941_v15  ;;  %v3246_v15 = vld [vmem:[%s4193_s3] sm:$0xff]  }
  0xa7   :  { %2793 = vmatpush3.bf16.msra.mxu1 %v3142_v50  ;;  %v3220_v50 = vld [vmem:[%s4191_s1 + $0x6d8] ss:$12 sps:$4 sm:$0xff]  }
  0xa8   :  { %1826 = vmatpush1.bf16.msra.mxu0 %v3138_v49  ;;  %2794 = vmatprep.subr.bf16.mxu1 %v3146_v53  ;;  %v3222_v49 = vld [vmem:[%s4191_s1 + $0x6dc] ss:$12 sps:$4 sm:$0xff]  }
  0xa9   :  { %1827 = vmatprep.subr.bf16.mxu0 %v3145_v51  ;;  %v3225_v51 = vld [vmem:[%s4191_s1 + $0x6f4] ss:$12 sps:$4 sm:$0xff]   ;;  %v3223_v53 = vld [vmem:[%s4191_s1 + $0x6f0] ss:$12 sps:$4 sm:$0xff]  }
  0xab   :  { %2795 = vmatpush3.bf16.msra.mxu1 %v3147_v54  ;;  %v3226_v54 = vld [vmem:[%s4191_s1 + $0x708] ss:$12 sps:$4 sm:$0xff]  }
  0xac   :  { %1828 = vmatpush1.bf16.msra.mxu0 %v3143_v52  ;;  %2796 = vmatprep.subr.bf16.mxu1 %v3151_v56  ;;  %v3228_v52 = vld [vmem:[%s4191_s1 + $0x70c] ss:$12 sps:$4 sm:$0xff]  }
  0xad   :  { %1829 = vmatprep.subr.bf16.mxu0 %v3150_v55  ;;  %v3231_v55 = vld [vmem:[%s4191_s1 + $0x724] ss:$12 sps:$4 sm:$0xff]   ;;  %v3229_v56 = vld [vmem:[%s4191_s1 + $0x720] ss:$12 sps:$4 sm:$0xff]  }
  0xaf   :  { %2797 = vmatpush3.bf16.msra.mxu1 %v3152_v58  ;;  %v3232_v58 = vld [vmem:[%s4191_s1 + $0x738] ss:$12 sps:$4 sm:$0xff]  }
  0xb0   :  { %1830 = vmatpush1.bf16.msra.mxu0 %v3148_v57  ;;  %2798 = vmatprep.subr.bf16.mxu1 %v3156_v60  ;;  %v3234_v57 = vld [vmem:[%s4191_s1 + $0x73c] ss:$12 sps:$4 sm:$0xff]  }
  0xb1   :  { %1831 = vmatprep.subr.bf16.mxu0 %v3155_v59  ;;  %v3237_v59 = vld [vmem:[%s4191_s1 + $0x754] ss:$12 sps:$4 sm:$0xff]   ;;  %v3235_v60 = vld [vmem:[%s4191_s1 + $0x750] ss:$12 sps:$4 sm:$0xff]  }
  0xb3   :  { %2799 = vmatpush3.bf16.msra.mxu1 %v3157_v62  ;;  %v3238_v62 = vld [vmem:[%s4191_s1 + $0x768] ss:$12 sps:$4 sm:$0xff]  }
  0xb4   :  { %1832 = vmatpush1.bf16.msra.mxu0 %v3153_v61  ;;  %2800 = vmatprep.subr.bf16.mxu1 %v3161_v0  ;;  %v3240_v61 = vld [vmem:[%s4191_s1 + $0x76c] ss:$12 sps:$4 sm:$0xff]  }
  0xb5   :  { %1833 = vmatprep.subr.bf16.mxu0 %v3160_v63 }
  0xb7   :  { %2801 = vmatpush3.bf16.msra.mxu1 %v3162_v2 }
  0xb8   :  { %1834 = vmatpush1.bf16.msra.mxu0 %v3158_v1  ;;  %2802 = vmatprep.subr.bf16.mxu1 %v3166_v4  ;;  %v3241_v4 = vld [vmem:[%s4193_s3 + $0x80] sm:$0xff]  }
  0xb9   :  { %1835 = vmatprep.subr.bf16.mxu0 %v3165_v3  ;;  %v3266_v3 = vmov 0.0  }
  0xbb   :  { %2803 = vmatpush3.bf16.msra.mxu1 %v3167_v6 }
  0xbc   :  { %1836 = vmatpush1.bf16.msra.mxu0 %v3163_v5  ;;  %2804 = vmatprep.subr.bf16.mxu1 %v3171_v9  ;;  %v3242_v5 = vld [vmem:[%s4193_s3 + $0x88] sm:$0xff]   ;;  %v3243_v9 = vld [vmem:[%s4193_s3 + $0x90] sm:$0xff]  }
  0xbd   :  { %1837 = vmatprep.subr.bf16.mxu0 %v3170_v8 }
  0xbf   :  { %2805 = vmatpush3.bf16.msra.mxu1 %v3172_v11 }
  0xc0   :  { %1838 = vmatpush1.bf16.msra.mxu0 %v3168_v10  ;;  %2812 = vmatprep.subr.bf16.mxu1 %v3178_v13  ;;  %v3244_v13 = vld [vmem:[%s4193_s3 + $0x98] sm:$0xff]  }
  0xc1   :  { %1848 = vmatprep.subr.bf16.mxu0 %v3177_v12 }
  0xc2   :  { %2042 = vmatmul.mubr.bf16.vlgmr.msra.gmra.mrb[16].mxu1 %v2451_v14 }
  0xc3   :  { %1840 = vmatmul.mubr.bf16.vlgmr.msra.gmra.mrb[0].mxu0 %v2451_v14  ;;  %2813 = vmatpush3.bf16.msra.mxu1 %v3179_v17  ;;  %v3245_v14 = vld [vmem:[%s4193_s3 + $0x40] sm:$0xff]   ;;  %v3248_v17 = vld [vmem:[%s4193_s3 + $0x8] sm:$0xff]  }
  0xc4   :  { %1849 = vmatpush1.bf16.msra.mxu0 %v3175_v16  ;;  %2814 = vmatprep.subr.bf16.mxu1 %v3183_v7  ;;  %v3247_v16 = vld [vmem:[%s4193_s3 + $0x48] sm:$0xff]   ;;  %v3250_v7 = vld [vmem:[%s4193_s3 + $0x10] sm:$0xff]  }
  0xc5   :  { %1850 = vmatprep.subr.bf16.mxu0 %v3182_v18  ;;  %2081 = vmatprep.mubr.bf16.mxu1 %v2454_v19  ;;  %v3249_v18 = vld [vmem:[%s4193_s3 + $0x50] sm:$0xff]  }
  0xc6   :  { %1880 = vmatprep.mubr.bf16.mxu0 %v2454_v19  ;;  %v3251_v19 = vld [vmem:[%s4193_s3 + $0x58] sm:$0xff]  }
  0xc7   :  { %2815 = vmatpush3.bf16.msra.mxu1 %v3184_v21  ;;  %v3252_v21 = vld [vmem:[%s4193_s3 + $0x18] sm:$0xff]  }
  0xc8   :  { %1851 = vmatpush1.bf16.msra.mxu0 %v3180_v20  ;;  %2816 = vmatprep.subr.bf16.mxu1 %v3188_v23  ;;  %v354_v20 = vlaneseq }
  0xc9   :  { %1852 = vmatprep.subr.bf16.mxu0 %v3187_v22  ;;  %v3253_v22 = vld [vmem:[%s4193_s3 + $0x60] sm:$0xff]  }
  0xca   :  { %v355_v23 = vshrl.u32 %v354_v20, 7 }
  0xcb   :  { %2817 = vmatpush3.bf16.msra.mxu1 %v3189_v25  ;;  %v3255_v25 = vld [vmem:[%s4193_s3 + $0x68] sm:$0xff]  }
  0xcc   :  { %1853 = vmatpush1.bf16.msra.mxu0 %v3185_v24  ;;  %2818 = vmatprep.subr.bf16.mxu1 %v3193_v27  ;;  %v3254_v24 = vld [vmem:[%s4193_s3 + $0x20] sm:$0xff]   ;;  %v3256_v27 = vld [vmem:[%s4193_s3 + $0x28] sm:$0xff]  }
  0xcd   :  { %1854 = vmatprep.subr.bf16.mxu0 %v3192_v26  ;;  %v364_v26 = vsub.s32 2, %v355_v23 }
  0xcf   :  { %2819 = vmatpush3.bf16.msra.mxu1 %v3194_v29 }
  0xd0   :  { %1855 = vmatpush1.bf16.msra.mxu0 %v3190_v28  ;;  %2820 = vmatprep.subr.bf16.mxu1 %v3198_v31  ;;  %v352_v28 = vld [vmem:[%s4194_s2] sm:$0x7] }
  0xd1   :  { %1856 = vmatprep.subr.bf16.mxu0 %v3197_v30  ;;  %v365_v29 = vrot.slane %v352_v28, %v364_v26  ;;  %v3257_v30 = vld [vmem:[%s4193_s3 + $0x70] sm:$0xff]  }
  0xd3   :  { %2821 = vmatpush3.bf16.msra.mxu1 %v3199_v33  ;;  %v3258_v33 = vld [vmem:[%s4193_s3 + $0x30] sm:$0xff]  }
  0xd4   :  { %1857 = vmatpush1.bf16.msra.mxu0 %v3195_v32  ;;  %2822 = vmatprep.subr.bf16.mxu1 %v3203_v35 }
  0xd5   :  { %1858 = vmatprep.subr.bf16.mxu0 %v3202_v34 }
  0xd7   :  { %2823 = vmatpush3.bf16.msra.mxu1 %v3204_v37 }
  0xd8   :  { %1859 = vmatpush1.bf16.msra.mxu0 %v3200_v36  ;;  %2824 = vmatprep.subr.bf16.mxu1 %v3208_v39 }
  0xd9   :  { %1860 = vmatprep.subr.bf16.mxu0 %v3207_v38  ;;  %v3259_v38 = vld [vmem:[%s4193_s3 + $0x78] sm:$0xff]  }
  0xdb   :  { %2825 = vmatpush3.bf16.msra.mxu1 %v3209_v41 }
  0xdc   :  { %1861 = vmatpush1.bf16.msra.mxu0 %v3205_v40  ;;  %2826 = vmatprep.subr.bf16.mxu1 %v3213_v43  ;;  %v3260_v40 = vld [vmem:[%s4193_s3 + $0x38] sm:$0xff]  }
  0xdd   :  { %1862 = vmatprep.subr.bf16.mxu0 %v3212_v42 }
  0xdf   :  { %2827 = vmatpush3.bf16.msra.mxu1 %v3214_v45 }
  0xe0   :  { %1863 = vmatpush1.bf16.msra.mxu0 %v3210_v44  ;;  %2834 = vmatprep.subr.bf16.mxu1 %v3245_v14 }
  0xe1   :  { %1864 = vmatprep.subr.bf16.mxu0 %v3219_v46 }
  0xe2   :  { %2082 = vmatmul.mubr.bf16.vlgmr.msra.gmra.mrb[20].mxu1 %v2453_v47 }
  0xe3   :  { %2835 = vmatpush3.bf16.msra.mxu1 %v3246_v15 }
  0xe4   :  { %1865 = vmatpush1.bf16.msra.mxu0 %v3217_v48  ;;  %2836 = vmatprep.subr.bf16.mxu1 %v3247_v16 }
  0xe5   :  { %1866 = vmatprep.subr.bf16.mxu0 %v3222_v49 }
  0xe7   :  { %2837 = vmatpush3.bf16.msra.mxu1 %v3248_v17  ;;  %v3263_v17 = vld [vmem:[%s4195_s5 + $0x10] sm:$0xff]  }
  0xe8   :  { %1867 = vmatpush1.bf16.msra.mxu0 %v3220_v50  ;;  %2838 = vmatprep.subr.bf16.mxu1 %v3249_v18  ;;  %v3264_v18 = vld [vmem:[%s4195_s5 + $0x18] sm:$0xff]  }
  0xe9   :  { %1868 = vmatprep.subr.bf16.mxu0 %v3225_v51 }
  0xeb   :  { %2839 = vmatpush3.bf16.msra.mxu1 %v3250_v7  ;;  %v3265_v7 = vld [vmem:[%s4195_s5 + $0x20] sm:$0xff]  }
  0xec   :  { %1869 = vmatpush1.bf16.msra.mxu0 %v3223_v53  ;;  %2840 = vmatprep.subr.bf16.mxu1 %v3251_v19 }
  0xed   :  { %1870 = vmatprep.subr.bf16.mxu0 %v3228_v52 }
  0xef   :  { %2841 = vmatpush3.bf16.msra.mxu1 %v3252_v21 }
  0xf0   :  { %1871 = vmatpush1.bf16.msra.mxu0 %v3226_v54  ;;  %2842 = vmatprep.subr.bf16.mxu1 %v3253_v22 }
  0xf1   :  { %1872 = vmatprep.subr.bf16.mxu0 %v3231_v55 }
  0xf3   :  { %2843 = vmatpush3.bf16.msra.mxu1 %v3254_v24  ;;  %v2695_v24 = vld [vmem:[%s4196_s4] ss:$0 sm:$0xff] }
  0xf4   :  { %1873 = vmatpush1.bf16.msra.mxu0 %v3229_v56  ;;  %2844 = vmatprep.subr.bf16.mxu1 %v3255_v25 }
  0xf5   :  { %1874 = vmatprep.subr.bf16.mxu0 %v3234_v57 }
  0xf7   :  { %2845 = vmatpush3.bf16.msra.mxu1 %v3256_v27 }
  0xf8   :  { %1875 = vmatpush1.bf16.msra.mxu0 %v3232_v58  ;;  %2846 = vmatprep.subr.bf16.mxu1 %v3257_v30 }
  0xf9   :  { %1876 = vmatprep.subr.bf16.mxu0 %v3237_v59 }
  0xfb   :  { %2847 = vmatpush3.bf16.msra.mxu1 %v3258_v33 }
  0xfc   :  { %1877 = vmatpush1.bf16.msra.mxu0 %v3235_v60  ;;  %2848 = vmatprep.subr.bf16.mxu1 %v3259_v38 }
  0xfd   :  { %1878 = vmatprep.subr.bf16.mxu0 %v3240_v61  ;;  %v356_v61 = vsub.s32 0, %v355_v23 }
  0xff   :  { %2849 = vmatpush3.bf16.msra.mxu1 %v3260_v40 }
 0x100   :  { %1879 = vmatpush1.bf16.msra.mxu0 %v3238_v62  ;;  %2879 = vmatprep.subr.bf16.mxu1 %v3266_v3  ;;  %v360_v62 = vsub.s32 1, %v355_v23 }
 0x101   :  { %2867 = vmatprep.subr.bf16.mxu0 %v3266_v3 }
 0x103   :  { %1881 = vmatmul.mubr.bf16.vlgmr.msra.gmra.mrb[0].mxu0 %v2453_v47 }
 0x104   :  { %2868 = vmatpush3.bf16.msra.mxu0 %v3241_v4  ;;  %2875 = vmatprep.mubr.msk.bf16.mxu0 %vm3267_vm0, %v3266_v3 }
 0x105   :  { %2869 = vmatprep.subr.bf16.mxu0 %v3266_v3 }
 0x108   :  { %2870 = vmatpush3.bf16.msra.mxu0 %v3242_v5 }
 0x109   :  { %2871 = vmatprep.subr.bf16.mxu0 %v3266_v3 }
 0x10c   :  { %2872 = vmatpush3.bf16.msra.mxu0 %v3243_v9 }
 0x10d   :  { %2873 = vmatprep.subr.bf16.mxu0 %v3266_v3 }
 0x110   :  { %2874 = vmatpush3.bf16.msra.mxu0 %v3244_v13 }
 0x115   :  { %v4085_v63 = vpop.f32.mrb[0].mxu1 }
 0x116   :  { %v4087_v0 = vpop.f32.mrb[1].mxu1 }
 0x117   :  { %v1722_v1 = vpop.f32.mrb[2].mxu1 }
 0x118   :  { %v1723_v2 = vpop.f32.mrb[3].mxu1  ;;  %v357_v1 = vrot.slane %v352_v28, %v356_v61 }
 0x119   :  { %v361_v2 = vrot.slane %v352_v28, %v360_v62 }
 0x11a   :  { %v1719_v4 = vadd.f32 %v4085_v63, %v357_v1  ;;  %v3261_v63 = vld [vmem:[%s4195_s5] sm:$0xff]  }
 0x11b   :  { %v1721_v5 = vadd.f32 %v4087_v0, %v361_v2  ;;  %v3262_v0 = vld [vmem:[%s4195_s5 + $0x8] sm:$0xff]  }
 0x135   :  { %v2740_v6 = vpop.f32.mrb[4].mxu1 }
 0x136   :  { %v2741_v8 = vpop.f32.mrb[5].mxu1 }
 0x137   :  { %v2742_v10 = vadd.f32 %v2741_v8, %v2740_v6  ;;  %v2743_v11 = vpop.f32.mrb[6].mxu1 }
 0x138   :  { %v2744_v12 = vpop.f32.mrb[7].mxu1 }
 0x139   :  { %v1924_v31 = vadd.f32 %v2742_v10, %v365_v29 }
 0x155   :  { %v2762_v32 = vpop.f32.mrb[8].mxu1 }
 0x156   :  { %v2763_v34 = vpop.f32.mrb[9].mxu1 }
 0x157   :  { %v2764_v35 = vadd.f32 %v2763_v34, %v2762_v32  ;;  %v2765_v36 = vpop.f32.mrb[10].mxu1  ;;  %v2717_v32 = vld [vmem:[%s4197_s6] ss:$0 sm:$0xff] }
 0x158   :  { %v2766_v37 = vpop.f32.mrb[11].mxu1 }
 0x159   :  { %v1964_v39 = vadd.f32 %v2764_v35, %v1924_v31 }
 0x175   :  { %v2784_v41 = vpop.f32.mrb[12].mxu1 }
 0x176   :  { %v2785_v42 = vpop.f32.mrb[13].mxu1 }
 0x177   :  { %v2786_v43 = vadd.f32 %v2785_v42, %v2784_v41  ;;  %v2787_v44 = vpop.f32.mrb[14].mxu1 }
 0x178   :  { %v2788_v45 = vpop.f32.mrb[15].mxu1 }
 0x179   :  { %v2004_v46 = vadd.f32 %v2786_v43, %v1964_v39 }
 0x195   :  { %v2806_v47 = vpop.f32.mrb[16].mxu1 }
 0x196   :  { %v2807_v48 = vpop.f32.mrb[17].mxu1 }
 0x197   :  { %v2808_v49 = vadd.f32 %v2807_v48, %v2806_v47  ;;  %v2809_v50 = vpop.f32.mrb[18].mxu1 }
 0x198   :  { %v2810_v51 = vpop.f32.mrb[19].mxu1 }
 0x199   :  { %v2044_v53 = vadd.f32 %v2808_v49, %v2004_v46 }
 0x1b5   :  { %v2828_v52 = vpop.f32.mrb[20].mxu1 }
 0x1b6   :  { %v2829_v54 = vpop.f32.mrb[21].mxu1 }
 0x1b7   :  { %v2830_v55 = vadd.f32 %v2829_v54, %v2828_v52  ;;  %v2831_v56 = vpop.f32.mrb[22].mxu1 }
 0x1b8   :  { %v2832_v57 = vpop.f32.mrb[23].mxu1 }
 0x1b9   :  { %v2084_v58 = vadd.f32 %v2830_v55, %v2044_v53 }
 0x1bb   :  { %v2091_v59 = vmax.f32 %v2084_v58, 0.0 }
 0x1bd   :  { %v2094_v60 = vpack.c.bf16 %v2091_v59, %v2091_v59 }
 0x1bf   :  { %2876 = vmatmul.mubr.msk.bf16.vlgmr.msra.gmra.mrb[4].mxu0 %vm2262_vm1, %v2094_v60 }
 0x1d6   :  { %v1882_v6 = vpop.f32.mrb[0].mxu0 }
 0x1d7   :  { %v2894_v8 = vadd.f32 %v1882_v6, %v1719_v4  ;;  %v1884_v9 = vpop.f32.mrb[1].mxu0 }
 0x1d8   :  { %v2896_v10 = vadd.f32 %v1884_v9, %v1721_v5  ;;  %v1886_v11 = vpop.f32.mrb[2].mxu0 }
 0x1d9   :  { %v2089_v12 = vmax.f32 %v2894_v8, 0.0  ;;  %v1887_v13 = vpop.f32.mrb[3].mxu0 }
 0x1da   :  { %v2090_v14 = vmax.f32 %v2896_v10, 0.0 }
 0x1db   :  { %v2092_v16 = vpack.c.bf16 %v2089_v12, %v2089_v12 }
 0x1dc   :  { %v2093_v15 = vpack.c.bf16 %v2090_v14, %v2090_v14 }
 0x1de   :  { %2298 = vmatprep.mubr.bf16.mxu1 %v2093_v15 }
 0x1df   :  { %2299 = vmatmul.mubr.bf16.vlgmr.msra.gmra.mrb[24].mxu1 %v2092_v16 }
 0x1e0   :  { %2889 = vmatprep.mubr.msk.bf16.mxu1 %vm3267_vm0, %v3266_v3  ;;  %2880 = vmatpush3.bf16.msra.mxu1 %v3261_v63 }
 0x1e1   :  { %2881 = vmatprep.subr.bf16.mxu1 %v3266_v3 }
 0x1e4   :  { %2882 = vmatpush3.bf16.msra.mxu1 %v3262_v0 }
 0x1e5   :  { %2883 = vmatprep.subr.bf16.mxu1 %v3266_v3 }
 0x1e8   :  { %2884 = vmatpush3.bf16.msra.mxu1 %v3263_v17 }
 0x1e9   :  { %2885 = vmatprep.subr.bf16.mxu1 %v3266_v3 }
 0x1ec   :  { %2886 = vmatpush3.bf16.msra.mxu1 %v3264_v18 }
 0x1ed   :  { %2887 = vmatprep.subr.bf16.mxu1 %v3266_v3 }
 0x1f0   :  { %2888 = vmatpush3.bf16.msra.mxu1 %v3265_v7 }
 0x292   :  { %v2340_v19 = vpop.f32.mrb[4].mxu0 }
 0x293   :  { %v2877_v20 = vpop.f32.mrb[5].mxu0 }
 0x294   :  { %v2343_v21 = vpop.f32.mrb[6].mxu0 }
 0x295   :  { %v2878_v22 = vpop.f32.mrb[7].mxu0 }
 0x2b2   :  { %v2850_v23 = vpop.f32.mrb[24].mxu1 }
 0x2b3   :  { %v2851_v25 = vpop.f32.mrb[25].mxu1 }
 0x2b4   :  { %v2852_v26 = vadd.f32 %v2851_v25, %v2850_v23  ;;  %v2853_v27 = vpop.f32.mrb[26].mxu1 }
 0x2b5   :  { %v2854_v28 = vpop.f32.mrb[27].mxu1 }
 0x2b6   :  { %v2301_v29 = vadd.f32 %v2852_v26, %v2695_v24 }
 0x2b8   :  { %v2341_v3 = vadd.f32 %v2340_v19, %v2301_v29 }
 0x2ba   :  { %v2346_v30 = vmax.f32 %v2341_v3, 0.0 }
 0x2bc   :  { %v2347_v31 = vpack.c.bf16 %v2346_v30, %v2346_v30 }
 0x2be   :  { %2890 = vmatmul.mubr.msk.bf16.vlgmr.msra.gmra.mrb[28].mxu1 %vm2395_vm2, %v2347_v31 }
 0x391   :  { %v2433_v33 = vpop.f32.mrb[28].mxu1 }
 0x392   :  { %v2434_v34 = vadd.f32 %v2717_v32, %v2433_v33  ;;  %v2891_v35 = vpop.f32.mrb[29].mxu1 }
 0x393   :  { %v2436_v36 = vpop.f32.mrb[30].mxu1 }
 0x394   :  { %2440 = vst.msk [vmem:[%s4198_s7] sm:$0xff] %vm2439_vm3, %v2434_v34  ;;  %v2892_v37 = vpop.f32.mrb[31].mxu1 }

</bundles_post_ra>
